<compile_context>
chip_gen: v7x
topology: tpu7x:2x2x1
jax: 0.10.0
libtpu: 0.0.40
codegen_flags: <defaults>
</compile_context>

<pallas_src>
import functools
import math

import jax
import jax.numpy as jnp
from jax.experimental import pallas as pl
from jax.experimental.pallas import tpu as pltpu


_BN_EPS = 1e-5


# ----------------------------------------------------------------------------
# In-kernel helpers
# ----------------------------------------------------------------------------
def _bn_rows(h):
    """Train-mode BatchNorm (gamma=1, beta=0) over the row axis of (M, C)."""
    mean = jnp.mean(h, axis=0, keepdims=True)
    c = h - mean
    var = jnp.mean(c * c, axis=0, keepdims=True)
    return c * jax.lax.rsqrt(var + _BN_EPS)


# ----------------------------------------------------------------------------
# Fused FC stack kernel:  x -> [dense -> BN -> (relu)] * n  in one VMEM pass
# ----------------------------------------------------------------------------
@functools.lru_cache(maxsize=None)
def _fc_stack_call(m, dims, acts):
    n = len(acts)

    def kernel(*refs):
        x_ref = refs[0]
        w_refs = refs[1:1 + n]
        o_ref = refs[1 + n]
        h = x_ref[...]
        for i in range(n):
            # Bias intentionally omitted: the following affine-free BN
            # subtracts the per-channel mean, which cancels any constant
            # per-channel bias exactly.
            h = jnp.dot(h, w_refs[i][...], preferred_element_type=jnp.float32)
            h = _bn_rows(h)
            if acts[i]:
                h = jnp.maximum(h, 0.0)
        o_ref[...] = h

    # Single block: M = B*T*N and all channel dims are tiny, so the whole
    # stack (activations + weights) lives in VMEM for one kernel invocation.
    return pl.pallas_call(
        kernel,
        out_shape=jax.ShapeDtypeStruct((m, dims[-1]), jnp.float32),
    )


def fc_apply(x, weights, acts):
    """Apply a fused (dense -> BN -> optional ReLU)* stack over the last axis."""
    lead = x.shape[:-1]
    cin = int(x.shape[-1])
    weights = tuple(weights)
    acts = tuple(bool(a) for a in acts)
    dims = (cin,) + tuple(int(w.shape[1]) for w in weights)
    x2 = x.reshape(-1, cin).astype(jnp.float32)
    y = _fc_stack_call(int(x2.shape[0]), dims, acts)(x2, *weights)
    return y.reshape(lead + (dims[-1],))


def _ws(layers):
    return tuple(w for (w, _b) in layers)


# ----------------------------------------------------------------------------
# Fused gated-fusion kernel:  sigmoid gate + 2-layer FC, all in VMEM
# ----------------------------------------------------------------------------
@functools.lru_cache(maxsize=None)
def _gated_call(m, d):
    def kernel(hs_ref, ht_ref, wxs_ref, wxt_ref, wh1_ref, wh2_ref, o_ref):
        hs = hs_ref[...]
        ht = ht_ref[...]
        xs = _bn_rows(jnp.dot(hs, wxs_ref[...],
                              preferred_element_type=jnp.float32))
        xt = _bn_rows(jnp.dot(ht, wxt_ref[...],
                              preferred_element_type=jnp.float32))
        z = 1.0 / (1.0 + jnp.exp(-(xs + xt)))
        h = z * hs + (1.0 - z) * ht
        h = jnp.maximum(
            _bn_rows(jnp.dot(h, wh1_ref[...],
                             preferred_element_type=jnp.float32)), 0.0)
        h = _bn_rows(jnp.dot(h, wh2_ref[...],
                             preferred_element_type=jnp.float32))
        o_ref[...] = h

    return pl.pallas_call(
        kernel,
        out_shape=jax.ShapeDtypeStruct((m, d), jnp.float32),
    )


def gated_fusion(p, HS, HT):
    lead = HS.shape[:-1]
    d = int(HS.shape[-1])
    hs2 = HS.reshape(-1, d).astype(jnp.float32)
    ht2 = HT.reshape(-1, d).astype(jnp.float32)
    wxs = p["xs"][0][0]
    wxt = p["xt"][0][0]
    wh1 = p["h"][0][0]
    wh2 = p["h"][1][0]
    y = _gated_call(int(hs2.shape[0]), d)(hs2, ht2, wxs, wxt, wh1, wh2)
    return y.reshape(lead + (d,))


# ----------------------------------------------------------------------------
# Blocked multi-group attention kernel
# ----------------------------------------------------------------------------
@functools.lru_cache(maxsize=None)
def _attn_call(n_blocks, gb, lq, lk, d):
    scale = 1.0 / math.sqrt(float(d))

    def kernel(q_ref, k_ref, v_ref, o_ref):
        q = q_ref[...]                      # (gb, Lq, d)
        k = k_ref[...]                      # (gb, Lk, d)
        v = v_ref[...]                      # (gb, Lk, d)
        s = jnp.einsum("gqd,gkd->gqk", q, k,
                       preferred_element_type=jnp.float32) * scale
        s = s - jnp.max(s, axis=-1, keepdims=True)
        p = jnp.exp(s)
        denom = jnp.sum(p, axis=-1, keepdims=True)
        p = p * pl.reciprocal(denom, approx=True)   # EUP slot, frees VALU
        o_ref[...] = jnp.einsum("gqk,gkd->gqd", p, v,
                                preferred_element_type=jnp.float32)

    return pl.pallas_call(
        kernel,
        out_shape=jax.ShapeDtypeStruct((n_blocks * gb, lq, d), jnp.float32),
        grid=(n_blocks,),
        in_specs=[
            pl.BlockSpec((gb, lq, d), lambda i: (i, 0, 0)),
            pl.BlockSpec((gb, lk, d), lambda i: (i, 0, 0)),
            pl.BlockSpec((gb, lk, d), lambda i: (i, 0, 0)),
        ],
        out_specs=pl.BlockSpec((gb, lq, d), lambda i: (i, 0, 0)),
        compiler_params=pltpu.CompilerParams(
            dimension_semantics=("parallel",)
        ),
    )


def pallas_attention(q, k, v, max_groups_per_block=128):
    """q: (G, Lq, d), k/v: (G, Lk, d) -> softmax(qk^T/sqrt(d)) v : (G, Lq, d).

    A whole block of up to `max_groups_per_block` groups (heads x batch x
    position) is processed per grid step; zero-padded groups (if any) produce
    finite zeros and are sliced off.
    """
    g, lq, d = (int(s) for s in q.shape)
    lk = int(k.shape[1])
    gb = min(g, max_groups_per_block)
    n_blocks = pl.cdiv(g, gb)
    g_pad = n_blocks * gb
    if g_pad != g:
        pad = ((0, g_pad - g), (0, 0), (0, 0))
        q = jnp.pad(q, pad)
        k = jnp.pad(k, pad)
        v = jnp.pad(v, pad)
    out = _attn_call(n_blocks, gb, lq, lk, d)(
        q.astype(jnp.float32), k.astype(jnp.float32), v.astype(jnp.float32)
    )
    return out[:g]


# ----------------------------------------------------------------------------
# GMAN building blocks
# ----------------------------------------------------------------------------
def st_embedding(p, SE, TE, t_onehot):
    # SE: (N, D_se), TE: (B, steps, 2)
    se = fc_apply(SE[None, None], _ws(p["fc_se"]), (True, False))  # (1,1,N,D)
    day = jax.nn.one_hot(
        jnp.mod(TE[..., 0].astype(jnp.int32), 7), 7, dtype=jnp.float32)
    tod = jax.nn.one_hot(
        jnp.mod(TE[..., 1].astype(jnp.int32), t_onehot), t_onehot,
        dtype=jnp.float32)
    te = jnp.concatenate([day, tod], axis=-1)[:, :, None, :]   # (B,steps,1,7+T)
    te = fc_apply(te, _ws(p["fc_te"]), (True, False))           # (B,steps,1,D)
    return se + te                                               # (B,steps,N,D)


def _split_heads(x, K):
    # (B, T, N, D) -> (K*B, T, N, d)
    return jnp.concatenate(jnp.split(x, K, axis=-1), axis=0)


def _merge_heads(x, K):
    # (K*B, T, N, d) -> (B, T, N, D)
    return jnp.concatenate(jnp.split(x, K, axis=0), axis=-1)


def _qkv_project(p, h):
    """Fused Q/K/V projection: one matmul over concatenated weights.

    BN is per-channel and ReLU is elementwise, so BN/ReLU on the concatenated
    (M, 3D) slab is exactly equal to the three independent projections, while
    giving a 3x lane-denser store."""
    wq, wk, wv = p["q"][0][0], p["k"][0][0], p["v"][0][0]
    d_out = int(wq.shape[1])
    w = jnp.concatenate([wq, wk, wv], axis=1)        # (Cin, 3D)
    y = fc_apply(h, (w,), (True,))
    return y[..., :d_out], y[..., d_out:2 * d_out], y[..., 2 * d_out:]


def spatial_attention(p, X, STE, K, d):
    B, T, N, _ = X.shape
    h = jnp.concatenate([X, STE], axis=-1)
    q, k, v = _qkv_project(p, h)                     # (B,T,N,D) each
    q = _split_heads(q, K)
    k = _split_heads(k, K)
    v = _split_heads(v, K)
    KB = K * B
    out = pallas_attention(
        q.reshape(KB * T, N, d),
        k.reshape(KB * T, N, d),
        v.reshape(KB * T, N, d),
    ).reshape(KB, T, N, d)
    return fc_apply(_merge_heads(out, K), _ws(p["o"]), (True,))


def temporal_attention(p, X, STE, K, d):
    B, T, N, _ = X.shape
    h = jnp.concatenate([X, STE], axis=-1)
    q, k, v = _qkv_project(p, h)
    q = _split_heads(q, K)
    k = _split_heads(k, K)
    v = _split_heads(v, K)
    KB = K * B
    # TODO(synk): head transposes/reshapes stay in XLA (inside the single jit);
    # moving them into the attention kernel via index_map is not worth it at
    # these shapes.
    qt = q.transpose(0, 2, 1, 3).reshape(KB * N, T, d)
    kt = k.transpose(0, 2, 1, 3).reshape(KB * N, T, d)
    vt = v.transpose(0, 2, 1, 3).reshape(KB * N, T, d)
    out = pallas_attention(qt, kt, vt).reshape(KB, N, T, d).transpose(0, 2, 1, 3)
    return fc_apply(_merge_heads(out, K), _ws(p["o"]), (True,))


def st_att_block(p, X, STE, K, d):
    HS = spatial_attention(p["spatial"], X, STE, K, d)
    HT = temporal_attention(p["temporal"], X, STE, K, d)
    H = gated_fusion(p["gated"], HS, HT)
    return X + H


def transform_attention(p, X, STE_his, STE_pred, K, d):
    B, Th, N, _ = X.shape
    Tp = STE_pred.shape[1]
    q = _split_heads(fc_apply(STE_pred, _ws(p["q"]), (True,)), K)  # (KB,Tp,N,d)
    k = _split_heads(fc_apply(STE_his, _ws(p["k"]), (True,)), K)   # (KB,Th,N,d)
    v = _split_heads(fc_apply(X, _ws(p["v"]), (True,)), K)         # (KB,Th,N,d)
    KB = K * B
    qt = q.transpose(0, 2, 1, 3).reshape(KB * N, Tp, d)
    kt = k.transpose(0, 2, 1, 3).reshape(KB * N, Th, d)
    vt = v.transpose(0, 2, 1, 3).reshape(KB * N, Th, d)
    out = pallas_attention(qt, kt, vt).reshape(KB, N, Tp, d).transpose(0, 2, 1, 3)
    return fc_apply(_merge_heads(out, K), _ws(p["o"]), (True,))


def gman_forward(params, cfg, X, TE):
    K, d, H = cfg["K"], cfg["d"], cfg["num_his"]
    X = fc_apply(X, _ws(params["fc1"]), (True, False))          # (B, H, N, D)
    STE = st_embedding(params["ste"], params["SE"], TE, cfg["T_onehot"])
    STE_his, STE_pred = STE[:, :H], STE[:, H:]
    for blk in params["enc"]:
        X = st_att_block(blk, X, STE_his, K, d)
    X = transform_attention(params["trans"], X, STE_his, STE_pred, K, d)
    for blk in params["dec"]:
        X = st_att_block(blk, X, STE_pred, K, d)
    return fc_apply(X, _ws(params["fc2"]), (True, False))        # (B, 1, N, out)


def gman_sim_forward(params, cfg, X, time_mod):
    """Reproduces Gman_sim.forward(X, time) (mod='train'); rollout via scan."""
    B, temporal, N, feat = X.shape
    H, I0 = cfg["num_his"], cfg["init_length"]
    assert feat == cfg["input_size"]
    assert temporal - 1 > I0
    steps = temporal - I0 - 1

    if H <= I0:
        inp0 = X[:, I0 - H:I0]
    else:
        pad = jnp.zeros((B, H - I0, N, feat), X.dtype)
        inp0 = jnp.concatenate([pad, X[:, :I0]], axis=1)

    te0 = params["base_TE"][0, :, 0]
    te1_0 = params["base_TE"][0, :, 1]
    xs = jnp.moveaxis(X[:, :steps], 1, 0)            # (steps, B, N, feat)

    def step(carry, x_i):
        inp, te1 = carry
        # reproduce the PyTorch in-place accumulation `TE[:, :, 1] += time % cycle`
        te1 = te1 + time_mod
        TE = jnp.broadcast_to(
            jnp.stack([te0, te1], axis=-1)[None], (B, H + 1, 2))
        tmp = gman_forward(params, cfg, inp, TE)     # (B, 1, N, out)
        # shift history; in train mode the whole new frame comes from X[:, i]
        new_inp = jnp.concatenate([inp[:, 1:], x_i[:, None]], axis=1)
        return (new_inp, te1), tmp[:, 0]

    _, outs = jax.lax.scan(step, (inp0, te1_0), xs)
    return jnp.moveaxis(outs, 0, 1)                  # (B, steps, N, out)


# ----------------------------------------------------------------------------
# Deterministic parameter initialization
# ----------------------------------------------------------------------------
def init_fc(key, dims, units, biases=None):
    # Biases are created for parity with the PyTorch module but never used:
    # every FC layer is followed by an affine-free BatchNorm, which cancels
    # any constant per-channel bias exactly.
    if biases is None:
        biases = [True] * len(units)
    layers = []
    keys = jax.random.split(key, len(units))
    for k, cin, cout, use_b in zip(keys, dims, units, biases):
        kw, kb = jax.random.split(k)
        bound = 1.0 / math.sqrt(cin)
        w = jax.random.uniform(kw, (cin, cout), jnp.float32, -bound, bound)
        b = (
            jax.random.uniform(kb, (cout,), jnp.float32, -bound, bound)
            if use_b
            else jnp.zeros((cout,), jnp.float32)
        )
        layers.append((w, b))
    return layers


def init_attention(key, in_dim, D):
    kq, kk, kv, ko = jax.random.split(key, 4)
    return {
        "q": init_fc(kq, [in_dim], [D]),
        "k": init_fc(kk, [in_dim], [D]),
        "v": init_fc(kv, [in_dim], [D]),
        "o": init_fc(ko, [D], [D]),
    }


def init_gated(key, D):
    k1, k2, k3 = jax.random.split(key, 3)
    return {
        "xs": init_fc(k1, [D], [D], [False]),
        "xt": init_fc(k2, [D], [D], [True]),
        "h": init_fc(k3, [D, D], [D, D]),
    }


def init_st_block(key, D):
    ks, kt, kg = jax.random.split(key, 3)
    return {
        "spatial": init_attention(ks, 2 * D, D),
        "temporal": init_attention(kt, 2 * D, D),
        "gated": init_gated(kg, D),
    }


def init_params(key, cfg):
    D = cfg["K"] * cfg["d"]
    N, H = cfg["num_vertex"], cfg["num_his"]
    keys = jax.random.split(key, 12)
    SE = 0.1 * jax.random.normal(keys[0], (N, cfg["se_dims"]), jnp.float32)
    base_TE = jnp.concatenate(
        [
            jnp.zeros((H + 1, 1), jnp.float32),
            jnp.arange(H + 1, dtype=jnp.float32)[:, None],
        ],
        axis=1,
    )[None]
    return {
        "SE": SE,
        "base_TE": base_TE,
        "fc1": init_fc(keys[1], [cfg["input_size"], D], [D, D]),
        "fc2": init_fc(keys[2], [D, D], [D, cfg["output_size"]]),
        "ste": {
            "fc_se": init_fc(keys[3], [cfg["se_dims"], D], [D, D]),
            "fc_te": init_fc(keys[4], [7 + cfg["T_onehot"], D], [D, D]),
        },
        "enc": [init_st_block(keys[5 + l], cfg["K"] * cfg["d"])
                for l in range(cfg["L"])],
        "dec": [init_st_block(keys[7 + l], cfg["K"] * cfg["d"])
                for l in range(cfg["L"])],
        "trans": init_attention(keys[9], D, D),
    }


# ----------------------------------------------------------------------------
# Main
# ----------------------------------------------------------------------------
if __name__ == "__main__":
    cfg = dict(
        num_his=3,        # args['num_his']     (history_length)
        init_length=3,    # args['init_length']
        input_size=2,     # args['input_size']
        output_size=1,    # args['output_size']
        cycle=90,         # args['cycle']
        L=1,              # GMAN encoder/decoder depth
        K=2,              # attention heads
        d=8,              # per-head dim   (D = K*d = 16)
        num_vertex=8,     # cells / graph nodes
        se_dims=16,       # spatial-embedding dim from SE_file
        T_onehot=90,      # time-of-day one-hot size (= cycle)
    )

    key = jax.random.PRNGKey(0)
    k_params, k_x = jax.random.split(key)
    params = init_params(k_params, cfg)

    batch, temporal = 2, 6
    X = jax.random.normal(
        k_x, (batch, temporal, cfg["num_vertex"], cfg["input_size"]),
        jnp.float32)
    time = 17  # scalar simulation time
    time_mod = float(time % cfg["cycle"])

    # Single jit over the whole rollout: one dispatch, scan over time steps.
    fwd = jax.jit(lambda p, x, t: gman_sim_forward(p, cfg, x, t))
    out = fwd(params, X, time_mod)
    out = jax.block_until_ready(out)

    expected = (batch, temporal - cfg["init_length"] - 1,
                cfg["num_vertex"], cfg["output_size"])
    assert out.shape == expected, (out.shape, expected)
    assert bool(jnp.all(jnp.isfinite(out)))
    # TODO(synk): the inner GMAN module definition was not provided with
    # Gman_sim; the canonical GMAN (Zheng et al. 2020) architecture was used.
    print("KERNEL_OK")
</pallas_src>

<mosaic_0001>
module attributes {stable_mosaic.version = 11 : i64} {
  func.func @kernel(%arg0: memref<8x16xf32, #tpu.memory_space<vmem>>, %arg1: memref<16x16xf32, #tpu.memory_space<vmem>>, %arg2: memref<16x16xf32, #tpu.memory_space<vmem>>, %arg3: memref<8x16xf32, #tpu.memory_space<vmem>>) attributes {dimension_semantics = [], scalar_prefetch = 0 : i64, scratch_operands = 0 : i64, tpu.core_type = #tpu.core_type<tc>} {
    %c0 = arith.constant 0 : index
    %c0_0 = arith.constant 0 : index
    %0 = vector.load %arg0[%c0, %c0_0] : memref<8x16xf32, #tpu.memory_space<vmem>>, vector<8x16xf32>
    %c0_1 = arith.constant 0 : index
    %c0_2 = arith.constant 0 : index
    %1 = vector.load %arg1[%c0_1, %c0_2] : memref<16x16xf32, #tpu.memory_space<vmem>>, vector<16x16xf32>
    %cst = arith.constant dense<0.000000e+00> : vector<8x16xf32>
    %2 = tpu.matmul %0, %1, %cst {dimension_numbers = #tpu.dot_dimension_numbers<[1], [0], [0], [1], [0, 0, 1, 1], [], []>} : vector<8x16xf32>, vector<16x16xf32>, vector<8x16xf32> -> vector<8x16xf32>
    %cst_3 = arith.constant dense<0.000000e+00> : vector<16xf32>
    %3 = vector.multi_reduction <add>, %2, %cst_3 [0] : vector<8x16xf32> to vector<16xf32>
    %4 = vector.shape_cast %3 : vector<16xf32> to vector<1x16xf32>
    %cst_4 = arith.constant 8.000000e+00 : f32
    %5 = vector.broadcast %cst_4 : f32 to vector<1x16xf32>
    %6 = arith.divf %4, %5 : vector<1x16xf32>
    %7 = vector.broadcast %6 : vector<1x16xf32> to vector<8x16xf32>
    %8 = arith.subf %2, %7 : vector<8x16xf32>
    %9 = arith.mulf %8, %8 : vector<8x16xf32>
    %cst_5 = arith.constant dense<0.000000e+00> : vector<16xf32>
    %10 = vector.multi_reduction <add>, %9, %cst_5 [0] : vector<8x16xf32> to vector<16xf32>
    %11 = vector.shape_cast %10 : vector<16xf32> to vector<1x16xf32>
    %cst_6 = arith.constant 8.000000e+00 : f32
    %12 = vector.broadcast %cst_6 : f32 to vector<1x16xf32>
    %13 = arith.divf %11, %12 : vector<1x16xf32>
    %cst_7 = arith.constant 9.99999974E-6 : f32
    %14 = vector.broadcast %cst_7 : f32 to vector<1x16xf32>
    %15 = arith.addf %13, %14 : vector<1x16xf32>
    %16 = math.rsqrt %15 : vector<1x16xf32>
    %17 = vector.broadcast %16 : vector<1x16xf32> to vector<8x16xf32>
    %18 = arith.mulf %8, %17 : vector<8x16xf32>
    %cst_8 = arith.constant 0.000000e+00 : f32
    %19 = vector.broadcast %cst_8 : f32 to vector<8x16xf32>
    %20 = arith.maximumf %18, %19 : vector<8x16xf32>
    %c0_9 = arith.constant 0 : index
    %c0_10 = arith.constant 0 : index
    %21 = vector.load %arg2[%c0_9, %c0_10] : memref<16x16xf32, #tpu.memory_space<vmem>>, vector<16x16xf32>
    %cst_11 = arith.constant dense<0.000000e+00> : vector<8x16xf32>
    %22 = tpu.matmul %20, %21, %cst_11 {dimension_numbers = #tpu.dot_dimension_numbers<[1], [0], [0], [1], [0, 0, 1, 1], [], []>} : vector<8x16xf32>, vector<16x16xf32>, vector<8x16xf32> -> vector<8x16xf32>
    %cst_12 = arith.constant dense<0.000000e+00> : vector<16xf32>
    %23 = vector.multi_reduction <add>, %22, %cst_12 [0] : vector<8x16xf32> to vector<16xf32>
    %24 = vector.shape_cast %23 : vector<16xf32> to vector<1x16xf32>
    %cst_13 = arith.constant 8.000000e+00 : f32
    %25 = vector.broadcast %cst_13 : f32 to vector<1x16xf32>
    %26 = arith.divf %24, %25 : vector<1x16xf32>
    %27 = vector.broadcast %26 : vector<1x16xf32> to vector<8x16xf32>
    %28 = arith.subf %22, %27 : vector<8x16xf32>
    %29 = arith.mulf %28, %28 : vector<8x16xf32>
    %cst_14 = arith.constant dense<0.000000e+00> : vector<16xf32>
    %30 = vector.multi_reduction <add>, %29, %cst_14 [0] : vector<8x16xf32> to vector<16xf32>
    %31 = vector.shape_cast %30 : vector<16xf32> to vector<1x16xf32>
    %cst_15 = arith.constant 8.000000e+00 : f32
    %32 = vector.broadcast %cst_15 : f32 to vector<1x16xf32>
    %33 = arith.divf %31, %32 : vector<1x16xf32>
    %cst_16 = arith.constant 9.99999974E-6 : f32
    %34 = vector.broadcast %cst_16 : f32 to vector<1x16xf32>
    %35 = arith.addf %33, %34 : vector<1x16xf32>
    %36 = math.rsqrt %35 : vector<1x16xf32>
    %37 = vector.broadcast %36 : vector<1x16xf32> to vector<8x16xf32>
    %38 = arith.mulf %28, %37 : vector<8x16xf32>
    %c0_17 = arith.constant 0 : index
    %c0_18 = arith.constant 0 : index
    %39 = vector.load %arg3[%c0_17, %c0_18] : memref<8x16xf32, #tpu.memory_space<vmem>>, vector<8x16xf32>
    tpu.vector_store %arg3[%c0_17, %c0_18], %38 {strides = array<i32>} : memref<8x16xf32, #tpu.memory_space<vmem>>, vector<8x16xf32>,
    return
  }
}

module attributes {stable_mosaic.version = 11 : i64} {
  func.func @kernel(%arg0: memref<8x97xf32, #tpu.memory_space<vmem>>, %arg1: memref<97x16xf32, #tpu.memory_space<vmem>>, %arg2: memref<16x16xf32, #tpu.memory_space<vmem>>, %arg3: memref<8x16xf32, #tpu.memory_space<vmem>>) attributes {dimension_semantics = [], scalar_prefetch = 0 : i64, scratch_operands = 0 : i64, tpu.core_type = #tpu.core_type<tc>} {
    %c0 = arith.constant 0 : index
    %c0_0 = arith.constant 0 : index
    %0 = vector.load %arg0[%c0, %c0_0] : memref<8x97xf32, #tpu.memory_space<vmem>>, vector<8x97xf32>
    %c0_1 = arith.constant 0 : index
    %c0_2 = arith.constant 0 : index
    %1 = vector.load %arg1[%c0_1, %c0_2] : memref<97x16xf32, #tpu.memory_space<vmem>>, vector<97x16xf32>
    %cst = arith.constant dense<0.000000e+00> : vector<8x16xf32>
    %2 = tpu.matmul %0, %1, %cst {dimension_numbers = #tpu.dot_dimension_numbers<[1], [0], [0], [1], [0, 0, 1, 1], [], []>} : vector<8x97xf32>, vector<97x16xf32>, vector<8x16xf32> -> vector<8x16xf32>
    %cst_3 = arith.constant dense<0.000000e+00> : vector<16xf32>
    %3 = vector.multi_reduction <add>, %2, %cst_3 [0] : vector<8x16xf32> to vector<16xf32>
    %4 = vector.shape_cast %3 : vector<16xf32> to vector<1x16xf32>
    %cst_4 = arith.constant 8.000000e+00 : f32
    %5 = vector.broadcast %cst_4 : f32 to vector<1x16xf32>
    %6 = arith.divf %4, %5 : vector<1x16xf32>
    %7 = vector.broadcast %6 : vector<1x16xf32> to vector<8x16xf32>
    %8 = arith.subf %2, %7 : vector<8x16xf32>
    %9 = arith.mulf %8, %8 : vector<8x16xf32>
    %cst_5 = arith.constant dense<0.000000e+00> : vector<16xf32>
    %10 = vector.multi_reduction <add>, %9, %cst_5 [0] : vector<8x16xf32> to vector<16xf32>
    %11 = vector.shape_cast %10 : vector<16xf32> to vector<1x16xf32>
    %cst_6 = arith.constant 8.000000e+00 : f32
    %12 = vector.broadcast %cst_6 : f32 to vector<1x16xf32>
    %13 = arith.divf %11, %12 : vector<1x16xf32>
    %cst_7 = arith.constant 9.99999974E-6 : f32
    %14 = vector.broadcast %cst_7 : f32 to vector<1x16xf32>
    %15 = arith.addf %13, %14 : vector<1x16xf32>
    %16 = math.rsqrt %15 : vector<1x16xf32>
    %17 = vector.broadcast %16 : vector<1x16xf32> to vector<8x16xf32>
    %18 = arith.mulf %8, %17 : vector<8x16xf32>
    %cst_8 = arith.constant 0.000000e+00 : f32
    %19 = vector.broadcast %cst_8 : f32 to vector<8x16xf32>
    %20 = arith.maximumf %18, %19 : vector<8x16xf32>
    %c0_9 = arith.constant 0 : index
    %c0_10 = arith.constant 0 : index
    %21 = vector.load %arg2[%c0_9, %c0_10] : memref<16x16xf32, #tpu.memory_space<vmem>>, vector<16x16xf32>
    %cst_11 = arith.constant dense<0.000000e+00> : vector<8x16xf32>
    %22 = tpu.matmul %20, %21, %cst_11 {dimension_numbers = #tpu.dot_dimension_numbers<[1], [0], [0], [1], [0, 0, 1, 1], [], []>} : vector<8x16xf32>, vector<16x16xf32>, vector<8x16xf32> -> vector<8x16xf32>
    %cst_12 = arith.constant dense<0.000000e+00> : vector<16xf32>
    %23 = vector.multi_reduction <add>, %22, %cst_12 [0] : vector<8x16xf32> to vector<16xf32>
    %24 = vector.shape_cast %23 : vector<16xf32> to vector<1x16xf32>
    %cst_13 = arith.constant 8.000000e+00 : f32
    %25 = vector.broadcast %cst_13 : f32 to vector<1x16xf32>
    %26 = arith.divf %24, %25 : vector<1x16xf32>
    %27 = vector.broadcast %26 : vector<1x16xf32> to vector<8x16xf32>
    %28 = arith.subf %22, %27 : vector<8x16xf32>
    %29 = arith.mulf %28, %28 : vector<8x16xf32>
    %cst_14 = arith.constant dense<0.000000e+00> : vector<16xf32>
    %30 = vector.multi_reduction <add>, %29, %cst_14 [0] : vector<8x16xf32> to vector<16xf32>
    %31 = vector.shape_cast %30 : vector<16xf32> to vector<1x16xf32>
    %cst_15 = arith.constant 8.000000e+00 : f32
    %32 = vector.broadcast %cst_15 : f32 to vector<1x16xf32>
    %33 = arith.divf %31, %32 : vector<1x16xf32>
    %cst_16 = arith.constant 9.99999974E-6 : f32
    %34 = vector.broadcast %cst_16 : f32 to vector<1x16xf32>
    %35 = arith.addf %33, %34 : vector<1x16xf32>
    %36 = math.rsqrt %35 : vector<1x16xf32>
    %37 = vector.broadcast %36 : vector<1x16xf32> to vector<8x16xf32>
    %38 = arith.mulf %28, %37 : vector<8x16xf32>
    %c0_17 = arith.constant 0 : index
    %c0_18 = arith.constant 0 : index
    %39 = vector.load %arg3[%c0_17, %c0_18] : memref<8x16xf32, #tpu.memory_space<vmem>>, vector<8x16xf32>
    tpu.vector_store %arg3[%c0_17, %c0_18], %38 {strides = array<i32>} : memref<8x16xf32, #tpu.memory_space<vmem>>, vector<8x16xf32>,
    return
  }
}

module attributes {stable_mosaic.version = 11 : i64} {
  func.func @kernel(%arg0: memref<48x2xf32, #tpu.memory_space<vmem>>, %arg1: memref<2x16xf32, #tpu.memory_space<vmem>>, %arg2: memref<16x16xf32, #tpu.memory_space<vmem>>, %arg3: memref<48x16xf32, #tpu.memory_space<vmem>>) attributes {dimension_semantics = [], scalar_prefetch = 0 : i64, scratch_operands = 0 : i64, tpu.core_type = #tpu.core_type<tc>} {
    %c0 = arith.constant 0 : index
    %c0_0 = arith.constant 0 : index
    %0 = vector.load %arg0[%c0, %c0_0] : memref<48x2xf32, #tpu.memory_space<vmem>>, vector<48x2xf32>
    %c0_1 = arith.constant 0 : index
    %c0_2 = arith.constant 0 : index
    %1 = vector.load %arg1[%c0_1, %c0_2] : memref<2x16xf32, #tpu.memory_space<vmem>>, vector<2x16xf32>
    %cst = arith.constant dense<0.000000e+00> : vector<48x16xf32>
    %2 = tpu.matmul %0, %1, %cst {dimension_numbers = #tpu.dot_dimension_numbers<[1], [0], [0], [1], [0, 0, 1, 1], [], []>} : vector<48x2xf32>, vector<2x16xf32>, vector<48x16xf32> -> vector<48x16xf32>
    %cst_3 = arith.constant dense<0.000000e+00> : vector<16xf32>
    %3 = vector.multi_reduction <add>, %2, %cst_3 [0] : vector<48x16xf32> to vector<16xf32>
    %4 = vector.shape_cast %3 : vector<16xf32> to vector<1x16xf32>
    %cst_4 = arith.constant 4.800000e+01 : f32
    %5 = vector.broadcast %cst_4 : f32 to vector<1x16xf32>
    %6 = arith.divf %4, %5 : vector<1x16xf32>
    %7 = vector.broadcast %6 : vector<1x16xf32> to vector<48x16xf32>
    %8 = arith.subf %2, %7 : vector<48x16xf32>
    %9 = arith.mulf %8, %8 : vector<48x16xf32>
    %cst_5 = arith.constant dense<0.000000e+00> : vector<16xf32>
    %10 = vector.multi_reduction <add>, %9, %cst_5 [0] : vector<48x16xf32> to vector<16xf32>
    %11 = vector.shape_cast %10 : vector<16xf32> to vector<1x16xf32>
    %cst_6 = arith.constant 4.800000e+01 : f32
    %12 = vector.broadcast %cst_6 : f32 to vector<1x16xf32>
    %13 = arith.divf %11, %12 : vector<1x16xf32>
    %cst_7 = arith.constant 9.99999974E-6 : f32
    %14 = vector.broadcast %cst_7 : f32 to vector<1x16xf32>
    %15 = arith.addf %13, %14 : vector<1x16xf32>
    %16 = math.rsqrt %15 : vector<1x16xf32>
    %17 = vector.broadcast %16 : vector<1x16xf32> to vector<48x16xf32>
    %18 = arith.mulf %8, %17 : vector<48x16xf32>
    %cst_8 = arith.constant 0.000000e+00 : f32
    %19 = vector.broadcast %cst_8 : f32 to vector<48x16xf32>
    %20 = arith.maximumf %18, %19 : vector<48x16xf32>
    %c0_9 = arith.constant 0 : index
    %c0_10 = arith.constant 0 : index
    %21 = vector.load %arg2[%c0_9, %c0_10] : memref<16x16xf32, #tpu.memory_space<vmem>>, vector<16x16xf32>
    %cst_11 = arith.constant dense<0.000000e+00> : vector<48x16xf32>
    %22 = tpu.matmul %20, %21, %cst_11 {dimension_numbers = #tpu.dot_dimension_numbers<[1], [0], [0], [1], [0, 0, 1, 1], [], []>} : vector<48x16xf32>, vector<16x16xf32>, vector<48x16xf32> -> vector<48x16xf32>
    %cst_12 = arith.constant dense<0.000000e+00> : vector<16xf32>
    %23 = vector.multi_reduction <add>, %22, %cst_12 [0] : vector<48x16xf32> to vector<16xf32>
    %24 = vector.shape_cast %23 : vector<16xf32> to vector<1x16xf32>
    %cst_13 = arith.constant 4.800000e+01 : f32
    %25 = vector.broadcast %cst_13 : f32 to vector<1x16xf32>
    %26 = arith.divf %24, %25 : vector<1x16xf32>
    %27 = vector.broadcast %26 : vector<1x16xf32> to vector<48x16xf32>
    %28 = arith.subf %22, %27 : vector<48x16xf32>
    %29 = arith.mulf %28, %28 : vector<48x16xf32>
    %cst_14 = arith.constant dense<0.000000e+00> : vector<16xf32>
    %30 = vector.multi_reduction <add>, %29, %cst_14 [0] : vector<48x16xf32> to vector<16xf32>
    %31 = vector.shape_cast %30 : vector<16xf32> to vector<1x16xf32>
    %cst_15 = arith.constant 4.800000e+01 : f32
    %32 = vector.broadcast %cst_15 : f32 to vector<1x16xf32>
    %33 = arith.divf %31, %32 : vector<1x16xf32>
    %cst_16 = arith.constant 9.99999974E-6 : f32
    %34 = vector.broadcast %cst_16 : f32 to vector<1x16xf32>
    %35 = arith.addf %33, %34 : vector<1x16xf32>
    %36 = math.rsqrt %35 : vector<1x16xf32>
    %37 = vector.broadcast %36 : vector<1x16xf32> to vector<48x16xf32>
    %38 = arith.mulf %28, %37 : vector<48x16xf32>
    %c0_17 = arith.constant 0 : index
    %c0_18 = arith.constant 0 : index
    %39 = vector.load %arg3[%c0_17, %c0_18] : memref<48x16xf32, #tpu.memory_space<vmem>>, vector<48x16xf32>
    tpu.vector_store %arg3[%c0_17, %c0_18], %38 {strides = array<i32>} : memref<48x16xf32, #tpu.memory_space<vmem>>, vector<48x16xf32>,
    return
  }
}

module attributes {stable_mosaic.version = 11 : i64} {
  func.func @kernel(%arg0: memref<48x32xf32, #tpu.memory_space<vmem>>, %arg1: memref<32x48xf32, #tpu.memory_space<vmem>>, %arg2: memref<48x48xf32, #tpu.memory_space<vmem>>) attributes {dimension_semantics = [], scalar_prefetch = 0 : i64, scratch_operands = 0 : i64, tpu.core_type = #tpu.core_type<tc>} {
    %c0 = arith.constant 0 : index
    %c0_0 = arith.constant 0 : index
    %0 = vector.load %arg0[%c0, %c0_0] : memref<48x32xf32, #tpu.memory_space<vmem>>, vector<48x32xf32>
    %c0_1 = arith.constant 0 : index
    %c0_2 = arith.constant 0 : index
    %1 = vector.load %arg1[%c0_1, %c0_2] : memref<32x48xf32, #tpu.memory_space<vmem>>, vector<32x48xf32>
    %cst = arith.constant dense<0.000000e+00> : vector<48x48xf32>
    %2 = tpu.matmul %0, %1, %cst {dimension_numbers = #tpu.dot_dimension_numbers<[1], [0], [0], [1], [0, 0, 1, 1], [], []>} : vector<48x32xf32>, vector<32x48xf32>, vector<48x48xf32> -> vector<48x48xf32>
    %cst_3 = arith.constant dense<0.000000e+00> : vector<48xf32>
    %3 = vector.multi_reduction <add>, %2, %cst_3 [0] : vector<48x48xf32> to vector<48xf32>
    %4 = vector.shape_cast %3 : vector<48xf32> to vector<1x48xf32>
    %cst_4 = arith.constant 4.800000e+01 : f32
    %5 = vector.broadcast %cst_4 : f32 to vector<1x48xf32>
    %6 = arith.divf %4, %5 : vector<1x48xf32>
    %7 = vector.broadcast %6 : vector<1x48xf32> to vector<48x48xf32>
    %8 = arith.subf %2, %7 : vector<48x48xf32>
    %9 = arith.mulf %8, %8 : vector<48x48xf32>
    %cst_5 = arith.constant dense<0.000000e+00> : vector<48xf32>
    %10 = vector.multi_reduction <add>, %9, %cst_5 [0] : vector<48x48xf32> to vector<48xf32>
    %11 = vector.shape_cast %10 : vector<48xf32> to vector<1x48xf32>
    %cst_6 = arith.constant 4.800000e+01 : f32
    %12 = vector.broadcast %cst_6 : f32 to vector<1x48xf32>
    %13 = arith.divf %11, %12 : vector<1x48xf32>
    %cst_7 = arith.constant 9.99999974E-6 : f32
    %14 = vector.broadcast %cst_7 : f32 to vector<1x48xf32>
    %15 = arith.addf %13, %14 : vector<1x48xf32>
    %16 = math.rsqrt %15 : vector<1x48xf32>
    %17 = vector.broadcast %16 : vector<1x48xf32> to vector<48x48xf32>
    %18 = arith.mulf %8, %17 : vector<48x48xf32>
    %cst_8 = arith.constant 0.000000e+00 : f32
    %19 = vector.broadcast %cst_8 : f32 to vector<48x48xf32>
    %20 = arith.maximumf %18, %19 : vector<48x48xf32>
    %c0_9 = arith.constant 0 : index
    %c0_10 = arith.constant 0 : index
    %21 = vector.load %arg2[%c0_9, %c0_10] : memref<48x48xf32, #tpu.memory_space<vmem>>, vector<48x48xf32>
    tpu.vector_store %arg2[%c0_9, %c0_10], %20 {strides = array<i32>} : memref<48x48xf32, #tpu.memory_space<vmem>>, vector<48x48xf32>,
    return
  }
}

module attributes {stable_mosaic.version = 11 : i64} {
  func.func @kernel(%arg0: i32, %arg1: memref<32x3x8xf32, #tpu.memory_space<vmem>>, %arg2: memref<32x3x8xf32, #tpu.memory_space<vmem>>, %arg3: memref<32x3x8xf32, #tpu.memory_space<vmem>>, %arg4: memref<32x3x8xf32, #tpu.memory_space<vmem>>) attributes {dimension_semantics = [#tpu.dimension_semantics<parallel>], iteration_bounds = array<i64: 1>, scalar_prefetch = 0 : i64, scratch_operands = 0 : i64, tpu.core_type = #tpu.core_type<tc>, window_params = [{transform_indices = @transform_0, window_bounds = array<i64: 32, 3, 8>}, {transform_indices = @transform_1, window_bounds = array<i64: 32, 3, 8>}, {transform_indices = @transform_2, window_bounds = array<i64: 32, 3, 8>}, {transform_indices = @transform_3, window_bounds = array<i64: 32, 3, 8>}]} {
    %c0 = arith.constant 0 : index
    %c0_0 = arith.constant 0 : index
    %c0_1 = arith.constant 0 : index
    %0 = vector.load %arg1[%c0, %c0_0, %c0_1] : memref<32x3x8xf32, #tpu.memory_space<vmem>>, vector<32x3x8xf32>
    %c0_2 = arith.constant 0 : index
    %c0_3 = arith.constant 0 : index
    %c0_4 = arith.constant 0 : index
    %1 = vector.load %arg2[%c0_2, %c0_3, %c0_4] : memref<32x3x8xf32, #tpu.memory_space<vmem>>, vector<32x3x8xf32>
    %c0_5 = arith.constant 0 : index
    %c0_6 = arith.constant 0 : index
    %c0_7 = arith.constant 0 : index
    %2 = vector.load %arg3[%c0_5, %c0_6, %c0_7] : memref<32x3x8xf32, #tpu.memory_space<vmem>>, vector<32x3x8xf32>
    "tpu.trace_start"() <{level = 10 : i32, message = "gqd,gkd->gqk"}> : () -> ()
    %cst = arith.constant dense<0.000000e+00> : vector<32x3x3xf32>
    %3 = tpu.matmul %0, %1, %cst {dimension_numbers = #tpu.dot_dimension_numbers<[2], [2], [1], [1], [0, 0, 0, 1, 1, 1], [0], [0]>} : vector<32x3x8xf32>, vector<32x3x8xf32>, vector<32x3x3xf32> -> vector<32x3x3xf32>
    "tpu.trace_stop"() : () -> ()
    %cst_8 = arith.constant 0.353553385 : f32
    %4 = vector.broadcast %cst_8 : f32 to vector<32x3x3xf32>
    %5 = arith.mulf %3, %4 : vector<32x3x3xf32>
    %cst_9 = arith.constant dense<0xFF800000> : vector<32x3xf32>
    %6 = vector.multi_reduction <maximumf>, %5, %cst_9 [2] : vector<32x3x3xf32> to vector<32x3xf32>
    %7 = vector.shape_cast %6 : vector<32x3xf32> to vector<32x3x1xf32>
    %8 = vector.broadcast %7 : vector<32x3x1xf32> to vector<32x3x3xf32>
    %9 = arith.subf %5, %8 : vector<32x3x3xf32>
    %10 = math.exp %9 : vector<32x3x3xf32>
    %cst_10 = arith.constant dense<0.000000e+00> : vector<32x3xf32>
    %11 = vector.multi_reduction <add>, %10, %cst_10 [2] : vector<32x3x3xf32> to vector<32x3xf32>
    %12 = vector.shape_cast %11 : vector<32x3xf32> to vector<32x3x1xf32>
    %13 = tpu.reciprocal %12 {approx = true} : vector<32x3x1xf32> -> vector<32x3x1xf32>
    %14 = vector.broadcast %13 : vector<32x3x1xf32> to vector<32x3x3xf32>
    %15 = arith.mulf %10, %14 : vector<32x3x3xf32>
    "tpu.trace_start"() <{level = 10 : i32, message = "gqk,gkd->gqd"}> : () -> ()
    %cst_11 = arith.constant dense<0.000000e+00> : vector<32x3x8xf32>
    %16 = tpu.matmul %15, %2, %cst_11 {dimension_numbers = #tpu.dot_dimension_numbers<[2], [1], [1], [2], [0, 0, 0, 1, 1, 2], [0], [0]>} : vector<32x3x3xf32>, vector<32x3x8xf32>, vector<32x3x8xf32> -> vector<32x3x8xf32>
    "tpu.trace_stop"() : () -> ()
    %c0_12 = arith.constant 0 : index
    %c0_13 = arith.constant 0 : index
    %c0_14 = arith.constant 0 : index
    %17 = vector.load %arg4[%c0_12, %c0_13, %c0_14] : memref<32x3x8xf32, #tpu.memory_space<vmem>>, vector<32x3x8xf32>
    tpu.vector_store %arg4[%c0_12, %c0_13, %c0_14], %16 {strides = array<i32>} : memref<32x3x8xf32, #tpu.memory_space<vmem>>, vector<32x3x8xf32>,
    return
  }
  func.func @transform_0(%arg0: i32) -> (i32, i32, i32) {
    %c0_i32 = arith.constant 0 : i32
    %c0_i32_0 = arith.constant 0 : i32
    %c0_i32_1 = arith.constant 0 : i32
    return %arg0, %c0_i32, %c0_i32_0 : i32, i32, i32
  }
  func.func @transform_1(%arg0: i32) -> (i32, i32, i32) {
    %c0_i32 = arith.constant 0 : i32
    %c0_i32_0 = arith.constant 0 : i32
    %c0_i32_1 = arith.constant 0 : i32
    return %arg0, %c0_i32, %c0_i32_0 : i32, i32, i32
  }
  func.func @transform_2(%arg0: i32) -> (i32, i32, i32) {
    %c0_i32 = arith.constant 0 : i32
    %c0_i32_0 = arith.constant 0 : i32
    %c0_i32_1 = arith.constant 0 : i32
    return %arg0, %c0_i32, %c0_i32_0 : i32, i32, i32
  }
  func.func @transform_3(%arg0: i32) -> (i32, i32, i32) {
    %c0_i32 = arith.constant 0 : i32
    %c0_i32_0 = arith.constant 0 : i32
    %c0_i32_1 = arith.constant 0 : i32
    return %arg0, %c0_i32, %c0_i32_0 : i32, i32, i32
  }
}

module attributes {stable_mosaic.version = 11 : i64} {
  func.func @kernel(%arg0: memref<48x16xf32, #tpu.memory_space<vmem>>, %arg1: memref<16x16xf32, #tpu.memory_space<vmem>>, %arg2: memref<48x16xf32, #tpu.memory_space<vmem>>) attributes {dimension_semantics = [], scalar_prefetch = 0 : i64, scratch_operands = 0 : i64, tpu.core_type = #tpu.core_type<tc>} {
    %c0 = arith.constant 0 : index
    %c0_0 = arith.constant 0 : index
    %0 = vector.load %arg0[%c0, %c0_0] : memref<48x16xf32, #tpu.memory_space<vmem>>, vector<48x16xf32>
    %c0_1 = arith.constant 0 : index
    %c0_2 = arith.constant 0 : index
    %1 = vector.load %arg1[%c0_1, %c0_2] : memref<16x16xf32, #tpu.memory_space<vmem>>, vector<16x16xf32>
    %cst = arith.constant dense<0.000000e+00> : vector<48x16xf32>
    %2 = tpu.matmul %0, %1, %cst {dimension_numbers = #tpu.dot_dimension_numbers<[1], [0], [0], [1], [0, 0, 1, 1], [], []>} : vector<48x16xf32>, vector<16x16xf32>, vector<48x16xf32> -> vector<48x16xf32>
    %cst_3 = arith.constant dense<0.000000e+00> : vector<16xf32>
    %3 = vector.multi_reduction <add>, %2, %cst_3 [0] : vector<48x16xf32> to vector<16xf32>
    %4 = vector.shape_cast %3 : vector<16xf32> to vector<1x16xf32>
    %cst_4 = arith.constant 4.800000e+01 : f32
    %5 = vector.broadcast %cst_4 : f32 to vector<1x16xf32>
    %6 = arith.divf %4, %5 : vector<1x16xf32>
    %7 = vector.broadcast %6 : vector<1x16xf32> to vector<48x16xf32>
    %8 = arith.subf %2, %7 : vector<48x16xf32>
    %9 = arith.mulf %8, %8 : vector<48x16xf32>
    %cst_5 = arith.constant dense<0.000000e+00> : vector<16xf32>
    %10 = vector.multi_reduction <add>, %9, %cst_5 [0] : vector<48x16xf32> to vector<16xf32>
    %11 = vector.shape_cast %10 : vector<16xf32> to vector<1x16xf32>
    %cst_6 = arith.constant 4.800000e+01 : f32
    %12 = vector.broadcast %cst_6 : f32 to vector<1x16xf32>
    %13 = arith.divf %11, %12 : vector<1x16xf32>
    %cst_7 = arith.constant 9.99999974E-6 : f32
    %14 = vector.broadcast %cst_7 : f32 to vector<1x16xf32>
    %15 = arith.addf %13, %14 : vector<1x16xf32>
    %16 = math.rsqrt %15 : vector<1x16xf32>
    %17 = vector.broadcast %16 : vector<1x16xf32> to vector<48x16xf32>
    %18 = arith.mulf %8, %17 : vector<48x16xf32>
    %cst_8 = arith.constant 0.000000e+00 : f32
    %19 = vector.broadcast %cst_8 : f32 to vector<48x16xf32>
    %20 = arith.maximumf %18, %19 : vector<48x16xf32>
    %c0_9 = arith.constant 0 : index
    %c0_10 = arith.constant 0 : index
    %21 = vector.load %arg2[%c0_9, %c0_10] : memref<48x16xf32, #tpu.memory_space<vmem>>, vector<48x16xf32>
    tpu.vector_store %arg2[%c0_9, %c0_10], %20 {strides = array<i32>} : memref<48x16xf32, #tpu.memory_space<vmem>>, vector<48x16xf32>,
    return
  }
}

module attributes {stable_mosaic.version = 11 : i64} {
  func.func @kernel(%arg0: i32, %arg1: memref<12x8x8xf32, #tpu.memory_space<vmem>>, %arg2: memref<12x8x8xf32, #tpu.memory_space<vmem>>, %arg3: memref<12x8x8xf32, #tpu.memory_space<vmem>>, %arg4: memref<12x8x8xf32, #tpu.memory_space<vmem>>) attributes {dimension_semantics = [#tpu.dimension_semantics<parallel>], iteration_bounds = array<i64: 1>, scalar_prefetch = 0 : i64, scratch_operands = 0 : i64, tpu.core_type = #tpu.core_type<tc>, window_params = [{transform_indices = @transform_0, window_bounds = array<i64: 12, 8, 8>}, {transform_indices = @transform_1, window_bounds = array<i64: 12, 8, 8>}, {transform_indices = @transform_2, window_bounds = array<i64: 12, 8, 8>}, {transform_indices = @transform_3, window_bounds = array<i64: 12, 8, 8>}]} {
    %c0 = arith.constant 0 : index
    %c0_0 = arith.constant 0 : index
    %c0_1 = arith.constant 0 : index
    %0 = vector.load %arg1[%c0, %c0_0, %c0_1] : memref<12x8x8xf32, #tpu.memory_space<vmem>>, vector<12x8x8xf32>
    %c0_2 = arith.constant 0 : index
    %c0_3 = arith.constant 0 : index
    %c0_4 = arith.constant 0 : index
    %1 = vector.load %arg2[%c0_2, %c0_3, %c0_4] : memref<12x8x8xf32, #tpu.memory_space<vmem>>, vector<12x8x8xf32>
    %c0_5 = arith.constant 0 : index
    %c0_6 = arith.constant 0 : index
    %c0_7 = arith.constant 0 : index
    %2 = vector.load %arg3[%c0_5, %c0_6, %c0_7] : memref<12x8x8xf32, #tpu.memory_space<vmem>>, vector<12x8x8xf32>
    "tpu.trace_start"() <{level = 10 : i32, message = "gqd,gkd->gqk"}> : () -> ()
    %cst = arith.constant dense<0.000000e+00> : vector<12x8x8xf32>
    %3 = tpu.matmul %0, %1, %cst {dimension_numbers = #tpu.dot_dimension_numbers<[2], [2], [1], [1], [0, 0, 0, 1, 1, 1], [0], [0]>} : vector<12x8x8xf32>, vector<12x8x8xf32>, vector<12x8x8xf32> -> vector<12x8x8xf32>
    "tpu.trace_stop"() : () -> ()
    %cst_8 = arith.constant 0.353553385 : f32
    %4 = vector.broadcast %cst_8 : f32 to vector<12x8x8xf32>
    %5 = arith.mulf %3, %4 : vector<12x8x8xf32>
    %cst_9 = arith.constant dense<0xFF800000> : vector<12x8xf32>
    %6 = vector.multi_reduction <maximumf>, %5, %cst_9 [2] : vector<12x8x8xf32> to vector<12x8xf32>
    %7 = vector.shape_cast %6 : vector<12x8xf32> to vector<12x8x1xf32>
    %8 = vector.broadcast %7 : vector<12x8x1xf32> to vector<12x8x8xf32>
    %9 = arith.subf %5, %8 : vector<12x8x8xf32>
    %10 = math.exp %9 : vector<12x8x8xf32>
    %cst_10 = arith.constant dense<0.000000e+00> : vector<12x8xf32>
    %11 = vector.multi_reduction <add>, %10, %cst_10 [2] : vector<12x8x8xf32> to vector<12x8xf32>
    %12 = vector.shape_cast %11 : vector<12x8xf32> to vector<12x8x1xf32>
    %13 = tpu.reciprocal %12 {approx = true} : vector<12x8x1xf32> -> vector<12x8x1xf32>
    %14 = vector.broadcast %13 : vector<12x8x1xf32> to vector<12x8x8xf32>
    %15 = arith.mulf %10, %14 : vector<12x8x8xf32>
    "tpu.trace_start"() <{level = 10 : i32, message = "gqk,gkd->gqd"}> : () -> ()
    %cst_11 = arith.constant dense<0.000000e+00> : vector<12x8x8xf32>
    %16 = tpu.matmul %15, %2, %cst_11 {dimension_numbers = #tpu.dot_dimension_numbers<[2], [1], [1], [2], [0, 0, 0, 1, 1, 2], [0], [0]>} : vector<12x8x8xf32>, vector<12x8x8xf32>, vector<12x8x8xf32> -> vector<12x8x8xf32>
    "tpu.trace_stop"() : () -> ()
    %c0_12 = arith.constant 0 : index
    %c0_13 = arith.constant 0 : index
    %c0_14 = arith.constant 0 : index
    %17 = vector.load %arg4[%c0_12, %c0_13, %c0_14] : memref<12x8x8xf32, #tpu.memory_space<vmem>>, vector<12x8x8xf32>
    tpu.vector_store %arg4[%c0_12, %c0_13, %c0_14], %16 {strides = array<i32>} : memref<12x8x8xf32, #tpu.memory_space<vmem>>, vector<12x8x8xf32>,
    return
  }
  func.func @transform_0(%arg0: i32) -> (i32, i32, i32) {
    %c0_i32 = arith.constant 0 : i32
    %c0_i32_0 = arith.constant 0 : i32
    %c0_i32_1 = arith.constant 0 : i32
    return %arg0, %c0_i32, %c0_i32_0 : i32, i32, i32
  }
  func.func @transform_1(%arg0: i32) -> (i32, i32, i32) {
    %c0_i32 = arith.constant 0 : i32
    %c0_i32_0 = arith.constant 0 : i32
    %c0_i32_1 = arith.constant 0 : i32
    return %arg0, %c0_i32, %c0_i32_0 : i32, i32, i32
  }
  func.func @transform_2(%arg0: i32) -> (i32, i32, i32) {
    %c0_i32 = arith.constant 0 : i32
    %c0_i32_0 = arith.constant 0 : i32
    %c0_i32_1 = arith.constant 0 : i32
    return %arg0, %c0_i32, %c0_i32_0 : i32, i32, i32
  }
  func.func @transform_3(%arg0: i32) -> (i32, i32, i32) {
    %c0_i32 = arith.constant 0 : i32
    %c0_i32_0 = arith.constant 0 : i32
    %c0_i32_1 = arith.constant 0 : i32
    return %arg0, %c0_i32, %c0_i32_0 : i32, i32, i32
  }
}

module attributes {stable_mosaic.version = 11 : i64} {
  func.func @kernel(%arg0: memref<48x16xf32, #tpu.memory_space<vmem>>, %arg1: memref<48x16xf32, #tpu.memory_space<vmem>>, %arg2: memref<16x16xf32, #tpu.memory_space<vmem>>, %arg3: memref<16x16xf32, #tpu.memory_space<vmem>>, %arg4: memref<16x16xf32, #tpu.memory_space<vmem>>, %arg5: memref<16x16xf32, #tpu.memory_space<vmem>>, %arg6: memref<48x16xf32, #tpu.memory_space<vmem>>) attributes {dimension_semantics = [], scalar_prefetch = 0 : i64, scratch_operands = 0 : i64, tpu.core_type = #tpu.core_type<tc>} {
    %c0 = arith.constant 0 : index
    %c0_0 = arith.constant 0 : index
    %0 = vector.load %arg0[%c0, %c0_0] : memref<48x16xf32, #tpu.memory_space<vmem>>, vector<48x16xf32>
    %c0_1 = arith.constant 0 : index
    %c0_2 = arith.constant 0 : index
    %1 = vector.load %arg1[%c0_1, %c0_2] : memref<48x16xf32, #tpu.memory_space<vmem>>, vector<48x16xf32>
    %c0_3 = arith.constant 0 : index
    %c0_4 = arith.constant 0 : index
    %2 = vector.load %arg2[%c0_3, %c0_4] : memref<16x16xf32, #tpu.memory_space<vmem>>, vector<16x16xf32>
    %cst = arith.constant dense<0.000000e+00> : vector<48x16xf32>
    %3 = tpu.matmul %0, %2, %cst {dimension_numbers = #tpu.dot_dimension_numbers<[1], [0], [0], [1], [0, 0, 1, 1], [], []>} : vector<48x16xf32>, vector<16x16xf32>, vector<48x16xf32> -> vector<48x16xf32>
    %cst_5 = arith.constant dense<0.000000e+00> : vector<16xf32>
    %4 = vector.multi_reduction <add>, %3, %cst_5 [0] : vector<48x16xf32> to vector<16xf32>
    %5 = vector.shape_cast %4 : vector<16xf32> to vector<1x16xf32>
    %cst_6 = arith.constant 4.800000e+01 : f32
    %6 = vector.broadcast %cst_6 : f32 to vector<1x16xf32>
    %7 = arith.divf %5, %6 : vector<1x16xf32>
    %8 = vector.broadcast %7 : vector<1x16xf32> to vector<48x16xf32>
    %9 = arith.subf %3, %8 : vector<48x16xf32>
    %10 = arith.mulf %9, %9 : vector<48x16xf32>
    %cst_7 = arith.constant dense<0.000000e+00> : vector<16xf32>
    %11 = vector.multi_reduction <add>, %10, %cst_7 [0] : vector<48x16xf32> to vector<16xf32>
    %12 = vector.shape_cast %11 : vector<16xf32> to vector<1x16xf32>
    %cst_8 = arith.constant 4.800000e+01 : f32
    %13 = vector.broadcast %cst_8 : f32 to vector<1x16xf32>
    %14 = arith.divf %12, %13 : vector<1x16xf32>
    %cst_9 = arith.constant 9.99999974E-6 : f32
    %15 = vector.broadcast %cst_9 : f32 to vector<1x16xf32>
    %16 = arith.addf %14, %15 : vector<1x16xf32>
    %17 = math.rsqrt %16 : vector<1x16xf32>
    %18 = vector.broadcast %17 : vector<1x16xf32> to vector<48x16xf32>
    %19 = arith.mulf %9, %18 : vector<48x16xf32>
    %c0_10 = arith.constant 0 : index
    %c0_11 = arith.constant 0 : index
    %20 = vector.load %arg3[%c0_10, %c0_11] : memref<16x16xf32, #tpu.memory_space<vmem>>, vector<16x16xf32>
    %cst_12 = arith.constant dense<0.000000e+00> : vector<48x16xf32>
    %21 = tpu.matmul %1, %20, %cst_12 {dimension_numbers = #tpu.dot_dimension_numbers<[1], [0], [0], [1], [0, 0, 1, 1], [], []>} : vector<48x16xf32>, vector<16x16xf32>, vector<48x16xf32> -> vector<48x16xf32>
    %cst_13 = arith.constant dense<0.000000e+00> : vector<16xf32>
    %22 = vector.multi_reduction <add>, %21, %cst_13 [0] : vector<48x16xf32> to vector<16xf32>
    %23 = vector.shape_cast %22 : vector<16xf32> to vector<1x16xf32>
    %cst_14 = arith.constant 4.800000e+01 : f32
    %24 = vector.broadcast %cst_14 : f32 to vector<1x16xf32>
    %25 = arith.divf %23, %24 : vector<1x16xf32>
    %26 = vector.broadcast %25 : vector<1x16xf32> to vector<48x16xf32>
    %27 = arith.subf %21, %26 : vector<48x16xf32>
    %28 = arith.mulf %27, %27 : vector<48x16xf32>
    %cst_15 = arith.constant dense<0.000000e+00> : vector<16xf32>
    %29 = vector.multi_reduction <add>, %28, %cst_15 [0] : vector<48x16xf32> to vector<16xf32>
    %30 = vector.shape_cast %29 : vector<16xf32> to vector<1x16xf32>
    %cst_16 = arith.constant 4.800000e+01 : f32
    %31 = vector.broadcast %cst_16 : f32 to vector<1x16xf32>
    %32 = arith.divf %30, %31 : vector<1x16xf32>
    %cst_17 = arith.constant 9.99999974E-6 : f32
    %33 = vector.broadcast %cst_17 : f32 to vector<1x16xf32>
    %34 = arith.addf %32, %33 : vector<1x16xf32>
    %35 = math.rsqrt %34 : vector<1x16xf32>
    %36 = vector.broadcast %35 : vector<1x16xf32> to vector<48x16xf32>
    %37 = arith.mulf %27, %36 : vector<48x16xf32>
    %38 = arith.addf %19, %37 : vector<48x16xf32>
    %cst_18 = arith.constant 0.000000e+00 : f32
    %39 = vector.broadcast %cst_18 : f32 to vector<48x16xf32>
    %40 = arith.subf %39, %38 : vector<48x16xf32>
    %41 = math.exp %40 : vector<48x16xf32>
    %cst_19 = arith.constant 1.000000e+00 : f32
    %42 = vector.broadcast %cst_19 : f32 to vector<48x16xf32>
    %43 = arith.addf %42, %41 : vector<48x16xf32>
    %cst_20 = arith.constant 1.000000e+00 : f32
    %44 = vector.broadcast %cst_20 : f32 to vector<48x16xf32>
    %45 = arith.divf %44, %43 : vector<48x16xf32>
    %46 = arith.mulf %45, %0 : vector<48x16xf32>
    %cst_21 = arith.constant 1.000000e+00 : f32
    %47 = vector.broadcast %cst_21 : f32 to vector<48x16xf32>
    %48 = arith.subf %47, %45 : vector<48x16xf32>
    %49 = arith.mulf %48, %1 : vector<48x16xf32>
    %50 = arith.addf %46, %49 : vector<48x16xf32>
    %c0_22 = arith.constant 0 : index
    %c0_23 = arith.constant 0 : index
    %51 = vector.load %arg4[%c0_22, %c0_23] : memref<16x16xf32, #tpu.memory_space<vmem>>, vector<16x16xf32>
    %cst_24 = arith.constant dense<0.000000e+00> : vector<48x16xf32>
    %52 = tpu.matmul %50, %51, %cst_24 {dimension_numbers = #tpu.dot_dimension_numbers<[1], [0], [0], [1], [0, 0, 1, 1], [], []>} : vector<48x16xf32>, vector<16x16xf32>, vector<48x16xf32> -> vector<48x16xf32>
    %cst_25 = arith.constant dense<0.000000e+00> : vector<16xf32>
    %53 = vector.multi_reduction <add>, %52, %cst_25 [0] : vector<48x16xf32> to vector<16xf32>
    %54 = vector.shape_cast %53 : vector<16xf32> to vector<1x16xf32>
    %cst_26 = arith.constant 4.800000e+01 : f32
    %55 = vector.broadcast %cst_26 : f32 to vector<1x16xf32>
    %56 = arith.divf %54, %55 : vector<1x16xf32>
    %57 = vector.broadcast %56 : vector<1x16xf32> to vector<48x16xf32>
    %58 = arith.subf %52, %57 : vector<48x16xf32>
    %59 = arith.mulf %58, %58 : vector<48x16xf32>
    %cst_27 = arith.constant dense<0.000000e+00> : vector<16xf32>
    %60 = vector.multi_reduction <add>, %59, %cst_27 [0] : vector<48x16xf32> to vector<16xf32>
    %61 = vector.shape_cast %60 : vector<16xf32> to vector<1x16xf32>
    %cst_28 = arith.constant 4.800000e+01 : f32
    %62 = vector.broadcast %cst_28 : f32 to vector<1x16xf32>
    %63 = arith.divf %61, %62 : vector<1x16xf32>
    %cst_29 = arith.constant 9.99999974E-6 : f32
    %64 = vector.broadcast %cst_29 : f32 to vector<1x16xf32>
    %65 = arith.addf %63, %64 : vector<1x16xf32>
    %66 = math.rsqrt %65 : vector<1x16xf32>
    %67 = vector.broadcast %66 : vector<1x16xf32> to vector<48x16xf32>
    %68 = arith.mulf %58, %67 : vector<48x16xf32>
    %cst_30 = arith.constant 0.000000e+00 : f32
    %69 = vector.broadcast %cst_30 : f32 to vector<48x16xf32>
    %70 = arith.maximumf %68, %69 : vector<48x16xf32>
    %c0_31 = arith.constant 0 : index
    %c0_32 = arith.constant 0 : index
    %71 = vector.load %arg5[%c0_31, %c0_32] : memref<16x16xf32, #tpu.memory_space<vmem>>, vector<16x16xf32>
    %cst_33 = arith.constant dense<0.000000e+00> : vector<48x16xf32>
    %72 = tpu.matmul %70, %71, %cst_33 {dimension_numbers = #tpu.dot_dimension_numbers<[1], [0], [0], [1], [0, 0, 1, 1], [], []>} : vector<48x16xf32>, vector<16x16xf32>, vector<48x16xf32> -> vector<48x16xf32>
    %cst_34 = arith.constant dense<0.000000e+00> : vector<16xf32>
    %73 = vector.multi_reduction <add>, %72, %cst_34 [0] : vector<48x16xf32> to vector<16xf32>
    %74 = vector.shape_cast %73 : vector<16xf32> to vector<1x16xf32>
    %cst_35 = arith.constant 4.800000e+01 : f32
    %75 = vector.broadcast %cst_35 : f32 to vector<1x16xf32>
    %76 = arith.divf %74, %75 : vector<1x16xf32>
    %77 = vector.broadcast %76 : vector<1x16xf32> to vector<48x16xf32>
    %78 = arith.subf %72, %77 : vector<48x16xf32>
    %79 = arith.mulf %78, %78 : vector<48x16xf32>
    %cst_36 = arith.constant dense<0.000000e+00> : vector<16xf32>
    %80 = vector.multi_reduction <add>, %79, %cst_36 [0] : vector<48x16xf32> to vector<16xf32>
    %81 = vector.shape_cast %80 : vector<16xf32> to vector<1x16xf32>
    %cst_37 = arith.constant 4.800000e+01 : f32
    %82 = vector.broadcast %cst_37 : f32 to vector<1x16xf32>
    %83 = arith.divf %81, %82 : vector<1x16xf32>
    %cst_38 = arith.constant 9.99999974E-6 : f32
    %84 = vector.broadcast %cst_38 : f32 to vector<1x16xf32>
    %85 = arith.addf %83, %84 : vector<1x16xf32>
    %86 = math.rsqrt %85 : vector<1x16xf32>
    %87 = vector.broadcast %86 : vector<1x16xf32> to vector<48x16xf32>
    %88 = arith.mulf %78, %87 : vector<48x16xf32>
    %c0_39 = arith.constant 0 : index
    %c0_40 = arith.constant 0 : index
    %89 = vector.load %arg6[%c0_39, %c0_40] : memref<48x16xf32, #tpu.memory_space<vmem>>, vector<48x16xf32>
    tpu.vector_store %arg6[%c0_39, %c0_40], %88 {strides = array<i32>} : memref<48x16xf32, #tpu.memory_space<vmem>>, vector<48x16xf32>,
    return
  }
}

module attributes {stable_mosaic.version = 11 : i64} {
  func.func @kernel(%arg0: memref<16x16xf32, #tpu.memory_space<vmem>>, %arg1: memref<16x16xf32, #tpu.memory_space<vmem>>, %arg2: memref<16x16xf32, #tpu.memory_space<vmem>>) attributes {dimension_semantics = [], scalar_prefetch = 0 : i64, scratch_operands = 0 : i64, tpu.core_type = #tpu.core_type<tc>} {
    %c0 = arith.constant 0 : index
    %c0_0 = arith.constant 0 : index
    %0 = vector.load %arg0[%c0, %c0_0] : memref<16x16xf32, #tpu.memory_space<vmem>>, vector<16x16xf32>
    %c0_1 = arith.constant 0 : index
    %c0_2 = arith.constant 0 : index
    %1 = vector.load %arg1[%c0_1, %c0_2] : memref<16x16xf32, #tpu.memory_space<vmem>>, vector<16x16xf32>
    %cst = arith.constant dense<0.000000e+00> : vector<16x16xf32>
    %2 = tpu.matmul %0, %1, %cst {dimension_numbers = #tpu.dot_dimension_numbers<[1], [0], [0], [1], [0, 0, 1, 1], [], []>} : vector<16x16xf32>, vector<16x16xf32>, vector<16x16xf32> -> vector<16x16xf32>
    %cst_3 = arith.constant dense<0.000000e+00> : vector<16xf32>
    %3 = vector.multi_reduction <add>, %2, %cst_3 [0] : vector<16x16xf32> to vector<16xf32>
    %4 = vector.shape_cast %3 : vector<16xf32> to vector<1x16xf32>
    %cst_4 = arith.constant 1.600000e+01 : f32
    %5 = vector.broadcast %cst_4 : f32 to vector<1x16xf32>
    %6 = arith.divf %4, %5 : vector<1x16xf32>
    %7 = vector.broadcast %6 : vector<1x16xf32> to vector<16x16xf32>
    %8 = arith.subf %2, %7 : vector<16x16xf32>
    %9 = arith.mulf %8, %8 : vector<16x16xf32>
    %cst_5 = arith.constant dense<0.000000e+00> : vector<16xf32>
    %10 = vector.multi_reduction <add>, %9, %cst_5 [0] : vector<16x16xf32> to vector<16xf32>
    %11 = vector.shape_cast %10 : vector<16xf32> to vector<1x16xf32>
    %cst_6 = arith.constant 1.600000e+01 : f32
    %12 = vector.broadcast %cst_6 : f32 to vector<1x16xf32>
    %13 = arith.divf %11, %12 : vector<1x16xf32>
    %cst_7 = arith.constant 9.99999974E-6 : f32
    %14 = vector.broadcast %cst_7 : f32 to vector<1x16xf32>
    %15 = arith.addf %13, %14 : vector<1x16xf32>
    %16 = math.rsqrt %15 : vector<1x16xf32>
    %17 = vector.broadcast %16 : vector<1x16xf32> to vector<16x16xf32>
    %18 = arith.mulf %8, %17 : vector<16x16xf32>
    %cst_8 = arith.constant 0.000000e+00 : f32
    %19 = vector.broadcast %cst_8 : f32 to vector<16x16xf32>
    %20 = arith.maximumf %18, %19 : vector<16x16xf32>
    %c0_9 = arith.constant 0 : index
    %c0_10 = arith.constant 0 : index
    %21 = vector.load %arg2[%c0_9, %c0_10] : memref<16x16xf32, #tpu.memory_space<vmem>>, vector<16x16xf32>
    tpu.vector_store %arg2[%c0_9, %c0_10], %20 {strides = array<i32>} : memref<16x16xf32, #tpu.memory_space<vmem>>, vector<16x16xf32>,
    return
  }
}

module attributes {stable_mosaic.version = 11 : i64} {
  func.func @kernel(%arg0: i32, %arg1: memref<32x1x8xf32, #tpu.memory_space<vmem>>, %arg2: memref<32x3x8xf32, #tpu.memory_space<vmem>>, %arg3: memref<32x3x8xf32, #tpu.memory_space<vmem>>, %arg4: memref<32x1x8xf32, #tpu.memory_space<vmem>>) attributes {dimension_semantics = [#tpu.dimension_semantics<parallel>], iteration_bounds = array<i64: 1>, scalar_prefetch = 0 : i64, scratch_operands = 0 : i64, tpu.core_type = #tpu.core_type<tc>, window_params = [{transform_indices = @transform_0, window_bounds = array<i64: 32, 1, 8>}, {transform_indices = @transform_1, window_bounds = array<i64: 32, 3, 8>}, {transform_indices = @transform_2, window_bounds = array<i64: 32, 3, 8>}, {transform_indices = @transform_3, window_bounds = array<i64: 32, 1, 8>}]} {
    %c0 = arith.constant 0 : index
    %c0_0 = arith.constant 0 : index
    %c0_1 = arith.constant 0 : index
    %0 = vector.load %arg1[%c0, %c0_0, %c0_1] : memref<32x1x8xf32, #tpu.memory_space<vmem>>, vector<32x1x8xf32>
    %c0_2 = arith.constant 0 : index
    %c0_3 = arith.constant 0 : index
    %c0_4 = arith.constant 0 : index
    %1 = vector.load %arg2[%c0_2, %c0_3, %c0_4] : memref<32x3x8xf32, #tpu.memory_space<vmem>>, vector<32x3x8xf32>
    %c0_5 = arith.constant 0 : index
    %c0_6 = arith.constant 0 : index
    %c0_7 = arith.constant 0 : index
    %2 = vector.load %arg3[%c0_5, %c0_6, %c0_7] : memref<32x3x8xf32, #tpu.memory_space<vmem>>, vector<32x3x8xf32>
    "tpu.trace_start"() <{level = 10 : i32, message = "gqd,gkd->gqk"}> : () -> ()
    %cst = arith.constant dense<0.000000e+00> : vector<32x1x3xf32>
    %3 = tpu.matmul %0, %1, %cst {dimension_numbers = #tpu.dot_dimension_numbers<[2], [2], [1], [1], [0, 0, 0, 1, 1, 1], [0], [0]>} : vector<32x1x8xf32>, vector<32x3x8xf32>, vector<32x1x3xf32> -> vector<32x1x3xf32>
    "tpu.trace_stop"() : () -> ()
    %cst_8 = arith.constant 0.353553385 : f32
    %4 = vector.broadcast %cst_8 : f32 to vector<32x1x3xf32>
    %5 = arith.mulf %3, %4 : vector<32x1x3xf32>
    %cst_9 = arith.constant dense<0xFF800000> : vector<32x1xf32>
    %6 = vector.multi_reduction <maximumf>, %5, %cst_9 [2] : vector<32x1x3xf32> to vector<32x1xf32>
    %7 = vector.shape_cast %6 : vector<32x1xf32> to vector<32x1x1xf32>
    %8 = vector.broadcast %7 : vector<32x1x1xf32> to vector<32x1x3xf32>
    %9 = arith.subf %5, %8 : vector<32x1x3xf32>
    %10 = math.exp %9 : vector<32x1x3xf32>
    %cst_10 = arith.constant dense<0.000000e+00> : vector<32x1xf32>
    %11 = vector.multi_reduction <add>, %10, %cst_10 [2] : vector<32x1x3xf32> to vector<32x1xf32>
    %12 = vector.shape_cast %11 : vector<32x1xf32> to vector<32x1x1xf32>
    %13 = tpu.reciprocal %12 {approx = true} : vector<32x1x1xf32> -> vector<32x1x1xf32>
    %14 = vector.broadcast %13 : vector<32x1x1xf32> to vector<32x1x3xf32>
    %15 = arith.mulf %10, %14 : vector<32x1x3xf32>
    "tpu.trace_start"() <{level = 10 : i32, message = "gqk,gkd->gqd"}> : () -> ()
    %cst_11 = arith.constant dense<0.000000e+00> : vector<32x1x8xf32>
    %16 = tpu.matmul %15, %2, %cst_11 {dimension_numbers = #tpu.dot_dimension_numbers<[2], [1], [1], [2], [0, 0, 0, 1, 1, 2], [0], [0]>} : vector<32x1x3xf32>, vector<32x3x8xf32>, vector<32x1x8xf32> -> vector<32x1x8xf32>
    "tpu.trace_stop"() : () -> ()
    %c0_12 = arith.constant 0 : index
    %c0_13 = arith.constant 0 : index
    %c0_14 = arith.constant 0 : index
    %17 = vector.load %arg4[%c0_12, %c0_13, %c0_14] : memref<32x1x8xf32, #tpu.memory_space<vmem>>, vector<32x1x8xf32>
    tpu.vector_store %arg4[%c0_12, %c0_13, %c0_14], %16 {strides = array<i32>} : memref<32x1x8xf32, #tpu.memory_space<vmem>>, vector<32x1x8xf32>,
    return
  }
  func.func @transform_0(%arg0: i32) -> (i32, i32, i32) {
    %c0_i32 = arith.constant 0 : i32
    %c0_i32_0 = arith.constant 0 : i32
    %c0_i32_1 = arith.constant 0 : i32
    return %arg0, %c0_i32, %c0_i32_0 : i32, i32, i32
  }
  func.func @transform_1(%arg0: i32) -> (i32, i32, i32) {
    %c0_i32 = arith.constant 0 : i32
    %c0_i32_0 = arith.constant 0 : i32
    %c0_i32_1 = arith.constant 0 : i32
    return %arg0, %c0_i32, %c0_i32_0 : i32, i32, i32
  }
  func.func @transform_2(%arg0: i32) -> (i32, i32, i32) {
    %c0_i32 = arith.constant 0 : i32
    %c0_i32_0 = arith.constant 0 : i32
    %c0_i32_1 = arith.constant 0 : i32
    return %arg0, %c0_i32, %c0_i32_0 : i32, i32, i32
  }
  func.func @transform_3(%arg0: i32) -> (i32, i32, i32) {
    %c0_i32 = arith.constant 0 : i32
    %c0_i32_0 = arith.constant 0 : i32
    %c0_i32_1 = arith.constant 0 : i32
    return %arg0, %c0_i32, %c0_i32_0 : i32, i32, i32
  }
}

module attributes {stable_mosaic.version = 11 : i64} {
  func.func @kernel(%arg0: memref<16x32xf32, #tpu.memory_space<vmem>>, %arg1: memref<32x48xf32, #tpu.memory_space<vmem>>, %arg2: memref<16x48xf32, #tpu.memory_space<vmem>>) attributes {dimension_semantics = [], scalar_prefetch = 0 : i64, scratch_operands = 0 : i64, tpu.core_type = #tpu.core_type<tc>} {
    %c0 = arith.constant 0 : index
    %c0_0 = arith.constant 0 : index
    %0 = vector.load %arg0[%c0, %c0_0] : memref<16x32xf32, #tpu.memory_space<vmem>>, vector<16x32xf32>
    %c0_1 = arith.constant 0 : index
    %c0_2 = arith.constant 0 : index
    %1 = vector.load %arg1[%c0_1, %c0_2] : memref<32x48xf32, #tpu.memory_space<vmem>>, vector<32x48xf32>
    %cst = arith.constant dense<0.000000e+00> : vector<16x48xf32>
    %2 = tpu.matmul %0, %1, %cst {dimension_numbers = #tpu.dot_dimension_numbers<[1], [0], [0], [1], [0, 0, 1, 1], [], []>} : vector<16x32xf32>, vector<32x48xf32>, vector<16x48xf32> -> vector<16x48xf32>
    %cst_3 = arith.constant dense<0.000000e+00> : vector<48xf32>
    %3 = vector.multi_reduction <add>, %2, %cst_3 [0] : vector<16x48xf32> to vector<48xf32>
    %4 = vector.shape_cast %3 : vector<48xf32> to vector<1x48xf32>
    %cst_4 = arith.constant 1.600000e+01 : f32
    %5 = vector.broadcast %cst_4 : f32 to vector<1x48xf32>
    %6 = arith.divf %4, %5 : vector<1x48xf32>
    %7 = vector.broadcast %6 : vector<1x48xf32> to vector<16x48xf32>
    %8 = arith.subf %2, %7 : vector<16x48xf32>
    %9 = arith.mulf %8, %8 : vector<16x48xf32>
    %cst_5 = arith.constant dense<0.000000e+00> : vector<48xf32>
    %10 = vector.multi_reduction <add>, %9, %cst_5 [0] : vector<16x48xf32> to vector<48xf32>
    %11 = vector.shape_cast %10 : vector<48xf32> to vector<1x48xf32>
    %cst_6 = arith.constant 1.600000e+01 : f32
    %12 = vector.broadcast %cst_6 : f32 to vector<1x48xf32>
    %13 = arith.divf %11, %12 : vector<1x48xf32>
    %cst_7 = arith.constant 9.99999974E-6 : f32
    %14 = vector.broadcast %cst_7 : f32 to vector<1x48xf32>
    %15 = arith.addf %13, %14 : vector<1x48xf32>
    %16 = math.rsqrt %15 : vector<1x48xf32>
    %17 = vector.broadcast %16 : vector<1x48xf32> to vector<16x48xf32>
    %18 = arith.mulf %8, %17 : vector<16x48xf32>
    %cst_8 = arith.constant 0.000000e+00 : f32
    %19 = vector.broadcast %cst_8 : f32 to vector<16x48xf32>
    %20 = arith.maximumf %18, %19 : vector<16x48xf32>
    %c0_9 = arith.constant 0 : index
    %c0_10 = arith.constant 0 : index
    %21 = vector.load %arg2[%c0_9, %c0_10] : memref<16x48xf32, #tpu.memory_space<vmem>>, vector<16x48xf32>
    tpu.vector_store %arg2[%c0_9, %c0_10], %20 {strides = array<i32>} : memref<16x48xf32, #tpu.memory_space<vmem>>, vector<16x48xf32>,
    return
  }
}

module attributes {stable_mosaic.version = 11 : i64} {
  func.func @kernel(%arg0: i32, %arg1: memref<32x1x8xf32, #tpu.memory_space<vmem>>, %arg2: memref<32x1x8xf32, #tpu.memory_space<vmem>>, %arg3: memref<32x1x8xf32, #tpu.memory_space<vmem>>, %arg4: memref<32x1x8xf32, #tpu.memory_space<vmem>>) attributes {dimension_semantics = [#tpu.dimension_semantics<parallel>], iteration_bounds = array<i64: 1>, scalar_prefetch = 0 : i64, scratch_operands = 0 : i64, tpu.core_type = #tpu.core_type<tc>, window_params = [{transform_indices = @transform_0, window_bounds = array<i64: 32, 1, 8>}, {transform_indices = @transform_1, window_bounds = array<i64: 32, 1, 8>}, {transform_indices = @transform_2, window_bounds = array<i64: 32, 1, 8>}, {transform_indices = @transform_3, window_bounds = array<i64: 32, 1, 8>}]} {
    %c0 = arith.constant 0 : index
    %c0_0 = arith.constant 0 : index
    %c0_1 = arith.constant 0 : index
    %0 = vector.load %arg1[%c0, %c0_0, %c0_1] : memref<32x1x8xf32, #tpu.memory_space<vmem>>, vector<32x1x8xf32>
    %c0_2 = arith.constant 0 : index
    %c0_3 = arith.constant 0 : index
    %c0_4 = arith.constant 0 : index
    %1 = vector.load %arg2[%c0_2, %c0_3, %c0_4] : memref<32x1x8xf32, #tpu.memory_space<vmem>>, vector<32x1x8xf32>
    %c0_5 = arith.constant 0 : index
    %c0_6 = arith.constant 0 : index
    %c0_7 = arith.constant 0 : index
    %2 = vector.load %arg3[%c0_5, %c0_6, %c0_7] : memref<32x1x8xf32, #tpu.memory_space<vmem>>, vector<32x1x8xf32>
    "tpu.trace_start"() <{level = 10 : i32, message = "gqd,gkd->gqk"}> : () -> ()
    %cst = arith.constant dense<0.000000e+00> : vector<32x1x1xf32>
    %3 = tpu.matmul %0, %1, %cst {dimension_numbers = #tpu.dot_dimension_numbers<[2], [2], [1], [1], [0, 0, 0, 1, 1, 1], [0], [0]>} : vector<32x1x8xf32>, vector<32x1x8xf32>, vector<32x1x1xf32> -> vector<32x1x1xf32>
    "tpu.trace_stop"() : () -> ()
    %cst_8 = arith.constant 0.353553385 : f32
    %4 = vector.broadcast %cst_8 : f32 to vector<32x1x1xf32>
    %5 = arith.mulf %3, %4 : vector<32x1x1xf32>
    %cst_9 = arith.constant dense<0xFF800000> : vector<32x1xf32>
    %6 = vector.multi_reduction <maximumf>, %5, %cst_9 [2] : vector<32x1x1xf32> to vector<32x1xf32>
    %7 = vector.shape_cast %6 : vector<32x1xf32> to vector<32x1x1xf32>
    %8 = arith.subf %5, %7 : vector<32x1x1xf32>
    %9 = math.exp %8 : vector<32x1x1xf32>
    %cst_10 = arith.constant dense<0.000000e+00> : vector<32x1xf32>
    %10 = vector.multi_reduction <add>, %9, %cst_10 [2] : vector<32x1x1xf32> to vector<32x1xf32>
    %11 = vector.shape_cast %10 : vector<32x1xf32> to vector<32x1x1xf32>
    %12 = tpu.reciprocal %11 {approx = true} : vector<32x1x1xf32> -> vector<32x1x1xf32>
    %13 = arith.mulf %9, %12 : vector<32x1x1xf32>
    "tpu.trace_start"() <{level = 10 : i32, message = "gqk,gkd->gqd"}> : () -> ()
    %cst_11 = arith.constant dense<0.000000e+00> : vector<32x1x8xf32>
    %14 = tpu.matmul %13, %2, %cst_11 {dimension_numbers = #tpu.dot_dimension_numbers<[2], [1], [1], [2], [0, 0, 0, 1, 1, 2], [0], [0]>} : vector<32x1x1xf32>, vector<32x1x8xf32>, vector<32x1x8xf32> -> vector<32x1x8xf32>
    "tpu.trace_stop"() : () -> ()
    %c0_12 = arith.constant 0 : index
    %c0_13 = arith.constant 0 : index
    %c0_14 = arith.constant 0 : index
    %15 = vector.load %arg4[%c0_12, %c0_13, %c0_14] : memref<32x1x8xf32, #tpu.memory_space<vmem>>, vector<32x1x8xf32>
    tpu.vector_store %arg4[%c0_12, %c0_13, %c0_14], %14 {strides = array<i32>} : memref<32x1x8xf32, #tpu.memory_space<vmem>>, vector<32x1x8xf32>,
    return
  }
  func.func @transform_0(%arg0: i32) -> (i32, i32, i32) {
    %c0_i32 = arith.constant 0 : i32
    %c0_i32_0 = arith.constant 0 : i32
    %c0_i32_1 = arith.constant 0 : i32
    return %arg0, %c0_i32, %c0_i32_0 : i32, i32, i32
  }
  func.func @transform_1(%arg0: i32) -> (i32, i32, i32) {
    %c0_i32 = arith.constant 0 : i32
    %c0_i32_0 = arith.constant 0 : i32
    %c0_i32_1 = arith.constant 0 : i32
    return %arg0, %c0_i32, %c0_i32_0 : i32, i32, i32
  }
  func.func @transform_2(%arg0: i32) -> (i32, i32, i32) {
    %c0_i32 = arith.constant 0 : i32
    %c0_i32_0 = arith.constant 0 : i32
    %c0_i32_1 = arith.constant 0 : i32
    return %arg0, %c0_i32, %c0_i32_0 : i32, i32, i32
  }
  func.func @transform_3(%arg0: i32) -> (i32, i32, i32) {
    %c0_i32 = arith.constant 0 : i32
    %c0_i32_0 = arith.constant 0 : i32
    %c0_i32_1 = arith.constant 0 : i32
    return %arg0, %c0_i32, %c0_i32_0 : i32, i32, i32
  }
}

module attributes {stable_mosaic.version = 11 : i64} {
  func.func @kernel(%arg0: i32, %arg1: memref<4x8x8xf32, #tpu.memory_space<vmem>>, %arg2: memref<4x8x8xf32, #tpu.memory_space<vmem>>, %arg3: memref<4x8x8xf32, #tpu.memory_space<vmem>>, %arg4: memref<4x8x8xf32, #tpu.memory_space<vmem>>) attributes {dimension_semantics = [#tpu.dimension_semantics<parallel>], iteration_bounds = array<i64: 1>, scalar_prefetch = 0 : i64, scratch_operands = 0 : i64, tpu.core_type = #tpu.core_type<tc>, window_params = [{transform_indices = @transform_0, window_bounds = array<i64: 4, 8, 8>}, {transform_indices = @transform_1, window_bounds = array<i64: 4, 8, 8>}, {transform_indices = @transform_2, window_bounds = array<i64: 4, 8, 8>}, {transform_indices = @transform_3, window_bounds = array<i64: 4, 8, 8>}]} {
    %c0 = arith.constant 0 : index
    %c0_0 = arith.constant 0 : index
    %c0_1 = arith.constant 0 : index
    %0 = vector.load %arg1[%c0, %c0_0, %c0_1] : memref<4x8x8xf32, #tpu.memory_space<vmem>>, vector<4x8x8xf32>
    %c0_2 = arith.constant 0 : index
    %c0_3 = arith.constant 0 : index
    %c0_4 = arith.constant 0 : index
    %1 = vector.load %arg2[%c0_2, %c0_3, %c0_4] : memref<4x8x8xf32, #tpu.memory_space<vmem>>, vector<4x8x8xf32>
    %c0_5 = arith.constant 0 : index
    %c0_6 = arith.constant 0 : index
    %c0_7 = arith.constant 0 : index
    %2 = vector.load %arg3[%c0_5, %c0_6, %c0_7] : memref<4x8x8xf32, #tpu.memory_space<vmem>>, vector<4x8x8xf32>
    "tpu.trace_start"() <{level = 10 : i32, message = "gqd,gkd->gqk"}> : () -> ()
    %cst = arith.constant dense<0.000000e+00> : vector<4x8x8xf32>
    %3 = tpu.matmul %0, %1, %cst {dimension_numbers = #tpu.dot_dimension_numbers<[2], [2], [1], [1], [0, 0, 0, 1, 1, 1], [0], [0]>} : vector<4x8x8xf32>, vector<4x8x8xf32>, vector<4x8x8xf32> -> vector<4x8x8xf32>
    "tpu.trace_stop"() : () -> ()
    %cst_8 = arith.constant 0.353553385 : f32
    %4 = vector.broadcast %cst_8 : f32 to vector<4x8x8xf32>
    %5 = arith.mulf %3, %4 : vector<4x8x8xf32>
    %cst_9 = arith.constant dense<0xFF800000> : vector<4x8xf32>
    %6 = vector.multi_reduction <maximumf>, %5, %cst_9 [2] : vector<4x8x8xf32> to vector<4x8xf32>
    %7 = vector.shape_cast %6 : vector<4x8xf32> to vector<4x8x1xf32>
    %8 = vector.broadcast %7 : vector<4x8x1xf32> to vector<4x8x8xf32>
    %9 = arith.subf %5, %8 : vector<4x8x8xf32>
    %10 = math.exp %9 : vector<4x8x8xf32>
    %cst_10 = arith.constant dense<0.000000e+00> : vector<4x8xf32>
    %11 = vector.multi_reduction <add>, %10, %cst_10 [2] : vector<4x8x8xf32> to vector<4x8xf32>
    %12 = vector.shape_cast %11 : vector<4x8xf32> to vector<4x8x1xf32>
    %13 = tpu.reciprocal %12 {approx = true} : vector<4x8x1xf32> -> vector<4x8x1xf32>
    %14 = vector.broadcast %13 : vector<4x8x1xf32> to vector<4x8x8xf32>
    %15 = arith.mulf %10, %14 : vector<4x8x8xf32>
    "tpu.trace_start"() <{level = 10 : i32, message = "gqk,gkd->gqd"}> : () -> ()
    %cst_11 = arith.constant dense<0.000000e+00> : vector<4x8x8xf32>
    %16 = tpu.matmul %15, %2, %cst_11 {dimension_numbers = #tpu.dot_dimension_numbers<[2], [1], [1], [2], [0, 0, 0, 1, 1, 2], [0], [0]>} : vector<4x8x8xf32>, vector<4x8x8xf32>, vector<4x8x8xf32> -> vector<4x8x8xf32>
    "tpu.trace_stop"() : () -> ()
    %c0_12 = arith.constant 0 : index
    %c0_13 = arith.constant 0 : index
    %c0_14 = arith.constant 0 : index
    %17 = vector.load %arg4[%c0_12, %c0_13, %c0_14] : memref<4x8x8xf32, #tpu.memory_space<vmem>>, vector<4x8x8xf32>
    tpu.vector_store %arg4[%c0_12, %c0_13, %c0_14], %16 {strides = array<i32>} : memref<4x8x8xf32, #tpu.memory_space<vmem>>, vector<4x8x8xf32>,
    return
  }
  func.func @transform_0(%arg0: i32) -> (i32, i32, i32) {
    %c0_i32 = arith.constant 0 : i32
    %c0_i32_0 = arith.constant 0 : i32
    %c0_i32_1 = arith.constant 0 : i32
    return %arg0, %c0_i32, %c0_i32_0 : i32, i32, i32
  }
  func.func @transform_1(%arg0: i32) -> (i32, i32, i32) {
    %c0_i32 = arith.constant 0 : i32
    %c0_i32_0 = arith.constant 0 : i32
    %c0_i32_1 = arith.constant 0 : i32
    return %arg0, %c0_i32, %c0_i32_0 : i32, i32, i32
  }
  func.func @transform_2(%arg0: i32) -> (i32, i32, i32) {
    %c0_i32 = arith.constant 0 : i32
    %c0_i32_0 = arith.constant 0 : i32
    %c0_i32_1 = arith.constant 0 : i32
    return %arg0, %c0_i32, %c0_i32_0 : i32, i32, i32
  }
  func.func @transform_3(%arg0: i32) -> (i32, i32, i32) {
    %c0_i32 = arith.constant 0 : i32
    %c0_i32_0 = arith.constant 0 : i32
    %c0_i32_1 = arith.constant 0 : i32
    return %arg0, %c0_i32, %c0_i32_0 : i32, i32, i32
  }
}

module attributes {stable_mosaic.version = 11 : i64} {
  func.func @kernel(%arg0: memref<16x16xf32, #tpu.memory_space<vmem>>, %arg1: memref<16x16xf32, #tpu.memory_space<vmem>>, %arg2: memref<16x16xf32, #tpu.memory_space<vmem>>, %arg3: memref<16x16xf32, #tpu.memory_space<vmem>>, %arg4: memref<16x16xf32, #tpu.memory_space<vmem>>, %arg5: memref<16x16xf32, #tpu.memory_space<vmem>>, %arg6: memref<16x16xf32, #tpu.memory_space<vmem>>) attributes {dimension_semantics = [], scalar_prefetch = 0 : i64, scratch_operands = 0 : i64, tpu.core_type = #tpu.core_type<tc>} {
    %c0 = arith.constant 0 : index
    %c0_0 = arith.constant 0 : index
    %0 = vector.load %arg0[%c0, %c0_0] : memref<16x16xf32, #tpu.memory_space<vmem>>, vector<16x16xf32>
    %c0_1 = arith.constant 0 : index
    %c0_2 = arith.constant 0 : index
    %1 = vector.load %arg1[%c0_1, %c0_2] : memref<16x16xf32, #tpu.memory_space<vmem>>, vector<16x16xf32>
    %c0_3 = arith.constant 0 : index
    %c0_4 = arith.constant 0 : index
    %2 = vector.load %arg2[%c0_3, %c0_4] : memref<16x16xf32, #tpu.memory_space<vmem>>, vector<16x16xf32>
    %cst = arith.constant dense<0.000000e+00> : vector<16x16xf32>
    %3 = tpu.matmul %0, %2, %cst {dimension_numbers = #tpu.dot_dimension_numbers<[1], [0], [0], [1], [0, 0, 1, 1], [], []>} : vector<16x16xf32>, vector<16x16xf32>, vector<16x16xf32> -> vector<16x16xf32>
    %cst_5 = arith.constant dense<0.000000e+00> : vector<16xf32>
    %4 = vector.multi_reduction <add>, %3, %cst_5 [0] : vector<16x16xf32> to vector<16xf32>
    %5 = vector.shape_cast %4 : vector<16xf32> to vector<1x16xf32>
    %cst_6 = arith.constant 1.600000e+01 : f32
    %6 = vector.broadcast %cst_6 : f32 to vector<1x16xf32>
    %7 = arith.divf %5, %6 : vector<1x16xf32>
    %8 = vector.broadcast %7 : vector<1x16xf32> to vector<16x16xf32>
    %9 = arith.subf %3, %8 : vector<16x16xf32>
    %10 = arith.mulf %9, %9 : vector<16x16xf32>
    %cst_7 = arith.constant dense<0.000000e+00> : vector<16xf32>
    %11 = vector.multi_reduction <add>, %10, %cst_7 [0] : vector<16x16xf32> to vector<16xf32>
    %12 = vector.shape_cast %11 : vector<16xf32> to vector<1x16xf32>
    %cst_8 = arith.constant 1.600000e+01 : f32
    %13 = vector.broadcast %cst_8 : f32 to vector<1x16xf32>
    %14 = arith.divf %12, %13 : vector<1x16xf32>
    %cst_9 = arith.constant 9.99999974E-6 : f32
    %15 = vector.broadcast %cst_9 : f32 to vector<1x16xf32>
    %16 = arith.addf %14, %15 : vector<1x16xf32>
    %17 = math.rsqrt %16 : vector<1x16xf32>
    %18 = vector.broadcast %17 : vector<1x16xf32> to vector<16x16xf32>
    %19 = arith.mulf %9, %18 : vector<16x16xf32>
    %c0_10 = arith.constant 0 : index
    %c0_11 = arith.constant 0 : index
    %20 = vector.load %arg3[%c0_10, %c0_11] : memref<16x16xf32, #tpu.memory_space<vmem>>, vector<16x16xf32>
    %cst_12 = arith.constant dense<0.000000e+00> : vector<16x16xf32>
    %21 = tpu.matmul %1, %20, %cst_12 {dimension_numbers = #tpu.dot_dimension_numbers<[1], [0], [0], [1], [0, 0, 1, 1], [], []>} : vector<16x16xf32>, vector<16x16xf32>, vector<16x16xf32> -> vector<16x16xf32>
    %cst_13 = arith.constant dense<0.000000e+00> : vector<16xf32>
    %22 = vector.multi_reduction <add>, %21, %cst_13 [0] : vector<16x16xf32> to vector<16xf32>
    %23 = vector.shape_cast %22 : vector<16xf32> to vector<1x16xf32>
    %cst_14 = arith.constant 1.600000e+01 : f32
    %24 = vector.broadcast %cst_14 : f32 to vector<1x16xf32>
    %25 = arith.divf %23, %24 : vector<1x16xf32>
    %26 = vector.broadcast %25 : vector<1x16xf32> to vector<16x16xf32>
    %27 = arith.subf %21, %26 : vector<16x16xf32>
    %28 = arith.mulf %27, %27 : vector<16x16xf32>
    %cst_15 = arith.constant dense<0.000000e+00> : vector<16xf32>
    %29 = vector.multi_reduction <add>, %28, %cst_15 [0] : vector<16x16xf32> to vector<16xf32>
    %30 = vector.shape_cast %29 : vector<16xf32> to vector<1x16xf32>
    %cst_16 = arith.constant 1.600000e+01 : f32
    %31 = vector.broadcast %cst_16 : f32 to vector<1x16xf32>
    %32 = arith.divf %30, %31 : vector<1x16xf32>
    %cst_17 = arith.constant 9.99999974E-6 : f32
    %33 = vector.broadcast %cst_17 : f32 to vector<1x16xf32>
    %34 = arith.addf %32, %33 : vector<1x16xf32>
    %35 = math.rsqrt %34 : vector<1x16xf32>
    %36 = vector.broadcast %35 : vector<1x16xf32> to vector<16x16xf32>
    %37 = arith.mulf %27, %36 : vector<16x16xf32>
    %38 = arith.addf %19, %37 : vector<16x16xf32>
    %cst_18 = arith.constant 0.000000e+00 : f32
    %39 = vector.broadcast %cst_18 : f32 to vector<16x16xf32>
    %40 = arith.subf %39, %38 : vector<16x16xf32>
    %41 = math.exp %40 : vector<16x16xf32>
    %cst_19 = arith.constant 1.000000e+00 : f32
    %42 = vector.broadcast %cst_19 : f32 to vector<16x16xf32>
    %43 = arith.addf %42, %41 : vector<16x16xf32>
    %cst_20 = arith.constant 1.000000e+00 : f32
    %44 = vector.broadcast %cst_20 : f32 to vector<16x16xf32>
    %45 = arith.divf %44, %43 : vector<16x16xf32>
    %46 = arith.mulf %45, %0 : vector<16x16xf32>
    %cst_21 = arith.constant 1.000000e+00 : f32
    %47 = vector.broadcast %cst_21 : f32 to vector<16x16xf32>
    %48 = arith.subf %47, %45 : vector<16x16xf32>
    %49 = arith.mulf %48, %1 : vector<16x16xf32>
    %50 = arith.addf %46, %49 : vector<16x16xf32>
    %c0_22 = arith.constant 0 : index
    %c0_23 = arith.constant 0 : index
    %51 = vector.load %arg4[%c0_22, %c0_23] : memref<16x16xf32, #tpu.memory_space<vmem>>, vector<16x16xf32>
    %cst_24 = arith.constant dense<0.000000e+00> : vector<16x16xf32>
    %52 = tpu.matmul %50, %51, %cst_24 {dimension_numbers = #tpu.dot_dimension_numbers<[1], [0], [0], [1], [0, 0, 1, 1], [], []>} : vector<16x16xf32>, vector<16x16xf32>, vector<16x16xf32> -> vector<16x16xf32>
    %cst_25 = arith.constant dense<0.000000e+00> : vector<16xf32>
    %53 = vector.multi_reduction <add>, %52, %cst_25 [0] : vector<16x16xf32> to vector<16xf32>
    %54 = vector.shape_cast %53 : vector<16xf32> to vector<1x16xf32>
    %cst_26 = arith.constant 1.600000e+01 : f32
    %55 = vector.broadcast %cst_26 : f32 to vector<1x16xf32>
    %56 = arith.divf %54, %55 : vector<1x16xf32>
    %57 = vector.broadcast %56 : vector<1x16xf32> to vector<16x16xf32>
    %58 = arith.subf %52, %57 : vector<16x16xf32>
    %59 = arith.mulf %58, %58 : vector<16x16xf32>
    %cst_27 = arith.constant dense<0.000000e+00> : vector<16xf32>
    %60 = vector.multi_reduction <add>, %59, %cst_27 [0] : vector<16x16xf32> to vector<16xf32>
    %61 = vector.shape_cast %60 : vector<16xf32> to vector<1x16xf32>
    %cst_28 = arith.constant 1.600000e+01 : f32
    %62 = vector.broadcast %cst_28 : f32 to vector<1x16xf32>
    %63 = arith.divf %61, %62 : vector<1x16xf32>
    %cst_29 = arith.constant 9.99999974E-6 : f32
    %64 = vector.broadcast %cst_29 : f32 to vector<1x16xf32>
    %65 = arith.addf %63, %64 : vector<1x16xf32>
    %66 = math.rsqrt %65 : vector<1x16xf32>
    %67 = vector.broadcast %66 : vector<1x16xf32> to vector<16x16xf32>
    %68 = arith.mulf %58, %67 : vector<16x16xf32>
    %cst_30 = arith.constant 0.000000e+00 : f32
    %69 = vector.broadcast %cst_30 : f32 to vector<16x16xf32>
    %70 = arith.maximumf %68, %69 : vector<16x16xf32>
    %c0_31 = arith.constant 0 : index
    %c0_32 = arith.constant 0 : index
    %71 = vector.load %arg5[%c0_31, %c0_32] : memref<16x16xf32, #tpu.memory_space<vmem>>, vector<16x16xf32>
    %cst_33 = arith.constant dense<0.000000e+00> : vector<16x16xf32>
    %72 = tpu.matmul %70, %71, %cst_33 {dimension_numbers = #tpu.dot_dimension_numbers<[1], [0], [0], [1], [0, 0, 1, 1], [], []>} : vector<16x16xf32>, vector<16x16xf32>, vector<16x16xf32> -> vector<16x16xf32>
    %cst_34 = arith.constant dense<0.000000e+00> : vector<16xf32>
    %73 = vector.multi_reduction <add>, %72, %cst_34 [0] : vector<16x16xf32> to vector<16xf32>
    %74 = vector.shape_cast %73 : vector<16xf32> to vector<1x16xf32>
    %cst_35 = arith.constant 1.600000e+01 : f32
    %75 = vector.broadcast %cst_35 : f32 to vector<1x16xf32>
    %76 = arith.divf %74, %75 : vector<1x16xf32>
    %77 = vector.broadcast %76 : vector<1x16xf32> to vector<16x16xf32>
    %78 = arith.subf %72, %77 : vector<16x16xf32>
    %79 = arith.mulf %78, %78 : vector<16x16xf32>
    %cst_36 = arith.constant dense<0.000000e+00> : vector<16xf32>
    %80 = vector.multi_reduction <add>, %79, %cst_36 [0] : vector<16x16xf32> to vector<16xf32>
    %81 = vector.shape_cast %80 : vector<16xf32> to vector<1x16xf32>
    %cst_37 = arith.constant 1.600000e+01 : f32
    %82 = vector.broadcast %cst_37 : f32 to vector<1x16xf32>
    %83 = arith.divf %81, %82 : vector<1x16xf32>
    %cst_38 = arith.constant 9.99999974E-6 : f32
    %84 = vector.broadcast %cst_38 : f32 to vector<1x16xf32>
    %85 = arith.addf %83, %84 : vector<1x16xf32>
    %86 = math.rsqrt %85 : vector<1x16xf32>
    %87 = vector.broadcast %86 : vector<1x16xf32> to vector<16x16xf32>
    %88 = arith.mulf %78, %87 : vector<16x16xf32>
    %c0_39 = arith.constant 0 : index
    %c0_40 = arith.constant 0 : index
    %89 = vector.load %arg6[%c0_39, %c0_40] : memref<16x16xf32, #tpu.memory_space<vmem>>, vector<16x16xf32>
    tpu.vector_store %arg6[%c0_39, %c0_40], %88 {strides = array<i32>} : memref<16x16xf32, #tpu.memory_space<vmem>>, vector<16x16xf32>,
    return
  }
}

module attributes {stable_mosaic.version = 11 : i64} {
  func.func @kernel(%arg0: memref<16x16xf32, #tpu.memory_space<vmem>>, %arg1: memref<16x16xf32, #tpu.memory_space<vmem>>, %arg2: memref<16x1xf32, #tpu.memory_space<vmem>>, %arg3: memref<16x1xf32, #tpu.memory_space<vmem>>) attributes {dimension_semantics = [], scalar_prefetch = 0 : i64, scratch_operands = 0 : i64, tpu.core_type = #tpu.core_type<tc>} {
    %c0 = arith.constant 0 : index
    %c0_0 = arith.constant 0 : index
    %0 = vector.load %arg0[%c0, %c0_0] : memref<16x16xf32, #tpu.memory_space<vmem>>, vector<16x16xf32>
    %c0_1 = arith.constant 0 : index
    %c0_2 = arith.constant 0 : index
    %1 = vector.load %arg1[%c0_1, %c0_2] : memref<16x16xf32, #tpu.memory_space<vmem>>, vector<16x16xf32>
    %cst = arith.constant dense<0.000000e+00> : vector<16x16xf32>
    %2 = tpu.matmul %0, %1, %cst {dimension_numbers = #tpu.dot_dimension_numbers<[1], [0], [0], [1], [0, 0, 1, 1], [], []>} : vector<16x16xf32>, vector<16x16xf32>, vector<16x16xf32> -> vector<16x16xf32>
    %cst_3 = arith.constant dense<0.000000e+00> : vector<16xf32>
    %3 = vector.multi_reduction <add>, %2, %cst_3 [0] : vector<16x16xf32> to vector<16xf32>
    %4 = vector.shape_cast %3 : vector<16xf32> to vector<1x16xf32>
    %cst_4 = arith.constant 1.600000e+01 : f32
    %5 = vector.broadcast %cst_4 : f32 to vector<1x16xf32>
    %6 = arith.divf %4, %5 : vector<1x16xf32>
    %7 = vector.broadcast %6 : vector<1x16xf32> to vector<16x16xf32>
    %8 = arith.subf %2, %7 : vector<16x16xf32>
    %9 = arith.mulf %8, %8 : vector<16x16xf32>
    %cst_5 = arith.constant dense<0.000000e+00> : vector<16xf32>
    %10 = vector.multi_reduction <add>, %9, %cst_5 [0] : vector<16x16xf32> to vector<16xf32>
    %11 = vector.shape_cast %10 : vector<16xf32> to vector<1x16xf32>
    %cst_6 = arith.constant 1.600000e+01 : f32
    %12 = vector.broadcast %cst_6 : f32 to vector<1x16xf32>
    %13 = arith.divf %11, %12 : vector<1x16xf32>
    %cst_7 = arith.constant 9.99999974E-6 : f32
    %14 = vector.broadcast %cst_7 : f32 to vector<1x16xf32>
    %15 = arith.addf %13, %14 : vector<1x16xf32>
    %16 = math.rsqrt %15 : vector<1x16xf32>
    %17 = vector.broadcast %16 : vector<1x16xf32> to vector<16x16xf32>
    %18 = arith.mulf %8, %17 : vector<16x16xf32>
    %cst_8 = arith.constant 0.000000e+00 : f32
    %19 = vector.broadcast %cst_8 : f32 to vector<16x16xf32>
    %20 = arith.maximumf %18, %19 : vector<16x16xf32>
    %c0_9 = arith.constant 0 : index
    %c0_10 = arith.constant 0 : index
    %21 = vector.load %arg2[%c0_9, %c0_10] : memref<16x1xf32, #tpu.memory_space<vmem>>, vector<16x1xf32>
    %cst_11 = arith.constant dense<0.000000e+00> : vector<16x1xf32>
    %22 = tpu.matmul %20, %21, %cst_11 {dimension_numbers = #tpu.dot_dimension_numbers<[1], [0], [0], [1], [0, 0, 1, 1], [], []>} : vector<16x16xf32>, vector<16x1xf32>, vector<16x1xf32> -> vector<16x1xf32>
    %cst_12 = arith.constant dense<0.000000e+00> : vector<1xf32>
    %23 = vector.multi_reduction <add>, %22, %cst_12 [0] : vector<16x1xf32> to vector<1xf32>
    %24 = vector.shape_cast %23 : vector<1xf32> to vector<1x1xf32>
    %cst_13 = arith.constant 1.600000e+01 : f32
    %25 = vector.broadcast %cst_13 : f32 to vector<1x1xf32>
    %26 = arith.divf %24, %25 : vector<1x1xf32>
    %27 = vector.broadcast %26 : vector<1x1xf32> to vector<16x1xf32>
    %28 = arith.subf %22, %27 : vector<16x1xf32>
    %29 = arith.mulf %28, %28 : vector<16x1xf32>
    %cst_14 = arith.constant dense<0.000000e+00> : vector<1xf32>
    %30 = vector.multi_reduction <add>, %29, %cst_14 [0] : vector<16x1xf32> to vector<1xf32>
    %31 = vector.shape_cast %30 : vector<1xf32> to vector<1x1xf32>
    %cst_15 = arith.constant 1.600000e+01 : f32
    %32 = vector.broadcast %cst_15 : f32 to vector<1x1xf32>
    %33 = arith.divf %31, %32 : vector<1x1xf32>
    %cst_16 = arith.constant 9.99999974E-6 : f32
    %34 = vector.broadcast %cst_16 : f32 to vector<1x1xf32>
    %35 = arith.addf %33, %34 : vector<1x1xf32>
    %36 = math.rsqrt %35 : vector<1x1xf32>
    %37 = vector.broadcast %36 : vector<1x1xf32> to vector<16x1xf32>
    %38 = arith.mulf %28, %37 : vector<16x1xf32>
    %c0_17 = arith.constant 0 : index
    %c0_18 = arith.constant 0 : index
    %39 = vector.load %arg3[%c0_17, %c0_18] : memref<16x1xf32, #tpu.memory_space<vmem>>, vector<16x1xf32>
    tpu.vector_store %arg3[%c0_17, %c0_18], %38 {strides = array<i32>} : memref<16x1xf32, #tpu.memory_space<vmem>>, vector<16x1xf32>,
    return
  }
}

</mosaic_0001>

<bundles_post_ra>
// kernel: custom-call
= control target key start
LH: loop header
LB: loop body
LE: loop exit
PB: predicated region body
PF: predicated region fallthrough
CT: control target
= control target key end

     0   :  { %s6_s0 = inlined_call_operand.vmem [shape: f32[2,2,8,1], index: 0, kind: output, shape index: {}]  }

// kernel: closed_call.162
= control target key start
LH: loop header
LB: loop body
LE: loop exit
PB: predicated region body
PF: predicated region fallthrough
CT: control target
= control target key end

     0   :  { %v315_v0 = vmov 0.0|0.0   ;;  %vm316_vm0 = vmmov 0   ;;  %v317_v4 = vmov 0.0   ;;  %vm32_vm1 = vcmask 1040384   ;;  %s395_s1 = inlined_call_operand.vmem [shape: f32[97,16], index: 1, kind: input, shape index: {}]   ;;  %s396_s0 = inlined_call_operand.vmem [shape: f32[8,97], index: 0, kind: input, shape index: {}]   ;;  %s397_s2 = inlined_call_operand.vmem [shape: f32[16,16], index: 2, kind: input, shape index: {}]   ;;  %s398_s3 = inlined_call_operand.vmem [shape: f32[8,16], index: 3, kind: output, shape index: {}]  }
   0x1   :  { %287 = vmatprep.subr.bf16.mxu0 %v315_v0  ;;  %v15_v1 = vld [vmem:[%s395_s1] sm:$0xff]  ;;  %v16_v2 = vld [vmem:[%s395_s1 + $0x8] sm:$0xff]  ;;  %v17_v3 = vld [vmem:[%s395_s1 + $0x10] sm:$0xff]  ;;  %277 = vmatprep.mubr.msk.f32.mxu0 %vm316_vm0, %v317_v4  ;;  %vm28_vm2 = vcmask 793600   ;;  %vm106_vm3 = vcmask 130048  }
   0x2   :  { %v288_v5 = vpack.c.bf16 %v16_v2, %v15_v1  ;;  %v18_v6 = vld [vmem:[%s395_s1 + $0x18] sm:$0xff]  ;;  %305 = vmatprep.subr.bf16.mxu1 %v315_v0  ;;  %284 = vmatprep.mubr.msk.f32.mxu1 %vm316_vm0, %v317_v4  ;;  %v19_v8 = vld [vmem:[%s395_s1 + $0x20] sm:$0xff]  ;;  %v20_v9 = vld [vmem:[%s395_s1 + $0x28] sm:$0xff] }
   0x3   :  { %v291_v7 = vpack.c.bf16 %v18_v6, %v17_v3  ;;  %v294_v10 = vpack.c.bf16 %v20_v9, %v19_v8  ;;  %v21_v11 = vld [vmem:[%s395_s1 + $0x30] sm:$0xff]  ;;  %v22_v12 = vld [vmem:[%s395_s1 + $0x38] sm:$0xff]  ;;  %v23_v14 = vld [vmem:[%s395_s1 + $0x40] sm:$0xff] }
   0x4   :  { %289 = vmatpush3.bf16.msra.mxu0 %v288_v5  ;;  %v297_v13 = vpack.c.bf16 %v22_v12, %v21_v11  ;;  %v24_v15 = vld [vmem:[%s395_s1 + $0x48] sm:$0xff]  ;;  %v25_v17 = vld [vmem:[%s395_s1 + $0x50] sm:$0xff]  ;;  %v26_v18 = vld [vmem:[%s395_s1 + $0x58] sm:$0xff] }
   0x5   :  { %290 = vmatprep.subr.bf16.mxu0 %v315_v0  ;;  %v300_v16 = vpack.c.bf16 %v24_v15, %v23_v14  ;;  %v303_v19 = vpack.c.bf16 %v26_v18, %v25_v17  ;;  %v27_v20 = vld [vmem:[%s395_s1 + $0x60] sm:$0x1]  ;;  %v131_v23 = vld [vmem:[%s397_s2 + $0x8] sm:$0xff] }
   0x6   :  { %v14_v21 = vld [vmem:[%s396_s0] sm:$0xff] }
   0x7   :  { %v130_v22 = vld [vmem:[%s397_s2] sm:$0xff] }
   0x8   :  { %292 = vmatpush3.bf16.msra.mxu0 %v291_v7  ;;  %v306_v24 = vpack.c.bf16 %v131_v23, %v130_v22 }
   0x9   :  { %293 = vmatprep.subr.bf16.mxu0 %v315_v0 }
   0xa   :  { %307 = vmatpush3.bf16.msra.mxu1 %v306_v24 }
   0xc   :  { %295 = vmatpush3.bf16.msra.mxu0 %v294_v10 }
   0xd   :  { %296 = vmatprep.subr.bf16.mxu0 %v315_v0 }
  0x10   :  { %298 = vmatpush3.bf16.msra.mxu0 %v297_v13 }
  0x11   :  { %299 = vmatprep.subr.bf16.mxu0 %v315_v0 }
  0x14   :  { %301 = vmatpush3.bf16.msra.mxu0 %v300_v16 }
  0x15   :  { %302 = vmatprep.subr.bf16.mxu0 %v315_v0 }
  0x18   :  { %304 = vmatpush3.bf16.msra.mxu0 %v303_v19 }
  0x19   :  { %275 = vmatprep.subr.mxu0 %v317_v4 }
  0x1c   :  { %276 = vmatpush3.msk.msra.mxu0 %vm32_vm1, %v27_v20 }
  0x1d   :  { %278 = vmatmul.mubr.msk.f32.vlgmr.msra.gmra.mrb[0].mxu0 %vm28_vm2, %v14_v21 }
  0xf0   :  { %v102_v25 = vpop.f32.mrb[0].mxu0 }
  0xf1   :  { %v107_v26 = vsel %vm106_vm3, %v102_v25, 0.0  ;;  %v279_v27 = vpop.f32.mrb[1].mxu0 }
  0xf2   :  { %v108_v28 = vrot.slane %v107_v26, 4 }
  0xf4   :  { %v109_v29 = vadd.f32 %v108_v28, %v107_v26 }
  0xf6   :  { %v110_v30 = vrot.slane %v109_v29, 2 }
  0xf8   :  { %v111_v31 = vadd.f32 %v110_v30, %v109_v29 }
  0xfa   :  { %v112_v32 = vrot.slane %v111_v31, 1 }
  0xfc   :  { %v113_v33 = vadd.f32 %v112_v32, %v111_v31 }
  0xfe   :  { %v115_v34 = vmul.f32 0.125, %v113_v33 }
 0x100   :  { %v116_v35 = vsub.f32 %v102_v25, %v115_v34 }
 0x102   :  { %v117_v36 = vmul.f32 %v116_v35, %v116_v35 }
 0x104   :  { %v118_v37 = vsel %vm106_vm3, %v117_v36, 0.0 }
 0x105   :  { %v119_v38 = vrot.slane %v118_v37, 4 }
 0x107   :  { %v120_v39 = vadd.f32 %v119_v38, %v118_v37 }
 0x109   :  { %v121_v40 = vrot.slane %v120_v39, 2 }
 0x10b   :  { %v122_v41 = vadd.f32 %v121_v40, %v120_v39 }
 0x10d   :  { %v123_v42 = vrot.slane %v122_v41, 1 }
 0x10f   :  { %v124_v43 = vadd.f32 %v123_v42, %v122_v41 }
 0x111   :  { %v125_v44 = vmul.f32 0.125, %v124_v43 }
 0x113   :  { %v126_v45 = vadd.f32 1e-05, %v125_v44 }
 0x115   :  { %311 = vrsqrt.f32 %v126_v45 }
 0x11f   :  { %v312_v46 = vpop.eup %311 }
 0x120   :  { %v128_v47 = vmul.f32 %v312_v46, %v116_v35 }
 0x122   :  { %v129_v48 = vmax.f32 %v128_v47, 0.0 }
 0x124   :  { %285 = vmatmul.mubr.msk.f32.vlgmr.msra.gmra.mrb[0].mxu1 %vm106_vm3, %v129_v48 }
 0x1f7   :  { %v201_v49 = vpop.f32.mrb[0].mxu1 }
 0x1f8   :  { %v205_v50 = vsel %vm106_vm3, %v201_v49, 0.0  ;;  %v286_v51 = vpop.f32.mrb[1].mxu1 }
 0x1f9   :  { %v206_v52 = vrot.slane %v205_v50, 4 }
 0x1fb   :  { %v207_v53 = vadd.f32 %v206_v52, %v205_v50 }
 0x1fd   :  { %v208_v54 = vrot.slane %v207_v53, 2 }
 0x1ff   :  { %v209_v55 = vadd.f32 %v208_v54, %v207_v53 }
 0x201   :  { %v210_v56 = vrot.slane %v209_v55, 1 }
 0x203   :  { %v211_v57 = vadd.f32 %v210_v56, %v209_v55 }
 0x205   :  { %v212_v58 = vmul.f32 0.125, %v211_v57 }
 0x207   :  { %v213_v59 = vsub.f32 %v201_v49, %v212_v58 }
 0x209   :  { %v214_v60 = vmul.f32 %v213_v59, %v213_v59 }
 0x20b   :  { %v215_v61 = vsel %vm106_vm3, %v214_v60, 0.0 }
 0x20c   :  { %v216_v62 = vrot.slane %v215_v61, 4 }
 0x20e   :  { %v217_v63 = vadd.f32 %v216_v62, %v215_v61 }
 0x210   :  { %v218_v0 = vrot.slane %v217_v63, 2 }
 0x212   :  { %v219_v1 = vadd.f32 %v218_v0, %v217_v63 }
 0x214   :  { %v220_v2 = vrot.slane %v219_v1, 1 }
 0x216   :  { %v221_v3 = vadd.f32 %v220_v2, %v219_v1 }
 0x218   :  { %v222_v4 = vmul.f32 0.125, %v221_v3 }
 0x21a   :  { %v223_v5 = vadd.f32 1e-05, %v222_v4 }
 0x21c   :  { %313 = vrsqrt.f32 %v223_v5 }
 0x226   :  { %v314_v6 = vpop.eup %313 }
 0x227   :  { %v225_v7 = vmul.f32 %v314_v6, %v213_v59 }
 0x229   :  { %226 = vst.msk [vmem:[%s398_s3] sm:$0xff] %vm106_vm3, %v225_v7 }

// kernel: closed_call.161
= control target key start
LH: loop header
LB: loop body
LE: loop exit
PB: predicated region body
PF: predicated region fallthrough
CT: control target
= control target key end

     0   :  { %v250_v0 = vmov 0.0|0.0   ;;  %vm251_vm0 = vmmov 0   ;;  %v252_v3 = vmov 0.0   ;;  %vm17_vm1 = vcmask 130048   ;;  %s298_s1 = inlined_call_operand.vmem [shape: f32[16,16], index: 1, kind: input, shape index: {}]   ;;  %s299_s0 = inlined_call_operand.vmem [shape: f32[8,16], index: 0, kind: input, shape index: {}]   ;;  %s300_s2 = inlined_call_operand.vmem [shape: f32[16,16], index: 2, kind: input, shape index: {}]   ;;  %s301_s3 = inlined_call_operand.vmem [shape: f32[8,16], index: 3, kind: output, shape index: {}]  }
   0x1   :  { %237 = vmatprep.subr.bf16.mxu0 %v250_v0  ;;  %v15_v1 = vld [vmem:[%s298_s1] sm:$0xff]  ;;  %v16_v2 = vld [vmem:[%s298_s1 + $0x8] sm:$0xff]  ;;  %227 = vmatprep.mubr.msk.f32.mxu0 %vm251_vm0, %v252_v3 }
   0x2   :  { %v238_v4 = vpack.c.bf16 %v16_v2, %v15_v1  ;;  %240 = vmatprep.subr.bf16.mxu1 %v250_v0  ;;  %234 = vmatprep.mubr.msk.f32.mxu1 %vm251_vm0, %v252_v3  ;;  %v14_v5 = vld [vmem:[%s299_s0] sm:$0xff]  ;;  %v115_v7 = vld [vmem:[%s300_s2 + $0x8] sm:$0xff] }
   0x3   :  { %v114_v6 = vld [vmem:[%s300_s2] sm:$0xff] }
   0x4   :  { %239 = vmatpush3.bf16.msra.mxu0 %v238_v4  ;;  %v241_v8 = vpack.c.bf16 %v115_v7, %v114_v6 }
   0x6   :  { %242 = vmatpush3.bf16.msra.mxu1 %v241_v8 }
   0x7   :  { %228 = vmatmul.mubr.msk.f32.vlgmr.msra.gmra.mrb[0].mxu0 %vm17_vm1, %v14_v5 }
  0xda   :  { %v87_v9 = vpop.f32.mrb[0].mxu0 }
  0xdb   :  { %v91_v10 = vsel %vm17_vm1, %v87_v9, 0.0  ;;  %v229_v11 = vpop.f32.mrb[1].mxu0 }
  0xdc   :  { %v92_v12 = vrot.slane %v91_v10, 4 }
  0xde   :  { %v93_v13 = vadd.f32 %v92_v12, %v91_v10 }
  0xe0   :  { %v94_v14 = vrot.slane %v93_v13, 2 }
  0xe2   :  { %v95_v15 = vadd.f32 %v94_v14, %v93_v13 }
  0xe4   :  { %v96_v16 = vrot.slane %v95_v15, 1 }
  0xe6   :  { %v97_v17 = vadd.f32 %v96_v16, %v95_v15 }
  0xe8   :  { %v99_v18 = vmul.f32 0.125, %v97_v17 }
  0xea   :  { %v100_v19 = vsub.f32 %v87_v9, %v99_v18 }
  0xec   :  { %v101_v20 = vmul.f32 %v100_v19, %v100_v19 }
  0xee   :  { %v102_v21 = vsel %vm17_vm1, %v101_v20, 0.0 }
  0xef   :  { %v103_v22 = vrot.slane %v102_v21, 4 }
  0xf1   :  { %v104_v23 = vadd.f32 %v103_v22, %v102_v21 }
  0xf3   :  { %v105_v24 = vrot.slane %v104_v23, 2 }
  0xf5   :  { %v106_v25 = vadd.f32 %v105_v24, %v104_v23 }
  0xf7   :  { %v107_v26 = vrot.slane %v106_v25, 1 }
  0xf9   :  { %v108_v27 = vadd.f32 %v107_v26, %v106_v25 }
  0xfb   :  { %v109_v28 = vmul.f32 0.125, %v108_v27 }
  0xfd   :  { %v110_v29 = vadd.f32 1e-05, %v109_v28 }
  0xff   :  { %246 = vrsqrt.f32 %v110_v29 }
 0x109   :  { %v247_v30 = vpop.eup %246 }
 0x10a   :  { %v112_v31 = vmul.f32 %v247_v30, %v100_v19 }
 0x10c   :  { %v113_v32 = vmax.f32 %v112_v31, 0.0 }
 0x10e   :  { %235 = vmatmul.mubr.msk.f32.vlgmr.msra.gmra.mrb[0].mxu1 %vm17_vm1, %v113_v32 }
 0x1e1   :  { %v185_v33 = vpop.f32.mrb[0].mxu1 }
 0x1e2   :  { %v189_v34 = vsel %vm17_vm1, %v185_v33, 0.0  ;;  %v236_v35 = vpop.f32.mrb[1].mxu1 }
 0x1e3   :  { %v190_v36 = vrot.slane %v189_v34, 4 }
 0x1e5   :  { %v191_v37 = vadd.f32 %v190_v36, %v189_v34 }
 0x1e7   :  { %v192_v38 = vrot.slane %v191_v37, 2 }
 0x1e9   :  { %v193_v39 = vadd.f32 %v192_v38, %v191_v37 }
 0x1eb   :  { %v194_v40 = vrot.slane %v193_v39, 1 }
 0x1ed   :  { %v195_v41 = vadd.f32 %v194_v40, %v193_v39 }
 0x1ef   :  { %v196_v42 = vmul.f32 0.125, %v195_v41 }
 0x1f1   :  { %v197_v43 = vsub.f32 %v185_v33, %v196_v42 }
 0x1f3   :  { %v198_v44 = vmul.f32 %v197_v43, %v197_v43 }
 0x1f5   :  { %v199_v45 = vsel %vm17_vm1, %v198_v44, 0.0 }
 0x1f6   :  { %v200_v46 = vrot.slane %v199_v45, 4 }
 0x1f8   :  { %v201_v47 = vadd.f32 %v200_v46, %v199_v45 }
 0x1fa   :  { %v202_v48 = vrot.slane %v201_v47, 2 }
 0x1fc   :  { %v203_v49 = vadd.f32 %v202_v48, %v201_v47 }
 0x1fe   :  { %v204_v50 = vrot.slane %v203_v49, 1 }
 0x200   :  { %v205_v51 = vadd.f32 %v204_v50, %v203_v49 }
 0x202   :  { %v206_v52 = vmul.f32 0.125, %v205_v51 }
 0x204   :  { %v207_v53 = vadd.f32 1e-05, %v206_v52 }
 0x206   :  { %248 = vrsqrt.f32 %v207_v53 }
 0x210   :  { %v249_v54 = vpop.eup %248 }
 0x211   :  { %v209_v55 = vmul.f32 %v249_v54, %v197_v43 }
 0x213   :  { %210 = vst.msk [vmem:[%s301_s3] sm:$0xff] %vm17_vm1, %v209_v55 }

// kernel: closed_call.165
= control target key start
LH: loop header
LB: loop body
LE: loop exit
PB: predicated region body
PF: predicated region fallthrough
CT: control target
= control target key end

     0   :  { %vm40_vm0 = vcmask 1041408   ;;  %vm21_vm1 = vcmask 15360   ;;  %vm139_vm2 = vcmask 130048   ;;  %s545_s1 = inlined_call_operand.vmem [shape: f32[2,16], index: 1, kind: input, shape index: {}]   ;;  %s546_s0 = inlined_call_operand.vmem [shape: f32[48,2], index: 0, kind: input, shape index: {}]   ;;  %s547_s2 = inlined_call_operand.vmem [shape: f32[16,16], index: 2, kind: input, shape index: {}]   ;;  %s548_s3 = inlined_call_operand.vmem [shape: f32[48,16], index: 3, kind: output, shape index: {}]  }
   0x1   :  { %v20_v0 = vld [vmem:[%s545_s1] sm:$0x3]  ;;  %v15_v2 = vld [vmem:[%s546_s0 + $0x8] sm:$0xff]  ;;  %v16_v3 = vld [vmem:[%s546_s0 + $0x10] sm:$0xff] }
   0x2   :  { %v14_v1 = vld [vmem:[%s546_s0] sm:$0xff]  ;;  %412 = vmatprep.subr.msk.mxu0 %vm40_vm0, %v20_v0  ;;  %v17_v4 = vld [vmem:[%s546_s0 + $0x18] sm:$0xff]  ;;  %v19_v6 = vld [vmem:[%s546_s0 + $0x28] sm:$0xff] }
   0x3   :  { %414 = vmatprep.mubr.msk.f32.mxu0 %vm21_vm1, %v14_v1  ;;  %413 = vmatpush3.msk.msra.mxu0 %vm40_vm0, %v20_v0  ;;  %v18_v5 = vld [vmem:[%s546_s0 + $0x20] sm:$0xff]  ;;  %v204_v8 = vld [vmem:[%s547_s2 + $0x8] sm:$0xff] }
   0x4   :  { %415 = vmatmul.mubr.msk.f32.vlgmr.msra.gmra.mrb[0].mxu0 %vm21_vm1, %v15_v2  ;;  %v203_v7 = vld [vmem:[%s547_s2] sm:$0xff] }
   0x5   :  { %417 = vmatprep.mubr.msk.f32.mxu0 %vm21_vm1, %v16_v3  ;;  %v436_v9 = vpack.c.bf16 %v204_v8, %v203_v7 }
   0x7   :  { %437 = vmatprep.subr.bf16.mxu1 %v436_v9 }
   0x8   :  { %418 = vmatmul.mubr.msk.f32.gmra.mrb[2].mxu0 %vm21_vm1, %v17_v4  ;;  %439 = vmatpush3.bf16.msra.mxu1 %v436_v9 }
   0x9   :  { %420 = vmatprep.mubr.msk.f32.mxu0 %vm21_vm1, %v18_v5 }
   0xc   :  { %421 = vmatmul.mubr.msk.f32.gmra.mrb[4].mxu0 %vm21_vm1, %v19_v6 }
  0xd7   :  { %v416_v10 = vpop.f32.mrb[0].mxu0 }
  0xd8   :  { %v141_v11 = vsel %vm139_vm2, %v416_v10, 0.0  ;;  %v110_v12 = vpop.f32.mrb[1].mxu0 }
  0xd9   :  { %v140_v13 = vsel %vm139_vm2, %v110_v12, 0.0 }
  0xda   :  { %v142_v14 = vadd.f32 %v141_v11, %v140_v13 }
  0xdb   :  { %v419_v15 = vpop.f32.mrb[2].mxu0 }
  0xdc   :  { %v120_v16 = vpop.f32.mrb[3].mxu0  ;;  %v145_v19 = vsel %vm139_vm2, %v419_v15, 0.0 }
  0xdd   :  { %v143_v17 = vsel %vm139_vm2, %v120_v16, 0.0 }
  0xde   :  { %v144_v18 = vadd.f32 %v143_v17, %v142_v14 }
  0xdf   :  { %v422_v20 = vpop.f32.mrb[4].mxu0 }
  0xe0   :  { %v130_v21 = vpop.f32.mrb[5].mxu0  ;;  %v146_v22 = vadd.f32 %v145_v19, %v144_v18  ;;  %v149_v25 = vsel %vm139_vm2, %v422_v20, 0.0 }
  0xe1   :  { %v147_v23 = vsel %vm139_vm2, %v130_v21, 0.0 }
  0xe2   :  { %v148_v24 = vadd.f32 %v147_v23, %v146_v22 }
  0xe4   :  { %v150_v26 = vadd.f32 %v149_v25, %v148_v24 }
  0xe6   :  { %v151_v27 = vrot.slane %v150_v26, 4 }
  0xe8   :  { %v152_v28 = vadd.f32 %v151_v27, %v150_v26 }
  0xea   :  { %v153_v29 = vrot.slane %v152_v28, 2 }
  0xec   :  { %v154_v30 = vadd.f32 %v153_v29, %v152_v28 }
  0xee   :  { %v155_v31 = vrot.slane %v154_v30, 1 }
  0xf0   :  { %v156_v32 = vadd.f32 %v155_v31, %v154_v30 }
  0xf2   :  { %v158_v33 = vmul.f32 0.020833334, %v156_v32 }
  0xf4   :  { %v159_v34 = vsub.f32 %v110_v12, %v158_v33  ;;  %v160_v35 = vsub.f32 %v416_v10, %v158_v33  ;;  %v161_v36 = vsub.f32 %v120_v16, %v158_v33  ;;  %v162_v37 = vsub.f32 %v419_v15, %v158_v33 }
  0xf5   :  { %v163_v38 = vsub.f32 %v130_v21, %v158_v33  ;;  %v164_v39 = vsub.f32 %v422_v20, %v158_v33 }
  0xf6   :  { %v165_v40 = vmul.f32 %v159_v34, %v159_v34  ;;  %v166_v41 = vmul.f32 %v160_v35, %v160_v35  ;;  %v167_v42 = vmul.f32 %v161_v36, %v161_v36  ;;  %v168_v43 = vmul.f32 %v162_v37, %v162_v37 }
  0xf7   :  { %v169_v47 = vmul.f32 %v163_v38, %v163_v38  ;;  %v170_v50 = vmul.f32 %v164_v39, %v164_v39 }
  0xf8   :  { %v171_v44 = vsel %vm139_vm2, %v165_v40, 0.0  ;;  %v172_v45 = vsel %vm139_vm2, %v166_v41, 0.0  ;;  %v174_v48 = vsel %vm139_vm2, %v167_v42, 0.0  ;;  %v176_v51 = vsel %vm139_vm2, %v168_v43, 0.0 }
  0xf9   :  { %v173_v46 = vadd.f32 %v172_v45, %v171_v44  ;;  %v178_v53 = vsel %vm139_vm2, %v169_v47, 0.0  ;;  %v180_v55 = vsel %vm139_vm2, %v170_v50, 0.0 }
  0xfb   :  { %v175_v49 = vadd.f32 %v174_v48, %v173_v46 }
  0xfd   :  { %v177_v52 = vadd.f32 %v176_v51, %v175_v49 }
  0xff   :  { %v179_v54 = vadd.f32 %v178_v53, %v177_v52 }
 0x101   :  { %v181_v56 = vadd.f32 %v180_v55, %v179_v54 }
 0x103   :  { %v182_v57 = vrot.slane %v181_v56, 4 }
 0x105   :  { %v183_v58 = vadd.f32 %v182_v57, %v181_v56 }
 0x107   :  { %v184_v59 = vrot.slane %v183_v58, 2 }
 0x109   :  { %v185_v60 = vadd.f32 %v184_v59, %v183_v58 }
 0x10b   :  { %v186_v61 = vrot.slane %v185_v60, 1 }
 0x10d   :  { %v187_v62 = vadd.f32 %v186_v61, %v185_v60 }
 0x10f   :  { %v188_v63 = vmul.f32 0.020833334, %v187_v62 }
 0x111   :  { %v189_v0 = vadd.f32 1e-05, %v188_v63 }
 0x113   :  { %440 = vrsqrt.f32 %v189_v0 }
 0x11d   :  { %v441_v1 = vpop.eup %440 }
 0x11e   :  { %v195_v2 = vmul.f32 %v441_v1, %v163_v38  ;;  %v191_v3 = vmul.f32 %v441_v1, %v159_v34  ;;  %v192_v4 = vmul.f32 %v441_v1, %v160_v35  ;;  %v193_v5 = vmul.f32 %v441_v1, %v161_v36 }
 0x11f   :  { %v194_v6 = vmul.f32 %v441_v1, %v162_v37  ;;  %v196_v7 = vmul.f32 %v441_v1, %v164_v39 }
 0x120   :  { %v197_v8 = vmax.f32 %v191_v3, 0.0  ;;  %v198_v9 = vmax.f32 %v192_v4, 0.0  ;;  %v199_v10 = vmax.f32 %v193_v5, 0.0  ;;  %v201_v12 = vmax.f32 %v195_v2, 0.0 }
 0x121   :  { %v200_v11 = vmax.f32 %v194_v6, 0.0  ;;  %v202_v13 = vmax.f32 %v196_v7, 0.0 }
 0x122   :  { %427 = vmatprep.mubr.msk.f32.mxu1 %vm139_vm2, %v197_v8 }
 0x123   :  { %428 = vmatmul.mubr.msk.f32.vlgmr.msra.gmra.mrb[0].mxu1 %vm139_vm2, %v198_v9 }
 0x124   :  { %430 = vmatprep.mubr.msk.f32.mxu1 %vm139_vm2, %v199_v10 }
 0x127   :  { %431 = vmatmul.mubr.msk.f32.gmra.mrb[2].mxu1 %vm139_vm2, %v200_v11 }
 0x128   :  { %433 = vmatprep.mubr.msk.f32.mxu1 %vm139_vm2, %v201_v12 }
 0x12b   :  { %434 = vmatmul.mubr.msk.f32.gmra.mrb[4].mxu1 %vm139_vm2, %v202_v13 }
 0x1f6   :  { %v429_v14 = vpop.f32.mrb[0].mxu1 }
 0x1f7   :  { %v319_v15 = vsel %vm139_vm2, %v429_v14, 0.0  ;;  %v289_v16 = vpop.f32.mrb[1].mxu1 }
 0x1f8   :  { %v318_v17 = vsel %vm139_vm2, %v289_v16, 0.0 }
 0x1f9   :  { %v320_v18 = vadd.f32 %v319_v15, %v318_v17 }
 0x1fa   :  { %v432_v19 = vpop.f32.mrb[2].mxu1 }
 0x1fb   :  { %v299_v20 = vpop.f32.mrb[3].mxu1  ;;  %v323_v23 = vsel %vm139_vm2, %v432_v19, 0.0 }
 0x1fc   :  { %v321_v21 = vsel %vm139_vm2, %v299_v20, 0.0 }
 0x1fd   :  { %v322_v22 = vadd.f32 %v321_v21, %v320_v18 }
 0x1fe   :  { %v435_v24 = vpop.f32.mrb[4].mxu1 }
 0x1ff   :  { %v309_v25 = vpop.f32.mrb[5].mxu1  ;;  %v324_v26 = vadd.f32 %v323_v23, %v322_v22  ;;  %v327_v29 = vsel %vm139_vm2, %v435_v24, 0.0 }
 0x200   :  { %v325_v27 = vsel %vm139_vm2, %v309_v25, 0.0 }
 0x201   :  { %v326_v28 = vadd.f32 %v325_v27, %v324_v26 }
 0x203   :  { %v328_v30 = vadd.f32 %v327_v29, %v326_v28 }
 0x205   :  { %v329_v31 = vrot.slane %v328_v30, 4 }
 0x207   :  { %v330_v32 = vadd.f32 %v329_v31, %v328_v30 }
 0x209   :  { %v331_v33 = vrot.slane %v330_v32, 2 }
 0x20b   :  { %v332_v34 = vadd.f32 %v331_v33, %v330_v32 }
 0x20d   :  { %v333_v35 = vrot.slane %v332_v34, 1 }
 0x20f   :  { %v334_v36 = vadd.f32 %v333_v35, %v332_v34 }
 0x211   :  { %v335_v37 = vmul.f32 0.020833334, %v334_v36 }
 0x213   :  { %v336_v38 = vsub.f32 %v289_v16, %v335_v37  ;;  %v337_v39 = vsub.f32 %v429_v14, %v335_v37  ;;  %v338_v40 = vsub.f32 %v299_v20, %v335_v37  ;;  %v339_v41 = vsub.f32 %v432_v19, %v335_v37 }
 0x214   :  { %v340_v42 = vsub.f32 %v309_v25, %v335_v37  ;;  %v341_v43 = vsub.f32 %v435_v24, %v335_v37 }
 0x215   :  { %v342_v44 = vmul.f32 %v336_v38, %v336_v38  ;;  %v343_v45 = vmul.f32 %v337_v39, %v337_v39  ;;  %v344_v46 = vmul.f32 %v338_v40, %v338_v40  ;;  %v345_v47 = vmul.f32 %v339_v41, %v339_v41 }
 0x216   :  { %v346_v51 = vmul.f32 %v340_v42, %v340_v42  ;;  %v347_v54 = vmul.f32 %v341_v43, %v341_v43 }
 0x217   :  { %v348_v48 = vsel %vm139_vm2, %v342_v44, 0.0  ;;  %v349_v49 = vsel %vm139_vm2, %v343_v45, 0.0  ;;  %v351_v52 = vsel %vm139_vm2, %v344_v46, 0.0  ;;  %v353_v55 = vsel %vm139_vm2, %v345_v47, 0.0 }
 0x218   :  { %v350_v50 = vadd.f32 %v349_v49, %v348_v48  ;;  %v355_v57 = vsel %vm139_vm2, %v346_v51, 0.0  ;;  %v357_v59 = vsel %vm139_vm2, %v347_v54, 0.0 }
 0x21a   :  { %v352_v53 = vadd.f32 %v351_v52, %v350_v50 }
 0x21c   :  { %v354_v56 = vadd.f32 %v353_v55, %v352_v53 }
 0x21e   :  { %v356_v58 = vadd.f32 %v355_v57, %v354_v56 }
 0x220   :  { %v358_v60 = vadd.f32 %v357_v59, %v356_v58 }
 0x222   :  { %v359_v61 = vrot.slane %v358_v60, 4 }
 0x224   :  { %v360_v62 = vadd.f32 %v359_v61, %v358_v60 }
 0x226   :  { %v361_v63 = vrot.slane %v360_v62, 2 }
 0x228   :  { %v362_v0 = vadd.f32 %v361_v63, %v360_v62 }
 0x22a   :  { %v363_v1 = vrot.slane %v362_v0, 1 }
 0x22c   :  { %v364_v2 = vadd.f32 %v363_v1, %v362_v0 }
 0x22e   :  { %v365_v3 = vmul.f32 0.020833334, %v364_v2 }
 0x230   :  { %v366_v4 = vadd.f32 1e-05, %v365_v3 }
 0x232   :  { %442 = vrsqrt.f32 %v366_v4 }
 0x23c   :  { %v443_v5 = vpop.eup %442 }
 0x23d   :  { %v368_v6 = vmul.f32 %v443_v5, %v336_v38  ;;  %v369_v7 = vmul.f32 %v443_v5, %v337_v39  ;;  %v370_v8 = vmul.f32 %v443_v5, %v338_v40  ;;  %v371_v9 = vmul.f32 %v443_v5, %v339_v41 }
 0x23e   :  { %v372_v10 = vmul.f32 %v443_v5, %v340_v42  ;;  %v373_v11 = vmul.f32 %v443_v5, %v341_v43 }
 0x23f   :  { %374 = vst.msk [vmem:[%s548_s3] sm:$0xff] %vm139_vm2, %v368_v6  ;;  %375 = vst.msk [vmem:[%s548_s3 + $0x8] sm:$0xff] %vm139_vm2, %v369_v7 }
 0x240   :  { %376 = vst.msk [vmem:[%s548_s3 + $0x10] sm:$0xff] %vm139_vm2, %v370_v8  ;;  %377 = vst.msk [vmem:[%s548_s3 + $0x18] sm:$0xff] %vm139_vm2, %v371_v9 }
 0x241   :  { %378 = vst.msk [vmem:[%s548_s3 + $0x20] sm:$0xff] %vm139_vm2, %v372_v10  ;;  %379 = vst.msk [vmem:[%s548_s3 + $0x28] sm:$0xff] %vm139_vm2, %v373_v11 }

// kernel: closed_call.169
= control target key start
LH: loop header
LB: loop body
LE: loop exit
PB: predicated region body
PF: predicated region fallthrough
CT: control target
= control target key end

     0   :  { %vm21_vm0 = vcmask 261120   ;;  %vm135_vm1 = vcmask 392192   ;;  %s343_s1 = inlined_call_operand.vmem [shape: f32[32,48], index: 1, kind: input, shape index: {}]   ;;  %s344_s0 = inlined_call_operand.vmem [shape: f32[48,32], index: 0, kind: input, shape index: {}]   ;;  %s345_s2 = inlined_call_operand.vmem [shape: f32[48,48], index: 2, kind: output, shape index: {}]  }
   0x1   :  { %v17_v0 = vld [vmem:[%s343_s1] sm:$0xff]  ;;  %v18_v1 = vld [vmem:[%s343_s1 + $0x8] sm:$0xff]  ;;  %v19_v2 = vld [vmem:[%s343_s1 + $0x10] sm:$0xff] }
   0x2   :  { %v242_v3 = vpack.c.bf16 %v18_v1, %v17_v0  ;;  %v20_v4 = vld [vmem:[%s343_s1 + $0x18] sm:$0xff]  ;;  %v11_v5 = vld [vmem:[%s344_s0] sm:$0xff]  ;;  %v13_v7 = vld [vmem:[%s344_s0 + $0x10] sm:$0xff] }
   0x3   :  { %v246_v6 = vpack.c.bf16 %v20_v4, %v19_v2  ;;  %233 = vmatprep.mubr.msk.f32.mxu0 %vm21_vm0, %v11_v5  ;;  %236 = vmatprep.mubr.msk.f32.mxu1 %vm21_vm0, %v13_v7  ;;  %v12_v8 = vld [vmem:[%s344_s0 + $0x8] sm:$0xff]  ;;  %v14_v9 = vld [vmem:[%s344_s0 + $0x18] sm:$0xff]  ;;  %v15_v10 = vld [vmem:[%s344_s0 + $0x20] sm:$0xff] }
   0x4   :  { %243 = vmatprep.subr.bf16.mxu0 %v242_v3  ;;  %250 = vmatprep.subr.bf16.mxu1 %v242_v3  ;;  %v16_v11 = vld [vmem:[%s344_s0 + $0x28] sm:$0xff] }
   0x5   :  { %245 = vmatpush3.bf16.msra.mxu0 %v242_v3  ;;  %252 = vmatpush3.bf16.msra.mxu1 %v242_v3 }
   0x6   :  { %247 = vmatprep.subr.bf16.mxu0 %v246_v6  ;;  %251 = vmatprep.subr.bf16.mxu1 %v246_v6 }
   0x9   :  { %249 = vmatpush3.bf16.msra.mxu0 %v246_v6  ;;  %253 = vmatpush3.bf16.msra.mxu1 %v246_v6 }
   0xc   :  { %234 = vmatmul.mubr.msk.f32.vlgmr.msra.gmra.mrb[0].mxu0 %vm21_vm0, %v12_v8  ;;  %237 = vmatmul.mubr.msk.f32.vlgmr.msra.gmra.mrb[0].mxu1 %vm21_vm0, %v14_v9 }
   0xd   :  { %239 = vmatprep.mubr.msk.f32.mxu1 %vm21_vm0, %v15_v10 }
  0x10   :  { %240 = vmatmul.mubr.msk.f32.gmra.mrb[2].mxu1 %vm21_vm0, %v16_v11 }
  0xdf   :  { %v235_v12 = vpop.f32.mrb[0].mxu0  ;;  %v238_v13 = vpop.f32.mrb[0].mxu1 }
  0xe0   :  { %v137_v14 = vsel %vm135_vm1, %v235_v12, 0.0  ;;  %v106_v15 = vpop.f32.mrb[1].mxu0  ;;  %v116_v16 = vpop.f32.mrb[1].mxu1  ;;  %v141_v23 = vsel %vm135_vm1, %v238_v13, 0.0 }
  0xe1   :  { %v136_v17 = vsel %vm135_vm1, %v106_v15, 0.0  ;;  %v139_v18 = vsel %vm135_vm1, %v116_v16, 0.0 }
  0xe2   :  { %v138_v19 = vadd.f32 %v137_v14, %v136_v17 }
  0xe3   :  { %v241_v20 = vpop.f32.mrb[2].mxu1 }
  0xe4   :  { %v140_v21 = vadd.f32 %v139_v18, %v138_v19  ;;  %v126_v22 = vpop.f32.mrb[3].mxu1  ;;  %v145_v27 = vsel %vm135_vm1, %v241_v20, 0.0 }
  0xe5   :  { %v143_v24 = vsel %vm135_vm1, %v126_v22, 0.0 }
  0xe6   :  { %v142_v25 = vadd.f32 %v141_v23, %v140_v21 }
  0xe8   :  { %v144_v26 = vadd.f32 %v143_v24, %v142_v25 }
  0xea   :  { %v146_v28 = vadd.f32 %v145_v27, %v144_v26 }
  0xec   :  { %v147_v29 = vrot.slane %v146_v28, 4 }
  0xee   :  { %v148_v30 = vadd.f32 %v147_v29, %v146_v28 }
  0xf0   :  { %v149_v31 = vrot.slane %v148_v30, 2 }
  0xf2   :  { %v150_v32 = vadd.f32 %v149_v31, %v148_v30 }
  0xf4   :  { %v151_v33 = vrot.slane %v150_v32, 1 }
  0xf6   :  { %v152_v34 = vadd.f32 %v151_v33, %v150_v32 }
  0xf8   :  { %v154_v35 = vmul.f32 0.020833334, %v152_v34 }
  0xfa   :  { %v155_v36 = vsub.f32 %v106_v15, %v154_v35  ;;  %v156_v37 = vsub.f32 %v235_v12, %v154_v35  ;;  %v157_v38 = vsub.f32 %v116_v16, %v154_v35  ;;  %v158_v39 = vsub.f32 %v238_v13, %v154_v35 }
  0xfb   :  { %v159_v40 = vsub.f32 %v126_v22, %v154_v35  ;;  %v160_v41 = vsub.f32 %v241_v20, %v154_v35 }
  0xfc   :  { %v161_v42 = vmul.f32 %v155_v36, %v155_v36  ;;  %v162_v43 = vmul.f32 %v156_v37, %v156_v37  ;;  %v163_v44 = vmul.f32 %v157_v38, %v157_v38  ;;  %v164_v45 = vmul.f32 %v158_v39, %v158_v39 }
  0xfd   :  { %v165_v49 = vmul.f32 %v159_v40, %v159_v40  ;;  %v166_v52 = vmul.f32 %v160_v41, %v160_v41 }
  0xfe   :  { %v167_v46 = vsel %vm135_vm1, %v161_v42, 0.0  ;;  %v168_v47 = vsel %vm135_vm1, %v162_v43, 0.0  ;;  %v170_v50 = vsel %vm135_vm1, %v163_v44, 0.0  ;;  %v172_v53 = vsel %vm135_vm1, %v164_v45, 0.0 }
  0xff   :  { %v169_v48 = vadd.f32 %v168_v47, %v167_v46  ;;  %v174_v55 = vsel %vm135_vm1, %v165_v49, 0.0  ;;  %v176_v57 = vsel %vm135_vm1, %v166_v52, 0.0 }
 0x101   :  { %v171_v51 = vadd.f32 %v170_v50, %v169_v48 }
 0x103   :  { %v173_v54 = vadd.f32 %v172_v53, %v171_v51 }
 0x105   :  { %v175_v56 = vadd.f32 %v174_v55, %v173_v54 }
 0x107   :  { %v177_v58 = vadd.f32 %v176_v57, %v175_v56 }
 0x109   :  { %v178_v59 = vrot.slane %v177_v58, 4 }
 0x10b   :  { %v179_v60 = vadd.f32 %v178_v59, %v177_v58 }
 0x10d   :  { %v180_v61 = vrot.slane %v179_v60, 2 }
 0x10f   :  { %v181_v62 = vadd.f32 %v180_v61, %v179_v60 }
 0x111   :  { %v182_v63 = vrot.slane %v181_v62, 1 }
 0x113   :  { %v183_v0 = vadd.f32 %v182_v63, %v181_v62 }
 0x115   :  { %v184_v1 = vmul.f32 0.020833334, %v183_v0 }
 0x117   :  { %v185_v2 = vadd.f32 1e-05, %v184_v1 }
 0x119   :  { %254 = vrsqrt.f32 %v185_v2 }
 0x123   :  { %v255_v3 = vpop.eup %254 }
 0x124   :  { %v187_v4 = vmul.f32 %v255_v3, %v155_v36  ;;  %v188_v5 = vmul.f32 %v255_v3, %v156_v37  ;;  %v189_v6 = vmul.f32 %v255_v3, %v157_v38  ;;  %v190_v7 = vmul.f32 %v255_v3, %v158_v39 }
 0x125   :  { %v191_v8 = vmul.f32 %v255_v3, %v159_v40  ;;  %v192_v9 = vmul.f32 %v255_v3, %v160_v41 }
 0x126   :  { %v193_v10 = vmax.f32 %v187_v4, 0.0  ;;  %v194_v11 = vmax.f32 %v188_v5, 0.0  ;;  %v195_v12 = vmax.f32 %v189_v6, 0.0  ;;  %v196_v13 = vmax.f32 %v190_v7, 0.0 }
 0x127   :  { %v197_v14 = vmax.f32 %v191_v8, 0.0  ;;  %v198_v15 = vmax.f32 %v192_v9, 0.0 }
 0x128   :  { %199 = vst.msk [vmem:[%s345_s2] sm:$0xff] %vm135_vm1, %v193_v10  ;;  %200 = vst.msk [vmem:[%s345_s2 + $0x8] sm:$0xff] %vm135_vm1, %v194_v11 }
 0x129   :  { %201 = vst.msk [vmem:[%s345_s2 + $0x10] sm:$0xff] %vm135_vm1, %v195_v12  ;;  %202 = vst.msk [vmem:[%s345_s2 + $0x18] sm:$0xff] %vm135_vm1, %v196_v13 }
 0x12a   :  { %203 = vst.msk [vmem:[%s345_s2 + $0x20] sm:$0xff] %vm135_vm1, %v197_v14  ;;  %204 = vst.msk [vmem:[%s345_s2 + $0x28] sm:$0xff] %vm135_vm1, %v198_v15 }

// kernel: split.366
= control target key start
LH: loop header
LB: loop body
LE: loop exit
PB: predicated region body
PF: predicated region fallthrough
CT: control target
= control target key end

     0   :  { %s89_s0 = inlined_call_operand.vmem [shape: f32[4,3,8,8], index: 0, kind: input, shape index: {}]   ;;  %s90_s1 = inlined_call_operand.vmem [shape: f32[2,3,8,8], index: 1, kind: output, shape index: {}]  }
   0x1   :  { %v32_v0 = vld [vmem:[%s89_s0 + $0x30] sm:$0xff]  ;;  %v33_v1 = vld [vmem:[%s89_s0 + $0x48] sm:$0xff]  ;;  %v35_v2 = vld [vmem:[%s89_s0 + $0x38] sm:$0xff] }
   0x2   :  { %6 = vst [vmem:[%s90_s1] sm:$0xff] %v32_v0  ;;  %34 = vst [vmem:[%s90_s1 + $0x18] sm:$0xff] %v33_v1  ;;  %v37_v3 = vld [vmem:[%s89_s0 + $0x50] sm:$0xff]  ;;  %v39_v4 = vld [vmem:[%s89_s0 + $0x40] sm:$0xff] }
   0x3   :  { %36 = vst [vmem:[%s90_s1 + $0x8] sm:$0xff] %v35_v2  ;;  %v41_v5 = vld [vmem:[%s89_s0 + $0x58] sm:$0xff]  ;;  %38 = vst [vmem:[%s90_s1 + $0x20] sm:$0xff] %v37_v3 }
   0x4   :  { %40 = vst [vmem:[%s90_s1 + $0x10] sm:$0xff] %v39_v4  ;;  %42 = vst [vmem:[%s90_s1 + $0x28] sm:$0xff] %v41_v5 }

// kernel: closed_call.171
= control target key start
LH: loop header
LB: loop body
LE: loop exit
PB: predicated region body
PF: predicated region fallthrough
CT: control target
= control target key end

     0   :  { %vm19_vm0 = vcmask 130048   ;;  %s322_s1 = inlined_call_operand.vmem [shape: f32[16,16], index: 1, kind: input, shape index: {}]   ;;  %s323_s0 = inlined_call_operand.vmem [shape: f32[48,16], index: 0, kind: input, shape index: {}]   ;;  %s324_s2 = inlined_call_operand.vmem [shape: f32[48,16], index: 2, kind: output, shape index: {}]  }
   0x1   :  { %v17_v0 = vld [vmem:[%s322_s1] sm:$0xff]  ;;  %v18_v1 = vld [vmem:[%s322_s1 + $0x8] sm:$0xff]  ;;  %v13_v4 = vld [vmem:[%s323_s0 + $0x10] sm:$0xff] }
   0x2   :  { %v11_v2 = vld [vmem:[%s323_s0] sm:$0xff]  ;;  %v233_v3 = vpack.c.bf16 %v18_v1, %v17_v0  ;;  %227 = vmatprep.mubr.msk.f32.mxu1 %vm19_vm0, %v13_v4  ;;  %v12_v5 = vld [vmem:[%s323_s0 + $0x8] sm:$0xff]  ;;  %v14_v6 = vld [vmem:[%s323_s0 + $0x18] sm:$0xff] }
   0x3   :  { %224 = vmatprep.mubr.msk.f32.mxu0 %vm19_vm0, %v11_v2  ;;  %v15_v7 = vld [vmem:[%s323_s0 + $0x20] sm:$0xff]  ;;  %v16_v8 = vld [vmem:[%s323_s0 + $0x28] sm:$0xff] }
   0x4   :  { %234 = vmatprep.subr.bf16.mxu0 %v233_v3  ;;  %237 = vmatprep.subr.bf16.mxu1 %v233_v3 }
   0x5   :  { %236 = vmatpush3.bf16.msra.mxu0 %v233_v3  ;;  %238 = vmatpush3.bf16.msra.mxu1 %v233_v3 }
   0x8   :  { %225 = vmatmul.mubr.msk.f32.vlgmr.msra.gmra.mrb[0].mxu0 %vm19_vm0, %v12_v5  ;;  %228 = vmatmul.mubr.msk.f32.vlgmr.msra.gmra.mrb[0].mxu1 %vm19_vm0, %v14_v6 }
   0x9   :  { %230 = vmatprep.mubr.msk.f32.mxu1 %vm19_vm0, %v15_v7 }
   0xc   :  { %231 = vmatmul.mubr.msk.f32.gmra.mrb[2].mxu1 %vm19_vm0, %v16_v8 }
  0xdb   :  { %v226_v9 = vpop.f32.mrb[0].mxu0  ;;  %v229_v10 = vpop.f32.mrb[0].mxu1 }
  0xdc   :  { %v134_v11 = vsel %vm19_vm0, %v226_v9, 0.0  ;;  %v104_v12 = vpop.f32.mrb[1].mxu0  ;;  %v114_v13 = vpop.f32.mrb[1].mxu1  ;;  %v138_v20 = vsel %vm19_vm0, %v229_v10, 0.0 }
  0xdd   :  { %v133_v14 = vsel %vm19_vm0, %v104_v12, 0.0  ;;  %v136_v15 = vsel %vm19_vm0, %v114_v13, 0.0 }
  0xde   :  { %v135_v16 = vadd.f32 %v134_v11, %v133_v14 }
  0xdf   :  { %v232_v17 = vpop.f32.mrb[2].mxu1 }
  0xe0   :  { %v137_v18 = vadd.f32 %v136_v15, %v135_v16  ;;  %v124_v19 = vpop.f32.mrb[3].mxu1  ;;  %v142_v24 = vsel %vm19_vm0, %v232_v17, 0.0 }
  0xe1   :  { %v140_v21 = vsel %vm19_vm0, %v124_v19, 0.0 }
  0xe2   :  { %v139_v22 = vadd.f32 %v138_v20, %v137_v18 }
  0xe4   :  { %v141_v23 = vadd.f32 %v140_v21, %v139_v22 }
  0xe6   :  { %v143_v25 = vadd.f32 %v142_v24, %v141_v23 }
  0xe8   :  { %v144_v26 = vrot.slane %v143_v25, 4 }
  0xea   :  { %v145_v27 = vadd.f32 %v144_v26, %v143_v25 }
  0xec   :  { %v146_v28 = vrot.slane %v145_v27, 2 }
  0xee   :  { %v147_v29 = vadd.f32 %v146_v28, %v145_v27 }
  0xf0   :  { %v148_v30 = vrot.slane %v147_v29, 1 }
  0xf2   :  { %v149_v31 = vadd.f32 %v148_v30, %v147_v29 }
  0xf4   :  { %v151_v32 = vmul.f32 0.020833334, %v149_v31 }
  0xf6   :  { %v152_v33 = vsub.f32 %v104_v12, %v151_v32  ;;  %v153_v34 = vsub.f32 %v226_v9, %v151_v32  ;;  %v154_v35 = vsub.f32 %v114_v13, %v151_v32  ;;  %v155_v36 = vsub.f32 %v229_v10, %v151_v32 }
  0xf7   :  { %v156_v37 = vsub.f32 %v124_v19, %v151_v32  ;;  %v157_v38 = vsub.f32 %v232_v17, %v151_v32 }
  0xf8   :  { %v158_v39 = vmul.f32 %v152_v33, %v152_v33  ;;  %v159_v40 = vmul.f32 %v153_v34, %v153_v34  ;;  %v160_v41 = vmul.f32 %v154_v35, %v154_v35  ;;  %v161_v42 = vmul.f32 %v155_v36, %v155_v36 }
  0xf9   :  { %v162_v46 = vmul.f32 %v156_v37, %v156_v37  ;;  %v163_v49 = vmul.f32 %v157_v38, %v157_v38 }
  0xfa   :  { %v164_v43 = vsel %vm19_vm0, %v158_v39, 0.0  ;;  %v165_v44 = vsel %vm19_vm0, %v159_v40, 0.0  ;;  %v167_v47 = vsel %vm19_vm0, %v160_v41, 0.0  ;;  %v169_v50 = vsel %vm19_vm0, %v161_v42, 0.0 }
  0xfb   :  { %v166_v45 = vadd.f32 %v165_v44, %v164_v43  ;;  %v171_v52 = vsel %vm19_vm0, %v162_v46, 0.0  ;;  %v173_v54 = vsel %vm19_vm0, %v163_v49, 0.0 }
  0xfd   :  { %v168_v48 = vadd.f32 %v167_v47, %v166_v45 }
  0xff   :  { %v170_v51 = vadd.f32 %v169_v50, %v168_v48 }
 0x101   :  { %v172_v53 = vadd.f32 %v171_v52, %v170_v51 }
 0x103   :  { %v174_v55 = vadd.f32 %v173_v54, %v172_v53 }
 0x105   :  { %v175_v56 = vrot.slane %v174_v55, 4 }
 0x107   :  { %v176_v57 = vadd.f32 %v175_v56, %v174_v55 }
 0x109   :  { %v177_v58 = vrot.slane %v176_v57, 2 }
 0x10b   :  { %v178_v59 = vadd.f32 %v177_v58, %v176_v57 }
 0x10d   :  { %v179_v60 = vrot.slane %v178_v59, 1 }
 0x10f   :  { %v180_v61 = vadd.f32 %v179_v60, %v178_v59 }
 0x111   :  { %v181_v62 = vmul.f32 0.020833334, %v180_v61 }
 0x113   :  { %v182_v63 = vadd.f32 1e-05, %v181_v62 }
 0x115   :  { %239 = vrsqrt.f32 %v182_v63 }
 0x11f   :  { %v240_v0 = vpop.eup %239 }
 0x120   :  { %v184_v1 = vmul.f32 %v240_v0, %v152_v33  ;;  %v185_v2 = vmul.f32 %v240_v0, %v153_v34  ;;  %v186_v3 = vmul.f32 %v240_v0, %v154_v35  ;;  %v187_v4 = vmul.f32 %v240_v0, %v155_v36 }
 0x121   :  { %v188_v5 = vmul.f32 %v240_v0, %v156_v37  ;;  %v189_v6 = vmul.f32 %v240_v0, %v157_v38 }
 0x122   :  { %v190_v7 = vmax.f32 %v184_v1, 0.0  ;;  %v191_v8 = vmax.f32 %v185_v2, 0.0  ;;  %v192_v9 = vmax.f32 %v186_v3, 0.0  ;;  %v193_v10 = vmax.f32 %v187_v4, 0.0 }
 0x123   :  { %v194_v11 = vmax.f32 %v188_v5, 0.0  ;;  %v195_v12 = vmax.f32 %v189_v6, 0.0 }
 0x124   :  { %196 = vst.msk [vmem:[%s324_s2] sm:$0xff] %vm19_vm0, %v190_v7  ;;  %197 = vst.msk [vmem:[%s324_s2 + $0x8] sm:$0xff] %vm19_vm0, %v191_v8 }
 0x125   :  { %198 = vst.msk [vmem:[%s324_s2 + $0x10] sm:$0xff] %vm19_vm0, %v192_v9  ;;  %199 = vst.msk [vmem:[%s324_s2 + $0x18] sm:$0xff] %vm19_vm0, %v193_v10 }
 0x126   :  { %200 = vst.msk [vmem:[%s324_s2 + $0x20] sm:$0xff] %vm19_vm0, %v194_v11  ;;  %201 = vst.msk [vmem:[%s324_s2 + $0x28] sm:$0xff] %vm19_vm0, %v195_v12 }

// kernel: closed_call.172
= control target key start
LH: loop header
LB: loop body
LE: loop exit
PB: predicated region body
PF: predicated region fallthrough
CT: control target
= control target key end

     0   :  { %vm37_vm0 = vcmask 130048   ;;  %s1248_s2 = inlined_call_operand.vmem [shape: f32[16,16], index: 2, kind: input, shape index: {}]   ;;  %s1249_s3 = inlined_call_operand.vmem [shape: f32[16,16], index: 3, kind: input, shape index: {}]   ;;  %s1250_s0 = inlined_call_operand.vmem [shape: f32[48,16], index: 0, kind: input, shape index: {}]   ;;  %s1251_s1 = inlined_call_operand.vmem [shape: f32[48,16], index: 1, kind: input, shape index: {}]   ;;  %s1252_s4 = inlined_call_operand.vmem [shape: f32[16,16], index: 4, kind: input, shape index: {}]   ;;  %s1253_s5 = inlined_call_operand.vmem [shape: f32[16,16], index: 5, kind: input, shape index: {}]   ;;  %s1254_s6 = inlined_call_operand.vmem [shape: f32[48,16], index: 6, kind: output, shape index: {}]  }
   0x1   :  { %v35_v0 = vld [vmem:[%s1248_s2] sm:$0xff]  ;;  %v36_v1 = vld [vmem:[%s1248_s2 + $0x8] sm:$0xff]  ;;  %v1033_v10 = vld [vmem:[%s1250_s0 + $0x10] sm:$0xff] }
   0x2   :  { %v208_v2 = vld [vmem:[%s1249_s3] sm:$0xff]  ;;  %v911_v3 = vpack.c.bf16 %v36_v1, %v35_v0  ;;  %v209_v4 = vld [vmem:[%s1249_s3 + $0x8] sm:$0xff]  ;;  %v1038_v11 = vld [vmem:[%s1251_s1 + $0x10] sm:$0xff] }
   0x3   :  { %v1009_v5 = vld [vmem:[%s1250_s0] sm:$0xff]  ;;  %v915_v7 = vpack.c.bf16 %v209_v4, %v208_v2  ;;  %v1023_v8 = vld [vmem:[%s1250_s0 + $0x8] sm:$0xff]  ;;  %v1049_v12 = vld [vmem:[%s1250_s0 + $0x18] sm:$0xff] }
   0x4   :  { %v1014_v6 = vld [vmem:[%s1251_s1] sm:$0xff]  ;;  %863 = vmatprep.mubr.msk.f32.mxu0 %vm37_vm0, %v1009_v5  ;;  %912 = vmatprep.subr.bf16.mxu0 %v911_v3  ;;  %v1028_v9 = vld [vmem:[%s1251_s1 + $0x8] sm:$0xff]  ;;  %v1056_v13 = vld [vmem:[%s1251_s1 + $0x18] sm:$0xff] }
   0x5   :  { %876 = vmatprep.mubr.msk.f32.mxu1 %vm37_vm0, %v1014_v6  ;;  %916 = vmatprep.subr.bf16.mxu1 %v915_v7  ;;  %v1061_v14 = vld [vmem:[%s1250_s0 + $0x20] sm:$0xff]  ;;  %v1077_v16 = vld [vmem:[%s1250_s0 + $0x28] sm:$0xff] }
   0x6   :  { %914 = vmatpush3.bf16.msra.mxu0 %v911_v3  ;;  %918 = vmatpush3.bf16.msra.mxu1 %v915_v7  ;;  %v1066_v15 = vld [vmem:[%s1251_s1 + $0x20] sm:$0xff]  ;;  %v1084_v17 = vld [vmem:[%s1251_s1 + $0x28] sm:$0xff] }
   0x7   :  { %v445_v18 = vld [vmem:[%s1252_s4] sm:$0xff]  ;;  %v446_v19 = vld [vmem:[%s1252_s4 + $0x8] sm:$0xff] }
   0x8   :  { %v919_v20 = vpack.c.bf16 %v446_v19, %v445_v18 }
   0x9   :  { %864 = vmatmul.mubr.msk.f32.vlgmr.msra.gmra.mrb[0].mxu0 %vm37_vm0, %v1023_v8  ;;  %877 = vmatmul.mubr.msk.f32.vlgmr.msra.gmra.mrb[0].mxu1 %vm37_vm0, %v1028_v9 }
   0xa   :  { %866 = vmatprep.mubr.msk.f32.mxu0 %vm37_vm0, %v1033_v10  ;;  %879 = vmatprep.mubr.msk.f32.mxu1 %vm37_vm0, %v1038_v11 }
   0xb   :  { %920 = vmatprep.subr.bf16.mxu0 %v919_v20 }
   0xc   :  { %922 = vmatpush3.bf16.msra.mxu0 %v919_v20 }
   0xd   :  { %867 = vmatmul.mubr.msk.f32.gmra.mrb[2].mxu0 %vm37_vm0, %v1049_v12  ;;  %880 = vmatmul.mubr.msk.f32.gmra.mrb[2].mxu1 %vm37_vm0, %v1056_v13 }
   0xe   :  { %869 = vmatprep.mubr.msk.f32.mxu0 %vm37_vm0, %v1061_v14  ;;  %882 = vmatprep.mubr.msk.f32.mxu1 %vm37_vm0, %v1066_v15 }
  0x11   :  { %870 = vmatmul.mubr.msk.f32.gmra.mrb[4].mxu0 %vm37_vm0, %v1077_v16  ;;  %883 = vmatmul.mubr.msk.f32.gmra.mrb[4].mxu1 %vm37_vm0, %v1084_v17 }
  0xdc   :  { %v865_v21 = vpop.f32.mrb[0].mxu0  ;;  %v878_v23 = vpop.f32.mrb[0].mxu1 }
  0xdd   :  { %v152_v22 = vsel %vm37_vm0, %v865_v21, 0.0  ;;  %v122_v24 = vpop.f32.mrb[1].mxu0  ;;  %v324_v25 = vsel %vm37_vm0, %v878_v23, 0.0  ;;  %v294_v27 = vpop.f32.mrb[1].mxu1 }
  0xde   :  { %v151_v26 = vsel %vm37_vm0, %v122_v24, 0.0  ;;  %v323_v29 = vsel %vm37_vm0, %v294_v27, 0.0 }
  0xdf   :  { %v153_v28 = vadd.f32 %v152_v22, %v151_v26  ;;  %v325_v30 = vadd.f32 %v324_v25, %v323_v29 }
  0xe0   :  { %v868_v31 = vpop.f32.mrb[2].mxu0  ;;  %v881_v32 = vpop.f32.mrb[2].mxu1 }
  0xe1   :  { %v132_v33 = vpop.f32.mrb[3].mxu0  ;;  %v304_v35 = vpop.f32.mrb[3].mxu1  ;;  %v156_v38 = vsel %vm37_vm0, %v868_v31, 0.0  ;;  %v328_v41 = vsel %vm37_vm0, %v881_v32, 0.0 }
  0xe2   :  { %v154_v34 = vsel %vm37_vm0, %v132_v33, 0.0  ;;  %v326_v37 = vsel %vm37_vm0, %v304_v35, 0.0 }
  0xe3   :  { %v155_v36 = vadd.f32 %v154_v34, %v153_v28  ;;  %v327_v39 = vadd.f32 %v326_v37, %v325_v30 }
  0xe4   :  { %v871_v40 = vpop.f32.mrb[4].mxu0  ;;  %v884_v42 = vpop.f32.mrb[4].mxu1 }
  0xe5   :  { %v142_v43 = vpop.f32.mrb[5].mxu0  ;;  %v157_v44 = vadd.f32 %v156_v38, %v155_v36  ;;  %v314_v46 = vpop.f32.mrb[5].mxu1  ;;  %v329_v47 = vadd.f32 %v328_v41, %v327_v39  ;;  %v160_v50 = vsel %vm37_vm0, %v871_v40, 0.0  ;;  %v332_v52 = vsel %vm37_vm0, %v884_v42, 0.0 }
  0xe6   :  { %v158_v45 = vsel %vm37_vm0, %v142_v43, 0.0  ;;  %v330_v49 = vsel %vm37_vm0, %v314_v46, 0.0 }
  0xe7   :  { %v159_v48 = vadd.f32 %v158_v45, %v157_v44  ;;  %v331_v51 = vadd.f32 %v330_v49, %v329_v47 }
  0xe9   :  { %v161_v53 = vadd.f32 %v160_v50, %v159_v48  ;;  %v333_v54 = vadd.f32 %v332_v52, %v331_v51 }
  0xeb   :  { %v162_v55 = vrot.slane %v161_v53, 4  ;;  %v334_v56 = vrot.slane %v333_v54, 4 }
  0xed   :  { %v163_v57 = vadd.f32 %v162_v55, %v161_v53  ;;  %v335_v58 = vadd.f32 %v334_v56, %v333_v54 }
  0xef   :  { %v164_v59 = vrot.slane %v163_v57, 2  ;;  %v336_v60 = vrot.slane %v335_v58, 2 }
  0xf1   :  { %v165_v61 = vadd.f32 %v164_v59, %v163_v57  ;;  %v337_v62 = vadd.f32 %v336_v60, %v335_v58 }
  0xf3   :  { %v166_v63 = vrot.slane %v165_v61, 1  ;;  %v338_v0 = vrot.slane %v337_v62, 1 }
  0xf5   :  { %v167_v1 = vadd.f32 %v166_v63, %v165_v61  ;;  %v339_v2 = vadd.f32 %v338_v0, %v337_v62 }
  0xf7   :  { %v169_v3 = vmul.f32 0.020833334, %v167_v1  ;;  %v340_v4 = vmul.f32 0.020833334, %v339_v2 }
  0xf9   :  { %v1108_v7 = vsub.f32 %v122_v24, %v169_v3  ;;  %v1110_v18 = vsub.f32 %v865_v21, %v169_v3  ;;  %v1112_v19 = vsub.f32 %v132_v33, %v169_v3  ;;  %v1114_v20 = vsub.f32 %v868_v31, %v169_v3 }
  0xfa   :  { %v1116_v22 = vsub.f32 %v142_v43, %v169_v3  ;;  %v1118_v25 = vsub.f32 %v871_v40, %v169_v3  ;;  %v1120_v26 = vsub.f32 %v294_v27, %v340_v4  ;;  %v1122_v28 = vsub.f32 %v878_v23, %v340_v4 }
  0xfb   :  { %v176_v29 = vmul.f32 %v1108_v7, %v1108_v7  ;;  %v177_v24 = vmul.f32 %v1110_v18, %v1110_v18  ;;  %v178_v21 = vmul.f32 %v1112_v19, %v1112_v19  ;;  %v1130_v30 = vsub.f32 %v304_v35, %v340_v4 }
  0xfc   :  { %v1132_v31 = vsub.f32 %v881_v32, %v340_v4  ;;  %v179_v33 = vmul.f32 %v1114_v20, %v1114_v20  ;;  %v180_v34 = vmul.f32 %v1116_v22, %v1116_v22  ;;  %v345_v38 = vsub.f32 %v314_v46, %v340_v4 }
  0xfd   :  { %v182_v27 = vsel %vm37_vm0, %v176_v29, 0.0  ;;  %v183_v23 = vsel %vm37_vm0, %v177_v24, 0.0  ;;  %v185_v37 = vsel %vm37_vm0, %v178_v21, 0.0  ;;  %v346_v39 = vsub.f32 %v884_v42, %v340_v4 }
  0xfe   :  { %v184_v36 = vadd.f32 %v183_v23, %v182_v27  ;;  %v347_v35 = vmul.f32 %v1120_v26, %v1120_v26  ;;  %v348_v32 = vmul.f32 %v1122_v28, %v1122_v28  ;;  %v349_v40 = vmul.f32 %v1130_v30, %v1130_v30 }
  0xff   :  { %v181_v41 = vmul.f32 %v1118_v25, %v1118_v25  ;;  %v187_v44 = vsel %vm37_vm0, %v179_v33, 0.0  ;;  %v350_v45 = vmul.f32 %v1132_v31, %v1132_v31  ;;  %v189_v49 = vsel %vm37_vm0, %v180_v34, 0.0 }
 0x100   :  { %v186_v43 = vadd.f32 %v185_v37, %v184_v36  ;;  %v353_v42 = vsel %vm37_vm0, %v347_v35, 0.0  ;;  %v354_v46 = vsel %vm37_vm0, %v348_v32, 0.0  ;;  %v351_v50 = vmul.f32 %v345_v38, %v345_v38 }
 0x101   :  { %v355_v48 = vadd.f32 %v354_v46, %v353_v42  ;;  %v356_v51 = vsel %vm37_vm0, %v349_v40, 0.0  ;;  %v191_v54 = vsel %vm37_vm0, %v181_v41, 0.0  ;;  %v352_v55 = vmul.f32 %v346_v39, %v346_v39 }
 0x102   :  { %v188_v47 = vadd.f32 %v187_v44, %v186_v43  ;;  %v358_v56 = vsel %vm37_vm0, %v350_v45, 0.0  ;;  %v360_v59 = vsel %vm37_vm0, %v351_v50, 0.0 }
 0x103   :  { %v357_v53 = vadd.f32 %v356_v51, %v355_v48  ;;  %v362_v62 = vsel %vm37_vm0, %v352_v55, 0.0 }
 0x104   :  { %v190_v52 = vadd.f32 %v189_v49, %v188_v47 }
 0x105   :  { %v359_v58 = vadd.f32 %v358_v56, %v357_v53 }
 0x106   :  { %v192_v57 = vadd.f32 %v191_v54, %v190_v52 }
 0x107   :  { %v361_v61 = vadd.f32 %v360_v59, %v359_v58 }
 0x108   :  { %v193_v60 = vrot.slane %v192_v57, 4 }
 0x109   :  { %v363_v0 = vadd.f32 %v362_v62, %v361_v61 }
 0x10a   :  { %v194_v63 = vadd.f32 %v193_v60, %v192_v57 }
 0x10b   :  { %v364_v2 = vrot.slane %v363_v0, 4 }
 0x10c   :  { %v195_v1 = vrot.slane %v194_v63, 2 }
 0x10d   :  { %v365_v4 = vadd.f32 %v364_v2, %v363_v0 }
 0x10e   :  { %v196_v3 = vadd.f32 %v195_v1, %v194_v63 }
 0x10f   :  { %v366_v24 = vrot.slane %v365_v4, 2 }
 0x110   :  { %v197_v29 = vrot.slane %v196_v3, 1 }
 0x111   :  { %v367_v33 = vadd.f32 %v366_v24, %v365_v4 }
 0x112   :  { %v198_v21 = vadd.f32 %v197_v29, %v196_v3 }
 0x113   :  { %v368_v23 = vrot.slane %v367_v33, 1 }
 0x114   :  { %v199_v27 = vmul.f32 0.020833334, %v198_v21 }
 0x115   :  { %v369_v36 = vadd.f32 %v368_v23, %v367_v33 }
 0x116   :  { %v200_v34 = vadd.f32 1e-05, %v199_v27 }
 0x117   :  { %v370_v37 = vmul.f32 0.020833334, %v369_v36 }
 0x118   :  { %927 = vrsqrt.f32 %v200_v34 }
 0x119   :  { %v371_v35 = vadd.f32 1e-05, %v370_v37 }
 0x11b   :  { %929 = vrsqrt.f32 %v371_v35 }
 0x122   :  { %v928_v32 = vpop.eup %927 }
 0x123   :  { %v202_v40 = vmul.f32 %v928_v32, %v1108_v7  ;;  %v203_v41 = vmul.f32 %v928_v32, %v1110_v18  ;;  %v204_v43 = vmul.f32 %v928_v32, %v1112_v19  ;;  %v205_v44 = vmul.f32 %v928_v32, %v1114_v20 }
 0x124   :  { %v206_v45 = vmul.f32 %v928_v32, %v1116_v22  ;;  %v207_v42 = vmul.f32 %v928_v32, %v1118_v25 }
 0x125   :  { %v930_v46 = vpop.eup %929 }
 0x126   :  { %v373_v47 = vmul.f32 %v930_v46, %v1120_v26  ;;  %v374_v48 = vmul.f32 %v930_v46, %v1122_v28  ;;  %v375_v49 = vmul.f32 %v930_v46, %v1130_v30  ;;  %v376_v50 = vmul.f32 %v930_v46, %v1132_v31 }
 0x127   :  { %v377_v7 = vmul.f32 %v930_v46, %v345_v38  ;;  %v378_v51 = vmul.f32 %v930_v46, %v346_v39 }
 0x128   :  { %v379_v18 = vadd.f32 %v373_v47, %v202_v40  ;;  %v380_v52 = vadd.f32 %v374_v48, %v203_v41  ;;  %v381_v19 = vadd.f32 %v375_v49, %v204_v43  ;;  %v382_v53 = vadd.f32 %v376_v50, %v205_v44 }
 0x129   :  { %v383_v20 = vadd.f32 %v377_v7, %v206_v45  ;;  %v384_v54 = vadd.f32 %v378_v51, %v207_v42 }
 0x12a   :  { %v385_v22 = vsub.f32 0.0, %v379_v18  ;;  %v386_v55 = vsub.f32 0.0, %v380_v52  ;;  %v387_v25 = vsub.f32 0.0, %v381_v19  ;;  %v388_v56 = vsub.f32 0.0, %v382_v53 }
 0x12b   :  { %v389_v57 = vsub.f32 0.0, %v383_v20  ;;  %v390_v26 = vsub.f32 0.0, %v384_v54 }
 0x12c   :  { %v391_v58 = vmul.f32 1.442695, %v385_v22  ;;  %v393_v28 = vmul.f32 1.442695, %v386_v55  ;;  %v395_v59 = vmul.f32 1.442695, %v387_v25 }
 0x12d   :  { %v397_v30 = vmul.f32 1.442695, %v388_v56  ;;  %v399_v31 = vmul.f32 1.442695, %v389_v57  ;;  %v401_v38 = vmul.f32 1.442695, %v390_v26 }
 0x12e   :  { %931 = vpow2.f32 %v391_v58 }
 0x12f   :  { %933 = vpow2.f32 %v393_v28 }
 0x130   :  { %935 = vpow2.f32 %v395_v59 }
 0x131   :  { %937 = vpow2.f32 %v397_v30 }
 0x132   :  { %939 = vpow2.f32 %v399_v31 }
 0x133   :  { %941 = vpow2.f32 %v401_v38 }
 0x138   :  { %v932_v39 = vpop.eup %931 }
 0x139   :  { %v934_v60 = vpop.eup %933  ;;  %v403_v61 = vadd.f32 1.0, %v932_v39 }
 0x13a   :  { %v936_v62 = vpop.eup %935  ;;  %v404_v63 = vadd.f32 1.0, %v934_v60 }
 0x13b   :  { %v938_v0 = vpop.eup %937  ;;  %943 = vrcp.f32 %v403_v61  ;;  %v405_v1 = vadd.f32 1.0, %v936_v62 }
 0x13c   :  { %v940_v2 = vpop.eup %939  ;;  %945 = vrcp.f32 %v404_v63  ;;  %v406_v3 = vadd.f32 1.0, %v938_v0 }
 0x13d   :  { %v942_v4 = vpop.eup %941  ;;  %v407_v29 = vadd.f32 1.0, %v940_v2  ;;  %947 = vrcp.f32 %v405_v1 }
 0x13e   :  { %949 = vrcp.f32 %v406_v3  ;;  %v408_v24 = vadd.f32 1.0, %v942_v4 }
 0x13f   :  { %951 = vrcp.f32 %v407_v29 }
 0x140   :  { %953 = vrcp.f32 %v408_v24 }
 0x145   :  { %v944_v21 = vpop.eup %943 }
 0x146   :  { %v946_v33 = vpop.eup %945  ;;  %v427_v27 = vsub.f32 1.0, %v944_v21  ;;  %v421_v37 = vmul.f32 %v944_v21, %v1009_v5 }
 0x147   :  { %v948_v23 = vpop.eup %947  ;;  %v428_v34 = vsub.f32 1.0, %v946_v33  ;;  %v422_v41 = vmul.f32 %v946_v33, %v1023_v8 }
 0x148   :  { %v950_v36 = vpop.eup %949  ;;  %v433_v35 = vmul.f32 %v427_v27, %v1014_v6  ;;  %v429_v32 = vsub.f32 1.0, %v948_v23  ;;  %v423_v46 = vmul.f32 %v948_v23, %v1033_v10 }
 0x149   :  { %v952_v40 = vpop.eup %951  ;;  %v434_v43 = vmul.f32 %v428_v34, %v1028_v9  ;;  %v430_v44 = vsub.f32 1.0, %v950_v36  ;;  %v424_v8 = vmul.f32 %v950_v36, %v1049_v12  ;;  %v622_v12 = vld [vmem:[%s1253_s5] sm:$0xff] }
 0x14a   :  { %v954_v45 = vpop.eup %953  ;;  %v439_v42 = vadd.f32 %v433_v35, %v421_v37  ;;  %v435_v47 = vmul.f32 %v429_v32, %v1038_v11  ;;  %v431_v48 = vsub.f32 1.0, %v952_v40  ;;  %v425_v9 = vmul.f32 %v952_v40, %v1061_v14  ;;  %v623_v14 = vld [vmem:[%s1253_s5 + $0x8] sm:$0xff] }
 0x14b   :  { %v440_v49 = vadd.f32 %v434_v43, %v422_v41  ;;  %v436_v50 = vmul.f32 %v430_v44, %v1056_v13  ;;  %v432_v5 = vsub.f32 1.0, %v954_v45  ;;  %v426_v13 = vmul.f32 %v954_v45, %v1077_v16 }
 0x14c   :  { %889 = vmatprep.mubr.msk.f32.mxu0 %vm37_vm0, %v439_v42  ;;  %v441_v6 = vadd.f32 %v435_v47, %v423_v46  ;;  %v437_v7 = vmul.f32 %v431_v48, %v1066_v15  ;;  %v923_v15 = vpack.c.bf16 %v623_v14, %v622_v12 }
 0x14d   :  { %890 = vmatmul.mubr.msk.f32.vlgmr.msra.gmra.mrb[6].mxu0 %vm37_vm0, %v440_v49  ;;  %v442_v10 = vadd.f32 %v436_v50, %v424_v8  ;;  %v438_v11 = vmul.f32 %v432_v5, %v1084_v17 }
 0x14e   :  { %892 = vmatprep.mubr.msk.f32.mxu0 %vm37_vm0, %v441_v6  ;;  %v443_v51 = vadd.f32 %v437_v7, %v425_v9  ;;  %924 = vmatprep.subr.bf16.mxu1 %v923_v15 }
 0x14f   :  { %v444_v18 = vadd.f32 %v438_v11, %v426_v13  ;;  %926 = vmatpush3.bf16.msra.mxu1 %v923_v15 }
 0x151   :  { %893 = vmatmul.mubr.msk.f32.gmra.mrb[8].mxu0 %vm37_vm0, %v442_v10 }
 0x152   :  { %895 = vmatprep.mubr.msk.f32.mxu0 %vm37_vm0, %v443_v51 }
 0x155   :  { %896 = vmatmul.mubr.msk.f32.gmra.mrb[10].mxu0 %vm37_vm0, %v444_v18 }
 0x220   :  { %v891_v17 = vpop.f32.mrb[6].mxu0 }
 0x221   :  { %v561_v52 = vsel %vm37_vm0, %v891_v17, 0.0  ;;  %v531_v16 = vpop.f32.mrb[7].mxu0 }
 0x222   :  { %v560_v19 = vsel %vm37_vm0, %v531_v16, 0.0 }
 0x223   :  { %v562_v53 = vadd.f32 %v561_v52, %v560_v19 }
 0x224   :  { %v894_v20 = vpop.f32.mrb[8].mxu0 }
 0x225   :  { %v541_v54 = vpop.f32.mrb[9].mxu0  ;;  %v565_v25 = vsel %vm37_vm0, %v894_v20, 0.0 }
 0x226   :  { %v563_v22 = vsel %vm37_vm0, %v541_v54, 0.0 }
 0x227   :  { %v564_v55 = vadd.f32 %v563_v22, %v562_v53 }
 0x228   :  { %v897_v56 = vpop.f32.mrb[10].mxu0 }
 0x229   :  { %v551_v57 = vpop.f32.mrb[11].mxu0  ;;  %v566_v26 = vadd.f32 %v565_v25, %v564_v55  ;;  %v569_v59 = vsel %vm37_vm0, %v897_v56, 0.0 }
 0x22a   :  { %v567_v58 = vsel %vm37_vm0, %v551_v57, 0.0 }
 0x22b   :  { %v568_v28 = vadd.f32 %v567_v58, %v566_v26 }
 0x22d   :  { %v570_v30 = vadd.f32 %v569_v59, %v568_v28 }
 0x22f   :  { %v571_v31 = vrot.slane %v570_v30, 4 }
 0x231   :  { %v572_v38 = vadd.f32 %v571_v31, %v570_v30 }
 0x233   :  { %v573_v39 = vrot.slane %v572_v38, 2 }
 0x235   :  { %v574_v60 = vadd.f32 %v573_v39, %v572_v38 }
 0x237   :  { %v575_v61 = vrot.slane %v574_v60, 1 }
 0x239   :  { %v576_v62 = vadd.f32 %v575_v61, %v574_v60 }
 0x23b   :  { %v577_v63 = vmul.f32 0.020833334, %v576_v62 }
 0x23d   :  { %v578_v0 = vsub.f32 %v531_v16, %v577_v63  ;;  %v579_v1 = vsub.f32 %v891_v17, %v577_v63  ;;  %v580_v2 = vsub.f32 %v541_v54, %v577_v63  ;;  %v581_v3 = vsub.f32 %v894_v20, %v577_v63 }
 0x23e   :  { %v582_v4 = vsub.f32 %v551_v57, %v577_v63  ;;  %v583_v29 = vsub.f32 %v897_v56, %v577_v63 }
 0x23f   :  { %v584_v24 = vmul.f32 %v578_v0, %v578_v0  ;;  %v585_v21 = vmul.f32 %v579_v1, %v579_v1  ;;  %v586_v33 = vmul.f32 %v580_v2, %v580_v2  ;;  %v587_v27 = vmul.f32 %v581_v3, %v581_v3 }
 0x240   :  { %v588_v37 = vmul.f32 %v582_v4, %v582_v4  ;;  %v589_v40 = vmul.f32 %v583_v29, %v583_v29 }
 0x241   :  { %v590_v23 = vsel %vm37_vm0, %v584_v24, 0.0  ;;  %v591_v34 = vsel %vm37_vm0, %v585_v21, 0.0  ;;  %v593_v35 = vsel %vm37_vm0, %v586_v33, 0.0  ;;  %v595_v41 = vsel %vm37_vm0, %v587_v27, 0.0 }
 0x242   :  { %v592_v36 = vadd.f32 %v591_v34, %v590_v23  ;;  %v597_v44 = vsel %vm37_vm0, %v588_v37, 0.0  ;;  %v599_v42 = vsel %vm37_vm0, %v589_v40, 0.0 }
 0x244   :  { %v594_v32 = vadd.f32 %v593_v35, %v592_v36 }
 0x246   :  { %v596_v43 = vadd.f32 %v595_v41, %v594_v32 }
 0x248   :  { %v598_v45 = vadd.f32 %v597_v44, %v596_v43 }
 0x24a   :  { %v600_v46 = vadd.f32 %v599_v42, %v598_v45 }
 0x24c   :  { %v601_v47 = vrot.slane %v600_v46, 4 }
 0x24e   :  { %v602_v48 = vadd.f32 %v601_v47, %v600_v46 }
 0x250   :  { %v603_v49 = vrot.slane %v602_v48, 2 }
 0x252   :  { %v604_v50 = vadd.f32 %v603_v49, %v602_v48 }
 0x254   :  { %v605_v5 = vrot.slane %v604_v50, 1 }
 0x256   :  { %v606_v6 = vadd.f32 %v605_v5, %v604_v50 }
 0x258   :  { %v607_v7 = vmul.f32 0.020833334, %v606_v6 }
 0x25a   :  { %v608_v8 = vadd.f32 1e-05, %v607_v7 }
 0x25c   :  { %955 = vrsqrt.f32 %v608_v8 }
 0x266   :  { %v956_v9 = vpop.eup %955 }
 0x267   :  { %v614_v10 = vmul.f32 %v956_v9, %v582_v4  ;;  %v610_v11 = vmul.f32 %v956_v9, %v578_v0  ;;  %v611_v51 = vmul.f32 %v956_v9, %v579_v1  ;;  %v612_v13 = vmul.f32 %v956_v9, %v580_v2 }
 0x268   :  { %v613_v18 = vmul.f32 %v956_v9, %v581_v3  ;;  %v615_v12 = vmul.f32 %v956_v9, %v583_v29 }
 0x269   :  { %v616_v14 = vmax.f32 %v610_v11, 0.0  ;;  %v617_v15 = vmax.f32 %v611_v51, 0.0  ;;  %v618_v17 = vmax.f32 %v612_v13, 0.0  ;;  %v620_v16 = vmax.f32 %v614_v10, 0.0 }
 0x26a   :  { %v619_v52 = vmax.f32 %v613_v18, 0.0  ;;  %v621_v19 = vmax.f32 %v615_v12, 0.0 }
 0x26b   :  { %902 = vmatprep.mubr.msk.f32.mxu1 %vm37_vm0, %v616_v14 }
 0x26c   :  { %903 = vmatmul.mubr.msk.f32.vlgmr.msra.gmra.mrb[6].mxu1 %vm37_vm0, %v617_v15 }
 0x26d   :  { %905 = vmatprep.mubr.msk.f32.mxu1 %vm37_vm0, %v618_v17 }
 0x270   :  { %906 = vmatmul.mubr.msk.f32.gmra.mrb[8].mxu1 %vm37_vm0, %v619_v52 }
 0x271   :  { %908 = vmatprep.mubr.msk.f32.mxu1 %vm37_vm0, %v620_v16 }
 0x274   :  { %909 = vmatmul.mubr.msk.f32.gmra.mrb[10].mxu1 %vm37_vm0, %v621_v19 }
 0x33f   :  { %v904_v53 = vpop.f32.mrb[6].mxu1 }
 0x340   :  { %v738_v20 = vsel %vm37_vm0, %v904_v53, 0.0  ;;  %v708_v54 = vpop.f32.mrb[7].mxu1 }
 0x341   :  { %v737_v22 = vsel %vm37_vm0, %v708_v54, 0.0 }
 0x342   :  { %v739_v55 = vadd.f32 %v738_v20, %v737_v22 }
 0x343   :  { %v907_v25 = vpop.f32.mrb[8].mxu1 }
 0x344   :  { %v718_v56 = vpop.f32.mrb[9].mxu1  ;;  %v742_v58 = vsel %vm37_vm0, %v907_v25, 0.0 }
 0x345   :  { %v740_v57 = vsel %vm37_vm0, %v718_v56, 0.0 }
 0x346   :  { %v741_v26 = vadd.f32 %v740_v57, %v739_v55 }
 0x347   :  { %v910_v28 = vpop.f32.mrb[10].mxu1 }
 0x348   :  { %v728_v59 = vpop.f32.mrb[11].mxu1  ;;  %v743_v30 = vadd.f32 %v742_v58, %v741_v26  ;;  %v746_v39 = vsel %vm37_vm0, %v910_v28, 0.0 }
 0x349   :  { %v744_v31 = vsel %vm37_vm0, %v728_v59, 0.0 }
 0x34a   :  { %v745_v38 = vadd.f32 %v744_v31, %v743_v30 }
 0x34c   :  { %v747_v60 = vadd.f32 %v746_v39, %v745_v38 }
 0x34e   :  { %v748_v61 = vrot.slane %v747_v60, 4 }
 0x350   :  { %v749_v62 = vadd.f32 %v748_v61, %v747_v60 }
 0x352   :  { %v750_v63 = vrot.slane %v749_v62, 2 }
 0x354   :  { %v751_v0 = vadd.f32 %v750_v63, %v749_v62 }
 0x356   :  { %v752_v1 = vrot.slane %v751_v0, 1 }
 0x358   :  { %v753_v2 = vadd.f32 %v752_v1, %v751_v0 }
 0x35a   :  { %v754_v3 = vmul.f32 0.020833334, %v753_v2 }
 0x35c   :  { %v755_v4 = vsub.f32 %v708_v54, %v754_v3  ;;  %v756_v29 = vsub.f32 %v904_v53, %v754_v3  ;;  %v757_v24 = vsub.f32 %v718_v56, %v754_v3  ;;  %v758_v21 = vsub.f32 %v907_v25, %v754_v3 }
 0x35d   :  { %v759_v33 = vsub.f32 %v728_v59, %v754_v3  ;;  %v760_v27 = vsub.f32 %v910_v28, %v754_v3 }
 0x35e   :  { %v761_v23 = vmul.f32 %v755_v4, %v755_v4  ;;  %v762_v34 = vmul.f32 %v756_v29, %v756_v29  ;;  %v763_v36 = vmul.f32 %v757_v24, %v757_v24  ;;  %v764_v37 = vmul.f32 %v758_v21, %v758_v21 }
 0x35f   :  { %v765_v41 = vmul.f32 %v759_v33, %v759_v33  ;;  %v766_v45 = vmul.f32 %v760_v27, %v760_v27 }
 0x360   :  { %v767_v35 = vsel %vm37_vm0, %v761_v23, 0.0  ;;  %v768_v32 = vsel %vm37_vm0, %v762_v34, 0.0  ;;  %v770_v43 = vsel %vm37_vm0, %v763_v36, 0.0  ;;  %v772_v42 = vsel %vm37_vm0, %v764_v37, 0.0 }
 0x361   :  { %v769_v40 = vadd.f32 %v768_v32, %v767_v35  ;;  %v774_v47 = vsel %vm37_vm0, %v765_v41, 0.0  ;;  %v776_v49 = vsel %vm37_vm0, %v766_v45, 0.0 }
 0x363   :  { %v771_v44 = vadd.f32 %v770_v43, %v769_v40 }
 0x365   :  { %v773_v46 = vadd.f32 %v772_v42, %v771_v44 }
 0x367   :  { %v775_v48 = vadd.f32 %v774_v47, %v773_v46 }
 0x369   :  { %v777_v50 = vadd.f32 %v776_v49, %v775_v48 }
 0x36b   :  { %v778_v5 = vrot.slane %v777_v50, 4 }
 0x36d   :  { %v779_v6 = vadd.f32 %v778_v5, %v777_v50 }
 0x36f   :  { %v780_v7 = vrot.slane %v779_v6, 2 }
 0x371   :  { %v781_v8 = vadd.f32 %v780_v7, %v779_v6 }
 0x373   :  { %v782_v9 = vrot.slane %v781_v8, 1 }
 0x375   :  { %v783_v10 = vadd.f32 %v782_v9, %v781_v8 }
 0x377   :  { %v784_v11 = vmul.f32 0.020833334, %v783_v10 }
 0x379   :  { %v785_v51 = vadd.f32 1e-05, %v784_v11 }
 0x37b   :  { %957 = vrsqrt.f32 %v785_v51 }
 0x385   :  { %v958_v13 = vpop.eup %957 }
 0x386   :  { %v787_v18 = vmul.f32 %v958_v13, %v755_v4  ;;  %v788_v12 = vmul.f32 %v958_v13, %v756_v29  ;;  %v789_v14 = vmul.f32 %v958_v13, %v757_v24  ;;  %v790_v15 = vmul.f32 %v958_v13, %v758_v21 }
 0x387   :  { %v791_v17 = vmul.f32 %v958_v13, %v759_v33  ;;  %v792_v52 = vmul.f32 %v958_v13, %v760_v27 }
 0x388   :  { %793 = vst.msk [vmem:[%s1254_s6] sm:$0xff] %vm37_vm0, %v787_v18  ;;  %794 = vst.msk [vmem:[%s1254_s6 + $0x8] sm:$0xff] %vm37_vm0, %v788_v12 }
 0x389   :  { %795 = vst.msk [vmem:[%s1254_s6 + $0x10] sm:$0xff] %vm37_vm0, %v789_v14  ;;  %796 = vst.msk [vmem:[%s1254_s6 + $0x18] sm:$0xff] %vm37_vm0, %v790_v15 }
 0x38a   :  { %797 = vst.msk [vmem:[%s1254_s6 + $0x20] sm:$0xff] %vm37_vm0, %v791_v17  ;;  %798 = vst.msk [vmem:[%s1254_s6 + $0x28] sm:$0xff] %vm37_vm0, %v792_v52 }

// kernel: closed_call.167
= control target key start
LH: loop header
LB: loop body
LE: loop exit
PB: predicated region body
PF: predicated region fallthrough
CT: control target
= control target key end

     0   :  { %vm50_vm0 = vcmask 64512   ;;  %v2253_v0 = vmov 0.0   ;;  %vm2254_vm1 = vmmov 0   ;;  %s2631_s1 = inlined_call_operand.vmem [shape: f32[12,8,8], index: 1, kind: input, shape index: {}]   ;;  %s2632_s0 = inlined_call_operand.vmem [shape: f32[12,8,8], index: 0, kind: input, shape index: {}]   ;;  %s2633_s2 = inlined_call_operand.vmem [shape: f32[12,8,8], index: 2, kind: input, shape index: {}]   ;;  %s2634_s3 = inlined_call_operand.vmem [shape: f32[12,8,8], index: 3, kind: output, shape index: {}]  }
   0x1   :  { %2083 = vmatprep.subr.mxu0 %v2253_v0  ;;  %v26_v1 = vld [vmem:[%s2631_s1] sm:$0xff]  ;;  %2085 = vmatprep.mubr.msk.f32.mxu0 %vm2254_vm1, %v2253_v0  ;;  %v27_v2 = vld [vmem:[%s2631_s1 + $0x8] sm:$0xff]  ;;  %v28_v4 = vld [vmem:[%s2631_s1 + $0x10] sm:$0xff] }
   0x2   :  { %2084 = vmatpush3.xpose.msk.msra.mxu0 %vm50_vm0, %v26_v1  ;;  %v14_v3 = vld [vmem:[%s2632_s0] sm:$0xff]  ;;  %2088 = vmatprep.subr.mxu1 %v2253_v0  ;;  %v15_v5 = vld [vmem:[%s2632_s0 + $0x8] sm:$0xff]  ;;  %v29_v6 = vld [vmem:[%s2631_s1 + $0x18] sm:$0xff] }
   0x3   :  { %2093 = vmatprep.subr.mxu0 %v2253_v0  ;;  %2089 = vmatpush3.xpose.msk.msra.mxu1 %vm50_vm0, %v27_v2  ;;  %v16_v7 = vld [vmem:[%s2632_s0 + $0x10] sm:$0xff]  ;;  %v30_v8 = vld [vmem:[%s2631_s1 + $0x20] sm:$0xff]  ;;  %v17_v9 = vld [vmem:[%s2632_s0 + $0x18] sm:$0xff] }
   0x4   :  { %2090 = vmatprep.mubr.msk.f32.mxu1 %vm2254_vm1, %v2253_v0  ;;  %2098 = vmatprep.subr.mxu1 %v2253_v0  ;;  %v31_v10 = vld [vmem:[%s2631_s1 + $0x28] sm:$0xff]  ;;  %v18_v11 = vld [vmem:[%s2632_s0 + $0x20] sm:$0xff]  ;;  %v32_v12 = vld [vmem:[%s2631_s1 + $0x30] sm:$0xff] }
   0x5   :  { %2086 = vmatmul.mubr.msk.f32.vlgmr.msra.gmra.mrb[0].mxu0 %vm50_vm0, %v14_v3  ;;  %v19_v13 = vld [vmem:[%s2632_s0 + $0x28] sm:$0xff]  ;;  %v33_v14 = vld [vmem:[%s2631_s1 + $0x38] sm:$0xff]  ;;  %v20_v15 = vld [vmem:[%s2632_s0 + $0x30] sm:$0xff] }
   0x6   :  { %2094 = vmatpush3.xpose.msk.msra.mxu0 %vm50_vm0, %v28_v4  ;;  %2095 = vmatprep.mubr.msk.f32.mxu0 %vm2254_vm1, %v2253_v0  ;;  %v34_v16 = vld [vmem:[%s2631_s1 + $0x40] sm:$0xff]  ;;  %v21_v17 = vld [vmem:[%s2632_s0 + $0x38] sm:$0xff]  ;;  %v35_v18 = vld [vmem:[%s2631_s1 + $0x48] sm:$0xff] }
   0x7   :  { %2091 = vmatmul.mubr.msk.f32.vlgmr.msra.gmra.mrb[0].mxu1 %vm50_vm0, %v15_v5  ;;  %2103 = vmatprep.subr.mxu0 %v2253_v0  ;;  %v22_v19 = vld [vmem:[%s2632_s0 + $0x40] sm:$0xff]  ;;  %v36_v20 = vld [vmem:[%s2631_s1 + $0x50] sm:$0xff]  ;;  %v23_v21 = vld [vmem:[%s2632_s0 + $0x48] sm:$0xff] }
   0x8   :  { %2099 = vmatpush3.xpose.msk.msra.mxu1 %vm50_vm0, %v29_v6  ;;  %2100 = vmatprep.mubr.msk.f32.mxu1 %vm2254_vm1, %v2253_v0  ;;  %v37_v22 = vld [vmem:[%s2631_s1 + $0x58] sm:$0xff]  ;;  %v24_v23 = vld [vmem:[%s2632_s0 + $0x50] sm:$0xff] }
   0x9   :  { %2096 = vmatmul.mubr.msk.f32.vlgmr.msra.gmra.mrb[2].mxu0 %vm50_vm0, %v16_v7  ;;  %2108 = vmatprep.subr.mxu1 %v2253_v0  ;;  %v25_v24 = vld [vmem:[%s2632_s0 + $0x58] sm:$0xff] }
   0xa   :  { %2104 = vmatpush3.xpose.msk.msra.mxu0 %vm50_vm0, %v30_v8  ;;  %2105 = vmatprep.mubr.msk.f32.mxu0 %vm2254_vm1, %v2253_v0 }
   0xb   :  { %2101 = vmatmul.mubr.msk.f32.vlgmr.msra.gmra.mrb[2].mxu1 %vm50_vm0, %v17_v9  ;;  %2113 = vmatprep.subr.mxu0 %v2253_v0 }
   0xc   :  { %2109 = vmatpush3.xpose.msk.msra.mxu1 %vm50_vm0, %v31_v10  ;;  %2110 = vmatprep.mubr.msk.f32.mxu1 %vm2254_vm1, %v2253_v0 }
   0xd   :  { %2106 = vmatmul.mubr.msk.f32.vlgmr.msra.gmra.mrb[4].mxu0 %vm50_vm0, %v18_v11  ;;  %2118 = vmatprep.subr.mxu1 %v2253_v0 }
   0xe   :  { %2114 = vmatpush3.xpose.msk.msra.mxu0 %vm50_vm0, %v32_v12  ;;  %2115 = vmatprep.mubr.msk.f32.mxu0 %vm2254_vm1, %v2253_v0 }
   0xf   :  { %2111 = vmatmul.mubr.msk.f32.vlgmr.msra.gmra.mrb[4].mxu1 %vm50_vm0, %v19_v13  ;;  %2123 = vmatprep.subr.mxu0 %v2253_v0 }
  0x10   :  { %2119 = vmatpush3.xpose.msk.msra.mxu1 %vm50_vm0, %v33_v14  ;;  %2120 = vmatprep.mubr.msk.f32.mxu1 %vm2254_vm1, %v2253_v0 }
  0x11   :  { %2116 = vmatmul.mubr.msk.f32.vlgmr.msra.gmra.mrb[6].mxu0 %vm50_vm0, %v20_v15  ;;  %2128 = vmatprep.subr.mxu1 %v2253_v0 }
  0x12   :  { %2124 = vmatpush3.xpose.msk.msra.mxu0 %vm50_vm0, %v34_v16  ;;  %2125 = vmatprep.mubr.msk.f32.mxu0 %vm2254_vm1, %v2253_v0 }
  0x13   :  { %2121 = vmatmul.mubr.msk.f32.vlgmr.msra.gmra.mrb[6].mxu1 %vm50_vm0, %v21_v17  ;;  %2133 = vmatprep.subr.mxu0 %v2253_v0 }
  0x14   :  { %2129 = vmatpush3.xpose.msk.msra.mxu1 %vm50_vm0, %v35_v18  ;;  %2130 = vmatprep.mubr.msk.f32.mxu1 %vm2254_vm1, %v2253_v0 }
  0x15   :  { %2126 = vmatmul.mubr.msk.f32.vlgmr.msra.gmra.mrb[8].mxu0 %vm50_vm0, %v22_v19  ;;  %2138 = vmatprep.subr.mxu1 %v2253_v0 }
  0x16   :  { %2134 = vmatpush3.xpose.msk.msra.mxu0 %vm50_vm0, %v36_v20  ;;  %2135 = vmatprep.mubr.msk.f32.mxu0 %vm2254_vm1, %v2253_v0 }
  0x17   :  { %2131 = vmatmul.mubr.msk.f32.vlgmr.msra.gmra.mrb[8].mxu1 %vm50_vm0, %v23_v21  ;;  %2143 = vmatprep.subr.mxu0 %v2253_v0 }
  0x18   :  { %2139 = vmatpush3.xpose.msk.msra.mxu1 %vm50_vm0, %v37_v22  ;;  %2140 = vmatprep.mubr.msk.f32.mxu1 %vm2254_vm1, %v2253_v0 }
  0x19   :  { %2136 = vmatmul.mubr.msk.f32.vlgmr.msra.gmra.mrb[10].mxu0 %vm50_vm0, %v24_v23  ;;  %2148 = vmatprep.subr.mxu1 %v2253_v0 }
  0x1a   :  { %2145 = vmatprep.mubr.msk.f32.mxu0 %vm2254_vm1, %v2253_v0 }
  0x1b   :  { %2141 = vmatmul.mubr.msk.f32.vlgmr.msra.gmra.mrb[10].mxu1 %vm50_vm0, %v25_v24 }
  0x1c   :  { %2150 = vmatprep.mubr.msk.f32.mxu1 %vm2254_vm1, %v2253_v0 }
  0xd8   :  { %v123_v25 = vpop.f32.mrb[0].mxu0 }
  0xd9   :  { %v963_v26 = vmul.f32 0.35355338, %v123_v25  ;;  %v2087_v27 = vpop.f32.mrb[1].mxu0 }
  0xda   :  { %v199_v28 = vpop.f32.mrb[0].mxu1 }
  0xdb   :  { %v2413_v29 = vmul.f32 0.35355338, %v199_v28  ;;  %v975_v30 = vsel %vm50_vm0, %v963_v26, -inf  ;;  %v2092_v31 = vpop.f32.mrb[1].mxu1 }
  0xdc   :  { %976 = vmax.xlane.f32.xlu0 %v975_v30  ;;  %v275_v32 = vpop.f32.mrb[2].mxu0 }
  0xdd   :  { %v965_v33 = vmul.f32 0.35355338, %v275_v32  ;;  %v2097_v34 = vpop.f32.mrb[3].mxu0  ;;  %v978_v35 = vsel %vm50_vm0, %v2413_v29, -inf }
  0xde   :  { %v351_v36 = vpop.f32.mrb[2].mxu1 }
  0xdf   :  { %v2418_v37 = vmul.f32 0.35355338, %v351_v36  ;;  %v981_v38 = vsel %vm50_vm0, %v965_v33, -inf  ;;  %v2102_v39 = vpop.f32.mrb[3].mxu1 }
  0xe0   :  { %979 = vmax.xlane.f32.xlu0 %v978_v35  ;;  %982 = vmax.xlane.f32.xlu1 %v981_v38  ;;  %v427_v40 = vpop.f32.mrb[4].mxu0 }
  0xe1   :  { %v967_v41 = vmul.f32 0.35355338, %v427_v40  ;;  %v2107_v42 = vpop.f32.mrb[5].mxu0  ;;  %v984_v43 = vsel %vm50_vm0, %v2418_v37, -inf }
  0xe2   :  { %v503_v44 = vpop.f32.mrb[4].mxu1 }
  0xe3   :  { %v968_v45 = vmul.f32 0.35355338, %v503_v44  ;;  %v987_v46 = vsel %vm50_vm0, %v967_v41, -inf  ;;  %v2112_v47 = vpop.f32.mrb[5].mxu1 }
  0xe4   :  { %985 = vmax.xlane.f32.xlu1 %v984_v43  ;;  %988 = vmax.xlane.f32.xlu0 %v987_v46  ;;  %v579_v48 = vpop.f32.mrb[6].mxu0 }
  0xe5   :  { %v969_v49 = vmul.f32 0.35355338, %v579_v48  ;;  %v2117_v50 = vpop.f32.mrb[7].mxu0  ;;  %v990_v51 = vsel %vm50_vm0, %v968_v45, -inf }
  0xe6   :  { %v655_v52 = vpop.f32.mrb[6].mxu1 }
  0xe7   :  { %v2425_v53 = vmul.f32 0.35355338, %v655_v52  ;;  %v993_v54 = vsel %vm50_vm0, %v969_v49, -inf  ;;  %v2122_v55 = vpop.f32.mrb[7].mxu1 }
  0xe8   :  { %991 = vmax.xlane.f32.xlu1 %v990_v51  ;;  %994 = vmax.xlane.f32.xlu0 %v993_v54  ;;  %v731_v56 = vpop.f32.mrb[8].mxu0 }
  0xe9   :  { %v971_v57 = vmul.f32 0.35355338, %v731_v56  ;;  %v2127_v58 = vpop.f32.mrb[9].mxu0  ;;  %v996_v59 = vsel %vm50_vm0, %v2425_v53, -inf }
  0xea   :  { %v807_v60 = vpop.f32.mrb[8].mxu1 }
  0xeb   :  { %v2430_v61 = vmul.f32 0.35355338, %v807_v60  ;;  %v999_v62 = vsel %vm50_vm0, %v971_v57, -inf  ;;  %v2132_v63 = vpop.f32.mrb[9].mxu1 }
  0xec   :  { %997 = vmax.xlane.f32.xlu1 %v996_v59  ;;  %1000 = vmax.xlane.f32.xlu0 %v999_v62  ;;  %v883_v1 = vpop.f32.mrb[10].mxu0 }
  0xed   :  { %v973_v2 = vmul.f32 0.35355338, %v883_v1  ;;  %v1002_v3 = vsel %vm50_vm0, %v2430_v61, -inf  ;;  %v2137_v4 = vpop.f32.mrb[11].mxu0 }
  0xee   :  { %v959_v5 = vpop.f32.mrb[10].mxu1 }
  0xef   :  { %v2435_v6 = vmul.f32 0.35355338, %v959_v5  ;;  %v1005_v7 = vsel %vm50_vm0, %v973_v2, -inf  ;;  %v2142_v8 = vpop.f32.mrb[11].mxu1 }
  0xf0   :  { %1003 = vmax.xlane.f32.xlu1 %v1002_v3  ;;  %1006 = vmax.xlane.f32.xlu0 %v1005_v7  ;;  %v38_v7 = vld [vmem:[%s2633_s2] sm:$0xff]  ;;  %v39_v8 = vld [vmem:[%s2633_s2 + $0x8] sm:$0xff] }
  0xf1   :  { %v1008_v9 = vsel %vm50_vm0, %v2435_v6, -inf  ;;  %2144 = vmatpush3.msra.mxu0 %v38_v7  ;;  %2149 = vmatpush3.msra.mxu1 %v39_v8 }
  0xf2   :  { %2153 = vmatprep.subr.mxu0 %v2253_v0  ;;  %2158 = vmatprep.subr.mxu1 %v2253_v0 }
  0xf4   :  { %1009 = vmax.xlane.f32.xlu1 %v1008_v9 }
 0x169   :  { %v977_v10 = vpop.xlane.xlu0 %976 }
 0x16a   :  { %v1011_v11 = vsub.f32 %v963_v26, %v977_v10 }
 0x16c   :  { %v1023_v12 = vmul.f32 1.442695, %v1011_v11 }
 0x16d   :  { %v980_v13 = vpop.xlane.xlu0 %979  ;;  %v983_v14 = vpop.xlane.xlu1 %982 }
 0x16e   :  { %2205 = vpow2.f32 %v1023_v12  ;;  %v1012_v15 = vsub.f32 %v2413_v29, %v980_v13  ;;  %v1013_v16 = vsub.f32 %v965_v33, %v983_v14 }
 0x170   :  { %v1025_v17 = vmul.f32 1.442695, %v1012_v15  ;;  %v1027_v18 = vmul.f32 1.442695, %v1013_v16 }
 0x171   :  { %v986_v19 = vpop.xlane.xlu1 %985  ;;  %v989_v20 = vpop.xlane.xlu0 %988 }
 0x172   :  { %2207 = vpow2.f32 %v1025_v17  ;;  %v1014_v21 = vsub.f32 %v2418_v37, %v986_v19  ;;  %v1015_v22 = vsub.f32 %v967_v41, %v989_v20  ;;  %v40_v17 = vld [vmem:[%s2633_s2 + $0x10] sm:$0xff] }
 0x173   :  { %2209 = vpow2.f32 %v1027_v18 }
 0x174   :  { %v1029_v23 = vmul.f32 1.442695, %v1014_v21  ;;  %v1031_v24 = vmul.f32 1.442695, %v1015_v22 }
 0x175   :  { %v992_v25 = vpop.xlane.xlu1 %991  ;;  %v995_v26 = vpop.xlane.xlu0 %994 }
 0x176   :  { %2211 = vpow2.f32 %v1029_v23  ;;  %v1016_v27 = vsub.f32 %v968_v45, %v992_v25  ;;  %v1017_v28 = vsub.f32 %v969_v49, %v995_v26  ;;  %v41_v23 = vld [vmem:[%s2633_s2 + $0x18] sm:$0xff]  ;;  %v42_v26 = vld [vmem:[%s2633_s2 + $0x20] sm:$0xff] }
 0x177   :  { %2213 = vpow2.f32 %v1031_v24 }
 0x178   :  { %v2442_v30 = vpop.eup %2205  ;;  %v1033_v29 = vmul.f32 1.442695, %v1016_v27  ;;  %v1035_v31 = vmul.f32 1.442695, %v1017_v28 }
 0x179   :  { %v998_v32 = vpop.xlane.xlu1 %997  ;;  %v1001_v33 = vpop.xlane.xlu0 %1000  ;;  %v1047_v34 = vsel %vm50_vm0, %v2442_v30, 0.0 }
 0x17a   :  { %2215 = vpow2.f32 %v1033_v29  ;;  %v1018_v35 = vsub.f32 %v2425_v53, %v998_v32  ;;  %v1019_v36 = vsub.f32 %v971_v57, %v1001_v33  ;;  %1048 = vadd.xlane.f32.xlu0 %v1047_v34  ;;  %v44_v34 = vld [vmem:[%s2633_s2 + $0x30] sm:$0xff] }
 0x17b   :  { %2217 = vpow2.f32 %v1035_v31  ;;  %v43_v31 = vld [vmem:[%s2633_s2 + $0x28] sm:$0xff] }
 0x17c   :  { %v2447_v37 = vpop.eup %2207  ;;  %v1037_v38 = vmul.f32 1.442695, %v1018_v35  ;;  %v1039_v39 = vmul.f32 1.442695, %v1019_v36 }
 0x17d   :  { %v2449_v40 = vpop.eup %2209  ;;  %v1004_v41 = vpop.xlane.xlu1 %1003  ;;  %v1050_v43 = vsel %vm50_vm0, %v2447_v37, 0.0 }
 0x17e   :  { %v1007_v42 = vpop.xlane.xlu0 %1006  ;;  %2219 = vpow2.f32 %v1037_v38  ;;  %v1020_v44 = vsub.f32 %v2430_v61, %v1004_v41  ;;  %1051 = vadd.xlane.f32.xlu1 %v1050_v43  ;;  %v1053_v46 = vsel %vm50_vm0, %v2449_v40, 0.0  ;;  %v46_v41 = vld [vmem:[%s2633_s2 + $0x40] sm:$0xff] }
 0x17f   :  { %v1021_v45 = vsub.f32 %v973_v2, %v1007_v42  ;;  %2221 = vpow2.f32 %v1039_v39  ;;  %1054 = vadd.xlane.f32.xlu0 %v1053_v46  ;;  %v45_v39 = vld [vmem:[%s2633_s2 + $0x38] sm:$0xff] }
 0x180   :  { %v2456_v47 = vpop.eup %2211  ;;  %v1041_v48 = vmul.f32 1.442695, %v1020_v44 }
 0x181   :  { %v1043_v49 = vmul.f32 1.442695, %v1021_v45  ;;  %v2458_v50 = vpop.eup %2213  ;;  %v1010_v51 = vpop.xlane.xlu1 %1009  ;;  %v1056_v52 = vsel %vm50_vm0, %v2456_v47, 0.0  ;;  %v47_v45 = vld [vmem:[%s2633_s2 + $0x48] sm:$0xff] }
 0x182   :  { %2223 = vpow2.f32 %v1041_v48  ;;  %v1022_v53 = vsub.f32 %v2435_v6, %v1010_v51  ;;  %1057 = vadd.xlane.f32.xlu1 %v1056_v52  ;;  %v1059_v54 = vsel %vm50_vm0, %v2458_v50, 0.0  ;;  %v49_v51 = vld [vmem:[%s2633_s2 + $0x58] sm:$0xff] }
 0x183   :  { %2225 = vpow2.f32 %v1043_v49  ;;  %1060 = vadd.xlane.f32.xlu0 %v1059_v54 }
 0x184   :  { %v2465_v55 = vpop.eup %2215  ;;  %v1045_v56 = vmul.f32 1.442695, %v1022_v53 }
 0x185   :  { %v2467_v57 = vpop.eup %2217  ;;  %v1062_v58 = vsel %vm50_vm0, %v2465_v55, 0.0 }
 0x186   :  { %2227 = vpow2.f32 %v1045_v56  ;;  %1063 = vadd.xlane.f32.xlu1 %v1062_v58  ;;  %v1065_v59 = vsel %vm50_vm0, %v2467_v57, 0.0 }
 0x187   :  { %1066 = vadd.xlane.f32.xlu0 %v1065_v59 }
 0x188   :  { %v2473_v60 = vpop.eup %2219 }
 0x189   :  { %v2475_v61 = vpop.eup %2221  ;;  %v1068_v62 = vsel %vm50_vm0, %v2473_v60, 0.0 }
 0x18a   :  { %1069 = vadd.xlane.f32.xlu1 %v1068_v62  ;;  %v1071_v63 = vsel %vm50_vm0, %v2475_v61, 0.0 }
 0x18b   :  { %1072 = vadd.xlane.f32.xlu0 %v1071_v63 }
 0x18c   :  { %v2481_v1 = vpop.eup %2223 }
 0x18d   :  { %v2483_v2 = vpop.eup %2225  ;;  %v1074_v3 = vsel %vm50_vm0, %v2481_v1, 0.0 }
 0x18e   :  { %1075 = vadd.xlane.f32.xlu1 %v1074_v3  ;;  %v1077_v4 = vsel %vm50_vm0, %v2483_v2, 0.0 }
 0x18f   :  { %1078 = vadd.xlane.f32.xlu0 %v1077_v4 }
 0x190   :  { %v2489_v5 = vpop.eup %2227 }
 0x191   :  { %v1080_v6 = vsel %vm50_vm0, %v2489_v5, 0.0 }
 0x192   :  { %1081 = vadd.xlane.f32.xlu1 %v1080_v6 }
 0x207   :  { %v1049_v9 = vpop.xlane.xlu0 %1048 }
 0x208   :  { %2229 = vrcp.f32 %v1049_v9 }
 0x20b   :  { %v1052_v10 = vpop.xlane.xlu1 %1051 }
 0x20c   :  { %2231 = vrcp.f32 %v1052_v10  ;;  %v1055_v11 = vpop.xlane.xlu0 %1054 }
 0x20d   :  { %2233 = vrcp.f32 %v1055_v11 }
 0x20f   :  { %v1058_v12 = vpop.xlane.xlu1 %1057 }
 0x210   :  { %2235 = vrcp.f32 %v1058_v12  ;;  %v1061_v13 = vpop.xlane.xlu0 %1060 }
 0x211   :  { %2237 = vrcp.f32 %v1061_v13 }
 0x212   :  { %v2230_v14 = vpop.eup %2229 }
 0x213   :  { %v1095_v15 = vmul.f32 %v2230_v14, %v2442_v30  ;;  %v1064_v16 = vpop.xlane.xlu1 %1063 }
 0x214   :  { %2239 = vrcp.f32 %v1064_v16  ;;  %v1067_v18 = vpop.xlane.xlu0 %1066 }
 0x215   :  { %2241 = vrcp.f32 %v1067_v18  ;;  %2146 = vmatmul.mubr.msk.f32.vlgmr.msra.gmra.mrb[12].mxu0 %vm50_vm0, %v1095_v15 }
 0x216   :  { %v2232_v19 = vpop.eup %2231  ;;  %2154 = vmatpush3.msra.mxu0 %v40_v17  ;;  %2155 = vmatprep.mubr.msk.f32.mxu0 %vm2254_vm1, %v2253_v0 }
 0x217   :  { %v2234_v20 = vpop.eup %2233  ;;  %v1096_v21 = vmul.f32 %v2232_v19, %v2447_v37  ;;  %v1070_v22 = vpop.xlane.xlu1 %1069  ;;  %2163 = vmatprep.subr.mxu0 %v2253_v0 }
 0x218   :  { %v1097_v24 = vmul.f32 %v2234_v20, %v2449_v40  ;;  %2243 = vrcp.f32 %v1070_v22  ;;  %v1073_v25 = vpop.xlane.xlu0 %1072 }
 0x219   :  { %2245 = vrcp.f32 %v1073_v25  ;;  %2151 = vmatmul.mubr.msk.f32.vlgmr.msra.gmra.mrb[12].mxu1 %vm50_vm0, %v1096_v21 }
 0x21a   :  { %v2236_v27 = vpop.eup %2235  ;;  %2156 = vmatmul.mubr.msk.f32.vlgmr.msra.gmra.mrb[14].mxu0 %vm50_vm0, %v1097_v24  ;;  %2159 = vmatpush3.msra.mxu1 %v41_v23 }
 0x21b   :  { %v2238_v28 = vpop.eup %2237  ;;  %v1098_v30 = vmul.f32 %v2236_v27, %v2456_v47  ;;  %v1076_v29 = vpop.xlane.xlu1 %1075  ;;  %2160 = vmatprep.mubr.msk.f32.mxu1 %vm2254_vm1, %v2253_v0  ;;  %2164 = vmatpush3.msra.mxu0 %v42_v26  ;;  %v48_v47 = vld [vmem:[%s2633_s2 + $0x50] sm:$0xff] }
 0x21c   :  { %v1099_v32 = vmul.f32 %v2238_v28, %v2458_v50  ;;  %2247 = vrcp.f32 %v1076_v29  ;;  %v1079_v33 = vpop.xlane.xlu0 %1078  ;;  %2165 = vmatprep.mubr.msk.f32.mxu0 %vm2254_vm1, %v2253_v0  ;;  %2168 = vmatprep.subr.mxu1 %v2253_v0 }
 0x21d   :  { %2249 = vrcp.f32 %v1079_v33  ;;  %2161 = vmatmul.mubr.msk.f32.vlgmr.msra.gmra.mrb[14].mxu1 %vm50_vm0, %v1098_v30  ;;  %2173 = vmatprep.subr.mxu0 %v2253_v0 }
 0x21e   :  { %v2240_v35 = vpop.eup %2239  ;;  %2166 = vmatmul.mubr.msk.f32.vlgmr.msra.gmra.mrb[16].mxu0 %vm50_vm0, %v1099_v32  ;;  %2169 = vmatpush3.msra.mxu1 %v43_v31 }
 0x21f   :  { %v2242_v36 = vpop.eup %2241  ;;  %v1100_v37 = vmul.f32 %v2240_v35, %v2465_v55  ;;  %v1082_v38 = vpop.xlane.xlu1 %1081  ;;  %2170 = vmatprep.mubr.msk.f32.mxu1 %vm2254_vm1, %v2253_v0  ;;  %2174 = vmatpush3.msra.mxu0 %v44_v34 }
 0x220   :  { %v1101_v40 = vmul.f32 %v2242_v36, %v2467_v57  ;;  %2251 = vrcp.f32 %v1082_v38  ;;  %2175 = vmatprep.mubr.msk.f32.mxu0 %vm2254_vm1, %v2253_v0  ;;  %2178 = vmatprep.subr.mxu1 %v2253_v0 }
 0x221   :  { %2171 = vmatmul.mubr.msk.f32.vlgmr.msra.gmra.mrb[16].mxu1 %vm50_vm0, %v1100_v37  ;;  %2183 = vmatprep.subr.mxu0 %v2253_v0 }
 0x222   :  { %v2244_v42 = vpop.eup %2243  ;;  %2176 = vmatmul.mubr.msk.f32.vlgmr.msra.gmra.mrb[18].mxu0 %vm50_vm0, %v1101_v40  ;;  %2179 = vmatpush3.msra.mxu1 %v45_v39 }
 0x223   :  { %v2246_v43 = vpop.eup %2245  ;;  %v1102_v44 = vmul.f32 %v2244_v42, %v2473_v60  ;;  %2180 = vmatprep.mubr.msk.f32.mxu1 %vm2254_vm1, %v2253_v0  ;;  %2184 = vmatpush3.msra.mxu0 %v46_v41 }
 0x224   :  { %v1103_v46 = vmul.f32 %v2246_v43, %v2475_v61  ;;  %2185 = vmatprep.mubr.msk.f32.mxu0 %vm2254_vm1, %v2253_v0  ;;  %2188 = vmatprep.subr.mxu1 %v2253_v0 }
 0x225   :  { %2181 = vmatmul.mubr.msk.f32.vlgmr.msra.gmra.mrb[18].mxu1 %vm50_vm0, %v1102_v44  ;;  %2193 = vmatprep.subr.mxu0 %v2253_v0 }
 0x226   :  { %v2248_v48 = vpop.eup %2247  ;;  %2186 = vmatmul.mubr.msk.f32.vlgmr.msra.gmra.mrb[20].mxu0 %vm50_vm0, %v1103_v46  ;;  %2189 = vmatpush3.msra.mxu1 %v47_v45 }
 0x227   :  { %v2250_v49 = vpop.eup %2249  ;;  %v1104_v50 = vmul.f32 %v2248_v48, %v2481_v1  ;;  %2190 = vmatprep.mubr.msk.f32.mxu1 %vm2254_vm1, %v2253_v0  ;;  %2194 = vmatpush3.msra.mxu0 %v48_v47 }
 0x228   :  { %v1105_v52 = vmul.f32 %v2250_v49, %v2483_v2  ;;  %2195 = vmatprep.mubr.msk.f32.mxu0 %vm2254_vm1, %v2253_v0  ;;  %2198 = vmatprep.subr.mxu1 %v2253_v0 }
 0x229   :  { %2191 = vmatmul.mubr.msk.f32.vlgmr.msra.gmra.mrb[20].mxu1 %vm50_vm0, %v1104_v50 }
 0x22a   :  { %v2252_v53 = vpop.eup %2251  ;;  %2196 = vmatmul.mubr.msk.f32.vlgmr.msra.gmra.mrb[22].mxu0 %vm50_vm0, %v1105_v52  ;;  %2199 = vmatpush3.msra.mxu1 %v49_v51 }
 0x22b   :  { %v1106_v54 = vmul.f32 %v2252_v53, %v2489_v5  ;;  %2200 = vmatprep.mubr.msk.f32.mxu1 %vm2254_vm1, %v2253_v0 }
 0x22d   :  { %2201 = vmatmul.mubr.msk.f32.vlgmr.msra.gmra.mrb[22].mxu1 %vm50_vm0, %v1106_v54 }
 0x2e8   :  { %v1176_v55 = vpop.f32.mrb[12].mxu0 }
 0x2e9   :  { %1983 = vst.msk [vmem:[%s2634_s3] sm:$0xff] %vm50_vm0, %v1176_v55  ;;  %v2147_v56 = vpop.f32.mrb[13].mxu0 }
 0x2ec   :  { %v1249_v57 = vpop.f32.mrb[12].mxu1 }
 0x2ed   :  { %1984 = vst.msk [vmem:[%s2634_s3 + $0x8] sm:$0xff] %vm50_vm0, %v1249_v57  ;;  %v1322_v58 = vpop.f32.mrb[14].mxu0  ;;  %v2152_v59 = vpop.f32.mrb[13].mxu1 }
 0x2ee   :  { %1985 = vst.msk [vmem:[%s2634_s3 + $0x10] sm:$0xff] %vm50_vm0, %v1322_v58  ;;  %v2157_v0 = vpop.f32.mrb[15].mxu0 }
 0x2f0   :  { %v1395_v60 = vpop.f32.mrb[14].mxu1 }
 0x2f1   :  { %1986 = vst.msk [vmem:[%s2634_s3 + $0x18] sm:$0xff] %vm50_vm0, %v1395_v60  ;;  %v1468_v61 = vpop.f32.mrb[16].mxu0  ;;  %v2162_v62 = vpop.f32.mrb[15].mxu1 }
 0x2f2   :  { %1987 = vst.msk [vmem:[%s2634_s3 + $0x20] sm:$0xff] %vm50_vm0, %v1468_v61  ;;  %v2167_v63 = vpop.f32.mrb[17].mxu0 }
 0x2f4   :  { %v1541_v1 = vpop.f32.mrb[16].mxu1 }
 0x2f5   :  { %1988 = vst.msk [vmem:[%s2634_s3 + $0x28] sm:$0xff] %vm50_vm0, %v1541_v1  ;;  %v1614_v2 = vpop.f32.mrb[18].mxu0  ;;  %v2172_v3 = vpop.f32.mrb[17].mxu1 }
 0x2f6   :  { %1989 = vst.msk [vmem:[%s2634_s3 + $0x30] sm:$0xff] %vm50_vm0, %v1614_v2  ;;  %v2177_v4 = vpop.f32.mrb[19].mxu0 }
 0x2f8   :  { %v1687_v5 = vpop.f32.mrb[18].mxu1 }
 0x2f9   :  { %1990 = vst.msk [vmem:[%s2634_s3 + $0x38] sm:$0xff] %vm50_vm0, %v1687_v5  ;;  %v1760_v6 = vpop.f32.mrb[20].mxu0  ;;  %v2182_v7 = vpop.f32.mrb[19].mxu1 }
 0x2fa   :  { %1991 = vst.msk [vmem:[%s2634_s3 + $0x40] sm:$0xff] %vm50_vm0, %v1760_v6  ;;  %v2187_v8 = vpop.f32.mrb[21].mxu0 }
 0x2fc   :  { %v1833_v9 = vpop.f32.mrb[20].mxu1 }
 0x2fd   :  { %1992 = vst.msk [vmem:[%s2634_s3 + $0x48] sm:$0xff] %vm50_vm0, %v1833_v9  ;;  %v1906_v10 = vpop.f32.mrb[22].mxu0  ;;  %v2192_v11 = vpop.f32.mrb[21].mxu1 }
 0x2fe   :  { %1993 = vst.msk [vmem:[%s2634_s3 + $0x50] sm:$0xff] %vm50_vm0, %v1906_v10  ;;  %v2197_v12 = vpop.f32.mrb[23].mxu0 }
 0x300   :  { %v1979_v13 = vpop.f32.mrb[22].mxu1 }
 0x301   :  { %1994 = vst.msk [vmem:[%s2634_s3 + $0x58] sm:$0xff] %vm50_vm0, %v1979_v13  ;;  %v2202_v14 = vpop.f32.mrb[23].mxu1 }

// kernel: closed_call.163
= control target key start
LH: loop header
LB: loop body
LE: loop exit
PB: predicated region body
PF: predicated region fallthrough
CT: control target
= control target key end

     0   :  { %vm15_vm0 = vcmask 130048   ;;  %s194_s1 = inlined_call_operand.vmem [shape: f32[16,16], index: 1, kind: input, shape index: {}]   ;;  %s195_s0 = inlined_call_operand.vmem [shape: f32[16,16], index: 0, kind: input, shape index: {}]   ;;  %s196_s2 = inlined_call_operand.vmem [shape: f32[16,16], index: 2, kind: output, shape index: {}]  }
   0x1   :  { %v13_v0 = vld [vmem:[%s194_s1] sm:$0xff]  ;;  %v14_v1 = vld [vmem:[%s194_s1 + $0x8] sm:$0xff] }
   0x2   :  { %v11_v2 = vld [vmem:[%s195_s0] sm:$0xff]  ;;  %v147_v3 = vpack.c.bf16 %v14_v1, %v13_v0  ;;  %v12_v4 = vld [vmem:[%s195_s0 + $0x8] sm:$0xff] }
   0x3   :  { %144 = vmatprep.mubr.msk.f32.mxu0 %vm15_vm0, %v11_v2 }
   0x4   :  { %148 = vmatprep.subr.bf16.mxu0 %v147_v3 }
   0x5   :  { %150 = vmatpush3.bf16.msra.mxu0 %v147_v3 }
   0x8   :  { %145 = vmatmul.mubr.msk.f32.vlgmr.msra.gmra.mrb[0].mxu0 %vm15_vm0, %v12_v4 }
  0xdb   :  { %v146_v5 = vpop.f32.mrb[0].mxu0 }
  0xdc   :  { %v98_v6 = vsel %vm15_vm0, %v146_v5, 0.0  ;;  %v88_v7 = vpop.f32.mrb[1].mxu0 }
  0xdd   :  { %v97_v8 = vsel %vm15_vm0, %v88_v7, 0.0 }
  0xde   :  { %v99_v9 = vadd.f32 %v98_v6, %v97_v8 }
  0xe0   :  { %v100_v10 = vrot.slane %v99_v9, 4 }
  0xe2   :  { %v101_v11 = vadd.f32 %v100_v10, %v99_v9 }
  0xe4   :  { %v102_v12 = vrot.slane %v101_v11, 2 }
  0xe6   :  { %v103_v13 = vadd.f32 %v102_v12, %v101_v11 }
  0xe8   :  { %v104_v14 = vrot.slane %v103_v13, 1 }
  0xea   :  { %v105_v15 = vadd.f32 %v104_v14, %v103_v13 }
  0xec   :  { %v107_v16 = vmul.f32 0.0625, %v105_v15 }
  0xee   :  { %v108_v17 = vsub.f32 %v88_v7, %v107_v16  ;;  %v109_v18 = vsub.f32 %v146_v5, %v107_v16 }
  0xf0   :  { %v110_v19 = vmul.f32 %v108_v17, %v108_v17  ;;  %v111_v20 = vmul.f32 %v109_v18, %v109_v18 }
  0xf2   :  { %v112_v21 = vsel %vm15_vm0, %v110_v19, 0.0  ;;  %v113_v22 = vsel %vm15_vm0, %v111_v20, 0.0 }
  0xf3   :  { %v114_v23 = vadd.f32 %v113_v22, %v112_v21 }
  0xf5   :  { %v115_v24 = vrot.slane %v114_v23, 4 }
  0xf7   :  { %v116_v25 = vadd.f32 %v115_v24, %v114_v23 }
  0xf9   :  { %v117_v26 = vrot.slane %v116_v25, 2 }
  0xfb   :  { %v118_v27 = vadd.f32 %v117_v26, %v116_v25 }
  0xfd   :  { %v119_v28 = vrot.slane %v118_v27, 1 }
  0xff   :  { %v120_v29 = vadd.f32 %v119_v28, %v118_v27 }
 0x101   :  { %v121_v30 = vmul.f32 0.0625, %v120_v29 }
 0x103   :  { %v122_v31 = vadd.f32 1e-05, %v121_v30 }
 0x105   :  { %151 = vrsqrt.f32 %v122_v31 }
 0x10f   :  { %v152_v32 = vpop.eup %151 }
 0x110   :  { %v124_v33 = vmul.f32 %v152_v32, %v108_v17  ;;  %v125_v34 = vmul.f32 %v152_v32, %v109_v18 }
 0x112   :  { %v126_v35 = vmax.f32 %v124_v33, 0.0  ;;  %v127_v36 = vmax.f32 %v125_v34, 0.0 }
 0x114   :  { %128 = vst.msk [vmem:[%s196_s2] sm:$0xff] %vm15_vm0, %v126_v35  ;;  %129 = vst.msk [vmem:[%s196_s2 + $0x8] sm:$0xff] %vm15_vm0, %v127_v36 }

// kernel: closed_call.179
= control target key start
LH: loop header
LB: loop body
LE: loop exit
PB: predicated region body
PF: predicated region fallthrough
CT: control target
= control target key end

     0   :  { %vm17_vm0 = vcmask 261120   ;;  %vm99_vm1 = vcmask 392192   ;;  %s211_s1 = inlined_call_operand.vmem [shape: f32[32,48], index: 1, kind: input, shape index: {}]   ;;  %s212_s0 = inlined_call_operand.vmem [shape: f32[16,32], index: 0, kind: input, shape index: {}]   ;;  %s213_s2 = inlined_call_operand.vmem [shape: f32[16,48], index: 2, kind: output, shape index: {}]  }
   0x1   :  { %v13_v0 = vld [vmem:[%s211_s1] sm:$0xff]  ;;  %v14_v1 = vld [vmem:[%s211_s1 + $0x8] sm:$0xff]  ;;  %v15_v2 = vld [vmem:[%s211_s1 + $0x10] sm:$0xff] }
   0x2   :  { %v156_v3 = vpack.c.bf16 %v14_v1, %v13_v0  ;;  %v16_v4 = vld [vmem:[%s211_s1 + $0x18] sm:$0xff]  ;;  %v11_v5 = vld [vmem:[%s212_s0] sm:$0xff]  ;;  %v12_v7 = vld [vmem:[%s212_s0 + $0x8] sm:$0xff] }
   0x3   :  { %v160_v6 = vpack.c.bf16 %v16_v4, %v15_v2  ;;  %153 = vmatprep.mubr.msk.f32.mxu0 %vm17_vm0, %v11_v5 }
   0x4   :  { %157 = vmatprep.subr.bf16.mxu0 %v156_v3 }
   0x5   :  { %159 = vmatpush3.bf16.msra.mxu0 %v156_v3 }
   0x6   :  { %161 = vmatprep.subr.bf16.mxu0 %v160_v6 }
   0x9   :  { %163 = vmatpush3.bf16.msra.mxu0 %v160_v6 }
   0xc   :  { %154 = vmatmul.mubr.msk.f32.vlgmr.msra.gmra.mrb[0].mxu0 %vm17_vm0, %v12_v7 }
  0xdf   :  { %v155_v8 = vpop.f32.mrb[0].mxu0 }
  0xe0   :  { %v101_v9 = vsel %vm99_vm1, %v155_v8, 0.0  ;;  %v90_v10 = vpop.f32.mrb[1].mxu0 }
  0xe1   :  { %v100_v11 = vsel %vm99_vm1, %v90_v10, 0.0 }
  0xe2   :  { %v102_v12 = vadd.f32 %v101_v9, %v100_v11 }
  0xe4   :  { %v103_v13 = vrot.slane %v102_v12, 4 }
  0xe6   :  { %v104_v14 = vadd.f32 %v103_v13, %v102_v12 }
  0xe8   :  { %v105_v15 = vrot.slane %v104_v14, 2 }
  0xea   :  { %v106_v16 = vadd.f32 %v105_v15, %v104_v14 }
  0xec   :  { %v107_v17 = vrot.slane %v106_v16, 1 }
  0xee   :  { %v108_v18 = vadd.f32 %v107_v17, %v106_v16 }
  0xf0   :  { %v110_v19 = vmul.f32 0.0625, %v108_v18 }
  0xf2   :  { %v111_v20 = vsub.f32 %v90_v10, %v110_v19  ;;  %v112_v21 = vsub.f32 %v155_v8, %v110_v19 }
  0xf4   :  { %v113_v22 = vmul.f32 %v111_v20, %v111_v20  ;;  %v114_v23 = vmul.f32 %v112_v21, %v112_v21 }
  0xf6   :  { %v115_v24 = vsel %vm99_vm1, %v113_v22, 0.0  ;;  %v116_v25 = vsel %vm99_vm1, %v114_v23, 0.0 }
  0xf7   :  { %v117_v26 = vadd.f32 %v116_v25, %v115_v24 }
  0xf9   :  { %v118_v27 = vrot.slane %v117_v26, 4 }
  0xfb   :  { %v119_v28 = vadd.f32 %v118_v27, %v117_v26 }
  0xfd   :  { %v120_v29 = vrot.slane %v119_v28, 2 }
  0xff   :  { %v121_v30 = vadd.f32 %v120_v29, %v119_v28 }
 0x101   :  { %v122_v31 = vrot.slane %v121_v30, 1 }
 0x103   :  { %v123_v32 = vadd.f32 %v122_v31, %v121_v30 }
 0x105   :  { %v124_v33 = vmul.f32 0.0625, %v123_v32 }
 0x107   :  { %v125_v34 = vadd.f32 1e-05, %v124_v33 }
 0x109   :  { %164 = vrsqrt.f32 %v125_v34 }
 0x113   :  { %v165_v35 = vpop.eup %164 }
 0x114   :  { %v127_v36 = vmul.f32 %v165_v35, %v111_v20  ;;  %v128_v37 = vmul.f32 %v165_v35, %v112_v21 }
 0x116   :  { %v129_v38 = vmax.f32 %v127_v36, 0.0  ;;  %v130_v39 = vmax.f32 %v128_v37, 0.0 }
 0x118   :  { %131 = vst.msk [vmem:[%s213_s2] sm:$0xff] %vm99_vm1, %v129_v38  ;;  %132 = vst.msk [vmem:[%s213_s2 + $0x8] sm:$0xff] %vm99_vm1, %v130_v39 }

// kernel: closed_call.170
= control target key start
LH: loop header
LB: loop body
LE: loop exit
PB: predicated region body
PF: predicated region fallthrough
CT: control target
= control target key end

     0   :  { %vm110_vm0 = vcmask 64512   ;;  %v6105_v0 = vmov 0.0   ;;  %vm6106_vm1 = vmmov 0   ;;  %vm2575_vm2 = vcmask 18432   ;;  %s7183_s1 = inlined_call_operand.vmem [shape: f32[32,3,8], index: 1, kind: input, shape index: {}]   ;;  %s7184_s0 = inlined_call_operand.vmem [shape: f32[32,3,8], index: 0, kind: input, shape index: {}]   ;;  %s7185_s2 = inlined_call_operand.vmem [shape: f32[32,3,8], index: 2, kind: input, shape index: {}]   ;;  %s7186_s3 = inlined_call_operand.vmem [shape: f32[32,3,8], index: 3, kind: output, shape index: {}]  }
   0x1   :  { %5655 = vmatprep.subr.mxu0 %v6105_v0  ;;  %v46_v1 = vld [vmem:[%s7183_s1] sm:$0x7]  ;;  %5657 = vmatprep.mubr.msk.f32.mxu0 %vm6106_vm1, %v6105_v0  ;;  %v47_v2 = vld [vmem:[%s7183_s1 + $0x4] sm:$0x7]  ;;  %v48_v4 = vld [vmem:[%s7183_s1 + $0x8] sm:$0x7] }
   0x2   :  { %5656 = vmatpush3.xpose.msk.msra.mxu0 %vm110_vm0, %v46_v1  ;;  %v14_v3 = vld [vmem:[%s7184_s0] sm:$0x7]  ;;  %5660 = vmatprep.subr.mxu1 %v6105_v0  ;;  %v15_v5 = vld [vmem:[%s7184_s0 + $0x4] sm:$0x7]  ;;  %v49_v6 = vld [vmem:[%s7183_s1 + $0xc] sm:$0x7] }
   0x3   :  { %5665 = vmatprep.subr.mxu0 %v6105_v0  ;;  %5661 = vmatpush3.xpose.msk.msra.mxu1 %vm110_vm0, %v47_v2  ;;  %v16_v7 = vld [vmem:[%s7184_s0 + $0x8] sm:$0x7]  ;;  %v50_v8 = vld [vmem:[%s7183_s1 + $0x10] sm:$0x7]  ;;  %v17_v9 = vld [vmem:[%s7184_s0 + $0xc] sm:$0x7] }
   0x4   :  { %5662 = vmatprep.mubr.msk.f32.mxu1 %vm6106_vm1, %v6105_v0  ;;  %5670 = vmatprep.subr.mxu1 %v6105_v0  ;;  %v51_v10 = vld [vmem:[%s7183_s1 + $0x14] sm:$0x7]  ;;  %v18_v11 = vld [vmem:[%s7184_s0 + $0x10] sm:$0x7]  ;;  %v52_v12 = vld [vmem:[%s7183_s1 + $0x18] sm:$0x7] }
   0x5   :  { %5658 = vmatmul.mubr.msk.f32.vlgmr.msra.gmra.mrb[0].mxu0 %vm110_vm0, %v14_v3  ;;  %v19_v13 = vld [vmem:[%s7184_s0 + $0x14] sm:$0x7]  ;;  %v53_v14 = vld [vmem:[%s7183_s1 + $0x1c] sm:$0x7]  ;;  %v20_v15 = vld [vmem:[%s7184_s0 + $0x18] sm:$0x7] }
   0x6   :  { %5666 = vmatpush3.xpose.msk.msra.mxu0 %vm110_vm0, %v48_v4  ;;  %5667 = vmatprep.mubr.msk.f32.mxu0 %vm6106_vm1, %v6105_v0  ;;  %v54_v16 = vld [vmem:[%s7183_s1 + $0x20] sm:$0x7]  ;;  %v21_v17 = vld [vmem:[%s7184_s0 + $0x1c] sm:$0x7]  ;;  %v55_v18 = vld [vmem:[%s7183_s1 + $0x24] sm:$0x7] }
   0x7   :  { %5663 = vmatmul.mubr.msk.f32.vlgmr.msra.gmra.mrb[0].mxu1 %vm110_vm0, %v15_v5  ;;  %5675 = vmatprep.subr.mxu0 %v6105_v0  ;;  %v22_v19 = vld [vmem:[%s7184_s0 + $0x20] sm:$0x7]  ;;  %v56_v20 = vld [vmem:[%s7183_s1 + $0x28] sm:$0x7]  ;;  %v23_v21 = vld [vmem:[%s7184_s0 + $0x24] sm:$0x7] }
   0x8   :  { %5671 = vmatpush3.xpose.msk.msra.mxu1 %vm110_vm0, %v49_v6  ;;  %5672 = vmatprep.mubr.msk.f32.mxu1 %vm6106_vm1, %v6105_v0  ;;  %v57_v22 = vld [vmem:[%s7183_s1 + $0x2c] sm:$0x7]  ;;  %v24_v23 = vld [vmem:[%s7184_s0 + $0x28] sm:$0x7]  ;;  %v58_v24 = vld [vmem:[%s7183_s1 + $0x30] sm:$0x7] }
   0x9   :  { %5668 = vmatmul.mubr.msk.f32.vlgmr.msra.gmra.mrb[2].mxu0 %vm110_vm0, %v16_v7  ;;  %5680 = vmatprep.subr.mxu1 %v6105_v0  ;;  %v25_v25 = vld [vmem:[%s7184_s0 + $0x2c] sm:$0x7]  ;;  %v59_v26 = vld [vmem:[%s7183_s1 + $0x34] sm:$0x7]  ;;  %v26_v27 = vld [vmem:[%s7184_s0 + $0x30] sm:$0x7] }
   0xa   :  { %5676 = vmatpush3.xpose.msk.msra.mxu0 %vm110_vm0, %v50_v8  ;;  %5677 = vmatprep.mubr.msk.f32.mxu0 %vm6106_vm1, %v6105_v0  ;;  %v60_v28 = vld [vmem:[%s7183_s1 + $0x38] sm:$0x7]  ;;  %v27_v29 = vld [vmem:[%s7184_s0 + $0x34] sm:$0x7]  ;;  %v61_v30 = vld [vmem:[%s7183_s1 + $0x3c] sm:$0x7] }
   0xb   :  { %5673 = vmatmul.mubr.msk.f32.vlgmr.msra.gmra.mrb[2].mxu1 %vm110_vm0, %v17_v9  ;;  %5685 = vmatprep.subr.mxu0 %v6105_v0  ;;  %v28_v31 = vld [vmem:[%s7184_s0 + $0x38] sm:$0x7]  ;;  %v62_v32 = vld [vmem:[%s7183_s1 + $0x40] sm:$0x7]  ;;  %v29_v33 = vld [vmem:[%s7184_s0 + $0x3c] sm:$0x7] }
   0xc   :  { %5681 = vmatpush3.xpose.msk.msra.mxu1 %vm110_vm0, %v51_v10  ;;  %5682 = vmatprep.mubr.msk.f32.mxu1 %vm6106_vm1, %v6105_v0  ;;  %v63_v34 = vld [vmem:[%s7183_s1 + $0x44] sm:$0x7]  ;;  %v30_v35 = vld [vmem:[%s7184_s0 + $0x40] sm:$0x7]  ;;  %v64_v36 = vld [vmem:[%s7183_s1 + $0x48] sm:$0x7] }
   0xd   :  { %5678 = vmatmul.mubr.msk.f32.vlgmr.msra.gmra.mrb[4].mxu0 %vm110_vm0, %v18_v11  ;;  %5690 = vmatprep.subr.mxu1 %v6105_v0  ;;  %v31_v37 = vld [vmem:[%s7184_s0 + $0x44] sm:$0x7]  ;;  %v65_v38 = vld [vmem:[%s7183_s1 + $0x4c] sm:$0x7]  ;;  %v32_v39 = vld [vmem:[%s7184_s0 + $0x48] sm:$0x7] }
   0xe   :  { %5686 = vmatpush3.xpose.msk.msra.mxu0 %vm110_vm0, %v52_v12  ;;  %5687 = vmatprep.mubr.msk.f32.mxu0 %vm6106_vm1, %v6105_v0  ;;  %v66_v40 = vld [vmem:[%s7183_s1 + $0x50] sm:$0x7]  ;;  %v33_v41 = vld [vmem:[%s7184_s0 + $0x4c] sm:$0x7]  ;;  %v67_v42 = vld [vmem:[%s7183_s1 + $0x54] sm:$0x7] }
   0xf   :  { %5683 = vmatmul.mubr.msk.f32.vlgmr.msra.gmra.mrb[4].mxu1 %vm110_vm0, %v19_v13  ;;  %5695 = vmatprep.subr.mxu0 %v6105_v0  ;;  %v34_v43 = vld [vmem:[%s7184_s0 + $0x50] sm:$0x7]  ;;  %v68_v44 = vld [vmem:[%s7183_s1 + $0x58] sm:$0x7]  ;;  %v35_v45 = vld [vmem:[%s7184_s0 + $0x54] sm:$0x7] }
  0x10   :  { %5691 = vmatpush3.xpose.msk.msra.mxu1 %vm110_vm0, %v53_v14  ;;  %5692 = vmatprep.mubr.msk.f32.mxu1 %vm6106_vm1, %v6105_v0  ;;  %v69_v46 = vld [vmem:[%s7183_s1 + $0x5c] sm:$0x7]  ;;  %v36_v47 = vld [vmem:[%s7184_s0 + $0x58] sm:$0x7]  ;;  %v70_v48 = vld [vmem:[%s7183_s1 + $0x60] sm:$0x7] }
  0x11   :  { %5688 = vmatmul.mubr.msk.f32.vlgmr.msra.gmra.mrb[6].mxu0 %vm110_vm0, %v20_v15  ;;  %5700 = vmatprep.subr.mxu1 %v6105_v0  ;;  %v37_v49 = vld [vmem:[%s7184_s0 + $0x5c] sm:$0x7]  ;;  %v71_v50 = vld [vmem:[%s7183_s1 + $0x64] sm:$0x7]  ;;  %v38_v51 = vld [vmem:[%s7184_s0 + $0x60] sm:$0x7] }
  0x12   :  { %5696 = vmatpush3.xpose.msk.msra.mxu0 %vm110_vm0, %v54_v16  ;;  %5697 = vmatprep.mubr.msk.f32.mxu0 %vm6106_vm1, %v6105_v0  ;;  %v72_v52 = vld [vmem:[%s7183_s1 + $0x68] sm:$0x7]  ;;  %v39_v53 = vld [vmem:[%s7184_s0 + $0x64] sm:$0x7]  ;;  %v73_v54 = vld [vmem:[%s7183_s1 + $0x6c] sm:$0x7] }
  0x13   :  { %5693 = vmatmul.mubr.msk.f32.vlgmr.msra.gmra.mrb[6].mxu1 %vm110_vm0, %v21_v17  ;;  %5705 = vmatprep.subr.mxu0 %v6105_v0  ;;  %v40_v55 = vld [vmem:[%s7184_s0 + $0x68] sm:$0x7]  ;;  %v74_v56 = vld [vmem:[%s7183_s1 + $0x70] sm:$0x7]  ;;  %v41_v57 = vld [vmem:[%s7184_s0 + $0x6c] sm:$0x7] }
  0x14   :  { %5701 = vmatpush3.xpose.msk.msra.mxu1 %vm110_vm0, %v55_v18  ;;  %5702 = vmatprep.mubr.msk.f32.mxu1 %vm6106_vm1, %v6105_v0  ;;  %v75_v58 = vld [vmem:[%s7183_s1 + $0x74] sm:$0x7]  ;;  %v42_v59 = vld [vmem:[%s7184_s0 + $0x70] sm:$0x7]  ;;  %v76_v60 = vld [vmem:[%s7183_s1 + $0x78] sm:$0x7] }
  0x15   :  { %5698 = vmatmul.mubr.msk.f32.vlgmr.msra.gmra.mrb[8].mxu0 %vm110_vm0, %v22_v19  ;;  %5710 = vmatprep.subr.mxu1 %v6105_v0  ;;  %v43_v61 = vld [vmem:[%s7184_s0 + $0x74] sm:$0x7]  ;;  %v77_v62 = vld [vmem:[%s7183_s1 + $0x7c] sm:$0x7]  ;;  %v44_v63 = vld [vmem:[%s7184_s0 + $0x78] sm:$0x7] }
  0x16   :  { %5706 = vmatpush3.xpose.msk.msra.mxu0 %vm110_vm0, %v56_v20  ;;  %5707 = vmatprep.mubr.msk.f32.mxu0 %vm6106_vm1, %v6105_v0  ;;  %v45_v1 = vld [vmem:[%s7184_s0 + $0x7c] sm:$0x7]  ;;  %vm2932_vm3 = vcmask 1042432   ;;  %vm2928_vm4 = vcmask 23552   ;;  %vm5362_vm5 = vcmask 59392  }
  0x17   :  { %5703 = vmatmul.mubr.msk.f32.vlgmr.msra.gmra.mrb[8].mxu1 %vm110_vm0, %v23_v21  ;;  %5715 = vmatprep.subr.mxu0 %v6105_v0 }
  0x18   :  { %5711 = vmatpush3.xpose.msk.msra.mxu1 %vm110_vm0, %v57_v22  ;;  %5712 = vmatprep.mubr.msk.f32.mxu1 %vm6106_vm1, %v6105_v0 }
  0x19   :  { %5708 = vmatmul.mubr.msk.f32.vlgmr.msra.gmra.mrb[10].mxu0 %vm110_vm0, %v24_v23  ;;  %5720 = vmatprep.subr.mxu1 %v6105_v0 }
  0x1a   :  { %5716 = vmatpush3.xpose.msk.msra.mxu0 %vm110_vm0, %v58_v24  ;;  %5717 = vmatprep.mubr.msk.f32.mxu0 %vm6106_vm1, %v6105_v0 }
  0x1b   :  { %5713 = vmatmul.mubr.msk.f32.vlgmr.msra.gmra.mrb[10].mxu1 %vm110_vm0, %v25_v25  ;;  %5725 = vmatprep.subr.mxu0 %v6105_v0 }
  0x1c   :  { %5721 = vmatpush3.xpose.msk.msra.mxu1 %vm110_vm0, %v59_v26  ;;  %5722 = vmatprep.mubr.msk.f32.mxu1 %vm6106_vm1, %v6105_v0 }
  0x1d   :  { %5718 = vmatmul.mubr.msk.f32.vlgmr.msra.gmra.mrb[12].mxu0 %vm110_vm0, %v26_v27  ;;  %5730 = vmatprep.subr.mxu1 %v6105_v0 }
  0x1e   :  { %5726 = vmatpush3.xpose.msk.msra.mxu0 %vm110_vm0, %v60_v28  ;;  %5727 = vmatprep.mubr.msk.f32.mxu0 %vm6106_vm1, %v6105_v0 }
  0x1f   :  { %5723 = vmatmul.mubr.msk.f32.vlgmr.msra.gmra.mrb[12].mxu1 %vm110_vm0, %v27_v29  ;;  %5735 = vmatprep.subr.mxu0 %v6105_v0 }
  0x20   :  { %5731 = vmatpush3.xpose.msk.msra.mxu1 %vm110_vm0, %v61_v30  ;;  %5732 = vmatprep.mubr.msk.f32.mxu1 %vm6106_vm1, %v6105_v0 }
  0x21   :  { %5728 = vmatmul.mubr.msk.f32.vlgmr.msra.gmra.mrb[14].mxu0 %vm110_vm0, %v28_v31  ;;  %5740 = vmatprep.subr.mxu1 %v6105_v0 }
  0x22   :  { %5736 = vmatpush3.xpose.msk.msra.mxu0 %vm110_vm0, %v62_v32  ;;  %5737 = vmatprep.mubr.msk.f32.mxu0 %vm6106_vm1, %v6105_v0 }
  0x23   :  { %5733 = vmatmul.mubr.msk.f32.vlgmr.msra.gmra.mrb[14].mxu1 %vm110_vm0, %v29_v33  ;;  %5745 = vmatprep.subr.mxu0 %v6105_v0 }
  0x24   :  { %5741 = vmatpush3.xpose.msk.msra.mxu1 %vm110_vm0, %v63_v34  ;;  %5742 = vmatprep.mubr.msk.f32.mxu1 %vm6106_vm1, %v6105_v0 }
  0x25   :  { %5738 = vmatmul.mubr.msk.f32.vlgmr.msra.gmra.mrb[16].mxu0 %vm110_vm0, %v30_v35  ;;  %5750 = vmatprep.subr.mxu1 %v6105_v0 }
  0x26   :  { %5746 = vmatpush3.xpose.msk.msra.mxu0 %vm110_vm0, %v64_v36  ;;  %5747 = vmatprep.mubr.msk.f32.mxu0 %vm6106_vm1, %v6105_v0 }
  0x27   :  { %5743 = vmatmul.mubr.msk.f32.vlgmr.msra.gmra.mrb[16].mxu1 %vm110_vm0, %v31_v37  ;;  %5755 = vmatprep.subr.mxu0 %v6105_v0 }
  0x28   :  { %5751 = vmatpush3.xpose.msk.msra.mxu1 %vm110_vm0, %v65_v38  ;;  %5752 = vmatprep.mubr.msk.f32.mxu1 %vm6106_vm1, %v6105_v0 }
  0x29   :  { %5748 = vmatmul.mubr.msk.f32.vlgmr.msra.gmra.mrb[18].mxu0 %vm110_vm0, %v32_v39  ;;  %5760 = vmatprep.subr.mxu1 %v6105_v0 }
  0x2a   :  { %5756 = vmatpush3.xpose.msk.msra.mxu0 %vm110_vm0, %v66_v40  ;;  %5757 = vmatprep.mubr.msk.f32.mxu0 %vm6106_vm1, %v6105_v0 }
  0x2b   :  { %5753 = vmatmul.mubr.msk.f32.vlgmr.msra.gmra.mrb[18].mxu1 %vm110_vm0, %v33_v41  ;;  %5765 = vmatprep.subr.mxu0 %v6105_v0 }
  0x2c   :  { %5761 = vmatpush3.xpose.msk.msra.mxu1 %vm110_vm0, %v67_v42  ;;  %5762 = vmatprep.mubr.msk.f32.mxu1 %vm6106_vm1, %v6105_v0 }
  0x2d   :  { %5758 = vmatmul.mubr.msk.f32.vlgmr.msra.gmra.mrb[20].mxu0 %vm110_vm0, %v34_v43  ;;  %5770 = vmatprep.subr.mxu1 %v6105_v0 }
  0x2e   :  { %5766 = vmatpush3.xpose.msk.msra.mxu0 %vm110_vm0, %v68_v44  ;;  %5767 = vmatprep.mubr.msk.f32.mxu0 %vm6106_vm1, %v6105_v0 }
  0x2f   :  { %5763 = vmatmul.mubr.msk.f32.vlgmr.msra.gmra.mrb[20].mxu1 %vm110_vm0, %v35_v45  ;;  %5775 = vmatprep.subr.mxu0 %v6105_v0 }
  0x30   :  { %5771 = vmatpush3.xpose.msk.msra.mxu1 %vm110_vm0, %v69_v46  ;;  %5772 = vmatprep.mubr.msk.f32.mxu1 %vm6106_vm1, %v6105_v0 }
  0x31   :  { %5768 = vmatmul.mubr.msk.f32.vlgmr.msra.gmra.mrb[22].mxu0 %vm110_vm0, %v36_v47  ;;  %5780 = vmatprep.subr.mxu1 %v6105_v0 }
  0x32   :  { %5776 = vmatpush3.xpose.msk.msra.mxu0 %vm110_vm0, %v70_v48  ;;  %5777 = vmatprep.mubr.msk.f32.mxu0 %vm6106_vm1, %v6105_v0 }
  0x33   :  { %5773 = vmatmul.mubr.msk.f32.vlgmr.msra.gmra.mrb[22].mxu1 %vm110_vm0, %v37_v49  ;;  %5785 = vmatprep.subr.mxu0 %v6105_v0 }
  0x34   :  { %5781 = vmatpush3.xpose.msk.msra.mxu1 %vm110_vm0, %v71_v50  ;;  %5782 = vmatprep.mubr.msk.f32.mxu1 %vm6106_vm1, %v6105_v0 }
  0x35   :  { %5778 = vmatmul.mubr.msk.f32.vlgmr.msra.gmra.mrb[24].mxu0 %vm110_vm0, %v38_v51  ;;  %5790 = vmatprep.subr.mxu1 %v6105_v0 }
  0x36   :  { %5786 = vmatpush3.xpose.msk.msra.mxu0 %vm110_vm0, %v72_v52  ;;  %5787 = vmatprep.mubr.msk.f32.mxu0 %vm6106_vm1, %v6105_v0 }
  0x37   :  { %5783 = vmatmul.mubr.msk.f32.vlgmr.msra.gmra.mrb[24].mxu1 %vm110_vm0, %v39_v53  ;;  %5795 = vmatprep.subr.mxu0 %v6105_v0 }
  0x38   :  { %5791 = vmatpush3.xpose.msk.msra.mxu1 %vm110_vm0, %v73_v54  ;;  %5792 = vmatprep.mubr.msk.f32.mxu1 %vm6106_vm1, %v6105_v0 }
  0x39   :  { %5788 = vmatmul.mubr.msk.f32.vlgmr.msra.gmra.mrb[26].mxu0 %vm110_vm0, %v40_v55  ;;  %5800 = vmatprep.subr.mxu1 %v6105_v0 }
  0x3a   :  { %5796 = vmatpush3.xpose.msk.msra.mxu0 %vm110_vm0, %v74_v56  ;;  %5797 = vmatprep.mubr.msk.f32.mxu0 %vm6106_vm1, %v6105_v0 }
  0x3b   :  { %5793 = vmatmul.mubr.msk.f32.vlgmr.msra.gmra.mrb[26].mxu1 %vm110_vm0, %v41_v57  ;;  %5805 = vmatprep.subr.mxu0 %v6105_v0 }
  0x3c   :  { %5801 = vmatpush3.xpose.msk.msra.mxu1 %vm110_vm0, %v75_v58  ;;  %5802 = vmatprep.mubr.msk.f32.mxu1 %vm6106_vm1, %v6105_v0 }
  0x3d   :  { %5798 = vmatmul.mubr.msk.f32.vlgmr.msra.gmra.mrb[28].mxu0 %vm110_vm0, %v42_v59  ;;  %5810 = vmatprep.subr.mxu1 %v6105_v0 }
  0x3e   :  { %5806 = vmatpush3.xpose.msk.msra.mxu0 %vm110_vm0, %v76_v60  ;;  %5807 = vmatprep.mubr.msk.f32.mxu0 %vm6106_vm1, %v6105_v0 }
  0x3f   :  { %5803 = vmatmul.mubr.msk.f32.vlgmr.msra.gmra.mrb[28].mxu1 %vm110_vm0, %v43_v61  ;;  %5815 = vmatprep.subr.mxu0 %v6105_v0 }
  0x40   :  { %5811 = vmatpush3.xpose.msk.msra.mxu1 %vm110_vm0, %v77_v62  ;;  %5812 = vmatprep.mubr.msk.f32.mxu1 %vm6106_vm1, %v6105_v0 }
  0x41   :  { %5808 = vmatmul.mubr.msk.f32.vlgmr.msra.gmra.mrb[30].mxu0 %vm110_vm0, %v44_v63  ;;  %5820 = vmatprep.subr.mxu1 %v6105_v0 }
  0x42   :  { %5817 = vmatprep.mubr.msk.f32.mxu0 %vm6106_vm1, %v6105_v0 }
  0x43   :  { %5813 = vmatmul.mubr.msk.f32.vlgmr.msra.gmra.mrb[30].mxu1 %vm110_vm0, %v45_v1 }
  0x44   :  { %5822 = vmatprep.mubr.msk.f32.mxu1 %vm6106_vm1, %v6105_v0 }
  0xd8   :  { %v183_v2 = vpop.f32.mrb[0].mxu0 }
  0xd9   :  { %v6485_v3 = vmul.f32 0.35355338, %v183_v2  ;;  %v5659_v4 = vpop.f32.mrb[1].mxu0 }
  0xda   :  { %v259_v5 = vpop.f32.mrb[0].mxu1 }
  0xdb   :  { %v6487_v6 = vmul.f32 0.35355338, %v259_v5  ;;  %v2576_v7 = vsel %vm2575_vm2, %v6485_v3, -inf  ;;  %v5664_v8 = vpop.f32.mrb[1].mxu1 }
  0xdc   :  { %2577 = vmax.xlane.f32.xlu0 %v2576_v7  ;;  %v335_v9 = vpop.f32.mrb[2].mxu0 }
  0xdd   :  { %v6491_v10 = vmul.f32 0.35355338, %v335_v9  ;;  %v5669_v11 = vpop.f32.mrb[3].mxu0  ;;  %v2579_v12 = vsel %vm2575_vm2, %v6487_v6, -inf }
  0xde   :  { %v411_v13 = vpop.f32.mrb[2].mxu1 }
  0xdf   :  { %v6495_v14 = vmul.f32 0.35355338, %v411_v13  ;;  %v2582_v15 = vsel %vm2575_vm2, %v6491_v10, -inf  ;;  %v5674_v16 = vpop.f32.mrb[3].mxu1 }
  0xe0   :  { %2580 = vmax.xlane.f32.xlu0 %v2579_v12  ;;  %2583 = vmax.xlane.f32.xlu1 %v2582_v15  ;;  %v487_v17 = vpop.f32.mrb[4].mxu0 }
  0xe1   :  { %v6499_v18 = vmul.f32 0.35355338, %v487_v17  ;;  %v5679_v19 = vpop.f32.mrb[5].mxu0  ;;  %v2585_v20 = vsel %vm2575_vm2, %v6495_v14, -inf }
  0xe2   :  { %v563_v21 = vpop.f32.mrb[4].mxu1 }
  0xe3   :  { %v6503_v22 = vmul.f32 0.35355338, %v563_v21  ;;  %v2588_v23 = vsel %vm2575_vm2, %v6499_v18, -inf  ;;  %v5684_v24 = vpop.f32.mrb[5].mxu1 }
  0xe4   :  { %2586 = vmax.xlane.f32.xlu1 %v2585_v20  ;;  %2589 = vmax.xlane.f32.xlu0 %v2588_v23  ;;  %v639_v25 = vpop.f32.mrb[6].mxu0 }
  0xe5   :  { %v6507_v26 = vmul.f32 0.35355338, %v639_v25  ;;  %v5689_v27 = vpop.f32.mrb[7].mxu0  ;;  %v2591_v28 = vsel %vm2575_vm2, %v6503_v22, -inf }
  0xe6   :  { %v715_v29 = vpop.f32.mrb[6].mxu1 }
  0xe7   :  { %v6511_v30 = vmul.f32 0.35355338, %v715_v29  ;;  %v2594_v31 = vsel %vm2575_vm2, %v6507_v26, -inf  ;;  %v5694_v32 = vpop.f32.mrb[7].mxu1 }
  0xe8   :  { %2592 = vmax.xlane.f32.xlu1 %v2591_v28  ;;  %2595 = vmax.xlane.f32.xlu0 %v2594_v31  ;;  %v791_v33 = vpop.f32.mrb[8].mxu0 }
  0xe9   :  { %v6515_v34 = vmul.f32 0.35355338, %v791_v33  ;;  %v5699_v35 = vpop.f32.mrb[9].mxu0  ;;  %v2597_v36 = vsel %vm2575_vm2, %v6511_v30, -inf }
  0xea   :  { %v867_v37 = vpop.f32.mrb[8].mxu1 }
  0xeb   :  { %v6519_v38 = vmul.f32 0.35355338, %v867_v37  ;;  %v2600_v39 = vsel %vm2575_vm2, %v6515_v34, -inf  ;;  %v5704_v40 = vpop.f32.mrb[9].mxu1 }
  0xec   :  { %2598 = vmax.xlane.f32.xlu1 %v2597_v36  ;;  %2601 = vmax.xlane.f32.xlu0 %v2600_v39  ;;  %v943_v41 = vpop.f32.mrb[10].mxu0 }
  0xed   :  { %v6523_v42 = vmul.f32 0.35355338, %v943_v41  ;;  %v5709_v43 = vpop.f32.mrb[11].mxu0  ;;  %v2603_v44 = vsel %vm2575_vm2, %v6519_v38, -inf }
  0xee   :  { %v1019_v45 = vpop.f32.mrb[10].mxu1 }
  0xef   :  { %v6527_v46 = vmul.f32 0.35355338, %v1019_v45  ;;  %v2606_v47 = vsel %vm2575_vm2, %v6523_v42, -inf  ;;  %v5714_v48 = vpop.f32.mrb[11].mxu1 }
  0xf0   :  { %2604 = vmax.xlane.f32.xlu1 %v2603_v44  ;;  %2607 = vmax.xlane.f32.xlu0 %v2606_v47  ;;  %v1095_v49 = vpop.f32.mrb[12].mxu0 }
  0xf1   :  { %v6531_v50 = vmul.f32 0.35355338, %v1095_v49  ;;  %v5719_v51 = vpop.f32.mrb[13].mxu0  ;;  %v2609_v52 = vsel %vm2575_vm2, %v6527_v46, -inf }
  0xf2   :  { %v1171_v53 = vpop.f32.mrb[12].mxu1 }
  0xf3   :  { %v6535_v54 = vmul.f32 0.35355338, %v1171_v53  ;;  %v2612_v55 = vsel %vm2575_vm2, %v6531_v50, -inf  ;;  %v5724_v56 = vpop.f32.mrb[13].mxu1 }
  0xf4   :  { %2610 = vmax.xlane.f32.xlu1 %v2609_v52  ;;  %2613 = vmax.xlane.f32.xlu0 %v2612_v55  ;;  %v1247_v57 = vpop.f32.mrb[14].mxu0 }
  0xf5   :  { %v6539_v58 = vmul.f32 0.35355338, %v1247_v57  ;;  %v5729_v59 = vpop.f32.mrb[15].mxu0  ;;  %v2615_v60 = vsel %vm2575_vm2, %v6535_v54, -inf }
  0xf6   :  { %v1323_v61 = vpop.f32.mrb[14].mxu1 }
  0xf7   :  { %v6543_v62 = vmul.f32 0.35355338, %v1323_v61  ;;  %v2618_v63 = vsel %vm2575_vm2, %v6539_v58, -inf  ;;  %v5734_v1 = vpop.f32.mrb[15].mxu1 }
  0xf8   :  { %2616 = vmax.xlane.f32.xlu1 %v2615_v60  ;;  %2619 = vmax.xlane.f32.xlu0 %v2618_v63  ;;  %v1399_v2 = vpop.f32.mrb[16].mxu0 }
  0xf9   :  { %v6547_v4 = vmul.f32 0.35355338, %v1399_v2  ;;  %v5739_v5 = vpop.f32.mrb[17].mxu0  ;;  %v2621_v7 = vsel %vm2575_vm2, %v6543_v62, -inf }
  0xfa   :  { %v1475_v8 = vpop.f32.mrb[16].mxu1 }
  0xfb   :  { %v6551_v9 = vmul.f32 0.35355338, %v1475_v8  ;;  %v2624_v11 = vsel %vm2575_vm2, %v6547_v4, -inf  ;;  %v5744_v12 = vpop.f32.mrb[17].mxu1 }
  0xfc   :  { %2622 = vmax.xlane.f32.xlu1 %v2621_v7  ;;  %2625 = vmax.xlane.f32.xlu0 %v2624_v11  ;;  %v1551_v13 = vpop.f32.mrb[18].mxu0 }
  0xfd   :  { %v6555_v15 = vmul.f32 0.35355338, %v1551_v13  ;;  %v5749_v16 = vpop.f32.mrb[19].mxu0  ;;  %v2627_v17 = vsel %vm2575_vm2, %v6551_v9, -inf }
  0xfe   :  { %v1627_v19 = vpop.f32.mrb[18].mxu1 }
  0xff   :  { %v6559_v20 = vmul.f32 0.35355338, %v1627_v19  ;;  %v2630_v21 = vsel %vm2575_vm2, %v6555_v15, -inf  ;;  %v5754_v23 = vpop.f32.mrb[19].mxu1 }
 0x100   :  { %2628 = vmax.xlane.f32.xlu1 %v2627_v17  ;;  %2631 = vmax.xlane.f32.xlu0 %v2630_v21  ;;  %v1703_v24 = vpop.f32.mrb[20].mxu0 }
 0x101   :  { %v6563_v25 = vmul.f32 0.35355338, %v1703_v24  ;;  %v5759_v27 = vpop.f32.mrb[21].mxu0  ;;  %v2633_v28 = vsel %vm2575_vm2, %v6559_v20, -inf }
 0x102   :  { %v1779_v29 = vpop.f32.mrb[20].mxu1 }
 0x103   :  { %v6567_v31 = vmul.f32 0.35355338, %v1779_v29  ;;  %v2636_v32 = vsel %vm2575_vm2, %v6563_v25, -inf  ;;  %v5764_v33 = vpop.f32.mrb[21].mxu1 }
 0x104   :  { %2634 = vmax.xlane.f32.xlu1 %v2633_v28  ;;  %2637 = vmax.xlane.f32.xlu0 %v2636_v32  ;;  %v1855_v35 = vpop.f32.mrb[22].mxu0 }
 0x105   :  { %v6571_v36 = vmul.f32 0.35355338, %v1855_v35  ;;  %v5769_v37 = vpop.f32.mrb[23].mxu0  ;;  %v2639_v39 = vsel %vm2575_vm2, %v6567_v31, -inf }
 0x106   :  { %v1931_v40 = vpop.f32.mrb[22].mxu1 }
 0x107   :  { %v6575_v41 = vmul.f32 0.35355338, %v1931_v40  ;;  %v2642_v43 = vsel %vm2575_vm2, %v6571_v36, -inf  ;;  %v5774_v44 = vpop.f32.mrb[23].mxu1 }
 0x108   :  { %2640 = vmax.xlane.f32.xlu1 %v2639_v39  ;;  %2643 = vmax.xlane.f32.xlu0 %v2642_v43  ;;  %v2007_v45 = vpop.f32.mrb[24].mxu0 }
 0x109   :  { %v6579_v47 = vmul.f32 0.35355338, %v2007_v45  ;;  %v5779_v48 = vpop.f32.mrb[25].mxu0  ;;  %v2645_v49 = vsel %vm2575_vm2, %v6575_v41, -inf }
 0x10a   :  { %v2083_v51 = vpop.f32.mrb[24].mxu1 }
 0x10b   :  { %v6583_v52 = vmul.f32 0.35355338, %v2083_v51  ;;  %v2648_v53 = vsel %vm2575_vm2, %v6579_v47, -inf  ;;  %v5784_v55 = vpop.f32.mrb[25].mxu1 }
 0x10c   :  { %2646 = vmax.xlane.f32.xlu1 %v2645_v49  ;;  %2649 = vmax.xlane.f32.xlu0 %v2648_v53  ;;  %v2159_v56 = vpop.f32.mrb[26].mxu0 }
 0x10d   :  { %v6587_v57 = vmul.f32 0.35355338, %v2159_v56  ;;  %v5789_v59 = vpop.f32.mrb[27].mxu0  ;;  %v2651_v60 = vsel %vm2575_vm2, %v6583_v52, -inf }
 0x10e   :  { %v2235_v61 = vpop.f32.mrb[26].mxu1 }
 0x10f   :  { %v6591_v63 = vmul.f32 0.35355338, %v2235_v61  ;;  %v2654_v1 = vsel %vm2575_vm2, %v6587_v57, -inf  ;;  %v5794_v2 = vpop.f32.mrb[27].mxu1 }
 0x110   :  { %2652 = vmax.xlane.f32.xlu1 %v2651_v60  ;;  %2655 = vmax.xlane.f32.xlu0 %v2654_v1  ;;  %v2311_v5 = vpop.f32.mrb[28].mxu0 }
 0x111   :  { %v6595_v7 = vmul.f32 0.35355338, %v2311_v5  ;;  %v5799_v8 = vpop.f32.mrb[29].mxu0  ;;  %v2657_v11 = vsel %vm2575_vm2, %v6591_v63, -inf }
 0x112   :  { %v2387_v12 = vpop.f32.mrb[28].mxu1 }
 0x113   :  { %v6599_v13 = vmul.f32 0.35355338, %v2387_v12  ;;  %v2660_v16 = vsel %vm2575_vm2, %v6595_v7, -inf  ;;  %v5804_v17 = vpop.f32.mrb[29].mxu1 }
 0x114   :  { %2658 = vmax.xlane.f32.xlu1 %v2657_v11  ;;  %2661 = vmax.xlane.f32.xlu0 %v2660_v16  ;;  %v2463_v19 = vpop.f32.mrb[30].mxu0 }
 0x115   :  { %v6603_v21 = vmul.f32 0.35355338, %v2463_v19  ;;  %v2663_v23 = vsel %vm2575_vm2, %v6599_v13, -inf  ;;  %v5809_v24 = vpop.f32.mrb[31].mxu0 }
 0x116   :  { %v2539_v27 = vpop.f32.mrb[30].mxu1 }
 0x117   :  { %v6607_v28 = vmul.f32 0.35355338, %v2539_v27  ;;  %v2666_v29 = vsel %vm2575_vm2, %v6603_v21, -inf  ;;  %v5814_v32 = vpop.f32.mrb[31].mxu1 }
 0x118   :  { %2664 = vmax.xlane.f32.xlu1 %v2663_v23  ;;  %2667 = vmax.xlane.f32.xlu0 %v2666_v29 }
 0x119   :  { %v2669_v33 = vsel %vm2575_vm2, %v6607_v28, -inf }
 0x11c   :  { %2670 = vmax.xlane.f32.xlu1 %v2669_v33 }
 0x169   :  { %v2578_v35 = vpop.xlane.xlu0 %2577 }
 0x16a   :  { %v2672_v37 = vsub.f32 %v6485_v3, %v2578_v35 }
 0x16c   :  { %v2704_v39 = vmul.f32 1.442695, %v2672_v37 }
 0x16d   :  { %v2581_v40 = vpop.xlane.xlu0 %2580  ;;  %v2584_v43 = vpop.xlane.xlu1 %2583 }
 0x16e   :  { %5977 = vpow2.f32 %v2704_v39  ;;  %v2673_v44 = vsub.f32 %v6487_v6, %v2581_v40  ;;  %v2674_v45 = vsub.f32 %v6491_v10, %v2584_v43 }
 0x170   :  { %v2706_v48 = vmul.f32 1.442695, %v2673_v44  ;;  %v2708_v49 = vmul.f32 1.442695, %v2674_v45 }
 0x171   :  { %v2587_v51 = vpop.xlane.xlu1 %2586  ;;  %v2590_v53 = vpop.xlane.xlu0 %2589 }
 0x172   :  { %5979 = vpow2.f32 %v2706_v48  ;;  %v2675_v55 = vsub.f32 %v6495_v14, %v2587_v51  ;;  %v2676_v56 = vsub.f32 %v6499_v18, %v2590_v53 }
 0x173   :  { %5981 = vpow2.f32 %v2708_v49 }
 0x174   :  { %v2710_v59 = vmul.f32 1.442695, %v2675_v55  ;;  %v2712_v3 = vmul.f32 1.442695, %v2676_v56 }
 0x175   :  { %v2593_v60 = vpop.xlane.xlu1 %2592  ;;  %v2596_v61 = vpop.xlane.xlu0 %2595 }
 0x176   :  { %5983 = vpow2.f32 %v2710_v59  ;;  %v2677_v1 = vsub.f32 %v6503_v22, %v2593_v60  ;;  %v2678_v6 = vsub.f32 %v6507_v26, %v2596_v61 }
 0x177   :  { %5985 = vpow2.f32 %v2712_v3 }
 0x178   :  { %v6620_v10 = vpop.eup %5977  ;;  %v2714_v2 = vmul.f32 1.442695, %v2677_v1  ;;  %v2716_v5 = vmul.f32 1.442695, %v2678_v6 }
 0x179   :  { %v2599_v8 = vpop.xlane.xlu1 %2598  ;;  %v2602_v11 = vpop.xlane.xlu0 %2601  ;;  %v2768_v14 = vsel %vm2575_vm2, %v6620_v10, 0.0 }
 0x17a   :  { %5987 = vpow2.f32 %v2714_v2  ;;  %v2679_v18 = vsub.f32 %v6511_v30, %v2599_v8  ;;  %v2680_v12 = vsub.f32 %v6515_v34, %v2602_v11  ;;  %2769 = vadd.xlane.f32.xlu0 %v2768_v14 }
 0x17b   :  { %5989 = vpow2.f32 %v2716_v5 }
 0x17c   :  { %v6626_v22 = vpop.eup %5979  ;;  %v2718_v26 = vmul.f32 1.442695, %v2679_v18  ;;  %v2720_v16 = vmul.f32 1.442695, %v2680_v12 }
 0x17d   :  { %v6628_v17 = vpop.eup %5981  ;;  %v2605_v19 = vpop.xlane.xlu1 %2604  ;;  %v2771_v24 = vsel %vm2575_vm2, %v6626_v22, 0.0 }
 0x17e   :  { %v2608_v23 = vpop.xlane.xlu0 %2607  ;;  %5991 = vpow2.f32 %v2718_v26  ;;  %v2681_v27 = vsub.f32 %v6519_v38, %v2605_v19  ;;  %2772 = vadd.xlane.f32.xlu1 %v2771_v24  ;;  %v2774_v34 = vsel %vm2575_vm2, %v6628_v17, 0.0 }
 0x17f   :  { %v2682_v30 = vsub.f32 %v6523_v42, %v2608_v23  ;;  %5993 = vpow2.f32 %v2720_v16  ;;  %2775 = vadd.xlane.f32.xlu0 %v2774_v34 }
 0x180   :  { %v6636_v29 = vpop.eup %5983  ;;  %v2722_v32 = vmul.f32 1.442695, %v2681_v27 }
 0x181   :  { %v2724_v33 = vmul.f32 1.442695, %v2682_v30  ;;  %v6638_v35 = vpop.eup %5985  ;;  %v2611_v37 = vpop.xlane.xlu1 %2610  ;;  %v2777_v40 = vsel %vm2575_vm2, %v6636_v29, 0.0 }
 0x182   :  { %v2614_v39 = vpop.xlane.xlu0 %2613  ;;  %5995 = vpow2.f32 %v2722_v32  ;;  %v2683_v38 = vsub.f32 %v6527_v46, %v2611_v37  ;;  %2778 = vadd.xlane.f32.xlu1 %v2777_v40  ;;  %v2780_v43 = vsel %vm2575_vm2, %v6638_v35, 0.0 }
 0x183   :  { %v2684_v42 = vsub.f32 %v6531_v50, %v2614_v39  ;;  %5997 = vpow2.f32 %v2724_v33  ;;  %2781 = vadd.xlane.f32.xlu0 %v2780_v43 }
 0x184   :  { %v6646_v44 = vpop.eup %5987  ;;  %v2726_v45 = vmul.f32 1.442695, %v2683_v38 }
 0x185   :  { %v2728_v48 = vmul.f32 1.442695, %v2684_v42  ;;  %v6648_v49 = vpop.eup %5989  ;;  %v2617_v51 = vpop.xlane.xlu1 %2616  ;;  %v2783_v55 = vsel %vm2575_vm2, %v6646_v44, 0.0  ;;  %v78_v42 = vld [vmem:[%s7185_s2] sm:$0x7] }
 0x186   :  { %v2620_v53 = vpop.xlane.xlu0 %2619  ;;  %5999 = vpow2.f32 %v2726_v45  ;;  %v2685_v46 = vsub.f32 %v6535_v54, %v2617_v51  ;;  %2784 = vadd.xlane.f32.xlu1 %v2783_v55  ;;  %v2786_v56 = vsel %vm2575_vm2, %v6648_v49, 0.0  ;;  %5816 = vmatpush3.msk.msra.mxu0 %vm2932_vm3, %v78_v42 }
 0x187   :  { %v2686_v50 = vsub.f32 %v6539_v58, %v2620_v53  ;;  %6001 = vpow2.f32 %v2728_v48  ;;  %2787 = vadd.xlane.f32.xlu0 %v2786_v56  ;;  %5825 = vmatprep.subr.mxu0 %v6105_v0 }
 0x188   :  { %v6656_v59 = vpop.eup %5991  ;;  %v2730_v3 = vmul.f32 1.442695, %v2685_v46 }
 0x189   :  { %v2732_v60 = vmul.f32 1.442695, %v2686_v50  ;;  %v6658_v61 = vpop.eup %5993  ;;  %v2623_v1 = vpop.xlane.xlu1 %2622  ;;  %v2789_v2 = vsel %vm2575_vm2, %v6656_v59, 0.0 }
 0x18a   :  { %v2626_v6 = vpop.xlane.xlu0 %2625  ;;  %6003 = vpow2.f32 %v2730_v3  ;;  %v2687_v54 = vsub.f32 %v6543_v62, %v2623_v1  ;;  %2790 = vadd.xlane.f32.xlu1 %v2789_v2  ;;  %v2792_v5 = vsel %vm2575_vm2, %v6658_v61, 0.0 }
 0x18b   :  { %v2688_v58 = vsub.f32 %v6547_v4, %v2626_v6  ;;  %6005 = vpow2.f32 %v2732_v60  ;;  %2793 = vadd.xlane.f32.xlu0 %v2792_v5 }
 0x18c   :  { %v6666_v8 = vpop.eup %5995  ;;  %v2734_v11 = vmul.f32 1.442695, %v2687_v54 }
 0x18d   :  { %v2736_v14 = vmul.f32 1.442695, %v2688_v58  ;;  %v6668_v18 = vpop.eup %5997  ;;  %v2629_v12 = vpop.xlane.xlu1 %2628  ;;  %v2795_v16 = vsel %vm2575_vm2, %v6666_v8, 0.0 }
 0x18e   :  { %v2632_v26 = vpop.xlane.xlu0 %2631  ;;  %6007 = vpow2.f32 %v2734_v11  ;;  %v2689_v62 = vsub.f32 %v6551_v9, %v2629_v12  ;;  %2796 = vadd.xlane.f32.xlu1 %v2795_v16  ;;  %v2798_v19 = vsel %vm2575_vm2, %v6668_v18, 0.0 }
 0x18f   :  { %v2690_v4 = vsub.f32 %v6555_v15, %v2632_v26  ;;  %6009 = vpow2.f32 %v2736_v14  ;;  %2799 = vadd.xlane.f32.xlu0 %v2798_v19 }
 0x190   :  { %v6676_v23 = vpop.eup %5999  ;;  %v2738_v24 = vmul.f32 1.442695, %v2689_v62 }
 0x191   :  { %v2740_v27 = vmul.f32 1.442695, %v2690_v4  ;;  %v6678_v30 = vpop.eup %6001  ;;  %v2635_v34 = vpop.xlane.xlu1 %2634  ;;  %v2801_v33 = vsel %vm2575_vm2, %v6676_v23, 0.0 }
 0x192   :  { %v2638_v32 = vpop.xlane.xlu0 %2637  ;;  %6011 = vpow2.f32 %v2738_v24  ;;  %v2691_v9 = vsub.f32 %v6559_v20, %v2635_v34  ;;  %2802 = vadd.xlane.f32.xlu1 %v2801_v33  ;;  %v2804_v37 = vsel %vm2575_vm2, %v6678_v30, 0.0 }
 0x193   :  { %v2692_v15 = vsub.f32 %v6563_v25, %v2638_v32  ;;  %6013 = vpow2.f32 %v2740_v27  ;;  %2805 = vadd.xlane.f32.xlu0 %v2804_v37 }
 0x194   :  { %v6686_v39 = vpop.eup %6003  ;;  %v2742_v40 = vmul.f32 1.442695, %v2691_v9 }
 0x195   :  { %v2744_v38 = vmul.f32 1.442695, %v2692_v15  ;;  %v6691_v43 = vpop.eup %6005  ;;  %v2641_v45 = vpop.xlane.xlu1 %2640  ;;  %v2807_v25 = vsel %vm2575_vm2, %v6686_v39, 0.0 }
 0x196   :  { %v2644_v20 = vpop.xlane.xlu0 %2643  ;;  %6015 = vpow2.f32 %v2742_v40  ;;  %v2693_v48 = vsub.f32 %v6567_v31, %v2641_v45  ;;  %2808 = vadd.xlane.f32.xlu1 %v2807_v25  ;;  %v2810_v53 = vsel %vm2575_vm2, %v6691_v43, 0.0  ;;  %v79_v31 = vld [vmem:[%s7185_s2 + $0x4] sm:$0x7] }
 0x197   :  { %v2694_v51 = vsub.f32 %v6571_v36, %v2644_v20  ;;  %6017 = vpow2.f32 %v2744_v38  ;;  %2811 = vadd.xlane.f32.xlu0 %v2810_v53  ;;  %5821 = vmatpush3.msk.msra.mxu1 %vm2932_vm3, %v79_v31 }
 0x198   :  { %v6701_v55 = vpop.eup %6007  ;;  %v2746_v46 = vmul.f32 1.442695, %v2693_v48  ;;  %5830 = vmatprep.subr.mxu1 %v6105_v0 }
 0x199   :  { %v2748_v50 = vmul.f32 1.442695, %v2694_v51  ;;  %v6706_v56 = vpop.eup %6009  ;;  %v2647_v36 = vpop.xlane.xlu1 %2646  ;;  %v2813_v60 = vsel %vm2575_vm2, %v6701_v55, 0.0 }
 0x19a   :  { %v2650_v3 = vpop.xlane.xlu0 %2649  ;;  %6019 = vpow2.f32 %v2746_v46  ;;  %v2695_v1 = vsub.f32 %v6575_v41, %v2647_v36  ;;  %2814 = vadd.xlane.f32.xlu1 %v2813_v60  ;;  %v2816_v2 = vsel %vm2575_vm2, %v6706_v56, 0.0 }
 0x19b   :  { %v2696_v6 = vsub.f32 %v6579_v47, %v2650_v3  ;;  %6021 = vpow2.f32 %v2748_v50  ;;  %2817 = vadd.xlane.f32.xlu0 %v2816_v2 }
 0x19c   :  { %v6716_v54 = vpop.eup %6011  ;;  %v2750_v58 = vmul.f32 1.442695, %v2695_v1 }
 0x19d   :  { %v2752_v5 = vmul.f32 1.442695, %v2696_v6  ;;  %v6718_v11 = vpop.eup %6013  ;;  %v2653_v14 = vpop.xlane.xlu1 %2652  ;;  %v2819_v41 = vsel %vm2575_vm2, %v6716_v54, 0.0 }
 0x19e   :  { %v2656_v12 = vpop.xlane.xlu0 %2655  ;;  %6023 = vpow2.f32 %v2750_v58  ;;  %v2697_v47 = vsub.f32 %v6583_v52, %v2653_v14  ;;  %2820 = vadd.xlane.f32.xlu1 %v2819_v41  ;;  %v2822_v16 = vsel %vm2575_vm2, %v6718_v11, 0.0 }
 0x19f   :  { %v2698_v26 = vsub.f32 %v6587_v57, %v2656_v12  ;;  %6025 = vpow2.f32 %v2752_v5  ;;  %2823 = vadd.xlane.f32.xlu0 %v2822_v16 }
 0x1a0   :  { %v6726_v62 = vpop.eup %6015  ;;  %v2754_v4 = vmul.f32 1.442695, %v2697_v47 }
 0x1a1   :  { %v2756_v19 = vmul.f32 1.442695, %v2698_v26  ;;  %v6728_v24 = vpop.eup %6017  ;;  %v2659_v27 = vpop.xlane.xlu1 %2658  ;;  %v2825_v32 = vsel %vm2575_vm2, %v6726_v62, 0.0 }
 0x1a2   :  { %v2662_v34 = vpop.xlane.xlu0 %2661  ;;  %6027 = vpow2.f32 %v2754_v4  ;;  %v2699_v52 = vsub.f32 %v6591_v63, %v2659_v27  ;;  %2826 = vadd.xlane.f32.xlu1 %v2825_v32  ;;  %v2828_v33 = vsel %vm2575_vm2, %v6728_v24, 0.0 }
 0x1a3   :  { %v2700_v57 = vsub.f32 %v6595_v7, %v2662_v34  ;;  %6029 = vpow2.f32 %v2756_v19  ;;  %2829 = vadd.xlane.f32.xlu0 %v2828_v33  ;;  %v80_v33 = vld [vmem:[%s7185_s2 + $0x8] sm:$0x7] }
 0x1a4   :  { %v6736_v9 = vpop.eup %6019  ;;  %v2758_v15 = vmul.f32 1.442695, %v2699_v52 }
 0x1a5   :  { %v2760_v37 = vmul.f32 1.442695, %v2700_v57  ;;  %v6738_v40 = vpop.eup %6021  ;;  %v2665_v38 = vpop.xlane.xlu1 %2664  ;;  %v2831_v45 = vsel %vm2575_vm2, %v6736_v9, 0.0 }
 0x1a6   :  { %v2668_v42 = vpop.xlane.xlu0 %2667  ;;  %6031 = vpow2.f32 %v2758_v15  ;;  %v2701_v63 = vsub.f32 %v6599_v13, %v2665_v38  ;;  %2832 = vadd.xlane.f32.xlu1 %v2831_v45  ;;  %v2834_v20 = vsel %vm2575_vm2, %v6738_v40, 0.0  ;;  %v81_v45 = vld [vmem:[%s7185_s2 + $0xc] sm:$0x7] }
 0x1a7   :  { %v2702_v7 = vsub.f32 %v6603_v21, %v2668_v42  ;;  %6033 = vpow2.f32 %v2760_v37  ;;  %2835 = vadd.xlane.f32.xlu0 %v2834_v20  ;;  %v82_v20 = vld [vmem:[%s7185_s2 + $0x10] sm:$0x7] }
 0x1a8   :  { %v6746_v25 = vpop.eup %6023  ;;  %v2762_v48 = vmul.f32 1.442695, %v2701_v63 }
 0x1a9   :  { %v2764_v51 = vmul.f32 1.442695, %v2702_v7  ;;  %v6748_v53 = vpop.eup %6025  ;;  %v2671_v46 = vpop.xlane.xlu1 %2670  ;;  %v2837_v50 = vsel %vm2575_vm2, %v6746_v25, 0.0 }
 0x1aa   :  { %6035 = vpow2.f32 %v2762_v48  ;;  %v2703_v13 = vsub.f32 %v6607_v28, %v2671_v46  ;;  %2838 = vadd.xlane.f32.xlu1 %v2837_v50  ;;  %v2840_v21 = vsel %vm2575_vm2, %v6748_v53, 0.0 }
 0x1ab   :  { %6037 = vpow2.f32 %v2764_v51  ;;  %2841 = vadd.xlane.f32.xlu0 %v2840_v21 }
 0x1ac   :  { %v6755_v31 = vpop.eup %6027  ;;  %v2766_v36 = vmul.f32 1.442695, %v2703_v13 }
 0x1ad   :  { %v6757_v3 = vpop.eup %6029  ;;  %v2843_v60 = vsel %vm2575_vm2, %v6755_v31, 0.0 }
 0x1ae   :  { %6039 = vpow2.f32 %v2766_v36  ;;  %2844 = vadd.xlane.f32.xlu1 %v2843_v60  ;;  %v2846_v1 = vsel %vm2575_vm2, %v6757_v3, 0.0 }
 0x1af   :  { %2847 = vadd.xlane.f32.xlu0 %v2846_v1  ;;  %v85_v1 = vld [vmem:[%s7185_s2 + $0x1c] sm:$0x7] }
 0x1b0   :  { %v6763_v28 = vpop.eup %6031 }
 0x1b1   :  { %v6765_v6 = vpop.eup %6033  ;;  %v2849_v2 = vsel %vm2575_vm2, %v6763_v28, 0.0 }
 0x1b2   :  { %2850 = vadd.xlane.f32.xlu1 %v2849_v2  ;;  %v2852_v58 = vsel %vm2575_vm2, %v6765_v6, 0.0 }
 0x1b3   :  { %2853 = vadd.xlane.f32.xlu0 %v2852_v58 }
 0x1b4   :  { %v6771_v5 = vpop.eup %6035 }
 0x1b5   :  { %v6773_v14 = vpop.eup %6037  ;;  %v2855_v12 = vsel %vm2575_vm2, %v6771_v5, 0.0 }
 0x1b6   :  { %2856 = vadd.xlane.f32.xlu1 %v2855_v12  ;;  %v2858_v41 = vsel %vm2575_vm2, %v6773_v14, 0.0 }
 0x1b7   :  { %2859 = vadd.xlane.f32.xlu0 %v2858_v41 }
 0x1b8   :  { %v6779_v47 = vpop.eup %6039 }
 0x1b9   :  { %v2861_v26 = vsel %vm2575_vm2, %v6779_v47, 0.0 }
 0x1ba   :  { %2862 = vadd.xlane.f32.xlu1 %v2861_v26 }
 0x207   :  { %v2770_v16 = vpop.xlane.xlu0 %2769 }
 0x208   :  { %6041 = vrcp.f32 %v2770_v16  ;;  %v87_v16 = vld [vmem:[%s7185_s2 + $0x24] sm:$0x7] }
 0x20b   :  { %v2773_v4 = vpop.xlane.xlu1 %2772 }
 0x20c   :  { %6043 = vrcp.f32 %v2773_v4  ;;  %v2776_v19 = vpop.xlane.xlu0 %2775 }
 0x20d   :  { %6045 = vrcp.f32 %v2776_v19 }
 0x20f   :  { %v2779_v27 = vpop.xlane.xlu1 %2778 }
 0x210   :  { %6047 = vrcp.f32 %v2779_v27  ;;  %v2782_v34 = vpop.xlane.xlu0 %2781 }
 0x211   :  { %6049 = vrcp.f32 %v2782_v34 }
 0x212   :  { %v6042_v32 = vpop.eup %6041 }
 0x213   :  { %v2896_v52 = vmul.f32 %v6042_v32, %v6620_v10  ;;  %v2785_v57 = vpop.xlane.xlu1 %2784 }
 0x214   :  { %6051 = vrcp.f32 %v2785_v57  ;;  %v2788_v15 = vpop.xlane.xlu0 %2787 }
 0x215   :  { %6053 = vrcp.f32 %v2788_v15  ;;  %5818 = vmatmul.mubr.msk.f32.vlgmr.msra.gmra.mrb[32].mxu0 %vm2928_vm4, %v2896_v52  ;;  %v89_v52 = vld [vmem:[%s7185_s2 + $0x2c] sm:$0x7] }
 0x216   :  { %v6044_v37 = vpop.eup %6043  ;;  %5826 = vmatpush3.msk.msra.mxu0 %vm2932_vm3, %v80_v33  ;;  %5827 = vmatprep.mubr.msk.f32.mxu0 %vm6106_vm1, %v6105_v0 }
 0x217   :  { %v6046_v38 = vpop.eup %6045  ;;  %v2897_v42 = vmul.f32 %v6044_v37, %v6626_v22  ;;  %v2791_v10 = vpop.xlane.xlu1 %2790  ;;  %5835 = vmatprep.subr.mxu0 %v6105_v0 }
 0x218   :  { %v2898_v63 = vmul.f32 %v6046_v38, %v6628_v17  ;;  %6055 = vrcp.f32 %v2791_v10  ;;  %v2794_v7 = vpop.xlane.xlu0 %2793  ;;  %v83_v17 = vld [vmem:[%s7185_s2 + $0x14] sm:$0x7] }
 0x219   :  { %6057 = vrcp.f32 %v2794_v7  ;;  %5823 = vmatmul.mubr.msk.f32.vlgmr.msra.gmra.mrb[32].mxu1 %vm2928_vm4, %v2897_v42  ;;  %v91_v42 = vld [vmem:[%s7185_s2 + $0x34] sm:$0x7] }
 0x21a   :  { %v6048_v48 = vpop.eup %6047  ;;  %5828 = vmatmul.mubr.msk.f32.vlgmr.msra.gmra.mrb[34].mxu0 %vm2928_vm4, %v2898_v63  ;;  %5831 = vmatpush3.msk.msra.mxu1 %vm2932_vm3, %v81_v45 }
 0x21b   :  { %v6050_v22 = vpop.eup %6049  ;;  %v2899_v51 = vmul.f32 %v6048_v48, %v6636_v29  ;;  %v2797_v46 = vpop.xlane.xlu1 %2796  ;;  %5832 = vmatprep.mubr.msk.f32.mxu1 %vm6106_vm1, %v6105_v0  ;;  %5836 = vmatpush3.msk.msra.mxu0 %vm2932_vm3, %v82_v20  ;;  %v84_v29 = vld [vmem:[%s7185_s2 + $0x18] sm:$0x7]  ;;  %v93_v48 = vld [vmem:[%s7185_s2 + $0x3c] sm:$0x7] }
 0x21c   :  { %v2900_v50 = vmul.f32 %v6050_v22, %v6638_v35  ;;  %6059 = vrcp.f32 %v2797_v46  ;;  %v2800_v13 = vpop.xlane.xlu0 %2799  ;;  %5837 = vmatprep.mubr.msk.f32.mxu0 %vm6106_vm1, %v6105_v0  ;;  %5840 = vmatprep.subr.mxu1 %v6105_v0 }
 0x21d   :  { %6061 = vrcp.f32 %v2800_v13  ;;  %5833 = vmatmul.mubr.msk.f32.vlgmr.msra.gmra.mrb[34].mxu1 %vm2928_vm4, %v2899_v51  ;;  %5845 = vmatprep.subr.mxu0 %v6105_v0  ;;  %v95_v13 = vld [vmem:[%s7185_s2 + $0x44] sm:$0x7] }
 0x21e   :  { %v6052_v21 = vpop.eup %6051  ;;  %5838 = vmatmul.mubr.msk.f32.vlgmr.msra.gmra.mrb[36].mxu0 %vm2928_vm4, %v2900_v50  ;;  %5841 = vmatpush3.msk.msra.mxu1 %vm2932_vm3, %v83_v17 }
 0x21f   :  { %v6054_v35 = vpop.eup %6053  ;;  %v2901_v36 = vmul.f32 %v6052_v21, %v6646_v44  ;;  %v2803_v60 = vpop.xlane.xlu1 %2802  ;;  %5842 = vmatprep.mubr.msk.f32.mxu1 %vm6106_vm1, %v6105_v0  ;;  %5846 = vmatpush3.msk.msra.mxu0 %vm2932_vm3, %v84_v29  ;;  %v86_v44 = vld [vmem:[%s7185_s2 + $0x20] sm:$0x7] }
 0x220   :  { %v2902_v2 = vmul.f32 %v6054_v35, %v6648_v49  ;;  %6063 = vrcp.f32 %v2803_v60  ;;  %v2806_v58 = vpop.xlane.xlu0 %2805  ;;  %5847 = vmatprep.mubr.msk.f32.mxu0 %vm6106_vm1, %v6105_v0  ;;  %5850 = vmatprep.subr.mxu1 %v6105_v0 }
 0x221   :  { %6065 = vrcp.f32 %v2806_v58  ;;  %5843 = vmatmul.mubr.msk.f32.vlgmr.msra.gmra.mrb[36].mxu1 %vm2928_vm4, %v2901_v36  ;;  %5855 = vmatprep.subr.mxu0 %v6105_v0 }
 0x222   :  { %v6056_v12 = vpop.eup %6055  ;;  %5848 = vmatmul.mubr.msk.f32.vlgmr.msra.gmra.mrb[38].mxu0 %vm2928_vm4, %v2902_v2  ;;  %5851 = vmatpush3.msk.msra.mxu1 %vm2932_vm3, %v85_v1  ;;  %v97_v1 = vld [vmem:[%s7185_s2 + $0x4c] sm:$0x7] }
 0x223   :  { %v6058_v49 = vpop.eup %6057  ;;  %v2903_v41 = vmul.f32 %v6056_v12, %v6656_v59  ;;  %v2809_v26 = vpop.xlane.xlu1 %2808  ;;  %5852 = vmatprep.mubr.msk.f32.mxu1 %vm6106_vm1, %v6105_v0  ;;  %5856 = vmatpush3.msk.msra.mxu0 %vm2932_vm3, %v86_v44  ;;  %v88_v59 = vld [vmem:[%s7185_s2 + $0x28] sm:$0x7] }
 0x224   :  { %v2904_v4 = vmul.f32 %v6058_v49, %v6658_v61  ;;  %6067 = vrcp.f32 %v2809_v26  ;;  %v2812_v19 = vpop.xlane.xlu0 %2811  ;;  %5857 = vmatprep.mubr.msk.f32.mxu0 %vm6106_vm1, %v6105_v0  ;;  %5860 = vmatprep.subr.mxu1 %v6105_v0 }
 0x225   :  { %6069 = vrcp.f32 %v2812_v19  ;;  %5853 = vmatmul.mubr.msk.f32.vlgmr.msra.gmra.mrb[38].mxu1 %vm2928_vm4, %v2903_v41  ;;  %5865 = vmatprep.subr.mxu0 %v6105_v0  ;;  %v99_v41 = vld [vmem:[%s7185_s2 + $0x54] sm:$0x7] }
 0x226   :  { %v6060_v27 = vpop.eup %6059  ;;  %5858 = vmatmul.mubr.msk.f32.vlgmr.msra.gmra.mrb[40].mxu0 %vm2928_vm4, %v2904_v4  ;;  %5861 = vmatpush3.msk.msra.mxu1 %vm2932_vm3, %v87_v16 }
 0x227   :  { %v6062_v61 = vpop.eup %6061  ;;  %v2905_v34 = vmul.f32 %v6060_v27, %v6666_v8  ;;  %v2815_v32 = vpop.xlane.xlu1 %2814  ;;  %5862 = vmatprep.mubr.msk.f32.mxu1 %vm6106_vm1, %v6105_v0  ;;  %5866 = vmatpush3.msk.msra.mxu0 %vm2932_vm3, %v88_v59  ;;  %v90_v8 = vld [vmem:[%s7185_s2 + $0x30] sm:$0x7]  ;;  %v101_v27 = vld [vmem:[%s7185_s2 + $0x5c] sm:$0x7] }
 0x228   :  { %v2906_v57 = vmul.f32 %v6062_v61, %v6668_v18  ;;  %6071 = vrcp.f32 %v2815_v32  ;;  %v2818_v33 = vpop.xlane.xlu0 %2817  ;;  %5867 = vmatprep.mubr.msk.f32.mxu0 %vm6106_vm1, %v6105_v0  ;;  %5870 = vmatprep.subr.mxu1 %v6105_v0 }
 0x229   :  { %6073 = vrcp.f32 %v2818_v33  ;;  %5863 = vmatmul.mubr.msk.f32.vlgmr.msra.gmra.mrb[40].mxu1 %vm2928_vm4, %v2905_v34  ;;  %5875 = vmatprep.subr.mxu0 %v6105_v0  ;;  %v103_v33 = vld [vmem:[%s7185_s2 + $0x64] sm:$0x7] }
 0x22a   :  { %v6064_v15 = vpop.eup %6063  ;;  %5868 = vmatmul.mubr.msk.f32.vlgmr.msra.gmra.mrb[42].mxu0 %vm2928_vm4, %v2906_v57  ;;  %5871 = vmatpush3.msk.msra.mxu1 %vm2932_vm3, %v89_v52 }
 0x22b   :  { %v6066_v18 = vpop.eup %6065  ;;  %v2907_v37 = vmul.f32 %v6064_v15, %v6676_v23  ;;  %v2821_v38 = vpop.xlane.xlu1 %2820  ;;  %5872 = vmatprep.mubr.msk.f32.mxu1 %vm6106_vm1, %v6105_v0  ;;  %5876 = vmatpush3.msk.msra.mxu0 %vm2932_vm3, %v90_v8  ;;  %v92_v23 = vld [vmem:[%s7185_s2 + $0x38] sm:$0x7] }
 0x22c   :  { %v2908_v10 = vmul.f32 %v6066_v18, %v6678_v30  ;;  %6075 = vrcp.f32 %v2821_v38  ;;  %v2824_v45 = vpop.xlane.xlu0 %2823  ;;  %5877 = vmatprep.mubr.msk.f32.mxu0 %vm6106_vm1, %v6105_v0  ;;  %5880 = vmatprep.subr.mxu1 %v6105_v0 }
 0x22d   :  { %6077 = vrcp.f32 %v2824_v45  ;;  %5873 = vmatmul.mubr.msk.f32.vlgmr.msra.gmra.mrb[42].mxu1 %vm2928_vm4, %v2907_v37  ;;  %5885 = vmatprep.subr.mxu0 %v6105_v0 }
 0x22e   :  { %v6068_v63 = vpop.eup %6067  ;;  %5878 = vmatmul.mubr.msk.f32.vlgmr.msra.gmra.mrb[44].mxu0 %vm2928_vm4, %v2908_v10  ;;  %5881 = vmatpush3.msk.msra.mxu1 %vm2932_vm3, %v91_v42  ;;  %v105_v42 = vld [vmem:[%s7185_s2 + $0x6c] sm:$0x7] }
 0x22f   :  { %v6070_v30 = vpop.eup %6069  ;;  %v2909_v7 = vmul.f32 %v6068_v63, %v6686_v39  ;;  %v2827_v20 = vpop.xlane.xlu1 %2826  ;;  %5882 = vmatprep.mubr.msk.f32.mxu1 %vm6106_vm1, %v6105_v0  ;;  %5886 = vmatpush3.msk.msra.mxu0 %vm2932_vm3, %v92_v23  ;;  %v94_v39 = vld [vmem:[%s7185_s2 + $0x40] sm:$0x7]  ;;  %v107_v63 = vld [vmem:[%s7185_s2 + $0x74] sm:$0x7] }
 0x230   :  { %v2910_v22 = vmul.f32 %v6070_v30, %v6691_v43  ;;  %6079 = vrcp.f32 %v2827_v20  ;;  %v2830_v51 = vpop.xlane.xlu0 %2829  ;;  %5887 = vmatprep.mubr.msk.f32.mxu0 %vm6106_vm1, %v6105_v0  ;;  %5890 = vmatprep.subr.mxu1 %v6105_v0 }
 0x231   :  { %6081 = vrcp.f32 %v2830_v51  ;;  %5883 = vmatmul.mubr.msk.f32.vlgmr.msra.gmra.mrb[44].mxu1 %vm2928_vm4, %v2909_v7  ;;  %5895 = vmatprep.subr.mxu0 %v6105_v0 }
 0x232   :  { %v6072_v46 = vpop.eup %6071  ;;  %5888 = vmatmul.mubr.msk.f32.vlgmr.msra.gmra.mrb[46].mxu0 %vm2928_vm4, %v2910_v22  ;;  %5891 = vmatpush3.msk.msra.mxu1 %vm2932_vm3, %v93_v48  ;;  %v109_v48 = vld [vmem:[%s7185_s2 + $0x7c] sm:$0x7] }
 0x233   :  { %v6074_v43 = vpop.eup %6073  ;;  %v2911_v17 = vmul.f32 %v6072_v46, %v6701_v55  ;;  %v2833_v50 = vpop.xlane.xlu1 %2832  ;;  %5892 = vmatprep.mubr.msk.f32.mxu1 %vm6106_vm1, %v6105_v0  ;;  %5896 = vmatpush3.msk.msra.mxu0 %vm2932_vm3, %v94_v39  ;;  %v96_v55 = vld [vmem:[%s7185_s2 + $0x48] sm:$0x7] }
 0x234   :  { %v2912_v29 = vmul.f32 %v6074_v43, %v6706_v56  ;;  %6083 = vrcp.f32 %v2833_v50  ;;  %v2836_v21 = vpop.xlane.xlu0 %2835  ;;  %5897 = vmatprep.mubr.msk.f32.mxu0 %vm6106_vm1, %v6105_v0  ;;  %5900 = vmatprep.subr.mxu1 %v6105_v0 }
 0x235   :  { %6085 = vrcp.f32 %v2836_v21  ;;  %5893 = vmatmul.mubr.msk.f32.vlgmr.msra.gmra.mrb[46].mxu1 %vm2928_vm4, %v2911_v17  ;;  %5905 = vmatprep.subr.mxu0 %v6105_v0 }
 0x236   :  { %v6076_v35 = vpop.eup %6075  ;;  %5898 = vmatmul.mubr.msk.f32.vlgmr.msra.gmra.mrb[48].mxu0 %vm2928_vm4, %v2912_v29  ;;  %5901 = vmatpush3.msk.msra.mxu1 %vm2932_vm3, %v95_v13 }
 0x237   :  { %v6078_v56 = vpop.eup %6077  ;;  %v2913_v36 = vmul.f32 %v6076_v35, %v6716_v54  ;;  %v2839_v60 = vpop.xlane.xlu1 %2838  ;;  %5902 = vmatprep.mubr.msk.f32.mxu1 %vm6106_vm1, %v6105_v0  ;;  %5906 = vmatpush3.msk.msra.mxu0 %vm2932_vm3, %v96_v55  ;;  %v98_v54 = vld [vmem:[%s7185_s2 + $0x50] sm:$0x7] }
 0x238   :  { %v2914_v2 = vmul.f32 %v6078_v56, %v6718_v11  ;;  %6087 = vrcp.f32 %v2839_v60  ;;  %v2842_v58 = vpop.xlane.xlu0 %2841  ;;  %5907 = vmatprep.mubr.msk.f32.mxu0 %vm6106_vm1, %v6105_v0  ;;  %5910 = vmatprep.subr.mxu1 %v6105_v0 }
 0x239   :  { %6089 = vrcp.f32 %v2842_v58  ;;  %5903 = vmatmul.mubr.msk.f32.vlgmr.msra.gmra.mrb[48].mxu1 %vm2928_vm4, %v2913_v36  ;;  %5915 = vmatprep.subr.mxu0 %v6105_v0 }
 0x23a   :  { %v6080_v44 = vpop.eup %6079  ;;  %5908 = vmatmul.mubr.msk.f32.vlgmr.msra.gmra.mrb[50].mxu0 %vm2928_vm4, %v2914_v2  ;;  %5911 = vmatpush3.msk.msra.mxu1 %vm2932_vm3, %v97_v1 }
 0x23b   :  { %v6082_v11 = vpop.eup %6081  ;;  %v2915_v12 = vmul.f32 %v6080_v44, %v6726_v62  ;;  %v2845_v49 = vpop.xlane.xlu1 %2844  ;;  %5912 = vmatprep.mubr.msk.f32.mxu1 %vm6106_vm1, %v6105_v0  ;;  %5916 = vmatpush3.msk.msra.mxu0 %vm2932_vm3, %v98_v54  ;;  %v100_v62 = vld [vmem:[%s7185_s2 + $0x58] sm:$0x7] }
 0x23c   :  { %v2916_v26 = vmul.f32 %v6082_v11, %v6728_v24  ;;  %6091 = vrcp.f32 %v2845_v49  ;;  %v2848_v16 = vpop.xlane.xlu0 %2847  ;;  %5917 = vmatprep.mubr.msk.f32.mxu0 %vm6106_vm1, %v6105_v0  ;;  %5920 = vmatprep.subr.mxu1 %v6105_v0 }
 0x23d   :  { %6093 = vrcp.f32 %v2848_v16  ;;  %5913 = vmatmul.mubr.msk.f32.vlgmr.msra.gmra.mrb[50].mxu1 %vm2928_vm4, %v2915_v12  ;;  %5925 = vmatprep.subr.mxu0 %v6105_v0 }
 0x23e   :  { %v6084_v4 = vpop.eup %6083  ;;  %5918 = vmatmul.mubr.msk.f32.vlgmr.msra.gmra.mrb[52].mxu0 %vm2928_vm4, %v2916_v26  ;;  %5921 = vmatpush3.msk.msra.mxu1 %vm2932_vm3, %v99_v41 }
 0x23f   :  { %v6086_v24 = vpop.eup %6085  ;;  %v2917_v19 = vmul.f32 %v6084_v4, %v6736_v9  ;;  %v2851_v59 = vpop.xlane.xlu1 %2850  ;;  %5922 = vmatprep.mubr.msk.f32.mxu1 %vm6106_vm1, %v6105_v0  ;;  %5926 = vmatpush3.msk.msra.mxu0 %vm2932_vm3, %v100_v62  ;;  %v102_v9 = vld [vmem:[%s7185_s2 + $0x60] sm:$0x7] }
 0x240   :  { %v2918_v61 = vmul.f32 %v6086_v24, %v6738_v40  ;;  %6095 = vrcp.f32 %v2851_v59  ;;  %v2854_v34 = vpop.xlane.xlu0 %2853  ;;  %5927 = vmatprep.mubr.msk.f32.mxu0 %vm6106_vm1, %v6105_v0  ;;  %5930 = vmatprep.subr.mxu1 %v6105_v0 }
 0x241   :  { %6097 = vrcp.f32 %v2854_v34  ;;  %5923 = vmatmul.mubr.msk.f32.vlgmr.msra.gmra.mrb[52].mxu1 %vm2928_vm4, %v2917_v19  ;;  %5935 = vmatprep.subr.mxu0 %v6105_v0 }
 0x242   :  { %v6088_v32 = vpop.eup %6087  ;;  %5928 = vmatmul.mubr.msk.f32.vlgmr.msra.gmra.mrb[54].mxu0 %vm2928_vm4, %v2918_v61  ;;  %5931 = vmatpush3.msk.msra.mxu1 %vm2932_vm3, %v101_v27 }
 0x243   :  { %v6090_v40 = vpop.eup %6089  ;;  %v2919_v52 = vmul.f32 %v6088_v32, %v6746_v25  ;;  %v2857_v57 = vpop.xlane.xlu1 %2856  ;;  %5932 = vmatprep.mubr.msk.f32.mxu1 %vm6106_vm1, %v6105_v0  ;;  %5936 = vmatpush3.msk.msra.mxu0 %vm2932_vm3, %v102_v9  ;;  %v104_v25 = vld [vmem:[%s7185_s2 + $0x68] sm:$0x7] }
 0x244   :  { %v2920_v8 = vmul.f32 %v6090_v40, %v6748_v53  ;;  %6099 = vrcp.f32 %v2857_v57  ;;  %v2860_v15 = vpop.xlane.xlu0 %2859  ;;  %5937 = vmatprep.mubr.msk.f32.mxu0 %vm6106_vm1, %v6105_v0  ;;  %5940 = vmatprep.subr.mxu1 %v6105_v0 }
 0x245   :  { %6101 = vrcp.f32 %v2860_v15  ;;  %5933 = vmatmul.mubr.msk.f32.vlgmr.msra.gmra.mrb[54].mxu1 %vm2928_vm4, %v2919_v52  ;;  %5945 = vmatprep.subr.mxu0 %v6105_v0 }
 0x246   :  { %v6092_v18 = vpop.eup %6091  ;;  %5938 = vmatmul.mubr.msk.f32.vlgmr.msra.gmra.mrb[56].mxu0 %vm2928_vm4, %v2920_v8  ;;  %5941 = vmatpush3.msk.msra.mxu1 %vm2932_vm3, %v103_v33 }
 0x247   :  { %v6094_v53 = vpop.eup %6093  ;;  %v2921_v37 = vmul.f32 %v6092_v18, %v6755_v31  ;;  %v2863_v38 = vpop.xlane.xlu1 %2862  ;;  %5942 = vmatprep.mubr.msk.f32.mxu1 %vm6106_vm1, %v6105_v0  ;;  %5946 = vmatpush3.msk.msra.mxu0 %vm2932_vm3, %v104_v25  ;;  %v106_v31 = vld [vmem:[%s7185_s2 + $0x70] sm:$0x7] }
 0x248   :  { %v2922_v10 = vmul.f32 %v6094_v53, %v6757_v3  ;;  %6103 = vrcp.f32 %v2863_v38  ;;  %5947 = vmatprep.mubr.msk.f32.mxu0 %vm6106_vm1, %v6105_v0  ;;  %5950 = vmatprep.subr.mxu1 %v6105_v0 }
 0x249   :  { %5943 = vmatmul.mubr.msk.f32.vlgmr.msra.gmra.mrb[56].mxu1 %vm2928_vm4, %v2921_v37  ;;  %5955 = vmatprep.subr.mxu0 %v6105_v0 }
 0x24a   :  { %v6096_v45 = vpop.eup %6095  ;;  %5948 = vmatmul.mubr.msk.f32.vlgmr.msra.gmra.mrb[58].mxu0 %vm2928_vm4, %v2922_v10  ;;  %5951 = vmatpush3.msk.msra.mxu1 %vm2932_vm3, %v105_v42 }
 0x24b   :  { %v6098_v3 = vpop.eup %6097  ;;  %v2923_v23 = vmul.f32 %v6096_v45, %v6763_v28  ;;  %5952 = vmatprep.mubr.msk.f32.mxu1 %vm6106_vm1, %v6105_v0  ;;  %5956 = vmatpush3.msk.msra.mxu0 %vm2932_vm3, %v106_v31  ;;  %v108_v28 = vld [vmem:[%s7185_s2 + $0x78] sm:$0x7] }
 0x24c   :  { %v2924_v30 = vmul.f32 %v6098_v3, %v6765_v6  ;;  %5957 = vmatprep.mubr.msk.f32.mxu0 %vm6106_vm1, %v6105_v0  ;;  %5960 = vmatprep.subr.mxu1 %v6105_v0 }
 0x24d   :  { %5953 = vmatmul.mubr.msk.f32.vlgmr.msra.gmra.mrb[58].mxu1 %vm2928_vm4, %v2923_v23  ;;  %5965 = vmatprep.subr.mxu0 %v6105_v0 }
 0x24e   :  { %v6100_v7 = vpop.eup %6099  ;;  %5958 = vmatmul.mubr.msk.f32.vlgmr.msra.gmra.mrb[60].mxu0 %vm2928_vm4, %v2924_v30  ;;  %5961 = vmatpush3.msk.msra.mxu1 %vm2932_vm3, %v107_v63 }
 0x24f   :  { %v6102_v20 = vpop.eup %6101  ;;  %v2925_v6 = vmul.f32 %v6100_v7, %v6771_v5  ;;  %5962 = vmatprep.mubr.msk.f32.mxu1 %vm6106_vm1, %v6105_v0  ;;  %5966 = vmatpush3.msk.msra.mxu0 %vm2932_vm3, %v108_v28 }
 0x250   :  { %v2926_v22 = vmul.f32 %v6102_v20, %v6773_v14  ;;  %5967 = vmatprep.mubr.msk.f32.mxu0 %vm6106_vm1, %v6105_v0  ;;  %5970 = vmatprep.subr.mxu1 %v6105_v0 }
 0x251   :  { %5963 = vmatmul.mubr.msk.f32.vlgmr.msra.gmra.mrb[60].mxu1 %vm2928_vm4, %v2925_v6 }
 0x252   :  { %v6104_v51 = vpop.eup %6103  ;;  %5968 = vmatmul.mubr.msk.f32.vlgmr.msra.gmra.mrb[62].mxu0 %vm2928_vm4, %v2926_v22  ;;  %5971 = vmatpush3.msk.msra.mxu1 %vm2932_vm3, %v109_v48 }
 0x253   :  { %v2927_v5 = vmul.f32 %v6104_v51, %v6779_v47  ;;  %5972 = vmatprep.mubr.msk.f32.mxu1 %vm6106_vm1, %v6105_v0 }
 0x255   :  { %5973 = vmatmul.mubr.msk.f32.vlgmr.msra.gmra.mrb[62].mxu1 %vm2928_vm4, %v2927_v5 }
 0x2e8   :  { %v3002_v14 = vpop.f32.mrb[32].mxu0 }
 0x2e9   :  { %5363 = vst.msk [vmem:[%s7186_s3] sm:$0x7] %vm5362_vm5, %v3002_v14  ;;  %v5819_v39 = vpop.f32.mrb[33].mxu0 }
 0x2ec   :  { %v3078_v46 = vpop.f32.mrb[32].mxu1 }
 0x2ed   :  { %5364 = vst.msk [vmem:[%s7186_s3 + $0x4] sm:$0x7] %vm5362_vm5, %v3078_v46  ;;  %v3154_v47 = vpop.f32.mrb[34].mxu0  ;;  %v5824_v43 = vpop.f32.mrb[33].mxu1 }
 0x2ee   :  { %5365 = vst.msk [vmem:[%s7186_s3 + $0x8] sm:$0x7] %vm5362_vm5, %v3154_v47  ;;  %v5829_v0 = vpop.f32.mrb[35].mxu0 }
 0x2f0   :  { %v3230_v17 = vpop.f32.mrb[34].mxu1 }
 0x2f1   :  { %5366 = vst.msk [vmem:[%s7186_s3 + $0xc] sm:$0x7] %vm5362_vm5, %v3230_v17  ;;  %v3306_v50 = vpop.f32.mrb[36].mxu0  ;;  %v5834_v13 = vpop.f32.mrb[35].mxu1 }
 0x2f2   :  { %5367 = vst.msk [vmem:[%s7186_s3 + $0x10] sm:$0x7] %vm5362_vm5, %v3306_v50  ;;  %v5839_v29 = vpop.f32.mrb[37].mxu0 }
 0x2f4   :  { %v3382_v21 = vpop.f32.mrb[36].mxu1 }
 0x2f5   :  { %5368 = vst.msk [vmem:[%s7186_s3 + $0x14] sm:$0x7] %vm5362_vm5, %v3382_v21  ;;  %v3458_v55 = vpop.f32.mrb[38].mxu0  ;;  %v5844_v35 = vpop.f32.mrb[37].mxu1 }
 0x2f6   :  { %5369 = vst.msk [vmem:[%s7186_s3 + $0x18] sm:$0x7] %vm5362_vm5, %v3458_v55  ;;  %v5849_v56 = vpop.f32.mrb[39].mxu0 }
 0x2f8   :  { %v3534_v36 = vpop.f32.mrb[38].mxu1 }
 0x2f9   :  { %5370 = vst.msk [vmem:[%s7186_s3 + $0x1c] sm:$0x7] %vm5362_vm5, %v3534_v36  ;;  %v3610_v60 = vpop.f32.mrb[40].mxu0  ;;  %v5854_v1 = vpop.f32.mrb[39].mxu1 }
 0x2fa   :  { %5371 = vst.msk [vmem:[%s7186_s3 + $0x20] sm:$0x7] %vm5362_vm5, %v3610_v60  ;;  %v5859_v2 = vpop.f32.mrb[41].mxu0 }
 0x2fc   :  { %v3686_v58 = vpop.f32.mrb[40].mxu1 }
 0x2fd   :  { %5372 = vst.msk [vmem:[%s7186_s3 + $0x24] sm:$0x7] %vm5362_vm5, %v3686_v58  ;;  %v3762_v54 = vpop.f32.mrb[42].mxu0  ;;  %v5864_v44 = vpop.f32.mrb[41].mxu1 }
 0x2fe   :  { %5373 = vst.msk [vmem:[%s7186_s3 + $0x28] sm:$0x7] %vm5362_vm5, %v3762_v54  ;;  %v5869_v11 = vpop.f32.mrb[43].mxu0 }
 0x300   :  { %v3838_v12 = vpop.f32.mrb[42].mxu1 }
 0x301   :  { %5374 = vst.msk [vmem:[%s7186_s3 + $0x2c] sm:$0x7] %vm5362_vm5, %v3838_v12  ;;  %v3914_v49 = vpop.f32.mrb[44].mxu0  ;;  %v5874_v41 = vpop.f32.mrb[43].mxu1 }
 0x302   :  { %5375 = vst.msk [vmem:[%s7186_s3 + $0x30] sm:$0x7] %vm5362_vm5, %v3914_v49  ;;  %v5879_v26 = vpop.f32.mrb[45].mxu0 }
 0x304   :  { %v3990_v16 = vpop.f32.mrb[44].mxu1 }
 0x305   :  { %5376 = vst.msk [vmem:[%s7186_s3 + $0x34] sm:$0x7] %vm5362_vm5, %v3990_v16  ;;  %v4066_v62 = vpop.f32.mrb[46].mxu0  ;;  %v5884_v4 = vpop.f32.mrb[45].mxu1 }
 0x306   :  { %5377 = vst.msk [vmem:[%s7186_s3 + $0x38] sm:$0x7] %vm5362_vm5, %v4066_v62  ;;  %v5889_v24 = vpop.f32.mrb[47].mxu0 }
 0x308   :  { %v4142_v19 = vpop.f32.mrb[46].mxu1 }
 0x309   :  { %5378 = vst.msk [vmem:[%s7186_s3 + $0x3c] sm:$0x7] %vm5362_vm5, %v4142_v19  ;;  %v4218_v59 = vpop.f32.mrb[48].mxu0  ;;  %v5894_v27 = vpop.f32.mrb[47].mxu1 }
 0x30a   :  { %5379 = vst.msk [vmem:[%s7186_s3 + $0x40] sm:$0x7] %vm5362_vm5, %v4218_v59  ;;  %v5899_v61 = vpop.f32.mrb[49].mxu0 }
 0x30c   :  { %v4294_v34 = vpop.f32.mrb[48].mxu1 }
 0x30d   :  { %5380 = vst.msk [vmem:[%s7186_s3 + $0x44] sm:$0x7] %vm5362_vm5, %v4294_v34  ;;  %v4370_v9 = vpop.f32.mrb[50].mxu0  ;;  %v5904_v32 = vpop.f32.mrb[49].mxu1 }
 0x30e   :  { %5381 = vst.msk [vmem:[%s7186_s3 + $0x48] sm:$0x7] %vm5362_vm5, %v4370_v9  ;;  %v5909_v40 = vpop.f32.mrb[51].mxu0 }
 0x310   :  { %v4446_v52 = vpop.f32.mrb[50].mxu1 }
 0x311   :  { %5382 = vst.msk [vmem:[%s7186_s3 + $0x4c] sm:$0x7] %vm5362_vm5, %v4446_v52  ;;  %v4522_v57 = vpop.f32.mrb[52].mxu0  ;;  %v5914_v33 = vpop.f32.mrb[51].mxu1 }
 0x312   :  { %5383 = vst.msk [vmem:[%s7186_s3 + $0x50] sm:$0x7] %vm5362_vm5, %v4522_v57  ;;  %v5919_v8 = vpop.f32.mrb[53].mxu0 }
 0x314   :  { %v4598_v15 = vpop.f32.mrb[52].mxu1 }
 0x315   :  { %5384 = vst.msk [vmem:[%s7186_s3 + $0x54] sm:$0x7] %vm5362_vm5, %v4598_v15  ;;  %v4674_v25 = vpop.f32.mrb[54].mxu0  ;;  %v5924_v18 = vpop.f32.mrb[53].mxu1 }
 0x316   :  { %5385 = vst.msk [vmem:[%s7186_s3 + $0x58] sm:$0x7] %vm5362_vm5, %v4674_v25  ;;  %v5929_v53 = vpop.f32.mrb[55].mxu0 }
 0x318   :  { %v4750_v37 = vpop.f32.mrb[54].mxu1 }
 0x319   :  { %5386 = vst.msk [vmem:[%s7186_s3 + $0x5c] sm:$0x7] %vm5362_vm5, %v4750_v37  ;;  %v4826_v38 = vpop.f32.mrb[56].mxu0  ;;  %v5934_v42 = vpop.f32.mrb[55].mxu1 }
 0x31a   :  { %5387 = vst.msk [vmem:[%s7186_s3 + $0x60] sm:$0x7] %vm5362_vm5, %v4826_v38  ;;  %v5939_v10 = vpop.f32.mrb[57].mxu0 }
 0x31c   :  { %v4902_v31 = vpop.f32.mrb[56].mxu1 }
 0x31d   :  { %5388 = vst.msk [vmem:[%s7186_s3 + $0x64] sm:$0x7] %vm5362_vm5, %v4902_v31  ;;  %v4978_v45 = vpop.f32.mrb[58].mxu0  ;;  %v5944_v3 = vpop.f32.mrb[57].mxu1 }
 0x31e   :  { %5389 = vst.msk [vmem:[%s7186_s3 + $0x68] sm:$0x7] %vm5362_vm5, %v4978_v45  ;;  %v5949_v23 = vpop.f32.mrb[59].mxu0 }
 0x320   :  { %v5054_v63 = vpop.f32.mrb[58].mxu1 }
 0x321   :  { %5390 = vst.msk [vmem:[%s7186_s3 + $0x6c] sm:$0x7] %vm5362_vm5, %v5054_v63  ;;  %v5130_v30 = vpop.f32.mrb[60].mxu0  ;;  %v5954_v28 = vpop.f32.mrb[59].mxu1 }
 0x322   :  { %5391 = vst.msk [vmem:[%s7186_s3 + $0x70] sm:$0x7] %vm5362_vm5, %v5130_v30  ;;  %v5959_v7 = vpop.f32.mrb[61].mxu0 }
 0x324   :  { %v5206_v20 = vpop.f32.mrb[60].mxu1 }
 0x325   :  { %5392 = vst.msk [vmem:[%s7186_s3 + $0x74] sm:$0x7] %vm5362_vm5, %v5206_v20  ;;  %v5282_v6 = vpop.f32.mrb[62].mxu0  ;;  %v5964_v48 = vpop.f32.mrb[61].mxu1 }
 0x326   :  { %5393 = vst.msk [vmem:[%s7186_s3 + $0x78] sm:$0x7] %vm5362_vm5, %v5282_v6  ;;  %v5969_v22 = vpop.f32.mrb[63].mxu0 }
 0x328   :  { %v5358_v51 = vpop.f32.mrb[62].mxu1 }
 0x329   :  { %5394 = vst.msk [vmem:[%s7186_s3 + $0x7c] sm:$0x7] %vm5362_vm5, %v5358_v51  ;;  %v5974_v5 = vpop.f32.mrb[63].mxu1 }

// kernel: closed_call.177
= control target key start
LH: loop header
LB: loop body
LE: loop exit
PB: predicated region body
PF: predicated region fallthrough
CT: control target
= control target key end

     0   :  { %vm26_vm0 = vcmask 64512   ;;  %v765_v0 = vmov 0.0   ;;  %vm766_vm1 = vmmov 0   ;;  %s883_s1 = inlined_call_operand.vmem [shape: f32[4,8,8], index: 1, kind: input, shape index: {}]   ;;  %s884_s0 = inlined_call_operand.vmem [shape: f32[4,8,8], index: 0, kind: input, shape index: {}]   ;;  %s885_s2 = inlined_call_operand.vmem [shape: f32[4,8,8], index: 2, kind: input, shape index: {}]   ;;  %s886_s3 = inlined_call_operand.vmem [shape: f32[4,8,8], index: 3, kind: output, shape index: {}]  }
   0x1   :  { %707 = vmatprep.subr.mxu0 %v765_v0  ;;  %v18_v1 = vld [vmem:[%s883_s1] sm:$0xff]  ;;  %709 = vmatprep.mubr.msk.f32.mxu0 %vm766_vm1, %v765_v0  ;;  %v19_v2 = vld [vmem:[%s883_s1 + $0x8] sm:$0xff]  ;;  %v20_v4 = vld [vmem:[%s883_s1 + $0x10] sm:$0xff] }
   0x2   :  { %708 = vmatpush3.xpose.msk.msra.mxu0 %vm26_vm0, %v18_v1  ;;  %v14_v3 = vld [vmem:[%s884_s0] sm:$0xff]  ;;  %712 = vmatprep.subr.mxu1 %v765_v0  ;;  %v15_v5 = vld [vmem:[%s884_s0 + $0x8] sm:$0xff]  ;;  %v21_v6 = vld [vmem:[%s883_s1 + $0x18] sm:$0xff] }
   0x3   :  { %717 = vmatprep.subr.mxu0 %v765_v0  ;;  %713 = vmatpush3.xpose.msk.msra.mxu1 %vm26_vm0, %v19_v2  ;;  %v16_v7 = vld [vmem:[%s884_s0 + $0x10] sm:$0xff]  ;;  %v17_v8 = vld [vmem:[%s884_s0 + $0x18] sm:$0xff]  ;;  %v22_v45 = vld [vmem:[%s885_s2] sm:$0xff] }
   0x4   :  { %714 = vmatprep.mubr.msk.f32.mxu1 %vm766_vm1, %v765_v0  ;;  %722 = vmatprep.subr.mxu1 %v765_v0  ;;  %v23_v46 = vld [vmem:[%s885_s2 + $0x8] sm:$0xff]  ;;  %v24_v53 = vld [vmem:[%s885_s2 + $0x10] sm:$0xff]  ;;  %v25_v57 = vld [vmem:[%s885_s2 + $0x18] sm:$0xff] }
   0x5   :  { %710 = vmatmul.mubr.msk.f32.vlgmr.msra.gmra.mrb[0].mxu0 %vm26_vm0, %v14_v3 }
   0x6   :  { %718 = vmatpush3.xpose.msk.msra.mxu0 %vm26_vm0, %v20_v4  ;;  %719 = vmatprep.mubr.msk.f32.mxu0 %vm766_vm1, %v765_v0 }
   0x7   :  { %715 = vmatmul.mubr.msk.f32.vlgmr.msra.gmra.mrb[0].mxu1 %vm26_vm0, %v15_v5  ;;  %727 = vmatprep.subr.mxu0 %v765_v0 }
   0x8   :  { %723 = vmatpush3.xpose.msk.msra.mxu1 %vm26_vm0, %v21_v6  ;;  %724 = vmatprep.mubr.msk.f32.mxu1 %vm766_vm1, %v765_v0 }
   0x9   :  { %720 = vmatmul.mubr.msk.f32.vlgmr.msra.gmra.mrb[2].mxu0 %vm26_vm0, %v16_v7  ;;  %732 = vmatprep.subr.mxu1 %v765_v0 }
   0xa   :  { %729 = vmatprep.mubr.msk.f32.mxu0 %vm766_vm1, %v765_v0  ;;  %728 = vmatpush3.msra.mxu0 %v22_v45 }
   0xb   :  { %725 = vmatmul.mubr.msk.f32.vlgmr.msra.gmra.mrb[2].mxu1 %vm26_vm0, %v17_v8  ;;  %737 = vmatprep.subr.mxu0 %v765_v0 }
   0xc   :  { %734 = vmatprep.mubr.msk.f32.mxu1 %vm766_vm1, %v765_v0  ;;  %733 = vmatpush3.msra.mxu1 %v23_v46 }
   0xd   :  { %742 = vmatprep.subr.mxu1 %v765_v0 }
  0xd8   :  { %v99_v9 = vpop.f32.mrb[0].mxu0 }
  0xd9   :  { %v331_v10 = vmul.f32 0.35355338, %v99_v9  ;;  %v711_v11 = vpop.f32.mrb[1].mxu0 }
  0xda   :  { %v175_v12 = vpop.f32.mrb[0].mxu1 }
  0xdb   :  { %v332_v13 = vmul.f32 0.35355338, %v175_v12  ;;  %v335_v14 = vsel %vm26_vm0, %v331_v10, -inf  ;;  %v716_v15 = vpop.f32.mrb[1].mxu1 }
  0xdc   :  { %336 = vmax.xlane.f32.xlu0 %v335_v14  ;;  %v251_v16 = vpop.f32.mrb[2].mxu0 }
  0xdd   :  { %v333_v17 = vmul.f32 0.35355338, %v251_v16  ;;  %v721_v18 = vpop.f32.mrb[3].mxu0  ;;  %v338_v19 = vsel %vm26_vm0, %v332_v13, -inf }
  0xde   :  { %v327_v20 = vpop.f32.mrb[2].mxu1 }
  0xdf   :  { %v334_v21 = vmul.f32 0.35355338, %v327_v20  ;;  %v341_v22 = vsel %vm26_vm0, %v333_v17, -inf  ;;  %v726_v23 = vpop.f32.mrb[3].mxu1 }
  0xe0   :  { %339 = vmax.xlane.f32.xlu0 %v338_v19  ;;  %342 = vmax.xlane.f32.xlu1 %v341_v22 }
  0xe1   :  { %v344_v24 = vsel %vm26_vm0, %v334_v21, -inf }
  0xe4   :  { %345 = vmax.xlane.f32.xlu1 %v344_v24 }
 0x169   :  { %v337_v25 = vpop.xlane.xlu0 %336 }
 0x16a   :  { %v347_v26 = vsub.f32 %v331_v10, %v337_v25 }
 0x16c   :  { %v351_v27 = vmul.f32 1.442695, %v347_v26 }
 0x16d   :  { %v340_v28 = vpop.xlane.xlu0 %339  ;;  %v343_v29 = vpop.xlane.xlu1 %342 }
 0x16e   :  { %749 = vpow2.f32 %v351_v27  ;;  %v348_v30 = vsub.f32 %v332_v13, %v340_v28  ;;  %v349_v31 = vsub.f32 %v333_v17, %v343_v29 }
 0x170   :  { %v353_v32 = vmul.f32 1.442695, %v348_v30  ;;  %v355_v33 = vmul.f32 1.442695, %v349_v31 }
 0x171   :  { %v346_v34 = vpop.xlane.xlu1 %345 }
 0x172   :  { %751 = vpow2.f32 %v353_v32  ;;  %v350_v35 = vsub.f32 %v334_v21, %v346_v34 }
 0x173   :  { %753 = vpow2.f32 %v355_v33 }
 0x174   :  { %v357_v36 = vmul.f32 1.442695, %v350_v35 }
 0x176   :  { %755 = vpow2.f32 %v357_v36 }
 0x178   :  { %v750_v37 = vpop.eup %749 }
 0x179   :  { %v359_v38 = vsel %vm26_vm0, %v750_v37, 0.0 }
 0x17a   :  { %360 = vadd.xlane.f32.xlu0 %v359_v38 }
 0x17c   :  { %v752_v39 = vpop.eup %751 }
 0x17d   :  { %v754_v40 = vpop.eup %753  ;;  %v362_v41 = vsel %vm26_vm0, %v752_v39, 0.0 }
 0x17e   :  { %363 = vadd.xlane.f32.xlu1 %v362_v41  ;;  %v365_v42 = vsel %vm26_vm0, %v754_v40, 0.0 }
 0x17f   :  { %366 = vadd.xlane.f32.xlu0 %v365_v42 }
 0x180   :  { %v756_v43 = vpop.eup %755 }
 0x181   :  { %v368_v44 = vsel %vm26_vm0, %v756_v43, 0.0 }
 0x182   :  { %369 = vadd.xlane.f32.xlu1 %v368_v44 }
 0x207   :  { %v361_v47 = vpop.xlane.xlu0 %360 }
 0x208   :  { %757 = vrcp.f32 %v361_v47 }
 0x20b   :  { %v364_v48 = vpop.xlane.xlu1 %363 }
 0x20c   :  { %v367_v49 = vpop.xlane.xlu0 %366  ;;  %759 = vrcp.f32 %v364_v48 }
 0x20d   :  { %761 = vrcp.f32 %v367_v49 }
 0x20f   :  { %v370_v50 = vpop.xlane.xlu1 %369 }
 0x210   :  { %763 = vrcp.f32 %v370_v50 }
 0x212   :  { %v758_v51 = vpop.eup %757 }
 0x213   :  { %v375_v52 = vmul.f32 %v758_v51, %v750_v37 }
 0x215   :  { %730 = vmatmul.mubr.msk.f32.vlgmr.msra.gmra.mrb[4].mxu0 %vm26_vm0, %v375_v52 }
 0x216   :  { %v760_v54 = vpop.eup %759  ;;  %738 = vmatpush3.msra.mxu0 %v24_v53  ;;  %739 = vmatprep.mubr.msk.f32.mxu0 %vm766_vm1, %v765_v0 }
 0x217   :  { %v762_v55 = vpop.eup %761  ;;  %v376_v56 = vmul.f32 %v760_v54, %v752_v39 }
 0x218   :  { %v377_v58 = vmul.f32 %v762_v55, %v754_v40 }
 0x219   :  { %735 = vmatmul.mubr.msk.f32.vlgmr.msra.gmra.mrb[4].mxu1 %vm26_vm0, %v376_v56 }
 0x21a   :  { %v764_v59 = vpop.eup %763  ;;  %740 = vmatmul.mubr.msk.f32.vlgmr.msra.gmra.mrb[6].mxu0 %vm26_vm0, %v377_v58  ;;  %743 = vmatpush3.msra.mxu1 %v25_v57 }
 0x21b   :  { %v378_v60 = vmul.f32 %v764_v59, %v756_v43  ;;  %744 = vmatprep.mubr.msk.f32.mxu1 %vm766_vm1, %v765_v0 }
 0x21d   :  { %745 = vmatmul.mubr.msk.f32.vlgmr.msra.gmra.mrb[6].mxu1 %vm26_vm0, %v378_v60 }
 0x2e8   :  { %v448_v61 = vpop.f32.mrb[4].mxu0 }
 0x2e9   :  { %671 = vst.msk [vmem:[%s886_s3] sm:$0xff] %vm26_vm0, %v448_v61  ;;  %v731_v62 = vpop.f32.mrb[5].mxu0 }
 0x2ec   :  { %v521_v63 = vpop.f32.mrb[4].mxu1 }
 0x2ed   :  { %672 = vst.msk [vmem:[%s886_s3 + $0x8] sm:$0xff] %vm26_vm0, %v521_v63  ;;  %v594_v1 = vpop.f32.mrb[6].mxu0  ;;  %v736_v2 = vpop.f32.mrb[5].mxu1 }
 0x2ee   :  { %673 = vst.msk [vmem:[%s886_s3 + $0x10] sm:$0xff] %vm26_vm0, %v594_v1  ;;  %v741_v0 = vpop.f32.mrb[7].mxu0 }
 0x2f0   :  { %v667_v3 = vpop.f32.mrb[6].mxu1 }
 0x2f1   :  { %674 = vst.msk [vmem:[%s886_s3 + $0x18] sm:$0xff] %vm26_vm0, %v667_v3  ;;  %v746_v4 = vpop.f32.mrb[7].mxu1 }

// kernel: closed_call.180
= control target key start
LH: loop header
LB: loop body
LE: loop exit
PB: predicated region body
PF: predicated region fallthrough
CT: control target
= control target key end

     0   :  { %vm111_vm0 = vcmask 57344   ;;  %vm467_vm1 = vcmask 1040384   ;;  %vm3352_vm2 = vmmov 0   ;;  %vm463_vm3 = vcmask 7168   ;;  %s4077_s0 = inlined_call_operand.vmem [shape: f32[32,1,8], index: 0, kind: input, shape index: {}]   ;;  %s4078_s1 = inlined_call_operand.vmem [shape: f32[32,1,8], index: 1, kind: input, shape index: {}]   ;;  %s4079_s2 = inlined_call_operand.vmem [shape: f32[32,1,8], index: 2, kind: input, shape index: {}]   ;;  %s4080_s3 = inlined_call_operand.vmem [shape: f32[32,1,8], index: 3, kind: output, shape index: {}]  }
   0x1   :  { %v16_v0 = vld [vmem:[%s4077_s0 + $0x2] sm:$0x1]  ;;  %v14_v2 = vld [vmem:[%s4077_s0] sm:$0x1]  ;;  %v17_v5 = vld [vmem:[%s4077_s0 + $0x3] sm:$0x1] }
   0x2   :  { %v48_v1 = vld [vmem:[%s4078_s1 + $0x2] sm:$0x1]  ;;  %v46_v4 = vld [vmem:[%s4078_s1] sm:$0x1]  ;;  %v49_v6 = vld [vmem:[%s4078_s1 + $0x3] sm:$0x1] }
   0x3   :  { %v119_v3 = vmul.f32 %v48_v1, %v16_v0  ;;  %v110_v7 = vmul.f32 %v46_v4, %v14_v2  ;;  %v123_v8 = vmul.f32 %v49_v6, %v17_v5  ;;  %v15_v9 = vld [vmem:[%s4077_s0 + $0x1] sm:$0x1]  ;;  %v19_v11 = vld [vmem:[%s4077_s0 + $0x5] sm:$0x1]  ;;  %v18_v15 = vld [vmem:[%s4077_s0 + $0x4] sm:$0x1] }
   0x4   :  { %v47_v10 = vld [vmem:[%s4078_s1 + $0x1] sm:$0x1]  ;;  %v51_v14 = vld [vmem:[%s4078_s1 + $0x5] sm:$0x1]  ;;  %v50_v17 = vld [vmem:[%s4078_s1 + $0x4] sm:$0x1] }
   0x5   :  { %v120_v12 = vsel %vm111_vm0, %v119_v3, 0.0  ;;  %v115_v13 = vmul.f32 %v47_v10, %v15_v9  ;;  %v112_v16 = vsel %vm111_vm0, %v110_v7, 0.0  ;;  %v124_v18 = vsel %vm111_vm0, %v123_v8, 0.0  ;;  %v21_v22 = vld [vmem:[%s4077_s0 + $0x7] sm:$0x1] }
   0x6   :  { %121 = vadd.xlane.f32.xlu1 %v120_v12  ;;  %113 = vadd.xlane.f32.xlu0 %v112_v16  ;;  %v131_v19 = vmul.f32 %v51_v14, %v19_v11  ;;  %v127_v21 = vmul.f32 %v50_v17, %v18_v15  ;;  %v53_v23 = vld [vmem:[%s4078_s1 + $0x7] sm:$0x1]  ;;  %v20_v24 = vld [vmem:[%s4077_s0 + $0x6] sm:$0x1]  ;;  %v23_v30 = vld [vmem:[%s4077_s0 + $0x9] sm:$0x1] }
   0x7   :  { %v116_v20 = vsel %vm111_vm0, %v115_v13, 0.0  ;;  %v52_v25 = vld [vmem:[%s4078_s1 + $0x6] sm:$0x1]  ;;  %v139_v27 = vmul.f32 %v53_v23, %v21_v22  ;;  %v55_v31 = vld [vmem:[%s4078_s1 + $0x9] sm:$0x1] }
   0x8   :  { %v132_v26 = vsel %vm111_vm0, %v131_v19, 0.0  ;;  %v128_v28 = vsel %vm111_vm0, %v127_v21, 0.0  ;;  %v135_v29 = vmul.f32 %v52_v25, %v20_v24  ;;  %v22_v32 = vld [vmem:[%s4077_s0 + $0x8] sm:$0x1]  ;;  %v147_v35 = vmul.f32 %v55_v31, %v23_v30  ;;  %v25_v38 = vld [vmem:[%s4077_s0 + $0xb] sm:$0x1] }
   0x9   :  { %v54_v33 = vld [vmem:[%s4078_s1 + $0x8] sm:$0x1]  ;;  %v140_v34 = vsel %vm111_vm0, %v139_v27, 0.0  ;;  %v57_v39 = vld [vmem:[%s4078_s1 + $0xb] sm:$0x1] }
   0xa   :  { %125 = vadd.xlane.f32.xlu1 %v124_v18  ;;  %117 = vadd.xlane.f32.xlu0 %v116_v20  ;;  %v136_v36 = vsel %vm111_vm0, %v135_v29, 0.0  ;;  %v143_v37 = vmul.f32 %v54_v33, %v22_v32  ;;  %v24_v40 = vld [vmem:[%s4077_s0 + $0xa] sm:$0x1]  ;;  %v148_v42 = vsel %vm111_vm0, %v147_v35, 0.0  ;;  %v155_v43 = vmul.f32 %v57_v39, %v25_v38  ;;  %v27_v46 = vld [vmem:[%s4077_s0 + $0xd] sm:$0x1] }
   0xb   :  { %v56_v41 = vld [vmem:[%s4078_s1 + $0xa] sm:$0x1]  ;;  %v59_v47 = vld [vmem:[%s4078_s1 + $0xd] sm:$0x1]  ;;  %v26_v48 = vld [vmem:[%s4077_s0 + $0xc] sm:$0x1] }
   0xc   :  { %v144_v44 = vsel %vm111_vm0, %v143_v37, 0.0  ;;  %v151_v45 = vmul.f32 %v56_v41, %v24_v40  ;;  %v58_v49 = vld [vmem:[%s4078_s1 + $0xc] sm:$0x1]  ;;  %v156_v50 = vsel %vm111_vm0, %v155_v43, 0.0  ;;  %v163_v51 = vmul.f32 %v59_v47, %v27_v46  ;;  %v29_v54 = vld [vmem:[%s4077_s0 + $0xf] sm:$0x1] }
   0xd   :  { %v159_v53 = vmul.f32 %v58_v49, %v26_v48  ;;  %v61_v55 = vld [vmem:[%s4078_s1 + $0xf] sm:$0x1]  ;;  %v28_v56 = vld [vmem:[%s4077_s0 + $0xe] sm:$0x1]  ;;  %v31_v62 = vld [vmem:[%s4077_s0 + $0x11] sm:$0x1] }
   0xe   :  { %133 = vadd.xlane.f32.xlu1 %v132_v26  ;;  %129 = vadd.xlane.f32.xlu0 %v128_v28  ;;  %v152_v52 = vsel %vm111_vm0, %v151_v45, 0.0  ;;  %v60_v57 = vld [vmem:[%s4078_s1 + $0xe] sm:$0x1]  ;;  %v164_v58 = vsel %vm111_vm0, %v163_v51, 0.0  ;;  %v171_v59 = vmul.f32 %v61_v55, %v29_v54  ;;  %v63_v63 = vld [vmem:[%s4078_s1 + $0x11] sm:$0x1] }
   0xf   :  { %v160_v60 = vsel %vm111_vm0, %v159_v53, 0.0  ;;  %v167_v61 = vmul.f32 %v60_v57, %v28_v56  ;;  %v30_v0 = vld [vmem:[%s4077_s0 + $0x10] sm:$0x1]  ;;  %v179_v3 = vmul.f32 %v63_v63, %v31_v62  ;;  %v33_v6 = vld [vmem:[%s4077_s0 + $0x13] sm:$0x1] }
  0x10   :  { %v62_v1 = vld [vmem:[%s4078_s1 + $0x10] sm:$0x1]  ;;  %v172_v2 = vsel %vm111_vm0, %v171_v59, 0.0  ;;  %v65_v7 = vld [vmem:[%s4078_s1 + $0x13] sm:$0x1] }
  0x11   :  { %v168_v4 = vsel %vm111_vm0, %v167_v61, 0.0  ;;  %v175_v5 = vmul.f32 %v62_v1, %v30_v0  ;;  %v32_v8 = vld [vmem:[%s4077_s0 + $0x12] sm:$0x1]  ;;  %v180_v10 = vsel %vm111_vm0, %v179_v3, 0.0  ;;  %v187_v11 = vmul.f32 %v65_v7, %v33_v6  ;;  %v35_v14 = vld [vmem:[%s4077_s0 + $0x15] sm:$0x1] }
  0x12   :  { %141 = vadd.xlane.f32.xlu1 %v140_v34  ;;  %137 = vadd.xlane.f32.xlu0 %v136_v36  ;;  %v64_v9 = vld [vmem:[%s4078_s1 + $0x12] sm:$0x1]  ;;  %v67_v15 = vld [vmem:[%s4078_s1 + $0x15] sm:$0x1]  ;;  %v34_v16 = vld [vmem:[%s4077_s0 + $0x14] sm:$0x1] }
  0x13   :  { %v176_v12 = vsel %vm111_vm0, %v175_v5, 0.0  ;;  %v183_v13 = vmul.f32 %v64_v9, %v32_v8  ;;  %v66_v17 = vld [vmem:[%s4078_s1 + $0x14] sm:$0x1]  ;;  %v188_v18 = vsel %vm111_vm0, %v187_v11, 0.0  ;;  %v195_v19 = vmul.f32 %v67_v15, %v35_v14  ;;  %v37_v22 = vld [vmem:[%s4077_s0 + $0x17] sm:$0x1] }
  0x14   :  { %v191_v21 = vmul.f32 %v66_v17, %v34_v16  ;;  %v69_v23 = vld [vmem:[%s4078_s1 + $0x17] sm:$0x1]  ;;  %v36_v24 = vld [vmem:[%s4077_s0 + $0x16] sm:$0x1]  ;;  %v39_v30 = vld [vmem:[%s4077_s0 + $0x19] sm:$0x1] }
  0x15   :  { %v184_v20 = vsel %vm111_vm0, %v183_v13, 0.0  ;;  %v68_v25 = vld [vmem:[%s4078_s1 + $0x16] sm:$0x1]  ;;  %v196_v26 = vsel %vm111_vm0, %v195_v19, 0.0  ;;  %v203_v27 = vmul.f32 %v69_v23, %v37_v22  ;;  %v71_v31 = vld [vmem:[%s4078_s1 + $0x19] sm:$0x1] }
  0x16   :  { %149 = vadd.xlane.f32.xlu1 %v148_v42  ;;  %145 = vadd.xlane.f32.xlu0 %v144_v44  ;;  %v192_v28 = vsel %vm111_vm0, %v191_v21, 0.0  ;;  %v199_v29 = vmul.f32 %v68_v25, %v36_v24  ;;  %v38_v32 = vld [vmem:[%s4077_s0 + $0x18] sm:$0x1]  ;;  %v211_v35 = vmul.f32 %v71_v31, %v39_v30  ;;  %v41_v38 = vld [vmem:[%s4077_s0 + $0x1b] sm:$0x1]  ;;  %v3351_v44 = vmov 0.0  }
  0x17   :  { %v70_v33 = vld [vmem:[%s4078_s1 + $0x18] sm:$0x1]  ;;  %v204_v34 = vsel %vm111_vm0, %v203_v27, 0.0  ;;  %v73_v39 = vld [vmem:[%s4078_s1 + $0x1b] sm:$0x1]  ;;  %3061 = vmatprep.subr.mxu0 %v3351_v44  ;;  %3063 = vmatprep.mubr.msk.f32.mxu0 %vm3352_vm2, %v3351_v44 }
  0x18   :  { %v200_v36 = vsel %vm111_vm0, %v199_v29, 0.0  ;;  %v207_v37 = vmul.f32 %v70_v33, %v38_v32  ;;  %v40_v40 = vld [vmem:[%s4077_s0 + $0x1a] sm:$0x1]  ;;  %v212_v42 = vsel %vm111_vm0, %v211_v35, 0.0  ;;  %v219_v43 = vmul.f32 %v73_v39, %v41_v38  ;;  %v78_v45 = vld [vmem:[%s4079_s2] sm:$0x1]  ;;  %3066 = vmatprep.subr.mxu1 %v3351_v44  ;;  %3068 = vmatprep.mubr.msk.f32.mxu1 %vm3352_vm2, %v3351_v44 }
  0x19   :  { %v72_v41 = vld [vmem:[%s4078_s1 + $0x1a] sm:$0x1]  ;;  %v43_v48 = vld [vmem:[%s4077_s0 + $0x1d] sm:$0x1]  ;;  %3062 = vmatpush3.msk.msra.mxu0 %vm467_vm1, %v78_v45  ;;  %v74_v51 = vld [vmem:[%s4078_s1 + $0x1c] sm:$0x1] }
  0x1a   :  { %157 = vadd.xlane.f32.xlu1 %v156_v50  ;;  %153 = vadd.xlane.f32.xlu0 %v152_v52  ;;  %v208_v46 = vsel %vm111_vm0, %v207_v37, 0.0  ;;  %v215_v47 = vmul.f32 %v72_v41, %v40_v40  ;;  %v75_v49 = vld [vmem:[%s4078_s1 + $0x1d] sm:$0x1]  ;;  %v42_v50 = vld [vmem:[%s4077_s0 + $0x1c] sm:$0x1]  ;;  %v220_v52 = vsel %vm111_vm0, %v219_v43, 0.0 }
  0x1b   :  { %3071 = vmatprep.subr.mxu0 %v3351_v44  ;;  %v227_v53 = vmul.f32 %v75_v49, %v43_v48  ;;  %v79_v54 = vld [vmem:[%s4079_s2 + $0x1] sm:$0x1]  ;;  %v223_v56 = vmul.f32 %v74_v51, %v42_v50  ;;  %v45_v57 = vld [vmem:[%s4077_s0 + $0x1f] sm:$0x1]  ;;  %v44_v59 = vld [vmem:[%s4077_s0 + $0x1e] sm:$0x1] }
  0x1c   :  { %v216_v55 = vsel %vm111_vm0, %v215_v47, 0.0  ;;  %3067 = vmatpush3.msk.msra.mxu1 %vm467_vm1, %v79_v54 }
  0x1d   :  { %3076 = vmatprep.subr.mxu1 %v3351_v44  ;;  %v228_v61 = vsel %vm111_vm0, %v227_v53, 0.0  ;;  %v224_v63 = vsel %vm111_vm0, %v223_v56, 0.0 }
  0x1e   :  { %165 = vadd.xlane.f32.xlu1 %v164_v58  ;;  %161 = vadd.xlane.f32.xlu0 %v160_v60  ;;  %v77_v58 = vld [vmem:[%s4078_s1 + $0x1f] sm:$0x1]  ;;  %v76_v60 = vld [vmem:[%s4078_s1 + $0x1e] sm:$0x1] }
  0x1f   :  { %v235_v62 = vmul.f32 %v77_v58, %v45_v57  ;;  %v231_v0 = vmul.f32 %v76_v60, %v44_v59 }
  0x21   :  { %v236_v1 = vsel %vm111_vm0, %v235_v62, 0.0 }
  0x22   :  { %173 = vadd.xlane.f32.xlu1 %v172_v2  ;;  %169 = vadd.xlane.f32.xlu0 %v168_v4  ;;  %v232_v2 = vsel %vm111_vm0, %v231_v0, 0.0 }
  0x26   :  { %181 = vadd.xlane.f32.xlu1 %v180_v10  ;;  %177 = vadd.xlane.f32.xlu0 %v176_v12 }
  0x2a   :  { %189 = vadd.xlane.f32.xlu1 %v188_v18  ;;  %185 = vadd.xlane.f32.xlu0 %v184_v20 }
  0x2e   :  { %197 = vadd.xlane.f32.xlu1 %v196_v26  ;;  %193 = vadd.xlane.f32.xlu0 %v192_v28 }
  0x32   :  { %205 = vadd.xlane.f32.xlu1 %v204_v34  ;;  %201 = vadd.xlane.f32.xlu0 %v200_v36 }
  0x36   :  { %213 = vadd.xlane.f32.xlu1 %v212_v42  ;;  %209 = vadd.xlane.f32.xlu0 %v208_v46 }
  0x3a   :  { %221 = vadd.xlane.f32.xlu1 %v220_v52  ;;  %217 = vadd.xlane.f32.xlu0 %v216_v55 }
  0x3e   :  { %229 = vadd.xlane.f32.xlu1 %v228_v61  ;;  %225 = vadd.xlane.f32.xlu0 %v224_v63 }
  0x42   :  { %237 = vadd.xlane.f32.xlu1 %v236_v1  ;;  %233 = vadd.xlane.f32.xlu0 %v232_v2 }
  0x93   :  { %v122_v3 = vpop.xlane.xlu1 %121  ;;  %v114_v5 = vpop.xlane.xlu0 %113 }
  0x94   :  { %v241_v4 = vmul.f32 0.35355338, %v122_v3  ;;  %v239_v6 = vmul.f32 0.35355338, %v114_v5 }
  0x96   :  { %v273_v7 = vsub.f32 %v241_v4, %v241_v4  ;;  %v271_v8 = vsub.f32 %v239_v6, %v239_v6 }
  0x97   :  { %v126_v9 = vpop.xlane.xlu1 %125  ;;  %v118_v12 = vpop.xlane.xlu0 %117 }
  0x98   :  { %v307_v10 = vmul.f32 1.442695, %v273_v7  ;;  %v242_v11 = vmul.f32 0.35355338, %v126_v9  ;;  %v303_v13 = vmul.f32 1.442695, %v271_v8 }
  0x99   :  { %v240_v14 = vmul.f32 0.35355338, %v118_v12 }
  0x9a   :  { %3223 = vpow2.f32 %v307_v10  ;;  %v274_v15 = vsub.f32 %v242_v11, %v242_v11  ;;  %v80_v10 = vld [vmem:[%s4079_s2 + $0x2] sm:$0x1] }
  0x9b   :  { %3225 = vpow2.f32 %v303_v13  ;;  %v272_v16 = vsub.f32 %v240_v14, %v240_v14  ;;  %v134_v17 = vpop.xlane.xlu1 %133  ;;  %v130_v20 = vpop.xlane.xlu0 %129 }
  0x9c   :  { %v309_v18 = vmul.f32 1.442695, %v274_v15  ;;  %v244_v19 = vmul.f32 0.35355338, %v134_v17  ;;  %v243_v22 = vmul.f32 0.35355338, %v130_v20 }
  0x9d   :  { %v305_v21 = vmul.f32 1.442695, %v272_v16 }
  0x9e   :  { %3227 = vpow2.f32 %v309_v18  ;;  %v276_v23 = vsub.f32 %v244_v19, %v244_v19  ;;  %v275_v24 = vsub.f32 %v243_v22, %v243_v22 }
  0x9f   :  { %3229 = vpow2.f32 %v305_v21  ;;  %v142_v25 = vpop.xlane.xlu1 %141  ;;  %v138_v28 = vpop.xlane.xlu0 %137 }
  0xa0   :  { %v313_v26 = vmul.f32 1.442695, %v276_v23  ;;  %v246_v27 = vmul.f32 0.35355338, %v142_v25  ;;  %v311_v29 = vmul.f32 1.442695, %v275_v24 }
  0xa1   :  { %v245_v30 = vmul.f32 0.35355338, %v138_v28  ;;  %v81_v25 = vld [vmem:[%s4079_s2 + $0x3] sm:$0x1]  ;;  %v82_v28 = vld [vmem:[%s4079_s2 + $0x4] sm:$0x1] }
  0xa2   :  { %3231 = vpow2.f32 %v313_v26  ;;  %v278_v31 = vsub.f32 %v246_v27, %v246_v27 }
  0xa3   :  { %3233 = vpow2.f32 %v311_v29  ;;  %v277_v32 = vsub.f32 %v245_v30, %v245_v30  ;;  %v150_v33 = vpop.xlane.xlu1 %149  ;;  %v146_v37 = vpop.xlane.xlu0 %145 }
  0xa4   :  { %v3613_v34 = vpop.eup %3223  ;;  %v317_v35 = vmul.f32 1.442695, %v278_v31  ;;  %v248_v36 = vmul.f32 0.35355338, %v150_v33  ;;  %v247_v40 = vmul.f32 0.35355338, %v146_v37 }
  0xa5   :  { %v3226_v38 = vpop.eup %3225  ;;  %3235 = vrcp.f32 %v3613_v34  ;;  %v315_v39 = vmul.f32 1.442695, %v277_v32 }
  0xa6   :  { %3237 = vrcp.f32 %v3226_v38  ;;  %v280_v41 = vsub.f32 %v248_v36, %v248_v36  ;;  %v279_v42 = vsub.f32 %v247_v40, %v247_v40 }
  0xa7   :  { %3239 = vpow2.f32 %v317_v35  ;;  %v158_v43 = vpop.xlane.xlu1 %157  ;;  %v154_v48 = vpop.xlane.xlu0 %153 }
  0xa8   :  { %v3616_v45 = vpop.eup %3227  ;;  %3241 = vpow2.f32 %v315_v39  ;;  %v321_v46 = vmul.f32 1.442695, %v280_v41  ;;  %v250_v47 = vmul.f32 0.35355338, %v158_v43  ;;  %v319_v50 = vmul.f32 1.442695, %v279_v42 }
  0xa9   :  { %v3230_v49 = vpop.eup %3229  ;;  %3243 = vrcp.f32 %v3616_v45  ;;  %v249_v51 = vmul.f32 0.35355338, %v154_v48  ;;  %v83_v41 = vld [vmem:[%s4079_s2 + $0x5] sm:$0x1] }
  0xaa   :  { %3245 = vrcp.f32 %v3230_v49  ;;  %v282_v52 = vsub.f32 %v250_v47, %v250_v47 }
  0xab   :  { %3247 = vpow2.f32 %v321_v46  ;;  %v281_v53 = vsub.f32 %v249_v51, %v249_v51  ;;  %v166_v54 = vpop.xlane.xlu1 %165  ;;  %v162_v58 = vpop.xlane.xlu0 %161 }
  0xac   :  { %v3619_v55 = vpop.eup %3231  ;;  %3249 = vpow2.f32 %v319_v50  ;;  %v325_v56 = vmul.f32 1.442695, %v282_v52  ;;  %v252_v57 = vmul.f32 0.35355338, %v166_v54  ;;  %v251_v61 = vmul.f32 0.35355338, %v162_v58 }
  0xad   :  { %v3621_v59 = vpop.eup %3233  ;;  %3251 = vrcp.f32 %v3619_v55  ;;  %v323_v60 = vmul.f32 1.442695, %v281_v53 }
  0xae   :  { %3253 = vrcp.f32 %v3621_v59  ;;  %v284_v62 = vsub.f32 %v252_v57, %v252_v57  ;;  %v283_v0 = vsub.f32 %v251_v61, %v251_v61  ;;  %v85_v57 = vld [vmem:[%s4079_s2 + $0x7] sm:$0x1]  ;;  %v86_v61 = vld [vmem:[%s4079_s2 + $0x8] sm:$0x1] }
  0xaf   :  { %v3236_v63 = vpop.eup %3235  ;;  %3255 = vpow2.f32 %v325_v56  ;;  %v174_v1 = vpop.xlane.xlu1 %173 }
  0xb0   :  { %v3238_v2 = vpop.eup %3237  ;;  %3257 = vpow2.f32 %v323_v60  ;;  %v329_v3 = vmul.f32 1.442695, %v284_v62  ;;  %v254_v4 = vmul.f32 0.35355338, %v174_v1  ;;  %v170_v5 = vpop.xlane.xlu0 %169  ;;  %v327_v7 = vmul.f32 1.442695, %v283_v0 }
  0xb1   :  { %v3625_v6 = vpop.eup %3239  ;;  %v253_v8 = vmul.f32 0.35355338, %v170_v5  ;;  %v431_v9 = vmul.f32 %v3238_v2, %v3226_v38  ;;  %v433_v20 = vmul.f32 %v3236_v63, %v3613_v34 }
  0xb2   :  { %v3630_v11 = vpop.eup %3241  ;;  %3259 = vrcp.f32 %v3625_v6  ;;  %v286_v12 = vsub.f32 %v254_v4, %v254_v4 }
  0xb3   :  { %v3244_v13 = vpop.eup %3243  ;;  %3261 = vrcp.f32 %v3630_v11  ;;  %v285_v14 = vsub.f32 %v253_v8, %v253_v8  ;;  %3064 = vmatmul.mubr.msk.f32.vlgmr.msra.gmra.mrb[0].mxu0 %vm463_vm3, %v431_v9  ;;  %v182_v15 = vpop.xlane.xlu1 %181  ;;  %v87_v9 = vld [vmem:[%s4079_s2 + $0x9] sm:$0x1] }
  0xb4   :  { %v3246_v16 = vpop.eup %3245  ;;  %3263 = vpow2.f32 %v329_v3  ;;  %v333_v17 = vmul.f32 1.442695, %v286_v12  ;;  %v256_v18 = vmul.f32 0.35355338, %v182_v15  ;;  %v178_v19 = vpop.xlane.xlu0 %177  ;;  %3072 = vmatpush3.msk.msra.mxu0 %vm467_vm1, %v80_v10  ;;  %3073 = vmatprep.mubr.msk.f32.mxu0 %vm3352_vm2, %v3351_v44  ;;  %v434_v36 = vmul.f32 %v3244_v13, %v3616_v45  ;;  %v84_v45 = vld [vmem:[%s4079_s2 + $0x6] sm:$0x1] }
  0xb5   :  { %v3639_v21 = vpop.eup %3247  ;;  %3265 = vpow2.f32 %v327_v7  ;;  %v331_v22 = vmul.f32 1.442695, %v285_v14  ;;  %v255_v23 = vmul.f32 0.35355338, %v178_v19  ;;  %v432_v24 = vmul.f32 %v3246_v16, %v3230_v49  ;;  %3081 = vmatprep.subr.mxu0 %v3351_v44  ;;  %v88_v13 = vld [vmem:[%s4079_s2 + $0xa] sm:$0x1] }
  0xb6   :  { %v3645_v26 = vpop.eup %3249  ;;  %3267 = vrcp.f32 %v3639_v21  ;;  %v288_v27 = vsub.f32 %v256_v18, %v256_v18 }
  0xb7   :  { %v3252_v29 = vpop.eup %3251  ;;  %3269 = vrcp.f32 %v3645_v26  ;;  %v287_v30 = vsub.f32 %v255_v23, %v255_v23  ;;  %3069 = vmatmul.mubr.msk.f32.vlgmr.msra.gmra.mrb[0].mxu1 %vm463_vm3, %v432_v24  ;;  %3074 = vmatmul.mubr.msk.f32.vlgmr.msra.gmra.mrb[2].mxu0 %vm463_vm3, %v433_v20  ;;  %v190_v31 = vpop.xlane.xlu1 %189  ;;  %v89_v24 = vld [vmem:[%s4079_s2 + $0xb] sm:$0x1] }
  0xb8   :  { %v3254_v32 = vpop.eup %3253  ;;  %3271 = vpow2.f32 %v333_v17  ;;  %v337_v33 = vmul.f32 1.442695, %v288_v27  ;;  %3077 = vmatpush3.msk.msra.mxu1 %vm467_vm1, %v81_v25  ;;  %v258_v34 = vmul.f32 0.35355338, %v190_v31  ;;  %v186_v35 = vpop.xlane.xlu0 %185  ;;  %3078 = vmatprep.mubr.msk.f32.mxu1 %vm3352_vm2, %v3351_v44  ;;  %v436_v56 = vmul.f32 %v3252_v29, %v3619_v55 }
  0xb9   :  { %v3658_v37 = vpop.eup %3255  ;;  %3273 = vpow2.f32 %v331_v22  ;;  %v335_v38 = vmul.f32 1.442695, %v287_v30  ;;  %v257_v39 = vmul.f32 0.35355338, %v186_v35  ;;  %3082 = vmatpush3.msk.msra.mxu0 %vm467_vm1, %v82_v28  ;;  %3083 = vmatprep.mubr.msk.f32.mxu0 %vm3352_vm2, %v3351_v44  ;;  %v435_v40 = vmul.f32 %v3254_v32, %v3621_v59 }
  0xba   :  { %v3667_v42 = vpop.eup %3257  ;;  %3275 = vrcp.f32 %v3658_v37  ;;  %v290_v43 = vsub.f32 %v258_v34, %v258_v34  ;;  %3086 = vmatprep.subr.mxu1 %v3351_v44  ;;  %3091 = vmatprep.subr.mxu0 %v3351_v44 }
  0xbb   :  { %3277 = vrcp.f32 %v3667_v42  ;;  %v289_v46 = vsub.f32 %v257_v39, %v257_v39  ;;  %3079 = vmatmul.mubr.msk.f32.vlgmr.msra.gmra.mrb[2].mxu1 %vm463_vm3, %v434_v36  ;;  %3084 = vmatmul.mubr.msk.f32.vlgmr.msra.gmra.mrb[4].mxu0 %vm463_vm3, %v435_v40  ;;  %v198_v47 = vpop.xlane.xlu1 %197  ;;  %v91_v40 = vld [vmem:[%s4079_s2 + $0xd] sm:$0x1] }
  0xbc   :  { %v3260_v48 = vpop.eup %3259  ;;  %3279 = vpow2.f32 %v337_v33  ;;  %v341_v49 = vmul.f32 1.442695, %v290_v43  ;;  %3087 = vmatpush3.msk.msra.mxu1 %vm467_vm1, %v83_v41  ;;  %v260_v50 = vmul.f32 0.35355338, %v198_v47  ;;  %v194_v51 = vpop.xlane.xlu0 %193  ;;  %3088 = vmatprep.mubr.msk.f32.mxu1 %vm3352_vm2, %v3351_v44 }
  0xbd   :  { %v3262_v52 = vpop.eup %3261  ;;  %3281 = vpow2.f32 %v335_v38  ;;  %v339_v53 = vmul.f32 1.442695, %v289_v46  ;;  %v259_v54 = vmul.f32 0.35355338, %v194_v51  ;;  %3092 = vmatpush3.msk.msra.mxu0 %vm467_vm1, %v84_v45  ;;  %3093 = vmatprep.mubr.msk.f32.mxu0 %vm3352_vm2, %v3351_v44  ;;  %v438_v8 = vmul.f32 %v3260_v48, %v3625_v6  ;;  %v92_v48 = vld [vmem:[%s4079_s2 + $0xe] sm:$0x1] }
  0xbe   :  { %v3688_v58 = vpop.eup %3263  ;;  %3283 = vpow2.f32 %v341_v49  ;;  %v292_v59 = vsub.f32 %v260_v50, %v260_v50  ;;  %3096 = vmatprep.subr.mxu1 %v3351_v44  ;;  %v437_v60 = vmul.f32 %v3262_v52, %v3630_v11  ;;  %3101 = vmatprep.subr.mxu0 %v3351_v44 }
  0xbf   :  { %v3696_v62 = vpop.eup %3265  ;;  %3285 = vrcp.f32 %v3688_v58  ;;  %v291_v55 = vsub.f32 %v259_v54, %v259_v54  ;;  %3089 = vmatmul.mubr.msk.f32.vlgmr.msra.gmra.mrb[4].mxu1 %vm463_vm3, %v436_v56  ;;  %v206_v63 = vpop.xlane.xlu1 %205 }
  0xc0   :  { %v3268_v0 = vpop.eup %3267  ;;  %3287 = vrcp.f32 %v3696_v62  ;;  %v345_v1 = vmul.f32 1.442695, %v292_v59  ;;  %3094 = vmatmul.mubr.msk.f32.vlgmr.msra.gmra.mrb[6].mxu0 %vm463_vm3, %v437_v60  ;;  %3097 = vmatpush3.msk.msra.mxu1 %vm467_vm1, %v85_v57  ;;  %v262_v2 = vmul.f32 0.35355338, %v206_v63  ;;  %v202_v3 = vpop.xlane.xlu0 %201  ;;  %v93_v57 = vld [vmem:[%s4079_s2 + $0xf] sm:$0x1] }
  0xc1   :  { %v3270_v4 = vpop.eup %3269  ;;  %3289 = vpow2.f32 %v339_v53  ;;  %v343_v5 = vmul.f32 1.442695, %v291_v55  ;;  %v261_v7 = vmul.f32 0.35355338, %v202_v3  ;;  %3098 = vmatprep.mubr.msk.f32.mxu1 %vm3352_vm2, %v3351_v44  ;;  %3102 = vmatpush3.msk.msra.mxu0 %vm467_vm1, %v86_v61  ;;  %v440_v23 = vmul.f32 %v3268_v0, %v3639_v21  ;;  %v90_v21 = vld [vmem:[%s4079_s2 + $0xc] sm:$0x1] }
  0xc2   :  { %v3710_v10 = vpop.eup %3271  ;;  %3291 = vpow2.f32 %v345_v1  ;;  %v294_v11 = vsub.f32 %v262_v2, %v262_v2  ;;  %3103 = vmatprep.mubr.msk.f32.mxu0 %vm3352_vm2, %v3351_v44  ;;  %3106 = vmatprep.subr.mxu1 %v3351_v44  ;;  %v439_v12 = vmul.f32 %v3270_v4, %v3645_v26  ;;  %v94_v0 = vld [vmem:[%s4079_s2 + $0x10] sm:$0x1] }
  0xc3   :  { %v3719_v6 = vpop.eup %3273  ;;  %3293 = vrcp.f32 %v3710_v10  ;;  %v293_v14 = vsub.f32 %v261_v7, %v261_v7  ;;  %3099 = vmatmul.mubr.msk.f32.vlgmr.msra.gmra.mrb[6].mxu1 %vm463_vm3, %v438_v8  ;;  %v214_v15 = vpop.xlane.xlu1 %213  ;;  %3111 = vmatprep.subr.mxu0 %v3351_v44 }
  0xc4   :  { %v3276_v16 = vpop.eup %3275  ;;  %3295 = vrcp.f32 %v3719_v6  ;;  %v349_v17 = vmul.f32 1.442695, %v294_v11  ;;  %3104 = vmatmul.mubr.msk.f32.vlgmr.msra.gmra.mrb[8].mxu0 %vm463_vm3, %v439_v12  ;;  %3107 = vmatpush3.msk.msra.mxu1 %vm467_vm1, %v87_v9  ;;  %v264_v18 = vmul.f32 0.35355338, %v214_v15  ;;  %v210_v19 = vpop.xlane.xlu0 %209  ;;  %v95_v11 = vld [vmem:[%s4079_s2 + $0x11] sm:$0x1] }
  0xc5   :  { %v3278_v20 = vpop.eup %3277  ;;  %3297 = vpow2.f32 %v343_v5  ;;  %v263_v22 = vmul.f32 0.35355338, %v210_v19  ;;  %3108 = vmatprep.mubr.msk.f32.mxu1 %vm3352_vm2, %v3351_v44  ;;  %3112 = vmatpush3.msk.msra.mxu0 %vm467_vm1, %v88_v13  ;;  %v347_v26 = vmul.f32 1.442695, %v293_v14  ;;  %v442_v39 = vmul.f32 %v3276_v16, %v3658_v37 }
  0xc6   :  { %v3734_v25 = vpop.eup %3279  ;;  %3299 = vpow2.f32 %v349_v17  ;;  %v296_v27 = vsub.f32 %v264_v18, %v264_v18  ;;  %3113 = vmatprep.mubr.msk.f32.mxu0 %vm3352_vm2, %v3351_v44  ;;  %3116 = vmatprep.subr.mxu1 %v3351_v44  ;;  %v441_v28 = vmul.f32 %v3278_v20, %v3667_v42 }
  0xc7   :  { %v3743_v29 = vpop.eup %3281  ;;  %3301 = vrcp.f32 %v3734_v25  ;;  %v295_v30 = vsub.f32 %v263_v22, %v263_v22  ;;  %3109 = vmatmul.mubr.msk.f32.vlgmr.msra.gmra.mrb[8].mxu1 %vm463_vm3, %v440_v23  ;;  %v222_v31 = vpop.xlane.xlu1 %221  ;;  %3121 = vmatprep.subr.mxu0 %v3351_v44  ;;  %v97_v22 = vld [vmem:[%s4079_s2 + $0x13] sm:$0x1] }
  0xc8   :  { %v3748_v32 = vpop.eup %3283  ;;  %3303 = vrcp.f32 %v3743_v29  ;;  %v353_v33 = vmul.f32 1.442695, %v296_v27  ;;  %3114 = vmatmul.mubr.msk.f32.vlgmr.msra.gmra.mrb[10].mxu0 %vm463_vm3, %v441_v28  ;;  %3117 = vmatpush3.msk.msra.mxu1 %vm467_vm1, %v89_v24  ;;  %v266_v34 = vmul.f32 0.35355338, %v222_v31  ;;  %v218_v35 = vpop.xlane.xlu0 %217 }
  0xc9   :  { %v3286_v36 = vpop.eup %3285  ;;  %3305 = vrcp.f32 %v3748_v32  ;;  %v265_v38 = vmul.f32 0.35355338, %v218_v35  ;;  %3118 = vmatprep.mubr.msk.f32.mxu1 %vm3352_vm2, %v3351_v44  ;;  %3122 = vmatpush3.msk.msra.mxu0 %vm467_vm1, %v90_v21  ;;  %v351_v42 = vmul.f32 1.442695, %v295_v30 }
  0xca   :  { %v3288_v41 = vpop.eup %3287  ;;  %3307 = vpow2.f32 %v347_v26  ;;  %v298_v43 = vsub.f32 %v266_v34, %v266_v34  ;;  %3123 = vmatprep.mubr.msk.f32.mxu0 %vm3352_vm2, %v3351_v44  ;;  %3126 = vmatprep.subr.mxu1 %v3351_v44  ;;  %v444_v56 = vmul.f32 %v3286_v36, %v3688_v58 }
  0xcb   :  { %v3764_v45 = vpop.eup %3289  ;;  %3309 = vpow2.f32 %v353_v33  ;;  %v297_v46 = vsub.f32 %v265_v38, %v265_v38  ;;  %3119 = vmatmul.mubr.msk.f32.vlgmr.msra.gmra.mrb[10].mxu1 %vm463_vm3, %v442_v39  ;;  %v443_v37 = vmul.f32 %v3288_v41, %v3696_v62  ;;  %v230_v47 = vpop.xlane.xlu1 %229  ;;  %3131 = vmatprep.subr.mxu0 %v3351_v44  ;;  %v101_v38 = vld [vmem:[%s4079_s2 + $0x17] sm:$0x1] }
  0xcc   :  { %v3772_v49 = vpop.eup %3291  ;;  %3311 = vrcp.f32 %v3764_v45  ;;  %v357_v50 = vmul.f32 1.442695, %v298_v43  ;;  %3127 = vmatpush3.msk.msra.mxu1 %vm467_vm1, %v91_v40  ;;  %v268_v51 = vmul.f32 0.35355338, %v230_v47  ;;  %v226_v52 = vpop.xlane.xlu0 %225  ;;  %3128 = vmatprep.mubr.msk.f32.mxu1 %vm3352_vm2, %v3351_v44  ;;  %v102_v43 = vld [vmem:[%s4079_s2 + $0x18] sm:$0x1] }
  0xcd   :  { %v3294_v53 = vpop.eup %3293  ;;  %3313 = vrcp.f32 %v3772_v49  ;;  %3124 = vmatmul.mubr.msk.f32.vlgmr.msra.gmra.mrb[12].mxu0 %vm463_vm3, %v443_v37  ;;  %v267_v54 = vmul.f32 0.35355338, %v226_v52  ;;  %3136 = vmatprep.subr.mxu1 %v3351_v44  ;;  %v355_v60 = vmul.f32 1.442695, %v297_v46  ;;  %v103_v47 = vld [vmem:[%s4079_s2 + $0x19] sm:$0x1] }
  0xce   :  { %v3296_v59 = vpop.eup %3295  ;;  %3315 = vpow2.f32 %v351_v42  ;;  %v300_v61 = vsub.f32 %v268_v51, %v268_v51  ;;  %3132 = vmatpush3.msk.msra.mxu0 %vm467_vm1, %v92_v48  ;;  %3133 = vmatprep.mubr.msk.f32.mxu0 %vm3352_vm2, %v3351_v44  ;;  %v446_v9 = vmul.f32 %v3294_v53, %v3710_v10  ;;  %v96_v10 = vld [vmem:[%s4079_s2 + $0x12] sm:$0x1]  ;;  %v105_v53 = vld [vmem:[%s4079_s2 + $0x1b] sm:$0x1] }
  0xcf   :  { %v3788_v62 = vpop.eup %3297  ;;  %3317 = vpow2.f32 %v357_v50  ;;  %v299_v55 = vsub.f32 %v267_v54, %v267_v54  ;;  %3129 = vmatmul.mubr.msk.f32.vlgmr.msra.gmra.mrb[12].mxu1 %vm463_vm3, %v444_v56  ;;  %v445_v58 = vmul.f32 %v3296_v59, %v3719_v6  ;;  %v238_v63 = vpop.xlane.xlu1 %237  ;;  %3141 = vmatprep.subr.mxu0 %v3351_v44  ;;  %v104_v50 = vld [vmem:[%s4079_s2 + $0x1a] sm:$0x1] }
  0xd0   :  { %v3796_v1 = vpop.eup %3299  ;;  %3319 = vrcp.f32 %v3788_v62  ;;  %v361_v2 = vmul.f32 1.442695, %v300_v61  ;;  %3137 = vmatpush3.msk.msra.mxu1 %vm467_vm1, %v93_v57  ;;  %v270_v3 = vmul.f32 0.35355338, %v238_v63  ;;  %v234_v4 = vpop.xlane.xlu0 %233  ;;  %3138 = vmatprep.mubr.msk.f32.mxu1 %vm3352_vm2, %v3351_v44  ;;  %v106_v57 = vld [vmem:[%s4079_s2 + $0x1c] sm:$0x1] }
  0xd1   :  { %v3302_v5 = vpop.eup %3301  ;;  %3321 = vrcp.f32 %v3796_v1  ;;  %v359_v7 = vmul.f32 1.442695, %v299_v55  ;;  %3134 = vmatmul.mubr.msk.f32.vlgmr.msra.gmra.mrb[14].mxu0 %vm463_vm3, %v445_v58  ;;  %v269_v8 = vmul.f32 0.35355338, %v234_v4  ;;  %3146 = vmatprep.subr.mxu1 %v3351_v44  ;;  %v108_v58 = vld [vmem:[%s4079_s2 + $0x1e] sm:$0x1] }
  0xd2   :  { %v3304_v12 = vpop.eup %3303  ;;  %3323 = vpow2.f32 %v355_v60  ;;  %v302_v13 = vsub.f32 %v270_v3, %v270_v3  ;;  %3142 = vmatpush3.msk.msra.mxu0 %vm467_vm1, %v94_v0  ;;  %3143 = vmatprep.mubr.msk.f32.mxu0 %vm3352_vm2, %v3351_v44  ;;  %v448_v20 = vmul.f32 %v3302_v5, %v3734_v25  ;;  %v98_v25 = vld [vmem:[%s4079_s2 + $0x14] sm:$0x1] }
  0xd3   :  { %v3306_v6 = vpop.eup %3305  ;;  %3325 = vpow2.f32 %v361_v2  ;;  %v301_v14 = vsub.f32 %v269_v8, %v269_v8  ;;  %3139 = vmatmul.mubr.msk.f32.vlgmr.msra.gmra.mrb[14].mxu1 %vm463_vm3, %v446_v9  ;;  %v447_v15 = vmul.f32 %v3304_v12, %v3743_v29  ;;  %3151 = vmatprep.subr.mxu0 %v3351_v44  ;;  %v99_v29 = vld [vmem:[%s4079_s2 + $0x15] sm:$0x1]  ;;  %v109_v2 = vld [vmem:[%s4079_s2 + $0x1f] sm:$0x1] }
  0xd4   :  { %v3308_v16 = vpop.eup %3307  ;;  %3327 = vpow2.f32 %v359_v7  ;;  %v365_v17 = vmul.f32 1.442695, %v302_v13  ;;  %3147 = vmatpush3.msk.msra.mxu1 %vm467_vm1, %v95_v11  ;;  %3148 = vmatprep.mubr.msk.f32.mxu1 %vm3352_vm2, %v3351_v44  ;;  %v450_v21 = vmul.f32 %v3306_v6, %v3748_v32  ;;  %v100_v32 = vld [vmem:[%s4079_s2 + $0x16] sm:$0x1] }
  0xd5   :  { %v3821_v18 = vpop.eup %3309  ;;  %3329 = vrcp.f32 %v3308_v16  ;;  %v363_v19 = vmul.f32 1.442695, %v301_v14  ;;  %3144 = vmatmul.mubr.msk.f32.vlgmr.msra.gmra.mrb[16].mxu0 %vm463_vm3, %v447_v15  ;;  %3156 = vmatprep.subr.mxu1 %v3351_v44 }
  0xd6   :  { %v3312_v23 = vpop.eup %3311  ;;  %3331 = vrcp.f32 %v3821_v18  ;;  %3152 = vmatpush3.msk.msra.mxu0 %vm467_vm1, %v96_v10  ;;  %3153 = vmatprep.mubr.msk.f32.mxu0 %vm3352_vm2, %v3351_v44 }
  0xd7   :  { %v3314_v24 = vpop.eup %3313  ;;  %3333 = vpow2.f32 %v365_v17  ;;  %3149 = vmatmul.mubr.msk.f32.vlgmr.msra.gmra.mrb[16].mxu1 %vm463_vm3, %v448_v20  ;;  %v449_v26 = vmul.f32 %v3312_v23, %v3764_v45  ;;  %3161 = vmatprep.subr.mxu0 %v3351_v44 }
  0xd8   :  { %v3316_v27 = vpop.eup %3315  ;;  %3335 = vpow2.f32 %v363_v19  ;;  %3157 = vmatpush3.msk.msra.mxu1 %vm467_vm1, %v97_v22  ;;  %3158 = vmatprep.mubr.msk.f32.mxu1 %vm3352_vm2, %v3351_v44  ;;  %v452_v36 = vmul.f32 %v3314_v24, %v3772_v49 }
  0xd9   :  { %v3842_v28 = vpop.eup %3317  ;;  %3337 = vrcp.f32 %v3316_v27  ;;  %3154 = vmatmul.mubr.msk.f32.vlgmr.msra.gmra.mrb[18].mxu0 %vm463_vm3, %v449_v26  ;;  %3166 = vmatprep.subr.mxu1 %v3351_v44 }
  0xda   :  { %v3320_v30 = vpop.eup %3319  ;;  %3162 = vmatpush3.msk.msra.mxu0 %vm467_vm1, %v98_v25  ;;  %3163 = vmatprep.mubr.msk.f32.mxu0 %vm3352_vm2, %v3351_v44  ;;  %3339 = vrcp.f32 %v3842_v28 }
  0xdb   :  { %v3322_v31 = vpop.eup %3321  ;;  %3159 = vmatmul.mubr.msk.f32.vlgmr.msra.gmra.mrb[18].mxu1 %vm463_vm3, %v450_v21  ;;  %v451_v33 = vmul.f32 %v3320_v30, %v3788_v62  ;;  %3171 = vmatprep.subr.mxu0 %v3351_v44  ;;  %v107_v62 = vld [vmem:[%s4079_s2 + $0x1d] sm:$0x1] }
  0xdc   :  { %v3324_v34 = vpop.eup %3323  ;;  %3167 = vmatpush3.msk.msra.mxu1 %vm467_vm1, %v99_v29  ;;  %3168 = vmatprep.mubr.msk.f32.mxu1 %vm3352_vm2, %v3351_v44  ;;  %v454_v37 = vmul.f32 %v3322_v31, %v3796_v1 }
  0xdd   :  { %v3863_v35 = vpop.eup %3325  ;;  %3341 = vrcp.f32 %v3324_v34  ;;  %3164 = vmatmul.mubr.msk.f32.vlgmr.msra.gmra.mrb[20].mxu0 %vm463_vm3, %v451_v33  ;;  %3176 = vmatprep.subr.mxu1 %v3351_v44 }
  0xde   :  { %v3328_v39 = vpop.eup %3327  ;;  %3172 = vmatpush3.msk.msra.mxu0 %vm467_vm1, %v100_v32  ;;  %3173 = vmatprep.mubr.msk.f32.mxu0 %vm3352_vm2, %v3351_v44 }
  0xdf   :  { %v3330_v40 = vpop.eup %3329  ;;  %3343 = vrcp.f32 %v3328_v39  ;;  %3169 = vmatmul.mubr.msk.f32.vlgmr.msra.gmra.mrb[20].mxu1 %vm463_vm3, %v452_v36  ;;  %3181 = vmatprep.subr.mxu0 %v3351_v44 }
  0xe0   :  { %v3332_v41 = vpop.eup %3331  ;;  %v453_v42 = vmul.f32 %v3330_v40, %v3308_v16  ;;  %3177 = vmatpush3.msk.msra.mxu1 %vm467_vm1, %v101_v38  ;;  %3178 = vmatprep.mubr.msk.f32.mxu1 %vm3352_vm2, %v3351_v44  ;;  %3345 = vrcp.f32 %v3863_v35 }
  0xe1   :  { %v3334_v45 = vpop.eup %3333  ;;  %3186 = vmatprep.subr.mxu1 %v3351_v44  ;;  %v456_v52 = vmul.f32 %v3332_v41, %v3821_v18 }
  0xe2   :  { %v3336_v46 = vpop.eup %3335  ;;  %3174 = vmatmul.mubr.msk.f32.vlgmr.msra.gmra.mrb[22].mxu0 %vm463_vm3, %v453_v42 }
  0xe3   :  { %v3338_v48 = vpop.eup %3337  ;;  %3347 = vrcp.f32 %v3336_v46  ;;  %3182 = vmatpush3.msk.msra.mxu0 %vm467_vm1, %v102_v43  ;;  %3183 = vmatprep.mubr.msk.f32.mxu0 %vm3352_vm2, %v3351_v44 }
  0xe4   :  { %3179 = vmatmul.mubr.msk.f32.vlgmr.msra.gmra.mrb[22].mxu1 %vm463_vm3, %v454_v37  ;;  %v455_v49 = vmul.f32 %v3338_v48, %v3316_v27  ;;  %3191 = vmatprep.subr.mxu0 %v3351_v44  ;;  %3349 = vrcp.f32 %v3334_v45  ;;  %v3340_v51 = vpop.eup %3339 }
  0xe5   :  { %3187 = vmatpush3.msk.msra.mxu1 %vm467_vm1, %v103_v47  ;;  %3188 = vmatprep.mubr.msk.f32.mxu1 %vm3352_vm2, %v3351_v44  ;;  %v458_v60 = vmul.f32 %v3340_v51, %v3842_v28 }
  0xe6   :  { %3184 = vmatmul.mubr.msk.f32.vlgmr.msra.gmra.mrb[24].mxu0 %vm463_vm3, %v455_v49  ;;  %3196 = vmatprep.subr.mxu1 %v3351_v44 }
  0xe7   :  { %v3342_v54 = vpop.eup %3341  ;;  %3192 = vmatpush3.msk.msra.mxu0 %vm467_vm1, %v104_v50  ;;  %3193 = vmatprep.mubr.msk.f32.mxu0 %vm3352_vm2, %v3351_v44 }
  0xe8   :  { %3189 = vmatmul.mubr.msk.f32.vlgmr.msra.gmra.mrb[24].mxu1 %vm463_vm3, %v456_v52  ;;  %v457_v56 = vmul.f32 %v3342_v54, %v3324_v34  ;;  %3201 = vmatprep.subr.mxu0 %v3351_v44 }
  0xe9   :  { %v3344_v59 = vpop.eup %3343  ;;  %3197 = vmatpush3.msk.msra.mxu1 %vm467_vm1, %v105_v53  ;;  %3198 = vmatprep.mubr.msk.f32.mxu1 %vm3352_vm2, %v3351_v44 }
  0xea   :  { %3194 = vmatmul.mubr.msk.f32.vlgmr.msra.gmra.mrb[26].mxu0 %vm463_vm3, %v457_v56  ;;  %3206 = vmatprep.subr.mxu1 %v3351_v44  ;;  %v459_v61 = vmul.f32 %v3344_v59, %v3328_v39  ;;  %v3346_v55 = vpop.eup %3345 }
  0xeb   :  { %3202 = vmatpush3.msk.msra.mxu0 %vm467_vm1, %v106_v57  ;;  %3203 = vmatprep.mubr.msk.f32.mxu0 %vm3352_vm2, %v3351_v44  ;;  %v460_v0 = vmul.f32 %v3346_v55, %v3863_v35 }
  0xec   :  { %3199 = vmatmul.mubr.msk.f32.vlgmr.msra.gmra.mrb[26].mxu1 %vm463_vm3, %v458_v60  ;;  %3211 = vmatprep.subr.mxu0 %v3351_v44 }
  0xed   :  { %v3348_v63 = vpop.eup %3347  ;;  %3207 = vmatpush3.msk.msra.mxu1 %vm467_vm1, %v107_v62  ;;  %3208 = vmatprep.mubr.msk.f32.mxu1 %vm3352_vm2, %v3351_v44 }
  0xee   :  { %3204 = vmatmul.mubr.msk.f32.vlgmr.msra.gmra.mrb[28].mxu0 %vm463_vm3, %v459_v61  ;;  %3216 = vmatprep.subr.mxu1 %v3351_v44  ;;  %v461_v1 = vmul.f32 %v3348_v63, %v3336_v46  ;;  %v3350_v3 = vpop.eup %3349 }
  0xef   :  { %3212 = vmatpush3.msk.msra.mxu0 %vm467_vm1, %v108_v58  ;;  %3213 = vmatprep.mubr.msk.f32.mxu0 %vm3352_vm2, %v3351_v44  ;;  %v462_v4 = vmul.f32 %v3350_v3, %v3334_v45 }
  0xf0   :  { %3209 = vmatmul.mubr.msk.f32.vlgmr.msra.gmra.mrb[28].mxu1 %vm463_vm3, %v460_v0 }
  0xf1   :  { %3217 = vmatpush3.msk.msra.mxu1 %vm467_vm1, %v109_v2  ;;  %3218 = vmatprep.mubr.msk.f32.mxu1 %vm3352_vm2, %v3351_v44 }
  0xf2   :  { %3214 = vmatmul.mubr.msk.f32.vlgmr.msra.gmra.mrb[30].mxu0 %vm463_vm3, %v461_v1 }
  0xf4   :  { %3219 = vmatmul.mubr.msk.f32.vlgmr.msra.gmra.mrb[30].mxu1 %vm463_vm3, %v462_v4 }
 0x186   :  { %v537_v5 = vpop.f32.mrb[0].mxu0 }
 0x187   :  { %2897 = vst.msk [vmem:[%s4080_s3] sm:$0x1] %vm111_vm0, %v537_v5  ;;  %v3065_v7 = vpop.f32.mrb[1].mxu0 }
 0x18a   :  { %v613_v8 = vpop.f32.mrb[0].mxu1  ;;  %v689_v9 = vpop.f32.mrb[2].mxu0 }
 0x18b   :  { %2898 = vst.msk [vmem:[%s4080_s3 + $0x1] sm:$0x1] %vm111_vm0, %v613_v8  ;;  %2899 = vst.msk [vmem:[%s4080_s3 + $0x2] sm:$0x1] %vm111_vm0, %v689_v9  ;;  %v3070_v44 = vpop.f32.mrb[1].mxu1  ;;  %v3075_v11 = vpop.f32.mrb[3].mxu0 }
 0x18e   :  { %v765_v12 = vpop.f32.mrb[2].mxu1  ;;  %v841_v13 = vpop.f32.mrb[4].mxu0 }
 0x18f   :  { %2900 = vst.msk [vmem:[%s4080_s3 + $0x3] sm:$0x1] %vm111_vm0, %v765_v12  ;;  %2901 = vst.msk [vmem:[%s4080_s3 + $0x4] sm:$0x1] %vm111_vm0, %v841_v13  ;;  %v3080_v6 = vpop.f32.mrb[3].mxu1  ;;  %v3085_v14 = vpop.f32.mrb[5].mxu0 }
 0x192   :  { %v917_v15 = vpop.f32.mrb[4].mxu1 }
 0x193   :  { %2902 = vst.msk [vmem:[%s4080_s3 + $0x5] sm:$0x1] %vm111_vm0, %v917_v15  ;;  %v993_v10 = vpop.f32.mrb[6].mxu0  ;;  %v3090_v16 = vpop.f32.mrb[5].mxu1 }
 0x194   :  { %2903 = vst.msk [vmem:[%s4080_s3 + $0x6] sm:$0x1] %vm111_vm0, %v993_v10  ;;  %v3095_v17 = vpop.f32.mrb[7].mxu0 }
 0x196   :  { %v1069_v18 = vpop.f32.mrb[6].mxu1 }
 0x197   :  { %2904 = vst.msk [vmem:[%s4080_s3 + $0x7] sm:$0x1] %vm111_vm0, %v1069_v18  ;;  %v1145_v19 = vpop.f32.mrb[8].mxu0  ;;  %v3100_v20 = vpop.f32.mrb[7].mxu1 }
 0x198   :  { %2905 = vst.msk [vmem:[%s4080_s3 + $0x8] sm:$0x1] %vm111_vm0, %v1145_v19  ;;  %v3105_v22 = vpop.f32.mrb[9].mxu0 }
 0x19a   :  { %v1221_v23 = vpop.f32.mrb[8].mxu1 }
 0x19b   :  { %2906 = vst.msk [vmem:[%s4080_s3 + $0x9] sm:$0x1] %vm111_vm0, %v1221_v23  ;;  %v1297_v24 = vpop.f32.mrb[10].mxu0  ;;  %v3110_v26 = vpop.f32.mrb[9].mxu1 }
 0x19c   :  { %2907 = vst.msk [vmem:[%s4080_s3 + $0xa] sm:$0x1] %vm111_vm0, %v1297_v24  ;;  %v3115_v25 = vpop.f32.mrb[11].mxu0 }
 0x19e   :  { %v1373_v27 = vpop.f32.mrb[10].mxu1 }
 0x19f   :  { %2908 = vst.msk [vmem:[%s4080_s3 + $0xb] sm:$0x1] %vm111_vm0, %v1373_v27  ;;  %v3120_v28 = vpop.f32.mrb[11].mxu1 }
 0x1a0   :  { %v1449_v21 = vpop.f32.mrb[12].mxu0 }
 0x1a1   :  { %2909 = vst.msk [vmem:[%s4080_s3 + $0xc] sm:$0x1] %vm111_vm0, %v1449_v21  ;;  %v3125_v29 = vpop.f32.mrb[13].mxu0 }
 0x1a2   :  { %v1525_v30 = vpop.f32.mrb[12].mxu1 }
 0x1a3   :  { %2910 = vst.msk [vmem:[%s4080_s3 + $0xd] sm:$0x1] %vm111_vm0, %v1525_v30  ;;  %v3130_v31 = vpop.f32.mrb[13].mxu1 }
 0x1a4   :  { %v1601_v33 = vpop.f32.mrb[14].mxu0 }
 0x1a5   :  { %2911 = vst.msk [vmem:[%s4080_s3 + $0xe] sm:$0x1] %vm111_vm0, %v1601_v33  ;;  %v3135_v32 = vpop.f32.mrb[15].mxu0 }
 0x1a6   :  { %v1677_v34 = vpop.f32.mrb[14].mxu1 }
 0x1a7   :  { %2912 = vst.msk [vmem:[%s4080_s3 + $0xf] sm:$0x1] %vm111_vm0, %v1677_v34  ;;  %v3140_v35 = vpop.f32.mrb[15].mxu1 }
 0x1a8   :  { %v1753_v36 = vpop.f32.mrb[16].mxu0 }
 0x1a9   :  { %2913 = vst.msk [vmem:[%s4080_s3 + $0x10] sm:$0x1] %vm111_vm0, %v1753_v36  ;;  %v3145_v38 = vpop.f32.mrb[17].mxu0 }
 0x1aa   :  { %v1829_v39 = vpop.f32.mrb[16].mxu1 }
 0x1ab   :  { %2914 = vst.msk [vmem:[%s4080_s3 + $0x11] sm:$0x1] %vm111_vm0, %v1829_v39  ;;  %v3150_v40 = vpop.f32.mrb[17].mxu1 }
 0x1ac   :  { %v1905_v41 = vpop.f32.mrb[18].mxu0 }
 0x1ad   :  { %2915 = vst.msk [vmem:[%s4080_s3 + $0x12] sm:$0x1] %vm111_vm0, %v1905_v41  ;;  %v3155_v42 = vpop.f32.mrb[19].mxu0 }
 0x1ae   :  { %v1981_v43 = vpop.f32.mrb[18].mxu1 }
 0x1af   :  { %2916 = vst.msk [vmem:[%s4080_s3 + $0x13] sm:$0x1] %vm111_vm0, %v1981_v43  ;;  %v3160_v45 = vpop.f32.mrb[19].mxu1 }
 0x1b0   :  { %v2057_v46 = vpop.f32.mrb[20].mxu0 }
 0x1b1   :  { %2917 = vst.msk [vmem:[%s4080_s3 + $0x14] sm:$0x1] %vm111_vm0, %v2057_v46  ;;  %v3165_v37 = vpop.f32.mrb[21].mxu0 }
 0x1b2   :  { %v2133_v47 = vpop.f32.mrb[20].mxu1 }
 0x1b3   :  { %2918 = vst.msk [vmem:[%s4080_s3 + $0x15] sm:$0x1] %vm111_vm0, %v2133_v47  ;;  %v3170_v48 = vpop.f32.mrb[21].mxu1 }
 0x1b5   :  { %v2209_v49 = vpop.f32.mrb[22].mxu0 }
 0x1b6   :  { %2919 = vst.msk [vmem:[%s4080_s3 + $0x16] sm:$0x1] %vm111_vm0, %v2209_v49  ;;  %v3175_v50 = vpop.f32.mrb[23].mxu0 }
 0x1b7   :  { %v2285_v51 = vpop.f32.mrb[22].mxu1 }
 0x1b8   :  { %2920 = vst.msk [vmem:[%s4080_s3 + $0x17] sm:$0x1] %vm111_vm0, %v2285_v51  ;;  %v3180_v52 = vpop.f32.mrb[23].mxu1 }
 0x1b9   :  { %v2361_v53 = vpop.f32.mrb[24].mxu0 }
 0x1ba   :  { %2921 = vst.msk [vmem:[%s4080_s3 + $0x18] sm:$0x1] %vm111_vm0, %v2361_v53  ;;  %v3185_v54 = vpop.f32.mrb[25].mxu0 }
 0x1bb   :  { %v2437_v56 = vpop.f32.mrb[24].mxu1 }
 0x1bc   :  { %2922 = vst.msk [vmem:[%s4080_s3 + $0x19] sm:$0x1] %vm111_vm0, %v2437_v56  ;;  %v3190_v57 = vpop.f32.mrb[25].mxu1 }
 0x1bd   :  { %v2513_v59 = vpop.f32.mrb[26].mxu0 }
 0x1be   :  { %2923 = vst.msk [vmem:[%s4080_s3 + $0x1a] sm:$0x1] %vm111_vm0, %v2513_v59  ;;  %v3195_v60 = vpop.f32.mrb[27].mxu0 }
 0x1bf   :  { %v2589_v61 = vpop.f32.mrb[26].mxu1 }
 0x1c0   :  { %2924 = vst.msk [vmem:[%s4080_s3 + $0x1b] sm:$0x1] %vm111_vm0, %v2589_v61  ;;  %v3200_v62 = vpop.f32.mrb[27].mxu1 }
 0x1c1   :  { %v2665_v55 = vpop.f32.mrb[28].mxu0 }
 0x1c2   :  { %2925 = vst.msk [vmem:[%s4080_s3 + $0x1c] sm:$0x1] %vm111_vm0, %v2665_v55  ;;  %v3205_v58 = vpop.f32.mrb[29].mxu0 }
 0x1c3   :  { %v2741_v63 = vpop.f32.mrb[28].mxu1 }
 0x1c4   :  { %2926 = vst.msk [vmem:[%s4080_s3 + $0x1d] sm:$0x1] %vm111_vm0, %v2741_v63  ;;  %v3210_v0 = vpop.f32.mrb[29].mxu1 }
 0x1c5   :  { %v2817_v1 = vpop.f32.mrb[30].mxu0 }
 0x1c6   :  { %2927 = vst.msk [vmem:[%s4080_s3 + $0x1e] sm:$0x1] %vm111_vm0, %v2817_v1  ;;  %v3215_v2 = vpop.f32.mrb[31].mxu0 }
 0x1c7   :  { %v2893_v3 = vpop.f32.mrb[30].mxu1 }
 0x1c8   :  { %2928 = vst.msk [vmem:[%s4080_s3 + $0x1f] sm:$0x1] %vm111_vm0, %v2893_v3  ;;  %v3220_v4 = vpop.f32.mrb[31].mxu1 }

// kernel: closed_call.174
= control target key start
LH: loop header
LB: loop body
LE: loop exit
PB: predicated region body
PF: predicated region fallthrough
CT: control target
= control target key end

     0   :  { %vm110_vm0 = vcmask 64512   ;;  %v6105_v0 = vmov 0.0   ;;  %vm6106_vm1 = vmmov 0   ;;  %vm2575_vm2 = vcmask 16384   ;;  %s7183_s1 = inlined_call_operand.vmem [shape: f32[32,3,8], index: 1, kind: input, shape index: {}]   ;;  %s7184_s0 = inlined_call_operand.vmem [shape: f32[32,1,8], index: 0, kind: input, shape index: {}]   ;;  %s7185_s2 = inlined_call_operand.vmem [shape: f32[32,3,8], index: 2, kind: input, shape index: {}]   ;;  %s7186_s3 = inlined_call_operand.vmem [shape: f32[32,1,8], index: 3, kind: output, shape index: {}]  }
   0x1   :  { %5655 = vmatprep.subr.mxu0 %v6105_v0  ;;  %v46_v1 = vld [vmem:[%s7183_s1] sm:$0x7]  ;;  %5657 = vmatprep.mubr.msk.f32.mxu0 %vm6106_vm1, %v6105_v0  ;;  %v47_v2 = vld [vmem:[%s7183_s1 + $0x4] sm:$0x7]  ;;  %v48_v4 = vld [vmem:[%s7183_s1 + $0x8] sm:$0x7] }
   0x2   :  { %5656 = vmatpush3.xpose.msk.msra.mxu0 %vm110_vm0, %v46_v1  ;;  %v14_v3 = vld [vmem:[%s7184_s0] sm:$0x1]  ;;  %5660 = vmatprep.subr.mxu1 %v6105_v0  ;;  %v15_v5 = vld [vmem:[%s7184_s0 + $0x1] sm:$0x1]  ;;  %v49_v6 = vld [vmem:[%s7183_s1 + $0xc] sm:$0x7] }
   0x3   :  { %5665 = vmatprep.subr.mxu0 %v6105_v0  ;;  %5661 = vmatpush3.xpose.msk.msra.mxu1 %vm110_vm0, %v47_v2  ;;  %v16_v7 = vld [vmem:[%s7184_s0 + $0x2] sm:$0x1]  ;;  %v50_v8 = vld [vmem:[%s7183_s1 + $0x10] sm:$0x7]  ;;  %v17_v9 = vld [vmem:[%s7184_s0 + $0x3] sm:$0x1] }
   0x4   :  { %5662 = vmatprep.mubr.msk.f32.mxu1 %vm6106_vm1, %v6105_v0  ;;  %5670 = vmatprep.subr.mxu1 %v6105_v0  ;;  %v51_v10 = vld [vmem:[%s7183_s1 + $0x14] sm:$0x7]  ;;  %v18_v11 = vld [vmem:[%s7184_s0 + $0x4] sm:$0x1]  ;;  %v52_v12 = vld [vmem:[%s7183_s1 + $0x18] sm:$0x7] }
   0x5   :  { %5658 = vmatmul.mubr.msk.f32.vlgmr.msra.gmra.mrb[0].mxu0 %vm110_vm0, %v14_v3  ;;  %v19_v13 = vld [vmem:[%s7184_s0 + $0x5] sm:$0x1]  ;;  %v53_v14 = vld [vmem:[%s7183_s1 + $0x1c] sm:$0x7]  ;;  %v20_v15 = vld [vmem:[%s7184_s0 + $0x6] sm:$0x1] }
   0x6   :  { %5666 = vmatpush3.xpose.msk.msra.mxu0 %vm110_vm0, %v48_v4  ;;  %5667 = vmatprep.mubr.msk.f32.mxu0 %vm6106_vm1, %v6105_v0  ;;  %v54_v16 = vld [vmem:[%s7183_s1 + $0x20] sm:$0x7]  ;;  %v21_v17 = vld [vmem:[%s7184_s0 + $0x7] sm:$0x1]  ;;  %v55_v18 = vld [vmem:[%s7183_s1 + $0x24] sm:$0x7] }
   0x7   :  { %5663 = vmatmul.mubr.msk.f32.vlgmr.msra.gmra.mrb[0].mxu1 %vm110_vm0, %v15_v5  ;;  %5675 = vmatprep.subr.mxu0 %v6105_v0  ;;  %v22_v19 = vld [vmem:[%s7184_s0 + $0x8] sm:$0x1]  ;;  %v23_v21 = vld [vmem:[%s7184_s0 + $0x9] sm:$0x1]  ;;  %v57_v22 = vld [vmem:[%s7183_s1 + $0x2c] sm:$0x7] }
   0x8   :  { %5671 = vmatpush3.xpose.msk.msra.mxu1 %vm110_vm0, %v49_v6  ;;  %5672 = vmatprep.mubr.msk.f32.mxu1 %vm6106_vm1, %v6105_v0  ;;  %v56_v20 = vld [vmem:[%s7183_s1 + $0x28] sm:$0x7]  ;;  %v58_v24 = vld [vmem:[%s7183_s1 + $0x30] sm:$0x7]  ;;  %v25_v25 = vld [vmem:[%s7184_s0 + $0xb] sm:$0x1] }
   0x9   :  { %5668 = vmatmul.mubr.msk.f32.vlgmr.msra.gmra.mrb[2].mxu0 %vm110_vm0, %v16_v7  ;;  %5680 = vmatprep.subr.mxu1 %v6105_v0  ;;  %v24_v23 = vld [vmem:[%s7184_s0 + $0xa] sm:$0x1]  ;;  %v59_v26 = vld [vmem:[%s7183_s1 + $0x34] sm:$0x7]  ;;  %v26_v27 = vld [vmem:[%s7184_s0 + $0xc] sm:$0x1] }
   0xa   :  { %5676 = vmatpush3.xpose.msk.msra.mxu0 %vm110_vm0, %v50_v8  ;;  %5677 = vmatprep.mubr.msk.f32.mxu0 %vm6106_vm1, %v6105_v0  ;;  %v60_v28 = vld [vmem:[%s7183_s1 + $0x38] sm:$0x7]  ;;  %v27_v29 = vld [vmem:[%s7184_s0 + $0xd] sm:$0x1]  ;;  %v61_v30 = vld [vmem:[%s7183_s1 + $0x3c] sm:$0x7] }
   0xb   :  { %5673 = vmatmul.mubr.msk.f32.vlgmr.msra.gmra.mrb[2].mxu1 %vm110_vm0, %v17_v9  ;;  %5685 = vmatprep.subr.mxu0 %v6105_v0  ;;  %v28_v31 = vld [vmem:[%s7184_s0 + $0xe] sm:$0x1]  ;;  %v62_v32 = vld [vmem:[%s7183_s1 + $0x40] sm:$0x7]  ;;  %v29_v33 = vld [vmem:[%s7184_s0 + $0xf] sm:$0x1] }
   0xc   :  { %5681 = vmatpush3.xpose.msk.msra.mxu1 %vm110_vm0, %v51_v10  ;;  %5682 = vmatprep.mubr.msk.f32.mxu1 %vm6106_vm1, %v6105_v0  ;;  %v63_v34 = vld [vmem:[%s7183_s1 + $0x44] sm:$0x7]  ;;  %v30_v35 = vld [vmem:[%s7184_s0 + $0x10] sm:$0x1]  ;;  %v64_v36 = vld [vmem:[%s7183_s1 + $0x48] sm:$0x7] }
   0xd   :  { %5678 = vmatmul.mubr.msk.f32.vlgmr.msra.gmra.mrb[4].mxu0 %vm110_vm0, %v18_v11  ;;  %5690 = vmatprep.subr.mxu1 %v6105_v0  ;;  %v31_v37 = vld [vmem:[%s7184_s0 + $0x11] sm:$0x1]  ;;  %v65_v38 = vld [vmem:[%s7183_s1 + $0x4c] sm:$0x7]  ;;  %v32_v39 = vld [vmem:[%s7184_s0 + $0x12] sm:$0x1] }
   0xe   :  { %5686 = vmatpush3.xpose.msk.msra.mxu0 %vm110_vm0, %v52_v12  ;;  %5687 = vmatprep.mubr.msk.f32.mxu0 %vm6106_vm1, %v6105_v0  ;;  %v66_v40 = vld [vmem:[%s7183_s1 + $0x50] sm:$0x7]  ;;  %v33_v41 = vld [vmem:[%s7184_s0 + $0x13] sm:$0x1]  ;;  %v67_v42 = vld [vmem:[%s7183_s1 + $0x54] sm:$0x7] }
   0xf   :  { %5683 = vmatmul.mubr.msk.f32.vlgmr.msra.gmra.mrb[4].mxu1 %vm110_vm0, %v19_v13  ;;  %5695 = vmatprep.subr.mxu0 %v6105_v0  ;;  %v34_v43 = vld [vmem:[%s7184_s0 + $0x14] sm:$0x1]  ;;  %v68_v44 = vld [vmem:[%s7183_s1 + $0x58] sm:$0x7]  ;;  %v35_v45 = vld [vmem:[%s7184_s0 + $0x15] sm:$0x1] }
  0x10   :  { %5691 = vmatpush3.xpose.msk.msra.mxu1 %vm110_vm0, %v53_v14  ;;  %5692 = vmatprep.mubr.msk.f32.mxu1 %vm6106_vm1, %v6105_v0  ;;  %v69_v46 = vld [vmem:[%s7183_s1 + $0x5c] sm:$0x7]  ;;  %v36_v47 = vld [vmem:[%s7184_s0 + $0x16] sm:$0x1]  ;;  %v70_v48 = vld [vmem:[%s7183_s1 + $0x60] sm:$0x7] }
  0x11   :  { %5688 = vmatmul.mubr.msk.f32.vlgmr.msra.gmra.mrb[6].mxu0 %vm110_vm0, %v20_v15  ;;  %5700 = vmatprep.subr.mxu1 %v6105_v0  ;;  %v37_v49 = vld [vmem:[%s7184_s0 + $0x17] sm:$0x1]  ;;  %v71_v50 = vld [vmem:[%s7183_s1 + $0x64] sm:$0x7]  ;;  %v38_v51 = vld [vmem:[%s7184_s0 + $0x18] sm:$0x1] }
  0x12   :  { %5696 = vmatpush3.xpose.msk.msra.mxu0 %vm110_vm0, %v54_v16  ;;  %5697 = vmatprep.mubr.msk.f32.mxu0 %vm6106_vm1, %v6105_v0  ;;  %v72_v52 = vld [vmem:[%s7183_s1 + $0x68] sm:$0x7]  ;;  %v39_v53 = vld [vmem:[%s7184_s0 + $0x19] sm:$0x1]  ;;  %v73_v54 = vld [vmem:[%s7183_s1 + $0x6c] sm:$0x7] }
  0x13   :  { %5693 = vmatmul.mubr.msk.f32.vlgmr.msra.gmra.mrb[6].mxu1 %vm110_vm0, %v21_v17  ;;  %5705 = vmatprep.subr.mxu0 %v6105_v0  ;;  %v40_v55 = vld [vmem:[%s7184_s0 + $0x1a] sm:$0x1]  ;;  %v74_v56 = vld [vmem:[%s7183_s1 + $0x70] sm:$0x7]  ;;  %v41_v57 = vld [vmem:[%s7184_s0 + $0x1b] sm:$0x1] }
  0x14   :  { %5701 = vmatpush3.xpose.msk.msra.mxu1 %vm110_vm0, %v55_v18  ;;  %5702 = vmatprep.mubr.msk.f32.mxu1 %vm6106_vm1, %v6105_v0  ;;  %v75_v58 = vld [vmem:[%s7183_s1 + $0x74] sm:$0x7]  ;;  %v42_v59 = vld [vmem:[%s7184_s0 + $0x1c] sm:$0x1]  ;;  %v76_v60 = vld [vmem:[%s7183_s1 + $0x78] sm:$0x7] }
  0x15   :  { %5698 = vmatmul.mubr.msk.f32.vlgmr.msra.gmra.mrb[8].mxu0 %vm110_vm0, %v22_v19  ;;  %5710 = vmatprep.subr.mxu1 %v6105_v0  ;;  %v43_v61 = vld [vmem:[%s7184_s0 + $0x1d] sm:$0x1]  ;;  %v44_v63 = vld [vmem:[%s7184_s0 + $0x1e] sm:$0x1]  ;;  %v45_v1 = vld [vmem:[%s7184_s0 + $0x1f] sm:$0x1] }
  0x16   :  { %5706 = vmatpush3.xpose.msk.msra.mxu0 %vm110_vm0, %v56_v20  ;;  %5707 = vmatprep.mubr.msk.f32.mxu0 %vm6106_vm1, %v6105_v0  ;;  %v77_v62 = vld [vmem:[%s7183_s1 + $0x7c] sm:$0x7]  ;;  %vm2932_vm3 = vcmask 1042432   ;;  %vm2928_vm4 = vcmask 23552   ;;  %vm5362_vm5 = vcmask 57344  }
  0x17   :  { %5703 = vmatmul.mubr.msk.f32.vlgmr.msra.gmra.mrb[8].mxu1 %vm110_vm0, %v23_v21  ;;  %5715 = vmatprep.subr.mxu0 %v6105_v0 }
  0x18   :  { %5711 = vmatpush3.xpose.msk.msra.mxu1 %vm110_vm0, %v57_v22  ;;  %5712 = vmatprep.mubr.msk.f32.mxu1 %vm6106_vm1, %v6105_v0 }
  0x19   :  { %5708 = vmatmul.mubr.msk.f32.vlgmr.msra.gmra.mrb[10].mxu0 %vm110_vm0, %v24_v23  ;;  %5720 = vmatprep.subr.mxu1 %v6105_v0 }
  0x1a   :  { %5716 = vmatpush3.xpose.msk.msra.mxu0 %vm110_vm0, %v58_v24  ;;  %5717 = vmatprep.mubr.msk.f32.mxu0 %vm6106_vm1, %v6105_v0 }
  0x1b   :  { %5713 = vmatmul.mubr.msk.f32.vlgmr.msra.gmra.mrb[10].mxu1 %vm110_vm0, %v25_v25  ;;  %5725 = vmatprep.subr.mxu0 %v6105_v0 }
  0x1c   :  { %5721 = vmatpush3.xpose.msk.msra.mxu1 %vm110_vm0, %v59_v26  ;;  %5722 = vmatprep.mubr.msk.f32.mxu1 %vm6106_vm1, %v6105_v0 }
  0x1d   :  { %5718 = vmatmul.mubr.msk.f32.vlgmr.msra.gmra.mrb[12].mxu0 %vm110_vm0, %v26_v27  ;;  %5730 = vmatprep.subr.mxu1 %v6105_v0 }
  0x1e   :  { %5726 = vmatpush3.xpose.msk.msra.mxu0 %vm110_vm0, %v60_v28  ;;  %5727 = vmatprep.mubr.msk.f32.mxu0 %vm6106_vm1, %v6105_v0 }
  0x1f   :  { %5723 = vmatmul.mubr.msk.f32.vlgmr.msra.gmra.mrb[12].mxu1 %vm110_vm0, %v27_v29  ;;  %5735 = vmatprep.subr.mxu0 %v6105_v0 }
  0x20   :  { %5731 = vmatpush3.xpose.msk.msra.mxu1 %vm110_vm0, %v61_v30  ;;  %5732 = vmatprep.mubr.msk.f32.mxu1 %vm6106_vm1, %v6105_v0 }
  0x21   :  { %5728 = vmatmul.mubr.msk.f32.vlgmr.msra.gmra.mrb[14].mxu0 %vm110_vm0, %v28_v31  ;;  %5740 = vmatprep.subr.mxu1 %v6105_v0 }
  0x22   :  { %5736 = vmatpush3.xpose.msk.msra.mxu0 %vm110_vm0, %v62_v32  ;;  %5737 = vmatprep.mubr.msk.f32.mxu0 %vm6106_vm1, %v6105_v0 }
  0x23   :  { %5733 = vmatmul.mubr.msk.f32.vlgmr.msra.gmra.mrb[14].mxu1 %vm110_vm0, %v29_v33  ;;  %5745 = vmatprep.subr.mxu0 %v6105_v0 }
  0x24   :  { %5741 = vmatpush3.xpose.msk.msra.mxu1 %vm110_vm0, %v63_v34  ;;  %5742 = vmatprep.mubr.msk.f32.mxu1 %vm6106_vm1, %v6105_v0 }
  0x25   :  { %5738 = vmatmul.mubr.msk.f32.vlgmr.msra.gmra.mrb[16].mxu0 %vm110_vm0, %v30_v35  ;;  %5750 = vmatprep.subr.mxu1 %v6105_v0 }
  0x26   :  { %5746 = vmatpush3.xpose.msk.msra.mxu0 %vm110_vm0, %v64_v36  ;;  %5747 = vmatprep.mubr.msk.f32.mxu0 %vm6106_vm1, %v6105_v0 }
  0x27   :  { %5743 = vmatmul.mubr.msk.f32.vlgmr.msra.gmra.mrb[16].mxu1 %vm110_vm0, %v31_v37  ;;  %5755 = vmatprep.subr.mxu0 %v6105_v0 }
  0x28   :  { %5751 = vmatpush3.xpose.msk.msra.mxu1 %vm110_vm0, %v65_v38  ;;  %5752 = vmatprep.mubr.msk.f32.mxu1 %vm6106_vm1, %v6105_v0 }
  0x29   :  { %5748 = vmatmul.mubr.msk.f32.vlgmr.msra.gmra.mrb[18].mxu0 %vm110_vm0, %v32_v39  ;;  %5760 = vmatprep.subr.mxu1 %v6105_v0 }
  0x2a   :  { %5756 = vmatpush3.xpose.msk.msra.mxu0 %vm110_vm0, %v66_v40  ;;  %5757 = vmatprep.mubr.msk.f32.mxu0 %vm6106_vm1, %v6105_v0 }
  0x2b   :  { %5753 = vmatmul.mubr.msk.f32.vlgmr.msra.gmra.mrb[18].mxu1 %vm110_vm0, %v33_v41  ;;  %5765 = vmatprep.subr.mxu0 %v6105_v0 }
  0x2c   :  { %5761 = vmatpush3.xpose.msk.msra.mxu1 %vm110_vm0, %v67_v42  ;;  %5762 = vmatprep.mubr.msk.f32.mxu1 %vm6106_vm1, %v6105_v0 }
  0x2d   :  { %5758 = vmatmul.mubr.msk.f32.vlgmr.msra.gmra.mrb[20].mxu0 %vm110_vm0, %v34_v43  ;;  %5770 = vmatprep.subr.mxu1 %v6105_v0 }
  0x2e   :  { %5766 = vmatpush3.xpose.msk.msra.mxu0 %vm110_vm0, %v68_v44  ;;  %5767 = vmatprep.mubr.msk.f32.mxu0 %vm6106_vm1, %v6105_v0 }
  0x2f   :  { %5763 = vmatmul.mubr.msk.f32.vlgmr.msra.gmra.mrb[20].mxu1 %vm110_vm0, %v35_v45  ;;  %5775 = vmatprep.subr.mxu0 %v6105_v0 }
  0x30   :  { %5771 = vmatpush3.xpose.msk.msra.mxu1 %vm110_vm0, %v69_v46  ;;  %5772 = vmatprep.mubr.msk.f32.mxu1 %vm6106_vm1, %v6105_v0 }
  0x31   :  { %5768 = vmatmul.mubr.msk.f32.vlgmr.msra.gmra.mrb[22].mxu0 %vm110_vm0, %v36_v47  ;;  %5780 = vmatprep.subr.mxu1 %v6105_v0 }
  0x32   :  { %5776 = vmatpush3.xpose.msk.msra.mxu0 %vm110_vm0, %v70_v48  ;;  %5777 = vmatprep.mubr.msk.f32.mxu0 %vm6106_vm1, %v6105_v0 }
  0x33   :  { %5773 = vmatmul.mubr.msk.f32.vlgmr.msra.gmra.mrb[22].mxu1 %vm110_vm0, %v37_v49  ;;  %5785 = vmatprep.subr.mxu0 %v6105_v0 }
  0x34   :  { %5781 = vmatpush3.xpose.msk.msra.mxu1 %vm110_vm0, %v71_v50  ;;  %5782 = vmatprep.mubr.msk.f32.mxu1 %vm6106_vm1, %v6105_v0 }
  0x35   :  { %5778 = vmatmul.mubr.msk.f32.vlgmr.msra.gmra.mrb[24].mxu0 %vm110_vm0, %v38_v51  ;;  %5790 = vmatprep.subr.mxu1 %v6105_v0 }
  0x36   :  { %5786 = vmatpush3.xpose.msk.msra.mxu0 %vm110_vm0, %v72_v52  ;;  %5787 = vmatprep.mubr.msk.f32.mxu0 %vm6106_vm1, %v6105_v0 }
  0x37   :  { %5783 = vmatmul.mubr.msk.f32.vlgmr.msra.gmra.mrb[24].mxu1 %vm110_vm0, %v39_v53  ;;  %5795 = vmatprep.subr.mxu0 %v6105_v0 }
  0x38   :  { %5791 = vmatpush3.xpose.msk.msra.mxu1 %vm110_vm0, %v73_v54  ;;  %5792 = vmatprep.mubr.msk.f32.mxu1 %vm6106_vm1, %v6105_v0 }
  0x39   :  { %5788 = vmatmul.mubr.msk.f32.vlgmr.msra.gmra.mrb[26].mxu0 %vm110_vm0, %v40_v55  ;;  %5800 = vmatprep.subr.mxu1 %v6105_v0 }
  0x3a   :  { %5796 = vmatpush3.xpose.msk.msra.mxu0 %vm110_vm0, %v74_v56  ;;  %5797 = vmatprep.mubr.msk.f32.mxu0 %vm6106_vm1, %v6105_v0 }
  0x3b   :  { %5793 = vmatmul.mubr.msk.f32.vlgmr.msra.gmra.mrb[26].mxu1 %vm110_vm0, %v41_v57  ;;  %5805 = vmatprep.subr.mxu0 %v6105_v0 }
  0x3c   :  { %5801 = vmatpush3.xpose.msk.msra.mxu1 %vm110_vm0, %v75_v58  ;;  %5802 = vmatprep.mubr.msk.f32.mxu1 %vm6106_vm1, %v6105_v0 }
  0x3d   :  { %5798 = vmatmul.mubr.msk.f32.vlgmr.msra.gmra.mrb[28].mxu0 %vm110_vm0, %v42_v59  ;;  %5810 = vmatprep.subr.mxu1 %v6105_v0 }
  0x3e   :  { %5806 = vmatpush3.xpose.msk.msra.mxu0 %vm110_vm0, %v76_v60  ;;  %5807 = vmatprep.mubr.msk.f32.mxu0 %vm6106_vm1, %v6105_v0 }
  0x3f   :  { %5803 = vmatmul.mubr.msk.f32.vlgmr.msra.gmra.mrb[28].mxu1 %vm110_vm0, %v43_v61  ;;  %5815 = vmatprep.subr.mxu0 %v6105_v0 }
  0x40   :  { %5811 = vmatpush3.xpose.msk.msra.mxu1 %vm110_vm0, %v77_v62  ;;  %5812 = vmatprep.mubr.msk.f32.mxu1 %vm6106_vm1, %v6105_v0 }
  0x41   :  { %5808 = vmatmul.mubr.msk.f32.vlgmr.msra.gmra.mrb[30].mxu0 %vm110_vm0, %v44_v63  ;;  %5820 = vmatprep.subr.mxu1 %v6105_v0 }
  0x42   :  { %5817 = vmatprep.mubr.msk.f32.mxu0 %vm6106_vm1, %v6105_v0 }
  0x43   :  { %5813 = vmatmul.mubr.msk.f32.vlgmr.msra.gmra.mrb[30].mxu1 %vm110_vm0, %v45_v1 }
  0x44   :  { %5822 = vmatprep.mubr.msk.f32.mxu1 %vm6106_vm1, %v6105_v0 }
  0xd8   :  { %v183_v2 = vpop.f32.mrb[0].mxu0 }
  0xd9   :  { %v6485_v3 = vmul.f32 0.35355338, %v183_v2  ;;  %v5659_v4 = vpop.f32.mrb[1].mxu0 }
  0xda   :  { %v259_v5 = vpop.f32.mrb[0].mxu1 }
  0xdb   :  { %v6487_v6 = vmul.f32 0.35355338, %v259_v5  ;;  %v2576_v7 = vsel %vm2575_vm2, %v6485_v3, -inf  ;;  %v5664_v8 = vpop.f32.mrb[1].mxu1 }
  0xdc   :  { %2577 = vmax.xlane.f32.xlu0 %v2576_v7  ;;  %v335_v9 = vpop.f32.mrb[2].mxu0 }
  0xdd   :  { %v6491_v10 = vmul.f32 0.35355338, %v335_v9  ;;  %v5669_v11 = vpop.f32.mrb[3].mxu0  ;;  %v2579_v12 = vsel %vm2575_vm2, %v6487_v6, -inf }
  0xde   :  { %v411_v13 = vpop.f32.mrb[2].mxu1 }
  0xdf   :  { %v6495_v14 = vmul.f32 0.35355338, %v411_v13  ;;  %v2582_v15 = vsel %vm2575_vm2, %v6491_v10, -inf  ;;  %v5674_v16 = vpop.f32.mrb[3].mxu1 }
  0xe0   :  { %2580 = vmax.xlane.f32.xlu0 %v2579_v12  ;;  %2583 = vmax.xlane.f32.xlu1 %v2582_v15  ;;  %v487_v17 = vpop.f32.mrb[4].mxu0 }
  0xe1   :  { %v6499_v18 = vmul.f32 0.35355338, %v487_v17  ;;  %v5679_v19 = vpop.f32.mrb[5].mxu0  ;;  %v2585_v20 = vsel %vm2575_vm2, %v6495_v14, -inf }
  0xe2   :  { %v563_v21 = vpop.f32.mrb[4].mxu1 }
  0xe3   :  { %v6503_v22 = vmul.f32 0.35355338, %v563_v21  ;;  %v2588_v23 = vsel %vm2575_vm2, %v6499_v18, -inf  ;;  %v5684_v24 = vpop.f32.mrb[5].mxu1 }
  0xe4   :  { %2586 = vmax.xlane.f32.xlu1 %v2585_v20  ;;  %2589 = vmax.xlane.f32.xlu0 %v2588_v23  ;;  %v639_v25 = vpop.f32.mrb[6].mxu0 }
  0xe5   :  { %v6507_v26 = vmul.f32 0.35355338, %v639_v25  ;;  %v5689_v27 = vpop.f32.mrb[7].mxu0  ;;  %v2591_v28 = vsel %vm2575_vm2, %v6503_v22, -inf }
  0xe6   :  { %v715_v29 = vpop.f32.mrb[6].mxu1 }
  0xe7   :  { %v6511_v30 = vmul.f32 0.35355338, %v715_v29  ;;  %v2594_v31 = vsel %vm2575_vm2, %v6507_v26, -inf  ;;  %v5694_v32 = vpop.f32.mrb[7].mxu1 }
  0xe8   :  { %2592 = vmax.xlane.f32.xlu1 %v2591_v28  ;;  %2595 = vmax.xlane.f32.xlu0 %v2594_v31  ;;  %v791_v33 = vpop.f32.mrb[8].mxu0 }
  0xe9   :  { %v6515_v34 = vmul.f32 0.35355338, %v791_v33  ;;  %v5699_v35 = vpop.f32.mrb[9].mxu0  ;;  %v2597_v36 = vsel %vm2575_vm2, %v6511_v30, -inf }
  0xea   :  { %v867_v37 = vpop.f32.mrb[8].mxu1 }
  0xeb   :  { %v6519_v38 = vmul.f32 0.35355338, %v867_v37  ;;  %v2600_v39 = vsel %vm2575_vm2, %v6515_v34, -inf  ;;  %v5704_v40 = vpop.f32.mrb[9].mxu1 }
  0xec   :  { %2598 = vmax.xlane.f32.xlu1 %v2597_v36  ;;  %2601 = vmax.xlane.f32.xlu0 %v2600_v39  ;;  %v943_v41 = vpop.f32.mrb[10].mxu0 }
  0xed   :  { %v6523_v42 = vmul.f32 0.35355338, %v943_v41  ;;  %v5709_v43 = vpop.f32.mrb[11].mxu0  ;;  %v2603_v44 = vsel %vm2575_vm2, %v6519_v38, -inf }
  0xee   :  { %v1019_v45 = vpop.f32.mrb[10].mxu1 }
  0xef   :  { %v6527_v46 = vmul.f32 0.35355338, %v1019_v45  ;;  %v2606_v47 = vsel %vm2575_vm2, %v6523_v42, -inf  ;;  %v5714_v48 = vpop.f32.mrb[11].mxu1 }
  0xf0   :  { %2604 = vmax.xlane.f32.xlu1 %v2603_v44  ;;  %2607 = vmax.xlane.f32.xlu0 %v2606_v47  ;;  %v1095_v49 = vpop.f32.mrb[12].mxu0 }
  0xf1   :  { %v6531_v50 = vmul.f32 0.35355338, %v1095_v49  ;;  %v5719_v51 = vpop.f32.mrb[13].mxu0  ;;  %v2609_v52 = vsel %vm2575_vm2, %v6527_v46, -inf }
  0xf2   :  { %v1171_v53 = vpop.f32.mrb[12].mxu1 }
  0xf3   :  { %v6535_v54 = vmul.f32 0.35355338, %v1171_v53  ;;  %v2612_v55 = vsel %vm2575_vm2, %v6531_v50, -inf  ;;  %v5724_v56 = vpop.f32.mrb[13].mxu1 }
  0xf4   :  { %2610 = vmax.xlane.f32.xlu1 %v2609_v52  ;;  %2613 = vmax.xlane.f32.xlu0 %v2612_v55  ;;  %v1247_v57 = vpop.f32.mrb[14].mxu0 }
  0xf5   :  { %v6539_v58 = vmul.f32 0.35355338, %v1247_v57  ;;  %v5729_v59 = vpop.f32.mrb[15].mxu0  ;;  %v2615_v60 = vsel %vm2575_vm2, %v6535_v54, -inf }
  0xf6   :  { %v1323_v61 = vpop.f32.mrb[14].mxu1 }
  0xf7   :  { %v6543_v62 = vmul.f32 0.35355338, %v1323_v61  ;;  %v2618_v63 = vsel %vm2575_vm2, %v6539_v58, -inf  ;;  %v5734_v1 = vpop.f32.mrb[15].mxu1 }
  0xf8   :  { %2616 = vmax.xlane.f32.xlu1 %v2615_v60  ;;  %2619 = vmax.xlane.f32.xlu0 %v2618_v63  ;;  %v1399_v2 = vpop.f32.mrb[16].mxu0 }
  0xf9   :  { %v6547_v4 = vmul.f32 0.35355338, %v1399_v2  ;;  %v5739_v5 = vpop.f32.mrb[17].mxu0  ;;  %v2621_v7 = vsel %vm2575_vm2, %v6543_v62, -inf }
  0xfa   :  { %v1475_v8 = vpop.f32.mrb[16].mxu1 }
  0xfb   :  { %v6551_v9 = vmul.f32 0.35355338, %v1475_v8  ;;  %v2624_v11 = vsel %vm2575_vm2, %v6547_v4, -inf  ;;  %v5744_v12 = vpop.f32.mrb[17].mxu1 }
  0xfc   :  { %2622 = vmax.xlane.f32.xlu1 %v2621_v7  ;;  %2625 = vmax.xlane.f32.xlu0 %v2624_v11  ;;  %v1551_v13 = vpop.f32.mrb[18].mxu0 }
  0xfd   :  { %v6555_v15 = vmul.f32 0.35355338, %v1551_v13  ;;  %v5749_v16 = vpop.f32.mrb[19].mxu0  ;;  %v2627_v17 = vsel %vm2575_vm2, %v6551_v9, -inf }
  0xfe   :  { %v1627_v19 = vpop.f32.mrb[18].mxu1 }
  0xff   :  { %v6559_v20 = vmul.f32 0.35355338, %v1627_v19  ;;  %v2630_v21 = vsel %vm2575_vm2, %v6555_v15, -inf  ;;  %v5754_v23 = vpop.f32.mrb[19].mxu1 }
 0x100   :  { %2628 = vmax.xlane.f32.xlu1 %v2627_v17  ;;  %2631 = vmax.xlane.f32.xlu0 %v2630_v21  ;;  %v1703_v24 = vpop.f32.mrb[20].mxu0 }
 0x101   :  { %v6563_v25 = vmul.f32 0.35355338, %v1703_v24  ;;  %v5759_v27 = vpop.f32.mrb[21].mxu0  ;;  %v2633_v28 = vsel %vm2575_vm2, %v6559_v20, -inf }
 0x102   :  { %v1779_v29 = vpop.f32.mrb[20].mxu1 }
 0x103   :  { %v6567_v31 = vmul.f32 0.35355338, %v1779_v29  ;;  %v2636_v32 = vsel %vm2575_vm2, %v6563_v25, -inf  ;;  %v5764_v33 = vpop.f32.mrb[21].mxu1 }
 0x104   :  { %2634 = vmax.xlane.f32.xlu1 %v2633_v28  ;;  %2637 = vmax.xlane.f32.xlu0 %v2636_v32  ;;  %v1855_v35 = vpop.f32.mrb[22].mxu0 }
 0x105   :  { %v6571_v36 = vmul.f32 0.35355338, %v1855_v35  ;;  %v5769_v37 = vpop.f32.mrb[23].mxu0  ;;  %v2639_v39 = vsel %vm2575_vm2, %v6567_v31, -inf }
 0x106   :  { %v1931_v40 = vpop.f32.mrb[22].mxu1 }
 0x107   :  { %v6575_v41 = vmul.f32 0.35355338, %v1931_v40  ;;  %v2642_v43 = vsel %vm2575_vm2, %v6571_v36, -inf  ;;  %v5774_v44 = vpop.f32.mrb[23].mxu1 }
 0x108   :  { %2640 = vmax.xlane.f32.xlu1 %v2639_v39  ;;  %2643 = vmax.xlane.f32.xlu0 %v2642_v43  ;;  %v2007_v45 = vpop.f32.mrb[24].mxu0 }
 0x109   :  { %v6579_v47 = vmul.f32 0.35355338, %v2007_v45  ;;  %v5779_v48 = vpop.f32.mrb[25].mxu0  ;;  %v2645_v49 = vsel %vm2575_vm2, %v6575_v41, -inf }
 0x10a   :  { %v2083_v51 = vpop.f32.mrb[24].mxu1 }
 0x10b   :  { %v6583_v52 = vmul.f32 0.35355338, %v2083_v51  ;;  %v2648_v53 = vsel %vm2575_vm2, %v6579_v47, -inf  ;;  %v5784_v55 = vpop.f32.mrb[25].mxu1 }
 0x10c   :  { %2646 = vmax.xlane.f32.xlu1 %v2645_v49  ;;  %2649 = vmax.xlane.f32.xlu0 %v2648_v53  ;;  %v2159_v56 = vpop.f32.mrb[26].mxu0 }
 0x10d   :  { %v6587_v57 = vmul.f32 0.35355338, %v2159_v56  ;;  %v5789_v59 = vpop.f32.mrb[27].mxu0  ;;  %v2651_v60 = vsel %vm2575_vm2, %v6583_v52, -inf }
 0x10e   :  { %v2235_v61 = vpop.f32.mrb[26].mxu1 }
 0x10f   :  { %v6591_v63 = vmul.f32 0.35355338, %v2235_v61  ;;  %v2654_v1 = vsel %vm2575_vm2, %v6587_v57, -inf  ;;  %v5794_v2 = vpop.f32.mrb[27].mxu1 }
 0x110   :  { %2652 = vmax.xlane.f32.xlu1 %v2651_v60  ;;  %2655 = vmax.xlane.f32.xlu0 %v2654_v1  ;;  %v2311_v5 = vpop.f32.mrb[28].mxu0 }
 0x111   :  { %v6595_v7 = vmul.f32 0.35355338, %v2311_v5  ;;  %v5799_v8 = vpop.f32.mrb[29].mxu0  ;;  %v2657_v11 = vsel %vm2575_vm2, %v6591_v63, -inf }
 0x112   :  { %v2387_v12 = vpop.f32.mrb[28].mxu1 }
 0x113   :  { %v6599_v13 = vmul.f32 0.35355338, %v2387_v12  ;;  %v2660_v16 = vsel %vm2575_vm2, %v6595_v7, -inf  ;;  %v5804_v17 = vpop.f32.mrb[29].mxu1 }
 0x114   :  { %2658 = vmax.xlane.f32.xlu1 %v2657_v11  ;;  %2661 = vmax.xlane.f32.xlu0 %v2660_v16  ;;  %v2463_v19 = vpop.f32.mrb[30].mxu0 }
 0x115   :  { %v6603_v21 = vmul.f32 0.35355338, %v2463_v19  ;;  %v2663_v23 = vsel %vm2575_vm2, %v6599_v13, -inf  ;;  %v5809_v24 = vpop.f32.mrb[31].mxu0 }
 0x116   :  { %v2539_v27 = vpop.f32.mrb[30].mxu1 }
 0x117   :  { %v6607_v28 = vmul.f32 0.35355338, %v2539_v27  ;;  %v2666_v29 = vsel %vm2575_vm2, %v6603_v21, -inf  ;;  %v5814_v32 = vpop.f32.mrb[31].mxu1 }
 0x118   :  { %2664 = vmax.xlane.f32.xlu1 %v2663_v23  ;;  %2667 = vmax.xlane.f32.xlu0 %v2666_v29 }
 0x119   :  { %v2669_v33 = vsel %vm2575_vm2, %v6607_v28, -inf }
 0x11c   :  { %2670 = vmax.xlane.f32.xlu1 %v2669_v33 }
 0x169   :  { %v2578_v35 = vpop.xlane.xlu0 %2577 }
 0x16a   :  { %v2672_v37 = vsub.f32 %v6485_v3, %v2578_v35 }
 0x16c   :  { %v2704_v39 = vmul.f32 1.442695, %v2672_v37 }
 0x16d   :  { %v2581_v40 = vpop.xlane.xlu0 %2580  ;;  %v2584_v43 = vpop.xlane.xlu1 %2583 }
 0x16e   :  { %5977 = vpow2.f32 %v2704_v39  ;;  %v2673_v44 = vsub.f32 %v6487_v6, %v2581_v40  ;;  %v2674_v45 = vsub.f32 %v6491_v10, %v2584_v43 }
 0x170   :  { %v2706_v48 = vmul.f32 1.442695, %v2673_v44  ;;  %v2708_v49 = vmul.f32 1.442695, %v2674_v45 }
 0x171   :  { %v2587_v51 = vpop.xlane.xlu1 %2586  ;;  %v2590_v53 = vpop.xlane.xlu0 %2589 }
 0x172   :  { %5979 = vpow2.f32 %v2706_v48  ;;  %v2675_v55 = vsub.f32 %v6495_v14, %v2587_v51  ;;  %v2676_v56 = vsub.f32 %v6499_v18, %v2590_v53 }
 0x173   :  { %5981 = vpow2.f32 %v2708_v49 }
 0x174   :  { %v2710_v59 = vmul.f32 1.442695, %v2675_v55  ;;  %v2712_v3 = vmul.f32 1.442695, %v2676_v56 }
 0x175   :  { %v2593_v60 = vpop.xlane.xlu1 %2592  ;;  %v2596_v61 = vpop.xlane.xlu0 %2595 }
 0x176   :  { %5983 = vpow2.f32 %v2710_v59  ;;  %v2677_v1 = vsub.f32 %v6503_v22, %v2593_v60  ;;  %v2678_v6 = vsub.f32 %v6507_v26, %v2596_v61 }
 0x177   :  { %5985 = vpow2.f32 %v2712_v3 }
 0x178   :  { %v6620_v10 = vpop.eup %5977  ;;  %v2714_v2 = vmul.f32 1.442695, %v2677_v1  ;;  %v2716_v5 = vmul.f32 1.442695, %v2678_v6 }
 0x179   :  { %v2599_v8 = vpop.xlane.xlu1 %2598  ;;  %v2602_v11 = vpop.xlane.xlu0 %2601  ;;  %v2768_v14 = vsel %vm2575_vm2, %v6620_v10, 0.0 }
 0x17a   :  { %5987 = vpow2.f32 %v2714_v2  ;;  %v2679_v18 = vsub.f32 %v6511_v30, %v2599_v8  ;;  %v2680_v12 = vsub.f32 %v6515_v34, %v2602_v11  ;;  %2769 = vadd.xlane.f32.xlu0 %v2768_v14 }
 0x17b   :  { %5989 = vpow2.f32 %v2716_v5 }
 0x17c   :  { %v6626_v22 = vpop.eup %5979  ;;  %v2718_v26 = vmul.f32 1.442695, %v2679_v18  ;;  %v2720_v16 = vmul.f32 1.442695, %v2680_v12 }
 0x17d   :  { %v6628_v17 = vpop.eup %5981  ;;  %v2605_v19 = vpop.xlane.xlu1 %2604  ;;  %v2771_v24 = vsel %vm2575_vm2, %v6626_v22, 0.0 }
 0x17e   :  { %v2608_v23 = vpop.xlane.xlu0 %2607  ;;  %5991 = vpow2.f32 %v2718_v26  ;;  %v2681_v27 = vsub.f32 %v6519_v38, %v2605_v19  ;;  %2772 = vadd.xlane.f32.xlu1 %v2771_v24  ;;  %v2774_v34 = vsel %vm2575_vm2, %v6628_v17, 0.0 }
 0x17f   :  { %v2682_v30 = vsub.f32 %v6523_v42, %v2608_v23  ;;  %5993 = vpow2.f32 %v2720_v16  ;;  %2775 = vadd.xlane.f32.xlu0 %v2774_v34 }
 0x180   :  { %v6636_v29 = vpop.eup %5983  ;;  %v2722_v32 = vmul.f32 1.442695, %v2681_v27 }
 0x181   :  { %v2724_v33 = vmul.f32 1.442695, %v2682_v30  ;;  %v6638_v35 = vpop.eup %5985  ;;  %v2611_v37 = vpop.xlane.xlu1 %2610  ;;  %v2777_v40 = vsel %vm2575_vm2, %v6636_v29, 0.0 }
 0x182   :  { %v2614_v39 = vpop.xlane.xlu0 %2613  ;;  %5995 = vpow2.f32 %v2722_v32  ;;  %v2683_v38 = vsub.f32 %v6527_v46, %v2611_v37  ;;  %2778 = vadd.xlane.f32.xlu1 %v2777_v40  ;;  %v2780_v43 = vsel %vm2575_vm2, %v6638_v35, 0.0 }
 0x183   :  { %v2684_v42 = vsub.f32 %v6531_v50, %v2614_v39  ;;  %5997 = vpow2.f32 %v2724_v33  ;;  %2781 = vadd.xlane.f32.xlu0 %v2780_v43 }
 0x184   :  { %v6646_v44 = vpop.eup %5987  ;;  %v2726_v45 = vmul.f32 1.442695, %v2683_v38 }
 0x185   :  { %v2728_v48 = vmul.f32 1.442695, %v2684_v42  ;;  %v6648_v49 = vpop.eup %5989  ;;  %v2617_v51 = vpop.xlane.xlu1 %2616  ;;  %v2783_v55 = vsel %vm2575_vm2, %v6646_v44, 0.0  ;;  %v78_v42 = vld [vmem:[%s7185_s2] sm:$0x7] }
 0x186   :  { %v2620_v53 = vpop.xlane.xlu0 %2619  ;;  %5999 = vpow2.f32 %v2726_v45  ;;  %v2685_v46 = vsub.f32 %v6535_v54, %v2617_v51  ;;  %2784 = vadd.xlane.f32.xlu1 %v2783_v55  ;;  %v2786_v56 = vsel %vm2575_vm2, %v6648_v49, 0.0  ;;  %5816 = vmatpush3.msk.msra.mxu0 %vm2932_vm3, %v78_v42 }
 0x187   :  { %v2686_v50 = vsub.f32 %v6539_v58, %v2620_v53  ;;  %6001 = vpow2.f32 %v2728_v48  ;;  %2787 = vadd.xlane.f32.xlu0 %v2786_v56  ;;  %5825 = vmatprep.subr.mxu0 %v6105_v0 }
 0x188   :  { %v6656_v59 = vpop.eup %5991  ;;  %v2730_v3 = vmul.f32 1.442695, %v2685_v46 }
 0x189   :  { %v2732_v60 = vmul.f32 1.442695, %v2686_v50  ;;  %v6658_v61 = vpop.eup %5993  ;;  %v2623_v1 = vpop.xlane.xlu1 %2622  ;;  %v2789_v2 = vsel %vm2575_vm2, %v6656_v59, 0.0 }
 0x18a   :  { %v2626_v6 = vpop.xlane.xlu0 %2625  ;;  %6003 = vpow2.f32 %v2730_v3  ;;  %v2687_v54 = vsub.f32 %v6543_v62, %v2623_v1  ;;  %2790 = vadd.xlane.f32.xlu1 %v2789_v2  ;;  %v2792_v5 = vsel %vm2575_vm2, %v6658_v61, 0.0 }
 0x18b   :  { %v2688_v58 = vsub.f32 %v6547_v4, %v2626_v6  ;;  %6005 = vpow2.f32 %v2732_v60  ;;  %2793 = vadd.xlane.f32.xlu0 %v2792_v5 }
 0x18c   :  { %v6666_v8 = vpop.eup %5995  ;;  %v2734_v11 = vmul.f32 1.442695, %v2687_v54 }
 0x18d   :  { %v2736_v14 = vmul.f32 1.442695, %v2688_v58  ;;  %v6668_v18 = vpop.eup %5997  ;;  %v2629_v12 = vpop.xlane.xlu1 %2628  ;;  %v2795_v16 = vsel %vm2575_vm2, %v6666_v8, 0.0 }
 0x18e   :  { %v2632_v26 = vpop.xlane.xlu0 %2631  ;;  %6007 = vpow2.f32 %v2734_v11  ;;  %v2689_v62 = vsub.f32 %v6551_v9, %v2629_v12  ;;  %2796 = vadd.xlane.f32.xlu1 %v2795_v16  ;;  %v2798_v19 = vsel %vm2575_vm2, %v6668_v18, 0.0 }
 0x18f   :  { %v2690_v4 = vsub.f32 %v6555_v15, %v2632_v26  ;;  %6009 = vpow2.f32 %v2736_v14  ;;  %2799 = vadd.xlane.f32.xlu0 %v2798_v19 }
 0x190   :  { %v6676_v23 = vpop.eup %5999  ;;  %v2738_v24 = vmul.f32 1.442695, %v2689_v62 }
 0x191   :  { %v2740_v27 = vmul.f32 1.442695, %v2690_v4  ;;  %v6678_v30 = vpop.eup %6001  ;;  %v2635_v34 = vpop.xlane.xlu1 %2634  ;;  %v2801_v33 = vsel %vm2575_vm2, %v6676_v23, 0.0 }
 0x192   :  { %v2638_v32 = vpop.xlane.xlu0 %2637  ;;  %6011 = vpow2.f32 %v2738_v24  ;;  %v2691_v9 = vsub.f32 %v6559_v20, %v2635_v34  ;;  %2802 = vadd.xlane.f32.xlu1 %v2801_v33  ;;  %v2804_v37 = vsel %vm2575_vm2, %v6678_v30, 0.0 }
 0x193   :  { %v2692_v15 = vsub.f32 %v6563_v25, %v2638_v32  ;;  %6013 = vpow2.f32 %v2740_v27  ;;  %2805 = vadd.xlane.f32.xlu0 %v2804_v37 }
 0x194   :  { %v6686_v39 = vpop.eup %6003  ;;  %v2742_v40 = vmul.f32 1.442695, %v2691_v9 }
 0x195   :  { %v2744_v38 = vmul.f32 1.442695, %v2692_v15  ;;  %v6691_v43 = vpop.eup %6005  ;;  %v2641_v45 = vpop.xlane.xlu1 %2640  ;;  %v2807_v25 = vsel %vm2575_vm2, %v6686_v39, 0.0 }
 0x196   :  { %v2644_v20 = vpop.xlane.xlu0 %2643  ;;  %6015 = vpow2.f32 %v2742_v40  ;;  %v2693_v48 = vsub.f32 %v6567_v31, %v2641_v45  ;;  %2808 = vadd.xlane.f32.xlu1 %v2807_v25  ;;  %v2810_v53 = vsel %vm2575_vm2, %v6691_v43, 0.0  ;;  %v79_v31 = vld [vmem:[%s7185_s2 + $0x4] sm:$0x7] }
 0x197   :  { %v2694_v51 = vsub.f32 %v6571_v36, %v2644_v20  ;;  %6017 = vpow2.f32 %v2744_v38  ;;  %2811 = vadd.xlane.f32.xlu0 %v2810_v53  ;;  %5821 = vmatpush3.msk.msra.mxu1 %vm2932_vm3, %v79_v31 }
 0x198   :  { %v6701_v55 = vpop.eup %6007  ;;  %v2746_v46 = vmul.f32 1.442695, %v2693_v48  ;;  %5830 = vmatprep.subr.mxu1 %v6105_v0 }
 0x199   :  { %v2748_v50 = vmul.f32 1.442695, %v2694_v51  ;;  %v6706_v56 = vpop.eup %6009  ;;  %v2647_v36 = vpop.xlane.xlu1 %2646  ;;  %v2813_v60 = vsel %vm2575_vm2, %v6701_v55, 0.0 }
 0x19a   :  { %v2650_v3 = vpop.xlane.xlu0 %2649  ;;  %6019 = vpow2.f32 %v2746_v46  ;;  %v2695_v1 = vsub.f32 %v6575_v41, %v2647_v36  ;;  %2814 = vadd.xlane.f32.xlu1 %v2813_v60  ;;  %v2816_v2 = vsel %vm2575_vm2, %v6706_v56, 0.0 }
 0x19b   :  { %v2696_v6 = vsub.f32 %v6579_v47, %v2650_v3  ;;  %6021 = vpow2.f32 %v2748_v50  ;;  %2817 = vadd.xlane.f32.xlu0 %v2816_v2 }
 0x19c   :  { %v6716_v54 = vpop.eup %6011  ;;  %v2750_v58 = vmul.f32 1.442695, %v2695_v1 }
 0x19d   :  { %v2752_v5 = vmul.f32 1.442695, %v2696_v6  ;;  %v6718_v11 = vpop.eup %6013  ;;  %v2653_v14 = vpop.xlane.xlu1 %2652  ;;  %v2819_v41 = vsel %vm2575_vm2, %v6716_v54, 0.0 }
 0x19e   :  { %v2656_v12 = vpop.xlane.xlu0 %2655  ;;  %6023 = vpow2.f32 %v2750_v58  ;;  %v2697_v47 = vsub.f32 %v6583_v52, %v2653_v14  ;;  %2820 = vadd.xlane.f32.xlu1 %v2819_v41  ;;  %v2822_v16 = vsel %vm2575_vm2, %v6718_v11, 0.0 }
 0x19f   :  { %v2698_v26 = vsub.f32 %v6587_v57, %v2656_v12  ;;  %6025 = vpow2.f32 %v2752_v5  ;;  %2823 = vadd.xlane.f32.xlu0 %v2822_v16 }
 0x1a0   :  { %v6726_v62 = vpop.eup %6015  ;;  %v2754_v4 = vmul.f32 1.442695, %v2697_v47 }
 0x1a1   :  { %v2756_v19 = vmul.f32 1.442695, %v2698_v26  ;;  %v6728_v24 = vpop.eup %6017  ;;  %v2659_v27 = vpop.xlane.xlu1 %2658  ;;  %v2825_v32 = vsel %vm2575_vm2, %v6726_v62, 0.0 }
 0x1a2   :  { %v2662_v34 = vpop.xlane.xlu0 %2661  ;;  %6027 = vpow2.f32 %v2754_v4  ;;  %v2699_v52 = vsub.f32 %v6591_v63, %v2659_v27  ;;  %2826 = vadd.xlane.f32.xlu1 %v2825_v32  ;;  %v2828_v33 = vsel %vm2575_vm2, %v6728_v24, 0.0 }
 0x1a3   :  { %v2700_v57 = vsub.f32 %v6595_v7, %v2662_v34  ;;  %6029 = vpow2.f32 %v2756_v19  ;;  %2829 = vadd.xlane.f32.xlu0 %v2828_v33  ;;  %v80_v33 = vld [vmem:[%s7185_s2 + $0x8] sm:$0x7] }
 0x1a4   :  { %v6736_v9 = vpop.eup %6019  ;;  %v2758_v15 = vmul.f32 1.442695, %v2699_v52 }
 0x1a5   :  { %v2760_v37 = vmul.f32 1.442695, %v2700_v57  ;;  %v6738_v40 = vpop.eup %6021  ;;  %v2665_v38 = vpop.xlane.xlu1 %2664  ;;  %v2831_v45 = vsel %vm2575_vm2, %v6736_v9, 0.0 }
 0x1a6   :  { %v2668_v42 = vpop.xlane.xlu0 %2667  ;;  %6031 = vpow2.f32 %v2758_v15  ;;  %v2701_v63 = vsub.f32 %v6599_v13, %v2665_v38  ;;  %2832 = vadd.xlane.f32.xlu1 %v2831_v45  ;;  %v2834_v20 = vsel %vm2575_vm2, %v6738_v40, 0.0  ;;  %v81_v45 = vld [vmem:[%s7185_s2 + $0xc] sm:$0x7] }
 0x1a7   :  { %v2702_v7 = vsub.f32 %v6603_v21, %v2668_v42  ;;  %6033 = vpow2.f32 %v2760_v37  ;;  %2835 = vadd.xlane.f32.xlu0 %v2834_v20  ;;  %v82_v20 = vld [vmem:[%s7185_s2 + $0x10] sm:$0x7] }
 0x1a8   :  { %v6746_v25 = vpop.eup %6023  ;;  %v2762_v48 = vmul.f32 1.442695, %v2701_v63 }
 0x1a9   :  { %v2764_v51 = vmul.f32 1.442695, %v2702_v7  ;;  %v6748_v53 = vpop.eup %6025  ;;  %v2671_v46 = vpop.xlane.xlu1 %2670  ;;  %v2837_v50 = vsel %vm2575_vm2, %v6746_v25, 0.0 }
 0x1aa   :  { %6035 = vpow2.f32 %v2762_v48  ;;  %v2703_v13 = vsub.f32 %v6607_v28, %v2671_v46  ;;  %2838 = vadd.xlane.f32.xlu1 %v2837_v50  ;;  %v2840_v21 = vsel %vm2575_vm2, %v6748_v53, 0.0 }
 0x1ab   :  { %6037 = vpow2.f32 %v2764_v51  ;;  %2841 = vadd.xlane.f32.xlu0 %v2840_v21 }
 0x1ac   :  { %v6755_v31 = vpop.eup %6027  ;;  %v2766_v36 = vmul.f32 1.442695, %v2703_v13 }
 0x1ad   :  { %v6757_v3 = vpop.eup %6029  ;;  %v2843_v60 = vsel %vm2575_vm2, %v6755_v31, 0.0 }
 0x1ae   :  { %6039 = vpow2.f32 %v2766_v36  ;;  %2844 = vadd.xlane.f32.xlu1 %v2843_v60  ;;  %v2846_v1 = vsel %vm2575_vm2, %v6757_v3, 0.0 }
 0x1af   :  { %2847 = vadd.xlane.f32.xlu0 %v2846_v1  ;;  %v85_v1 = vld [vmem:[%s7185_s2 + $0x1c] sm:$0x7] }
 0x1b0   :  { %v6763_v28 = vpop.eup %6031 }
 0x1b1   :  { %v6765_v6 = vpop.eup %6033  ;;  %v2849_v2 = vsel %vm2575_vm2, %v6763_v28, 0.0 }
 0x1b2   :  { %2850 = vadd.xlane.f32.xlu1 %v2849_v2  ;;  %v2852_v58 = vsel %vm2575_vm2, %v6765_v6, 0.0 }
 0x1b3   :  { %2853 = vadd.xlane.f32.xlu0 %v2852_v58 }
 0x1b4   :  { %v6771_v5 = vpop.eup %6035 }
 0x1b5   :  { %v6773_v14 = vpop.eup %6037  ;;  %v2855_v12 = vsel %vm2575_vm2, %v6771_v5, 0.0 }
 0x1b6   :  { %2856 = vadd.xlane.f32.xlu1 %v2855_v12  ;;  %v2858_v41 = vsel %vm2575_vm2, %v6773_v14, 0.0 }
 0x1b7   :  { %2859 = vadd.xlane.f32.xlu0 %v2858_v41 }
 0x1b8   :  { %v6779_v47 = vpop.eup %6039 }
 0x1b9   :  { %v2861_v26 = vsel %vm2575_vm2, %v6779_v47, 0.0 }
 0x1ba   :  { %2862 = vadd.xlane.f32.xlu1 %v2861_v26 }
 0x207   :  { %v2770_v16 = vpop.xlane.xlu0 %2769 }
 0x208   :  { %6041 = vrcp.f32 %v2770_v16  ;;  %v87_v16 = vld [vmem:[%s7185_s2 + $0x24] sm:$0x7] }
 0x20b   :  { %v2773_v4 = vpop.xlane.xlu1 %2772 }
 0x20c   :  { %6043 = vrcp.f32 %v2773_v4  ;;  %v2776_v19 = vpop.xlane.xlu0 %2775 }
 0x20d   :  { %6045 = vrcp.f32 %v2776_v19 }
 0x20f   :  { %v2779_v27 = vpop.xlane.xlu1 %2778 }
 0x210   :  { %6047 = vrcp.f32 %v2779_v27  ;;  %v2782_v34 = vpop.xlane.xlu0 %2781 }
 0x211   :  { %6049 = vrcp.f32 %v2782_v34 }
 0x212   :  { %v6042_v32 = vpop.eup %6041 }
 0x213   :  { %v2896_v52 = vmul.f32 %v6042_v32, %v6620_v10  ;;  %v2785_v57 = vpop.xlane.xlu1 %2784 }
 0x214   :  { %6051 = vrcp.f32 %v2785_v57  ;;  %v2788_v15 = vpop.xlane.xlu0 %2787 }
 0x215   :  { %6053 = vrcp.f32 %v2788_v15  ;;  %5818 = vmatmul.mubr.msk.f32.vlgmr.msra.gmra.mrb[32].mxu0 %vm2928_vm4, %v2896_v52  ;;  %v89_v52 = vld [vmem:[%s7185_s2 + $0x2c] sm:$0x7] }
 0x216   :  { %v6044_v37 = vpop.eup %6043  ;;  %5826 = vmatpush3.msk.msra.mxu0 %vm2932_vm3, %v80_v33  ;;  %5827 = vmatprep.mubr.msk.f32.mxu0 %vm6106_vm1, %v6105_v0 }
 0x217   :  { %v6046_v38 = vpop.eup %6045  ;;  %v2897_v42 = vmul.f32 %v6044_v37, %v6626_v22  ;;  %v2791_v10 = vpop.xlane.xlu1 %2790  ;;  %5835 = vmatprep.subr.mxu0 %v6105_v0 }
 0x218   :  { %v2898_v63 = vmul.f32 %v6046_v38, %v6628_v17  ;;  %6055 = vrcp.f32 %v2791_v10  ;;  %v2794_v7 = vpop.xlane.xlu0 %2793  ;;  %v83_v17 = vld [vmem:[%s7185_s2 + $0x14] sm:$0x7] }
 0x219   :  { %6057 = vrcp.f32 %v2794_v7  ;;  %5823 = vmatmul.mubr.msk.f32.vlgmr.msra.gmra.mrb[32].mxu1 %vm2928_vm4, %v2897_v42  ;;  %v91_v42 = vld [vmem:[%s7185_s2 + $0x34] sm:$0x7] }
 0x21a   :  { %v6048_v48 = vpop.eup %6047  ;;  %5828 = vmatmul.mubr.msk.f32.vlgmr.msra.gmra.mrb[34].mxu0 %vm2928_vm4, %v2898_v63  ;;  %5831 = vmatpush3.msk.msra.mxu1 %vm2932_vm3, %v81_v45 }
 0x21b   :  { %v6050_v22 = vpop.eup %6049  ;;  %v2899_v51 = vmul.f32 %v6048_v48, %v6636_v29  ;;  %v2797_v46 = vpop.xlane.xlu1 %2796  ;;  %5832 = vmatprep.mubr.msk.f32.mxu1 %vm6106_vm1, %v6105_v0  ;;  %5836 = vmatpush3.msk.msra.mxu0 %vm2932_vm3, %v82_v20  ;;  %v84_v29 = vld [vmem:[%s7185_s2 + $0x18] sm:$0x7]  ;;  %v93_v48 = vld [vmem:[%s7185_s2 + $0x3c] sm:$0x7] }
 0x21c   :  { %v2900_v50 = vmul.f32 %v6050_v22, %v6638_v35  ;;  %6059 = vrcp.f32 %v2797_v46  ;;  %v2800_v13 = vpop.xlane.xlu0 %2799  ;;  %5837 = vmatprep.mubr.msk.f32.mxu0 %vm6106_vm1, %v6105_v0  ;;  %5840 = vmatprep.subr.mxu1 %v6105_v0 }
 0x21d   :  { %6061 = vrcp.f32 %v2800_v13  ;;  %5833 = vmatmul.mubr.msk.f32.vlgmr.msra.gmra.mrb[34].mxu1 %vm2928_vm4, %v2899_v51  ;;  %5845 = vmatprep.subr.mxu0 %v6105_v0  ;;  %v95_v13 = vld [vmem:[%s7185_s2 + $0x44] sm:$0x7] }
 0x21e   :  { %v6052_v21 = vpop.eup %6051  ;;  %5838 = vmatmul.mubr.msk.f32.vlgmr.msra.gmra.mrb[36].mxu0 %vm2928_vm4, %v2900_v50  ;;  %5841 = vmatpush3.msk.msra.mxu1 %vm2932_vm3, %v83_v17 }
 0x21f   :  { %v6054_v35 = vpop.eup %6053  ;;  %v2901_v36 = vmul.f32 %v6052_v21, %v6646_v44  ;;  %v2803_v60 = vpop.xlane.xlu1 %2802  ;;  %5842 = vmatprep.mubr.msk.f32.mxu1 %vm6106_vm1, %v6105_v0  ;;  %5846 = vmatpush3.msk.msra.mxu0 %vm2932_vm3, %v84_v29  ;;  %v86_v44 = vld [vmem:[%s7185_s2 + $0x20] sm:$0x7] }
 0x220   :  { %v2902_v2 = vmul.f32 %v6054_v35, %v6648_v49  ;;  %6063 = vrcp.f32 %v2803_v60  ;;  %v2806_v58 = vpop.xlane.xlu0 %2805  ;;  %5847 = vmatprep.mubr.msk.f32.mxu0 %vm6106_vm1, %v6105_v0  ;;  %5850 = vmatprep.subr.mxu1 %v6105_v0 }
 0x221   :  { %6065 = vrcp.f32 %v2806_v58  ;;  %5843 = vmatmul.mubr.msk.f32.vlgmr.msra.gmra.mrb[36].mxu1 %vm2928_vm4, %v2901_v36  ;;  %5855 = vmatprep.subr.mxu0 %v6105_v0 }
 0x222   :  { %v6056_v12 = vpop.eup %6055  ;;  %5848 = vmatmul.mubr.msk.f32.vlgmr.msra.gmra.mrb[38].mxu0 %vm2928_vm4, %v2902_v2  ;;  %5851 = vmatpush3.msk.msra.mxu1 %vm2932_vm3, %v85_v1  ;;  %v97_v1 = vld [vmem:[%s7185_s2 + $0x4c] sm:$0x7] }
 0x223   :  { %v6058_v49 = vpop.eup %6057  ;;  %v2903_v41 = vmul.f32 %v6056_v12, %v6656_v59  ;;  %v2809_v26 = vpop.xlane.xlu1 %2808  ;;  %5852 = vmatprep.mubr.msk.f32.mxu1 %vm6106_vm1, %v6105_v0  ;;  %5856 = vmatpush3.msk.msra.mxu0 %vm2932_vm3, %v86_v44  ;;  %v88_v59 = vld [vmem:[%s7185_s2 + $0x28] sm:$0x7] }
 0x224   :  { %v2904_v4 = vmul.f32 %v6058_v49, %v6658_v61  ;;  %6067 = vrcp.f32 %v2809_v26  ;;  %v2812_v19 = vpop.xlane.xlu0 %2811  ;;  %5857 = vmatprep.mubr.msk.f32.mxu0 %vm6106_vm1, %v6105_v0  ;;  %5860 = vmatprep.subr.mxu1 %v6105_v0 }
 0x225   :  { %6069 = vrcp.f32 %v2812_v19  ;;  %5853 = vmatmul.mubr.msk.f32.vlgmr.msra.gmra.mrb[38].mxu1 %vm2928_vm4, %v2903_v41  ;;  %5865 = vmatprep.subr.mxu0 %v6105_v0  ;;  %v99_v41 = vld [vmem:[%s7185_s2 + $0x54] sm:$0x7] }
 0x226   :  { %v6060_v27 = vpop.eup %6059  ;;  %5858 = vmatmul.mubr.msk.f32.vlgmr.msra.gmra.mrb[40].mxu0 %vm2928_vm4, %v2904_v4  ;;  %5861 = vmatpush3.msk.msra.mxu1 %vm2932_vm3, %v87_v16 }
 0x227   :  { %v6062_v61 = vpop.eup %6061  ;;  %v2905_v34 = vmul.f32 %v6060_v27, %v6666_v8  ;;  %v2815_v32 = vpop.xlane.xlu1 %2814  ;;  %5862 = vmatprep.mubr.msk.f32.mxu1 %vm6106_vm1, %v6105_v0  ;;  %5866 = vmatpush3.msk.msra.mxu0 %vm2932_vm3, %v88_v59  ;;  %v90_v8 = vld [vmem:[%s7185_s2 + $0x30] sm:$0x7]  ;;  %v101_v27 = vld [vmem:[%s7185_s2 + $0x5c] sm:$0x7] }
 0x228   :  { %v2906_v57 = vmul.f32 %v6062_v61, %v6668_v18  ;;  %6071 = vrcp.f32 %v2815_v32  ;;  %v2818_v33 = vpop.xlane.xlu0 %2817  ;;  %5867 = vmatprep.mubr.msk.f32.mxu0 %vm6106_vm1, %v6105_v0  ;;  %5870 = vmatprep.subr.mxu1 %v6105_v0 }
 0x229   :  { %6073 = vrcp.f32 %v2818_v33  ;;  %5863 = vmatmul.mubr.msk.f32.vlgmr.msra.gmra.mrb[40].mxu1 %vm2928_vm4, %v2905_v34  ;;  %5875 = vmatprep.subr.mxu0 %v6105_v0  ;;  %v103_v33 = vld [vmem:[%s7185_s2 + $0x64] sm:$0x7] }
 0x22a   :  { %v6064_v15 = vpop.eup %6063  ;;  %5868 = vmatmul.mubr.msk.f32.vlgmr.msra.gmra.mrb[42].mxu0 %vm2928_vm4, %v2906_v57  ;;  %5871 = vmatpush3.msk.msra.mxu1 %vm2932_vm3, %v89_v52 }
 0x22b   :  { %v6066_v18 = vpop.eup %6065  ;;  %v2907_v37 = vmul.f32 %v6064_v15, %v6676_v23  ;;  %v2821_v38 = vpop.xlane.xlu1 %2820  ;;  %5872 = vmatprep.mubr.msk.f32.mxu1 %vm6106_vm1, %v6105_v0  ;;  %5876 = vmatpush3.msk.msra.mxu0 %vm2932_vm3, %v90_v8  ;;  %v92_v23 = vld [vmem:[%s7185_s2 + $0x38] sm:$0x7] }
 0x22c   :  { %v2908_v10 = vmul.f32 %v6066_v18, %v6678_v30  ;;  %6075 = vrcp.f32 %v2821_v38  ;;  %v2824_v45 = vpop.xlane.xlu0 %2823  ;;  %5877 = vmatprep.mubr.msk.f32.mxu0 %vm6106_vm1, %v6105_v0  ;;  %5880 = vmatprep.subr.mxu1 %v6105_v0 }
 0x22d   :  { %6077 = vrcp.f32 %v2824_v45  ;;  %5873 = vmatmul.mubr.msk.f32.vlgmr.msra.gmra.mrb[42].mxu1 %vm2928_vm4, %v2907_v37  ;;  %5885 = vmatprep.subr.mxu0 %v6105_v0 }
 0x22e   :  { %v6068_v63 = vpop.eup %6067  ;;  %5878 = vmatmul.mubr.msk.f32.vlgmr.msra.gmra.mrb[44].mxu0 %vm2928_vm4, %v2908_v10  ;;  %5881 = vmatpush3.msk.msra.mxu1 %vm2932_vm3, %v91_v42  ;;  %v105_v42 = vld [vmem:[%s7185_s2 + $0x6c] sm:$0x7] }
 0x22f   :  { %v6070_v30 = vpop.eup %6069  ;;  %v2909_v7 = vmul.f32 %v6068_v63, %v6686_v39  ;;  %v2827_v20 = vpop.xlane.xlu1 %2826  ;;  %5882 = vmatprep.mubr.msk.f32.mxu1 %vm6106_vm1, %v6105_v0  ;;  %5886 = vmatpush3.msk.msra.mxu0 %vm2932_vm3, %v92_v23  ;;  %v94_v39 = vld [vmem:[%s7185_s2 + $0x40] sm:$0x7]  ;;  %v107_v63 = vld [vmem:[%s7185_s2 + $0x74] sm:$0x7] }
 0x230   :  { %v2910_v22 = vmul.f32 %v6070_v30, %v6691_v43  ;;  %6079 = vrcp.f32 %v2827_v20  ;;  %v2830_v51 = vpop.xlane.xlu0 %2829  ;;  %5887 = vmatprep.mubr.msk.f32.mxu0 %vm6106_vm1, %v6105_v0  ;;  %5890 = vmatprep.subr.mxu1 %v6105_v0 }
 0x231   :  { %6081 = vrcp.f32 %v2830_v51  ;;  %5883 = vmatmul.mubr.msk.f32.vlgmr.msra.gmra.mrb[44].mxu1 %vm2928_vm4, %v2909_v7  ;;  %5895 = vmatprep.subr.mxu0 %v6105_v0 }
 0x232   :  { %v6072_v46 = vpop.eup %6071  ;;  %5888 = vmatmul.mubr.msk.f32.vlgmr.msra.gmra.mrb[46].mxu0 %vm2928_vm4, %v2910_v22  ;;  %5891 = vmatpush3.msk.msra.mxu1 %vm2932_vm3, %v93_v48  ;;  %v109_v48 = vld [vmem:[%s7185_s2 + $0x7c] sm:$0x7] }
 0x233   :  { %v6074_v43 = vpop.eup %6073  ;;  %v2911_v17 = vmul.f32 %v6072_v46, %v6701_v55  ;;  %v2833_v50 = vpop.xlane.xlu1 %2832  ;;  %5892 = vmatprep.mubr.msk.f32.mxu1 %vm6106_vm1, %v6105_v0  ;;  %5896 = vmatpush3.msk.msra.mxu0 %vm2932_vm3, %v94_v39  ;;  %v96_v55 = vld [vmem:[%s7185_s2 + $0x48] sm:$0x7] }
 0x234   :  { %v2912_v29 = vmul.f32 %v6074_v43, %v6706_v56  ;;  %6083 = vrcp.f32 %v2833_v50  ;;  %v2836_v21 = vpop.xlane.xlu0 %2835  ;;  %5897 = vmatprep.mubr.msk.f32.mxu0 %vm6106_vm1, %v6105_v0  ;;  %5900 = vmatprep.subr.mxu1 %v6105_v0 }
 0x235   :  { %6085 = vrcp.f32 %v2836_v21  ;;  %5893 = vmatmul.mubr.msk.f32.vlgmr.msra.gmra.mrb[46].mxu1 %vm2928_vm4, %v2911_v17  ;;  %5905 = vmatprep.subr.mxu0 %v6105_v0 }
 0x236   :  { %v6076_v35 = vpop.eup %6075  ;;  %5898 = vmatmul.mubr.msk.f32.vlgmr.msra.gmra.mrb[48].mxu0 %vm2928_vm4, %v2912_v29  ;;  %5901 = vmatpush3.msk.msra.mxu1 %vm2932_vm3, %v95_v13 }
 0x237   :  { %v6078_v56 = vpop.eup %6077  ;;  %v2913_v36 = vmul.f32 %v6076_v35, %v6716_v54  ;;  %v2839_v60 = vpop.xlane.xlu1 %2838  ;;  %5902 = vmatprep.mubr.msk.f32.mxu1 %vm6106_vm1, %v6105_v0  ;;  %5906 = vmatpush3.msk.msra.mxu0 %vm2932_vm3, %v96_v55  ;;  %v98_v54 = vld [vmem:[%s7185_s2 + $0x50] sm:$0x7] }
 0x238   :  { %v2914_v2 = vmul.f32 %v6078_v56, %v6718_v11  ;;  %6087 = vrcp.f32 %v2839_v60  ;;  %v2842_v58 = vpop.xlane.xlu0 %2841  ;;  %5907 = vmatprep.mubr.msk.f32.mxu0 %vm6106_vm1, %v6105_v0  ;;  %5910 = vmatprep.subr.mxu1 %v6105_v0 }
 0x239   :  { %6089 = vrcp.f32 %v2842_v58  ;;  %5903 = vmatmul.mubr.msk.f32.vlgmr.msra.gmra.mrb[48].mxu1 %vm2928_vm4, %v2913_v36  ;;  %5915 = vmatprep.subr.mxu0 %v6105_v0 }
 0x23a   :  { %v6080_v44 = vpop.eup %6079  ;;  %5908 = vmatmul.mubr.msk.f32.vlgmr.msra.gmra.mrb[50].mxu0 %vm2928_vm4, %v2914_v2  ;;  %5911 = vmatpush3.msk.msra.mxu1 %vm2932_vm3, %v97_v1 }
 0x23b   :  { %v6082_v11 = vpop.eup %6081  ;;  %v2915_v12 = vmul.f32 %v6080_v44, %v6726_v62  ;;  %v2845_v49 = vpop.xlane.xlu1 %2844  ;;  %5912 = vmatprep.mubr.msk.f32.mxu1 %vm6106_vm1, %v6105_v0  ;;  %5916 = vmatpush3.msk.msra.mxu0 %vm2932_vm3, %v98_v54  ;;  %v100_v62 = vld [vmem:[%s7185_s2 + $0x58] sm:$0x7] }
 0x23c   :  { %v2916_v26 = vmul.f32 %v6082_v11, %v6728_v24  ;;  %6091 = vrcp.f32 %v2845_v49  ;;  %v2848_v16 = vpop.xlane.xlu0 %2847  ;;  %5917 = vmatprep.mubr.msk.f32.mxu0 %vm6106_vm1, %v6105_v0  ;;  %5920 = vmatprep.subr.mxu1 %v6105_v0 }
 0x23d   :  { %6093 = vrcp.f32 %v2848_v16  ;;  %5913 = vmatmul.mubr.msk.f32.vlgmr.msra.gmra.mrb[50].mxu1 %vm2928_vm4, %v2915_v12  ;;  %5925 = vmatprep.subr.mxu0 %v6105_v0 }
 0x23e   :  { %v6084_v4 = vpop.eup %6083  ;;  %5918 = vmatmul.mubr.msk.f32.vlgmr.msra.gmra.mrb[52].mxu0 %vm2928_vm4, %v2916_v26  ;;  %5921 = vmatpush3.msk.msra.mxu1 %vm2932_vm3, %v99_v41 }
 0x23f   :  { %v6086_v24 = vpop.eup %6085  ;;  %v2917_v19 = vmul.f32 %v6084_v4, %v6736_v9  ;;  %v2851_v59 = vpop.xlane.xlu1 %2850  ;;  %5922 = vmatprep.mubr.msk.f32.mxu1 %vm6106_vm1, %v6105_v0  ;;  %5926 = vmatpush3.msk.msra.mxu0 %vm2932_vm3, %v100_v62  ;;  %v102_v9 = vld [vmem:[%s7185_s2 + $0x60] sm:$0x7] }
 0x240   :  { %v2918_v61 = vmul.f32 %v6086_v24, %v6738_v40  ;;  %6095 = vrcp.f32 %v2851_v59  ;;  %v2854_v34 = vpop.xlane.xlu0 %2853  ;;  %5927 = vmatprep.mubr.msk.f32.mxu0 %vm6106_vm1, %v6105_v0  ;;  %5930 = vmatprep.subr.mxu1 %v6105_v0 }
 0x241   :  { %6097 = vrcp.f32 %v2854_v34  ;;  %5923 = vmatmul.mubr.msk.f32.vlgmr.msra.gmra.mrb[52].mxu1 %vm2928_vm4, %v2917_v19  ;;  %5935 = vmatprep.subr.mxu0 %v6105_v0 }
 0x242   :  { %v6088_v32 = vpop.eup %6087  ;;  %5928 = vmatmul.mubr.msk.f32.vlgmr.msra.gmra.mrb[54].mxu0 %vm2928_vm4, %v2918_v61  ;;  %5931 = vmatpush3.msk.msra.mxu1 %vm2932_vm3, %v101_v27 }
 0x243   :  { %v6090_v40 = vpop.eup %6089  ;;  %v2919_v52 = vmul.f32 %v6088_v32, %v6746_v25  ;;  %v2857_v57 = vpop.xlane.xlu1 %2856  ;;  %5932 = vmatprep.mubr.msk.f32.mxu1 %vm6106_vm1, %v6105_v0  ;;  %5936 = vmatpush3.msk.msra.mxu0 %vm2932_vm3, %v102_v9  ;;  %v104_v25 = vld [vmem:[%s7185_s2 + $0x68] sm:$0x7] }
 0x244   :  { %v2920_v8 = vmul.f32 %v6090_v40, %v6748_v53  ;;  %6099 = vrcp.f32 %v2857_v57  ;;  %v2860_v15 = vpop.xlane.xlu0 %2859  ;;  %5937 = vmatprep.mubr.msk.f32.mxu0 %vm6106_vm1, %v6105_v0  ;;  %5940 = vmatprep.subr.mxu1 %v6105_v0 }
 0x245   :  { %6101 = vrcp.f32 %v2860_v15  ;;  %5933 = vmatmul.mubr.msk.f32.vlgmr.msra.gmra.mrb[54].mxu1 %vm2928_vm4, %v2919_v52  ;;  %5945 = vmatprep.subr.mxu0 %v6105_v0 }
 0x246   :  { %v6092_v18 = vpop.eup %6091  ;;  %5938 = vmatmul.mubr.msk.f32.vlgmr.msra.gmra.mrb[56].mxu0 %vm2928_vm4, %v2920_v8  ;;  %5941 = vmatpush3.msk.msra.mxu1 %vm2932_vm3, %v103_v33 }
 0x247   :  { %v6094_v53 = vpop.eup %6093  ;;  %v2921_v37 = vmul.f32 %v6092_v18, %v6755_v31  ;;  %v2863_v38 = vpop.xlane.xlu1 %2862  ;;  %5942 = vmatprep.mubr.msk.f32.mxu1 %vm6106_vm1, %v6105_v0  ;;  %5946 = vmatpush3.msk.msra.mxu0 %vm2932_vm3, %v104_v25  ;;  %v106_v31 = vld [vmem:[%s7185_s2 + $0x70] sm:$0x7] }
 0x248   :  { %v2922_v10 = vmul.f32 %v6094_v53, %v6757_v3  ;;  %6103 = vrcp.f32 %v2863_v38  ;;  %5947 = vmatprep.mubr.msk.f32.mxu0 %vm6106_vm1, %v6105_v0  ;;  %5950 = vmatprep.subr.mxu1 %v6105_v0 }
 0x249   :  { %5943 = vmatmul.mubr.msk.f32.vlgmr.msra.gmra.mrb[56].mxu1 %vm2928_vm4, %v2921_v37  ;;  %5955 = vmatprep.subr.mxu0 %v6105_v0 }
 0x24a   :  { %v6096_v45 = vpop.eup %6095  ;;  %5948 = vmatmul.mubr.msk.f32.vlgmr.msra.gmra.mrb[58].mxu0 %vm2928_vm4, %v2922_v10  ;;  %5951 = vmatpush3.msk.msra.mxu1 %vm2932_vm3, %v105_v42 }
 0x24b   :  { %v6098_v3 = vpop.eup %6097  ;;  %v2923_v23 = vmul.f32 %v6096_v45, %v6763_v28  ;;  %5952 = vmatprep.mubr.msk.f32.mxu1 %vm6106_vm1, %v6105_v0  ;;  %5956 = vmatpush3.msk.msra.mxu0 %vm2932_vm3, %v106_v31  ;;  %v108_v28 = vld [vmem:[%s7185_s2 + $0x78] sm:$0x7] }
 0x24c   :  { %v2924_v30 = vmul.f32 %v6098_v3, %v6765_v6  ;;  %5957 = vmatprep.mubr.msk.f32.mxu0 %vm6106_vm1, %v6105_v0  ;;  %5960 = vmatprep.subr.mxu1 %v6105_v0 }
 0x24d   :  { %5953 = vmatmul.mubr.msk.f32.vlgmr.msra.gmra.mrb[58].mxu1 %vm2928_vm4, %v2923_v23  ;;  %5965 = vmatprep.subr.mxu0 %v6105_v0 }
 0x24e   :  { %v6100_v7 = vpop.eup %6099  ;;  %5958 = vmatmul.mubr.msk.f32.vlgmr.msra.gmra.mrb[60].mxu0 %vm2928_vm4, %v2924_v30  ;;  %5961 = vmatpush3.msk.msra.mxu1 %vm2932_vm3, %v107_v63 }
 0x24f   :  { %v6102_v20 = vpop.eup %6101  ;;  %v2925_v6 = vmul.f32 %v6100_v7, %v6771_v5  ;;  %5962 = vmatprep.mubr.msk.f32.mxu1 %vm6106_vm1, %v6105_v0  ;;  %5966 = vmatpush3.msk.msra.mxu0 %vm2932_vm3, %v108_v28 }
 0x250   :  { %v2926_v22 = vmul.f32 %v6102_v20, %v6773_v14  ;;  %5967 = vmatprep.mubr.msk.f32.mxu0 %vm6106_vm1, %v6105_v0  ;;  %5970 = vmatprep.subr.mxu1 %v6105_v0 }
 0x251   :  { %5963 = vmatmul.mubr.msk.f32.vlgmr.msra.gmra.mrb[60].mxu1 %vm2928_vm4, %v2925_v6 }
 0x252   :  { %v6104_v51 = vpop.eup %6103  ;;  %5968 = vmatmul.mubr.msk.f32.vlgmr.msra.gmra.mrb[62].mxu0 %vm2928_vm4, %v2926_v22  ;;  %5971 = vmatpush3.msk.msra.mxu1 %vm2932_vm3, %v109_v48 }
 0x253   :  { %v2927_v5 = vmul.f32 %v6104_v51, %v6779_v47  ;;  %5972 = vmatprep.mubr.msk.f32.mxu1 %vm6106_vm1, %v6105_v0 }
 0x255   :  { %5973 = vmatmul.mubr.msk.f32.vlgmr.msra.gmra.mrb[62].mxu1 %vm2928_vm4, %v2927_v5 }
 0x2e8   :  { %v3002_v14 = vpop.f32.mrb[32].mxu0 }
 0x2e9   :  { %5363 = vst.msk [vmem:[%s7186_s3] sm:$0x1] %vm5362_vm5, %v3002_v14  ;;  %v5819_v39 = vpop.f32.mrb[33].mxu0 }
 0x2ec   :  { %v3078_v46 = vpop.f32.mrb[32].mxu1 }
 0x2ed   :  { %5364 = vst.msk [vmem:[%s7186_s3 + $0x1] sm:$0x1] %vm5362_vm5, %v3078_v46  ;;  %v3154_v47 = vpop.f32.mrb[34].mxu0  ;;  %v5824_v43 = vpop.f32.mrb[33].mxu1 }
 0x2ee   :  { %5365 = vst.msk [vmem:[%s7186_s3 + $0x2] sm:$0x1] %vm5362_vm5, %v3154_v47  ;;  %v5829_v0 = vpop.f32.mrb[35].mxu0 }
 0x2f0   :  { %v3230_v17 = vpop.f32.mrb[34].mxu1 }
 0x2f1   :  { %5366 = vst.msk [vmem:[%s7186_s3 + $0x3] sm:$0x1] %vm5362_vm5, %v3230_v17  ;;  %v3306_v50 = vpop.f32.mrb[36].mxu0  ;;  %v5834_v13 = vpop.f32.mrb[35].mxu1 }
 0x2f2   :  { %5367 = vst.msk [vmem:[%s7186_s3 + $0x4] sm:$0x1] %vm5362_vm5, %v3306_v50  ;;  %v5839_v29 = vpop.f32.mrb[37].mxu0 }
 0x2f4   :  { %v3382_v21 = vpop.f32.mrb[36].mxu1 }
 0x2f5   :  { %5368 = vst.msk [vmem:[%s7186_s3 + $0x5] sm:$0x1] %vm5362_vm5, %v3382_v21  ;;  %v3458_v55 = vpop.f32.mrb[38].mxu0  ;;  %v5844_v35 = vpop.f32.mrb[37].mxu1 }
 0x2f6   :  { %5369 = vst.msk [vmem:[%s7186_s3 + $0x6] sm:$0x1] %vm5362_vm5, %v3458_v55  ;;  %v5849_v56 = vpop.f32.mrb[39].mxu0 }
 0x2f8   :  { %v3534_v36 = vpop.f32.mrb[38].mxu1 }
 0x2f9   :  { %5370 = vst.msk [vmem:[%s7186_s3 + $0x7] sm:$0x1] %vm5362_vm5, %v3534_v36  ;;  %v3610_v60 = vpop.f32.mrb[40].mxu0  ;;  %v5854_v1 = vpop.f32.mrb[39].mxu1 }
 0x2fa   :  { %5371 = vst.msk [vmem:[%s7186_s3 + $0x8] sm:$0x1] %vm5362_vm5, %v3610_v60  ;;  %v5859_v2 = vpop.f32.mrb[41].mxu0 }
 0x2fc   :  { %v3686_v58 = vpop.f32.mrb[40].mxu1 }
 0x2fd   :  { %5372 = vst.msk [vmem:[%s7186_s3 + $0x9] sm:$0x1] %vm5362_vm5, %v3686_v58  ;;  %v3762_v54 = vpop.f32.mrb[42].mxu0  ;;  %v5864_v44 = vpop.f32.mrb[41].mxu1 }
 0x2fe   :  { %5373 = vst.msk [vmem:[%s7186_s3 + $0xa] sm:$0x1] %vm5362_vm5, %v3762_v54  ;;  %v5869_v11 = vpop.f32.mrb[43].mxu0 }
 0x300   :  { %v3838_v12 = vpop.f32.mrb[42].mxu1 }
 0x301   :  { %5374 = vst.msk [vmem:[%s7186_s3 + $0xb] sm:$0x1] %vm5362_vm5, %v3838_v12  ;;  %v3914_v49 = vpop.f32.mrb[44].mxu0  ;;  %v5874_v41 = vpop.f32.mrb[43].mxu1 }
 0x302   :  { %5375 = vst.msk [vmem:[%s7186_s3 + $0xc] sm:$0x1] %vm5362_vm5, %v3914_v49  ;;  %v5879_v26 = vpop.f32.mrb[45].mxu0 }
 0x304   :  { %v3990_v16 = vpop.f32.mrb[44].mxu1 }
 0x305   :  { %5376 = vst.msk [vmem:[%s7186_s3 + $0xd] sm:$0x1] %vm5362_vm5, %v3990_v16  ;;  %v4066_v62 = vpop.f32.mrb[46].mxu0  ;;  %v5884_v4 = vpop.f32.mrb[45].mxu1 }
 0x306   :  { %5377 = vst.msk [vmem:[%s7186_s3 + $0xe] sm:$0x1] %vm5362_vm5, %v4066_v62  ;;  %v5889_v24 = vpop.f32.mrb[47].mxu0 }
 0x308   :  { %v4142_v19 = vpop.f32.mrb[46].mxu1 }
 0x309   :  { %5378 = vst.msk [vmem:[%s7186_s3 + $0xf] sm:$0x1] %vm5362_vm5, %v4142_v19  ;;  %v4218_v59 = vpop.f32.mrb[48].mxu0  ;;  %v5894_v27 = vpop.f32.mrb[47].mxu1 }
 0x30a   :  { %5379 = vst.msk [vmem:[%s7186_s3 + $0x10] sm:$0x1] %vm5362_vm5, %v4218_v59  ;;  %v5899_v61 = vpop.f32.mrb[49].mxu0 }
 0x30c   :  { %v4294_v34 = vpop.f32.mrb[48].mxu1 }
 0x30d   :  { %5380 = vst.msk [vmem:[%s7186_s3 + $0x11] sm:$0x1] %vm5362_vm5, %v4294_v34  ;;  %v4370_v9 = vpop.f32.mrb[50].mxu0  ;;  %v5904_v32 = vpop.f32.mrb[49].mxu1 }
 0x30e   :  { %5381 = vst.msk [vmem:[%s7186_s3 + $0x12] sm:$0x1] %vm5362_vm5, %v4370_v9  ;;  %v5909_v40 = vpop.f32.mrb[51].mxu0 }
 0x310   :  { %v4446_v52 = vpop.f32.mrb[50].mxu1 }
 0x311   :  { %5382 = vst.msk [vmem:[%s7186_s3 + $0x13] sm:$0x1] %vm5362_vm5, %v4446_v52  ;;  %v4522_v57 = vpop.f32.mrb[52].mxu0  ;;  %v5914_v33 = vpop.f32.mrb[51].mxu1 }
 0x312   :  { %5383 = vst.msk [vmem:[%s7186_s3 + $0x14] sm:$0x1] %vm5362_vm5, %v4522_v57  ;;  %v5919_v8 = vpop.f32.mrb[53].mxu0 }
 0x314   :  { %v4598_v15 = vpop.f32.mrb[52].mxu1 }
 0x315   :  { %5384 = vst.msk [vmem:[%s7186_s3 + $0x15] sm:$0x1] %vm5362_vm5, %v4598_v15  ;;  %v4674_v25 = vpop.f32.mrb[54].mxu0  ;;  %v5924_v18 = vpop.f32.mrb[53].mxu1 }
 0x316   :  { %5385 = vst.msk [vmem:[%s7186_s3 + $0x16] sm:$0x1] %vm5362_vm5, %v4674_v25  ;;  %v5929_v53 = vpop.f32.mrb[55].mxu0 }
 0x318   :  { %v4750_v37 = vpop.f32.mrb[54].mxu1 }
 0x319   :  { %5386 = vst.msk [vmem:[%s7186_s3 + $0x17] sm:$0x1] %vm5362_vm5, %v4750_v37  ;;  %v4826_v38 = vpop.f32.mrb[56].mxu0  ;;  %v5934_v42 = vpop.f32.mrb[55].mxu1 }
 0x31a   :  { %5387 = vst.msk [vmem:[%s7186_s3 + $0x18] sm:$0x1] %vm5362_vm5, %v4826_v38  ;;  %v5939_v10 = vpop.f32.mrb[57].mxu0 }
 0x31c   :  { %v4902_v31 = vpop.f32.mrb[56].mxu1 }
 0x31d   :  { %5388 = vst.msk [vmem:[%s7186_s3 + $0x19] sm:$0x1] %vm5362_vm5, %v4902_v31  ;;  %v4978_v45 = vpop.f32.mrb[58].mxu0  ;;  %v5944_v3 = vpop.f32.mrb[57].mxu1 }
 0x31e   :  { %5389 = vst.msk [vmem:[%s7186_s3 + $0x1a] sm:$0x1] %vm5362_vm5, %v4978_v45  ;;  %v5949_v23 = vpop.f32.mrb[59].mxu0 }
 0x320   :  { %v5054_v63 = vpop.f32.mrb[58].mxu1 }
 0x321   :  { %5390 = vst.msk [vmem:[%s7186_s3 + $0x1b] sm:$0x1] %vm5362_vm5, %v5054_v63  ;;  %v5130_v30 = vpop.f32.mrb[60].mxu0  ;;  %v5954_v28 = vpop.f32.mrb[59].mxu1 }
 0x322   :  { %5391 = vst.msk [vmem:[%s7186_s3 + $0x1c] sm:$0x1] %vm5362_vm5, %v5130_v30  ;;  %v5959_v7 = vpop.f32.mrb[61].mxu0 }
 0x324   :  { %v5206_v20 = vpop.f32.mrb[60].mxu1 }
 0x325   :  { %5392 = vst.msk [vmem:[%s7186_s3 + $0x1d] sm:$0x1] %vm5362_vm5, %v5206_v20  ;;  %v5282_v6 = vpop.f32.mrb[62].mxu0  ;;  %v5964_v48 = vpop.f32.mrb[61].mxu1 }
 0x326   :  { %5393 = vst.msk [vmem:[%s7186_s3 + $0x1e] sm:$0x1] %vm5362_vm5, %v5282_v6  ;;  %v5969_v22 = vpop.f32.mrb[63].mxu0 }
 0x328   :  { %v5358_v51 = vpop.f32.mrb[62].mxu1 }
 0x329   :  { %5394 = vst.msk [vmem:[%s7186_s3 + $0x1f] sm:$0x1] %vm5362_vm5, %v5358_v51  ;;  %v5974_v5 = vpop.f32.mrb[63].mxu1 }

// kernel: closed_call.183
= control target key start
LH: loop header
LB: loop body
LE: loop exit
PB: predicated region body
PF: predicated region fallthrough
CT: control target
= control target key end

     0   :  { %vm18_vm0 = vcmask 130048   ;;  %vm214_vm1 = vcmask 7168   ;;  %s345_s1 = inlined_call_operand.vmem [shape: f32[16,16], index: 1, kind: input, shape index: {}]   ;;  %s346_s0 = inlined_call_operand.vmem [shape: f32[16,16], index: 0, kind: input, shape index: {}]   ;;  %s347_s2 = inlined_call_operand.vmem [shape: f32[16,1], index: 2, kind: input, shape index: {}]   ;;  %s348_s3 = inlined_call_operand.vmem [shape: f32[16,1], index: 3, kind: output, shape index: {}]  }
   0x1   :  { %v16_v0 = vld [vmem:[%s345_s1] sm:$0xff]  ;;  %v17_v1 = vld [vmem:[%s345_s1 + $0x8] sm:$0xff] }
   0x2   :  { %v14_v2 = vld [vmem:[%s346_s0] sm:$0xff]  ;;  %v275_v3 = vpack.c.bf16 %v17_v1, %v16_v0  ;;  %v15_v4 = vld [vmem:[%s346_s0 + $0x8] sm:$0xff] }
   0x3   :  { %265 = vmatprep.mubr.msk.f32.mxu0 %vm18_vm0, %v14_v2  ;;  %v131_v5 = vld [vmem:[%s347_s2] sm:$0xff]  ;;  %v132_v6 = vld [vmem:[%s347_s2 + $0x8] sm:$0xff] }
   0x4   :  { %276 = vmatprep.subr.bf16.mxu0 %v275_v3  ;;  %v279_v7 = vpack.c.bf16 %v132_v6, %v131_v5 }
   0x5   :  { %278 = vmatpush3.bf16.msra.mxu0 %v275_v3 }
   0x6   :  { %280 = vmatprep.subr.bf16.mxu1 %v279_v7 }
   0x7   :  { %282 = vmatpush3.bf16.msra.mxu1 %v279_v7 }
   0x8   :  { %266 = vmatmul.mubr.msk.f32.vlgmr.msra.gmra.mrb[0].mxu0 %vm18_vm0, %v15_v4 }
  0xdb   :  { %v267_v8 = vpop.f32.mrb[0].mxu0 }
  0xdc   :  { %v101_v9 = vsel %vm18_vm0, %v267_v8, 0.0  ;;  %v91_v10 = vpop.f32.mrb[1].mxu0 }
  0xdd   :  { %v100_v11 = vsel %vm18_vm0, %v91_v10, 0.0 }
  0xde   :  { %v102_v12 = vadd.f32 %v101_v9, %v100_v11 }
  0xe0   :  { %v103_v13 = vrot.slane %v102_v12, 4 }
  0xe2   :  { %v104_v14 = vadd.f32 %v103_v13, %v102_v12 }
  0xe4   :  { %v105_v15 = vrot.slane %v104_v14, 2 }
  0xe6   :  { %v106_v16 = vadd.f32 %v105_v15, %v104_v14 }
  0xe8   :  { %v107_v17 = vrot.slane %v106_v16, 1 }
  0xea   :  { %v108_v18 = vadd.f32 %v107_v17, %v106_v16 }
  0xec   :  { %v110_v19 = vmul.f32 0.0625, %v108_v18 }
  0xee   :  { %v111_v20 = vsub.f32 %v91_v10, %v110_v19  ;;  %v112_v21 = vsub.f32 %v267_v8, %v110_v19 }
  0xf0   :  { %v113_v22 = vmul.f32 %v111_v20, %v111_v20  ;;  %v114_v23 = vmul.f32 %v112_v21, %v112_v21 }
  0xf2   :  { %v115_v24 = vsel %vm18_vm0, %v113_v22, 0.0  ;;  %v116_v25 = vsel %vm18_vm0, %v114_v23, 0.0 }
  0xf3   :  { %v117_v26 = vadd.f32 %v116_v25, %v115_v24 }
  0xf5   :  { %v118_v27 = vrot.slane %v117_v26, 4 }
  0xf7   :  { %v119_v28 = vadd.f32 %v118_v27, %v117_v26 }
  0xf9   :  { %v120_v29 = vrot.slane %v119_v28, 2 }
  0xfb   :  { %v121_v30 = vadd.f32 %v120_v29, %v119_v28 }
  0xfd   :  { %v122_v31 = vrot.slane %v121_v30, 1 }
  0xff   :  { %v123_v32 = vadd.f32 %v122_v31, %v121_v30 }
 0x101   :  { %v124_v33 = vmul.f32 0.0625, %v123_v32 }
 0x103   :  { %v125_v34 = vadd.f32 1e-05, %v124_v33 }
 0x105   :  { %283 = vrsqrt.f32 %v125_v34 }
 0x10f   :  { %v284_v35 = vpop.eup %283 }
 0x110   :  { %v128_v36 = vmul.f32 %v284_v35, %v112_v21  ;;  %v127_v37 = vmul.f32 %v284_v35, %v111_v20 }
 0x112   :  { %v130_v38 = vmax.f32 %v128_v36, 0.0  ;;  %v129_v39 = vmax.f32 %v127_v37, 0.0 }
 0x114   :  { %272 = vmatprep.mubr.msk.f32.mxu1 %vm18_vm0, %v129_v39 }
 0x115   :  { %273 = vmatmul.mubr.msk.f32.vlgmr.msra.gmra.mrb[0].mxu1 %vm18_vm0, %v130_v38 }
 0x1e8   :  { %v274_v40 = vpop.f32.mrb[0].mxu1 }
 0x1e9   :  { %v216_v41 = vsel %vm214_vm1, %v274_v40, 0.0  ;;  %v205_v42 = vpop.f32.mrb[1].mxu1 }
 0x1ea   :  { %v215_v43 = vsel %vm214_vm1, %v205_v42, 0.0 }
 0x1eb   :  { %v217_v44 = vadd.f32 %v216_v41, %v215_v43 }
 0x1ed   :  { %v218_v45 = vrot.slane %v217_v44, 4 }
 0x1ef   :  { %v219_v46 = vadd.f32 %v218_v45, %v217_v44 }
 0x1f1   :  { %v220_v47 = vrot.slane %v219_v46, 2 }
 0x1f3   :  { %v221_v48 = vadd.f32 %v220_v47, %v219_v46 }
 0x1f5   :  { %v222_v49 = vrot.slane %v221_v48, 1 }
 0x1f7   :  { %v223_v50 = vadd.f32 %v222_v49, %v221_v48 }
 0x1f9   :  { %v224_v51 = vmul.f32 0.0625, %v223_v50 }
 0x1fb   :  { %v225_v52 = vsub.f32 %v205_v42, %v224_v51  ;;  %v226_v53 = vsub.f32 %v274_v40, %v224_v51 }
 0x1fd   :  { %v227_v54 = vmul.f32 %v225_v52, %v225_v52  ;;  %v228_v55 = vmul.f32 %v226_v53, %v226_v53 }
 0x1ff   :  { %v229_v56 = vsel %vm214_vm1, %v227_v54, 0.0  ;;  %v230_v57 = vsel %vm214_vm1, %v228_v55, 0.0 }
 0x200   :  { %v231_v58 = vadd.f32 %v230_v57, %v229_v56 }
 0x202   :  { %v232_v59 = vrot.slane %v231_v58, 4 }
 0x204   :  { %v233_v60 = vadd.f32 %v232_v59, %v231_v58 }
 0x206   :  { %v234_v61 = vrot.slane %v233_v60, 2 }
 0x208   :  { %v235_v62 = vadd.f32 %v234_v61, %v233_v60 }
 0x20a   :  { %v236_v63 = vrot.slane %v235_v62, 1 }
 0x20c   :  { %v237_v0 = vadd.f32 %v236_v63, %v235_v62 }
 0x20e   :  { %v238_v1 = vmul.f32 0.0625, %v237_v0 }
 0x210   :  { %v239_v2 = vadd.f32 1e-05, %v238_v1 }
 0x212   :  { %285 = vrsqrt.f32 %v239_v2 }
 0x21c   :  { %v286_v3 = vpop.eup %285 }
 0x21d   :  { %v241_v4 = vmul.f32 %v286_v3, %v225_v52  ;;  %v242_v5 = vmul.f32 %v286_v3, %v226_v53 }
 0x21f   :  { %243 = vst.msk [vmem:[%s348_s3] sm:$0xff] %vm214_vm1, %v241_v4  ;;  %244 = vst.msk [vmem:[%s348_s3 + $0x8] sm:$0xff] %vm214_vm1, %v242_v5 }

// kernel: closed_call.182
= control target key start
LH: loop header
LB: loop body
LE: loop exit
PB: predicated region body
PF: predicated region fallthrough
CT: control target
= control target key end

     0   :  { %vm29_vm0 = vcmask 130048   ;;  %s706_s2 = inlined_call_operand.vmem [shape: f32[16,16], index: 2, kind: input, shape index: {}]   ;;  %s707_s3 = inlined_call_operand.vmem [shape: f32[16,16], index: 3, kind: input, shape index: {}]   ;;  %s708_s0 = inlined_call_operand.vmem [shape: f32[16,16], index: 0, kind: input, shape index: {}]   ;;  %s709_s1 = inlined_call_operand.vmem [shape: f32[16,16], index: 1, kind: input, shape index: {}]   ;;  %s710_s4 = inlined_call_operand.vmem [shape: f32[16,16], index: 4, kind: input, shape index: {}]   ;;  %s711_s5 = inlined_call_operand.vmem [shape: f32[16,16], index: 5, kind: input, shape index: {}]   ;;  %s712_s6 = inlined_call_operand.vmem [shape: f32[16,16], index: 6, kind: output, shape index: {}]  }
   0x1   :  { %v27_v0 = vld [vmem:[%s706_s2] sm:$0xff]  ;;  %v28_v1 = vld [vmem:[%s706_s2 + $0x8] sm:$0xff] }
   0x2   :  { %v140_v2 = vld [vmem:[%s707_s3] sm:$0xff]  ;;  %v555_v3 = vpack.c.bf16 %v28_v1, %v27_v0  ;;  %v141_v4 = vld [vmem:[%s707_s3 + $0x8] sm:$0xff] }
   0x3   :  { %v637_v5 = vld [vmem:[%s708_s0] sm:$0xff]  ;;  %v559_v6 = vpack.c.bf16 %v141_v4, %v140_v2  ;;  %v651_v8 = vld [vmem:[%s708_s0 + $0x8] sm:$0xff] }
   0x4   :  { %531 = vmatprep.mubr.msk.f32.mxu0 %vm29_vm0, %v637_v5  ;;  %v644_v7 = vld [vmem:[%s709_s1] sm:$0xff]  ;;  %556 = vmatprep.subr.bf16.mxu0 %v555_v3  ;;  %v656_v9 = vld [vmem:[%s709_s1 + $0x8] sm:$0xff] }
   0x5   :  { %538 = vmatprep.mubr.msk.f32.mxu1 %vm29_vm0, %v644_v7  ;;  %560 = vmatprep.subr.bf16.mxu1 %v559_v6  ;;  %v273_v10 = vld [vmem:[%s710_s4] sm:$0xff]  ;;  %v274_v11 = vld [vmem:[%s710_s4 + $0x8] sm:$0xff] }
   0x6   :  { %558 = vmatpush3.bf16.msra.mxu0 %v555_v3  ;;  %562 = vmatpush3.bf16.msra.mxu1 %v559_v6  ;;  %v563_v12 = vpack.c.bf16 %v274_v11, %v273_v10 }
   0x8   :  { %564 = vmatprep.subr.bf16.mxu0 %v563_v12 }
   0x9   :  { %532 = vmatmul.mubr.msk.f32.vlgmr.msra.gmra.mrb[0].mxu0 %vm29_vm0, %v651_v8  ;;  %539 = vmatmul.mubr.msk.f32.vlgmr.msra.gmra.mrb[0].mxu1 %vm29_vm0, %v656_v9 }
   0xa   :  { %566 = vmatpush3.bf16.msra.mxu0 %v563_v12 }
  0xdc   :  { %v533_v13 = vpop.f32.mrb[0].mxu0  ;;  %v540_v15 = vpop.f32.mrb[0].mxu1 }
  0xdd   :  { %v112_v14 = vsel %vm29_vm0, %v533_v13, 0.0  ;;  %v102_v16 = vpop.f32.mrb[1].mxu0  ;;  %v224_v17 = vsel %vm29_vm0, %v540_v15, 0.0  ;;  %v214_v19 = vpop.f32.mrb[1].mxu1 }
  0xde   :  { %v111_v18 = vsel %vm29_vm0, %v102_v16, 0.0  ;;  %v223_v21 = vsel %vm29_vm0, %v214_v19, 0.0 }
  0xdf   :  { %v113_v20 = vadd.f32 %v112_v14, %v111_v18  ;;  %v225_v22 = vadd.f32 %v224_v17, %v223_v21 }
  0xe1   :  { %v114_v23 = vrot.slane %v113_v20, 4  ;;  %v226_v24 = vrot.slane %v225_v22, 4 }
  0xe3   :  { %v115_v25 = vadd.f32 %v114_v23, %v113_v20  ;;  %v227_v26 = vadd.f32 %v226_v24, %v225_v22 }
  0xe5   :  { %v116_v27 = vrot.slane %v115_v25, 2  ;;  %v228_v28 = vrot.slane %v227_v26, 2 }
  0xe7   :  { %v117_v29 = vadd.f32 %v116_v27, %v115_v25  ;;  %v229_v30 = vadd.f32 %v228_v28, %v227_v26 }
  0xe9   :  { %v118_v31 = vrot.slane %v117_v29, 1  ;;  %v230_v32 = vrot.slane %v229_v30, 1 }
  0xeb   :  { %v119_v33 = vadd.f32 %v118_v31, %v117_v29  ;;  %v231_v34 = vadd.f32 %v230_v32, %v229_v30 }
  0xed   :  { %v121_v35 = vmul.f32 0.0625, %v119_v33  ;;  %v232_v36 = vmul.f32 0.0625, %v231_v34  ;;  %v386_v33 = vld [vmem:[%s711_s5] sm:$0xff] }
  0xef   :  { %v122_v37 = vsub.f32 %v102_v16, %v121_v35  ;;  %v123_v38 = vsub.f32 %v533_v13, %v121_v35  ;;  %v233_v39 = vsub.f32 %v214_v19, %v232_v36  ;;  %v234_v40 = vsub.f32 %v540_v15, %v232_v36 }
  0xf1   :  { %v124_v41 = vmul.f32 %v122_v37, %v122_v37  ;;  %v125_v42 = vmul.f32 %v123_v38, %v123_v38  ;;  %v235_v43 = vmul.f32 %v233_v39, %v233_v39  ;;  %v236_v44 = vmul.f32 %v234_v40, %v234_v40 }
  0xf3   :  { %v126_v45 = vsel %vm29_vm0, %v124_v41, 0.0  ;;  %v127_v46 = vsel %vm29_vm0, %v125_v42, 0.0  ;;  %v237_v48 = vsel %vm29_vm0, %v235_v43, 0.0  ;;  %v238_v49 = vsel %vm29_vm0, %v236_v44, 0.0 }
  0xf4   :  { %v128_v47 = vadd.f32 %v127_v46, %v126_v45  ;;  %v239_v50 = vadd.f32 %v238_v49, %v237_v48 }
  0xf6   :  { %v129_v51 = vrot.slane %v128_v47, 4  ;;  %v240_v52 = vrot.slane %v239_v50, 4 }
  0xf8   :  { %v130_v53 = vadd.f32 %v129_v51, %v128_v47  ;;  %v241_v54 = vadd.f32 %v240_v52, %v239_v50 }
  0xfa   :  { %v131_v55 = vrot.slane %v130_v53, 2  ;;  %v242_v56 = vrot.slane %v241_v54, 2 }
  0xfc   :  { %v132_v57 = vadd.f32 %v131_v55, %v130_v53  ;;  %v243_v58 = vadd.f32 %v242_v56, %v241_v54 }
  0xfe   :  { %v133_v59 = vrot.slane %v132_v57, 1  ;;  %v244_v60 = vrot.slane %v243_v58, 1 }
 0x100   :  { %v134_v61 = vadd.f32 %v133_v59, %v132_v57  ;;  %v245_v62 = vadd.f32 %v244_v60, %v243_v58 }
 0x102   :  { %v135_v63 = vmul.f32 0.0625, %v134_v61  ;;  %v246_v0 = vmul.f32 0.0625, %v245_v62 }
 0x104   :  { %v136_v1 = vadd.f32 1e-05, %v135_v63  ;;  %v247_v2 = vadd.f32 1e-05, %v246_v0 }
 0x106   :  { %571 = vrsqrt.f32 %v136_v1 }
 0x107   :  { %573 = vrsqrt.f32 %v247_v2 }
 0x110   :  { %v572_v3 = vpop.eup %571 }
 0x111   :  { %v574_v4 = vpop.eup %573  ;;  %v138_v6 = vmul.f32 %v572_v3, %v122_v37  ;;  %v139_v10 = vmul.f32 %v572_v3, %v123_v38 }
 0x112   :  { %v249_v11 = vmul.f32 %v574_v4, %v233_v39  ;;  %v250_v12 = vmul.f32 %v574_v4, %v234_v40 }
 0x114   :  { %v251_v13 = vadd.f32 %v249_v11, %v138_v6  ;;  %v252_v14 = vadd.f32 %v250_v12, %v139_v10 }
 0x116   :  { %v253_v15 = vsub.f32 0.0, %v251_v13  ;;  %v254_v16 = vsub.f32 0.0, %v252_v14 }
 0x118   :  { %v255_v17 = vmul.f32 1.442695, %v253_v15  ;;  %v257_v18 = vmul.f32 1.442695, %v254_v16 }
 0x11a   :  { %575 = vpow2.f32 %v255_v17 }
 0x11b   :  { %577 = vpow2.f32 %v257_v18 }
 0x124   :  { %v576_v19 = vpop.eup %575 }
 0x125   :  { %v578_v20 = vpop.eup %577  ;;  %v259_v21 = vadd.f32 1.0, %v576_v19 }
 0x126   :  { %v260_v22 = vadd.f32 1.0, %v578_v20 }
 0x127   :  { %579 = vrcp.f32 %v259_v21 }
 0x128   :  { %581 = vrcp.f32 %v260_v22 }
 0x131   :  { %v580_v23 = vpop.eup %579 }
 0x132   :  { %v582_v24 = vpop.eup %581  ;;  %v267_v25 = vsub.f32 1.0, %v580_v23  ;;  %v265_v27 = vmul.f32 %v580_v23, %v637_v5  ;;  %v387_v5 = vld [vmem:[%s711_s5 + $0x8] sm:$0xff] }
 0x133   :  { %v268_v26 = vsub.f32 1.0, %v582_v24  ;;  %v266_v29 = vmul.f32 %v582_v24, %v651_v8  ;;  %v567_v34 = vpack.c.bf16 %v387_v5, %v386_v33 }
 0x134   :  { %v269_v28 = vmul.f32 %v267_v25, %v644_v7 }
 0x135   :  { %v270_v30 = vmul.f32 %v268_v26, %v656_v9  ;;  %568 = vmatprep.subr.bf16.mxu1 %v567_v34 }
 0x136   :  { %v271_v31 = vadd.f32 %v269_v28, %v265_v27  ;;  %570 = vmatpush3.bf16.msra.mxu1 %v567_v34 }
 0x137   :  { %v272_v32 = vadd.f32 %v270_v30, %v266_v29 }
 0x138   :  { %545 = vmatprep.mubr.msk.f32.mxu0 %vm29_vm0, %v271_v31 }
 0x139   :  { %546 = vmatmul.mubr.msk.f32.vlgmr.msra.gmra.mrb[2].mxu0 %vm29_vm0, %v272_v32 }
 0x20c   :  { %v547_v7 = vpop.f32.mrb[2].mxu0 }
 0x20d   :  { %v357_v8 = vsel %vm29_vm0, %v547_v7, 0.0  ;;  %v347_v9 = vpop.f32.mrb[3].mxu0 }
 0x20e   :  { %v356_v35 = vsel %vm29_vm0, %v347_v9, 0.0 }
 0x20f   :  { %v358_v36 = vadd.f32 %v357_v8, %v356_v35 }
 0x211   :  { %v359_v37 = vrot.slane %v358_v36, 4 }
 0x213   :  { %v360_v38 = vadd.f32 %v359_v37, %v358_v36 }
 0x215   :  { %v361_v39 = vrot.slane %v360_v38, 2 }
 0x217   :  { %v362_v40 = vadd.f32 %v361_v39, %v360_v38 }
 0x219   :  { %v363_v41 = vrot.slane %v362_v40, 1 }
 0x21b   :  { %v364_v42 = vadd.f32 %v363_v41, %v362_v40 }
 0x21d   :  { %v365_v43 = vmul.f32 0.0625, %v364_v42 }
 0x21f   :  { %v366_v44 = vsub.f32 %v347_v9, %v365_v43  ;;  %v367_v45 = vsub.f32 %v547_v7, %v365_v43 }
 0x221   :  { %v368_v46 = vmul.f32 %v366_v44, %v366_v44  ;;  %v369_v47 = vmul.f32 %v367_v45, %v367_v45 }
 0x223   :  { %v370_v48 = vsel %vm29_vm0, %v368_v46, 0.0  ;;  %v371_v49 = vsel %vm29_vm0, %v369_v47, 0.0 }
 0x224   :  { %v372_v50 = vadd.f32 %v371_v49, %v370_v48 }
 0x226   :  { %v373_v51 = vrot.slane %v372_v50, 4 }
 0x228   :  { %v374_v52 = vadd.f32 %v373_v51, %v372_v50 }
 0x22a   :  { %v375_v53 = vrot.slane %v374_v52, 2 }
 0x22c   :  { %v376_v54 = vadd.f32 %v375_v53, %v374_v52 }
 0x22e   :  { %v377_v55 = vrot.slane %v376_v54, 1 }
 0x230   :  { %v378_v56 = vadd.f32 %v377_v55, %v376_v54 }
 0x232   :  { %v379_v57 = vmul.f32 0.0625, %v378_v56 }
 0x234   :  { %v380_v58 = vadd.f32 1e-05, %v379_v57 }
 0x236   :  { %583 = vrsqrt.f32 %v380_v58 }
 0x240   :  { %v584_v59 = vpop.eup %583 }
 0x241   :  { %v382_v60 = vmul.f32 %v584_v59, %v366_v44  ;;  %v383_v61 = vmul.f32 %v584_v59, %v367_v45 }
 0x243   :  { %v384_v62 = vmax.f32 %v382_v60, 0.0  ;;  %v385_v63 = vmax.f32 %v383_v61, 0.0 }
 0x245   :  { %552 = vmatprep.mubr.msk.f32.mxu1 %vm29_vm0, %v384_v62 }
 0x246   :  { %553 = vmatmul.mubr.msk.f32.vlgmr.msra.gmra.mrb[2].mxu1 %vm29_vm0, %v385_v63 }
 0x319   :  { %v554_v0 = vpop.f32.mrb[2].mxu1 }
 0x31a   :  { %v470_v1 = vsel %vm29_vm0, %v554_v0, 0.0  ;;  %v460_v2 = vpop.f32.mrb[3].mxu1 }
 0x31b   :  { %v469_v3 = vsel %vm29_vm0, %v460_v2, 0.0 }
 0x31c   :  { %v471_v4 = vadd.f32 %v470_v1, %v469_v3 }
 0x31e   :  { %v472_v6 = vrot.slane %v471_v4, 4 }
 0x320   :  { %v473_v10 = vadd.f32 %v472_v6, %v471_v4 }
 0x322   :  { %v474_v11 = vrot.slane %v473_v10, 2 }
 0x324   :  { %v475_v12 = vadd.f32 %v474_v11, %v473_v10 }
 0x326   :  { %v476_v13 = vrot.slane %v475_v12, 1 }
 0x328   :  { %v477_v14 = vadd.f32 %v476_v13, %v475_v12 }
 0x32a   :  { %v478_v15 = vmul.f32 0.0625, %v477_v14 }
 0x32c   :  { %v479_v16 = vsub.f32 %v460_v2, %v478_v15  ;;  %v480_v17 = vsub.f32 %v554_v0, %v478_v15 }
 0x32e   :  { %v481_v18 = vmul.f32 %v479_v16, %v479_v16  ;;  %v482_v19 = vmul.f32 %v480_v17, %v480_v17 }
 0x330   :  { %v483_v20 = vsel %vm29_vm0, %v481_v18, 0.0  ;;  %v484_v21 = vsel %vm29_vm0, %v482_v19, 0.0 }
 0x331   :  { %v485_v22 = vadd.f32 %v484_v21, %v483_v20 }
 0x333   :  { %v486_v23 = vrot.slane %v485_v22, 4 }
 0x335   :  { %v487_v24 = vadd.f32 %v486_v23, %v485_v22 }
 0x337   :  { %v488_v25 = vrot.slane %v487_v24, 2 }
 0x339   :  { %v489_v26 = vadd.f32 %v488_v25, %v487_v24 }
 0x33b   :  { %v490_v27 = vrot.slane %v489_v26, 1 }
 0x33d   :  { %v491_v28 = vadd.f32 %v490_v27, %v489_v26 }
 0x33f   :  { %v492_v29 = vmul.f32 0.0625, %v491_v28 }
 0x341   :  { %v493_v30 = vadd.f32 1e-05, %v492_v29 }
 0x343   :  { %585 = vrsqrt.f32 %v493_v30 }
 0x34d   :  { %v586_v31 = vpop.eup %585 }
 0x34e   :  { %v495_v32 = vmul.f32 %v586_v31, %v479_v16  ;;  %v496_v33 = vmul.f32 %v586_v31, %v480_v17 }
 0x350   :  { %497 = vst.msk [vmem:[%s712_s6] sm:$0xff] %vm29_vm0, %v495_v32  ;;  %498 = vst.msk [vmem:[%s712_s6 + $0x8] sm:$0xff] %vm29_vm0, %v496_v33 }

</bundles_post_ra>
